<compile_context>
chip_gen: v7x
topology: tpu7x:2x2x1
jax: 0.10.0
libtpu: 0.0.40
codegen_flags: <defaults>
</compile_context>

<pallas_src>
import functools
import math

import jax
import jax.numpy as jnp
from jax import lax
from jax.experimental import pallas as pl
from jax.experimental.pallas import tpu as pltpu

EPS = 1e-5
LANE = 128
CDTYPE = jnp.bfloat16        # matmul-operand / inter-stage activation dtype


# ----------------------------------------------------------------------------
# helpers
# ----------------------------------------------------------------------------
def _round_up(x, m):
    return (x + m - 1) // m * m


def _pad_to(x, shape):
    pads = [(0, t - s) for s, t in zip(x.shape, shape)]
    if not any(p for _, p in pads):
        return x
    return jnp.pad(x, pads)


def _bytes(shape, dtype):
    return math.prod(shape) * jnp.dtype(dtype).itemsize


def _pick_tiling(m):
    """Return (tile_m, m_pad): prefer large exact-divisor tiles (no padded
    rows); otherwise a cdiv grid over zero-padded rows (tail masked in-kernel)."""
    for t in (1024, 512, 256, 128):
        if m % t == 0 and m // t >= 2:
            return t, m
    if m <= 512:                       # tiny input: one padded tile
        t = _round_up(m, 8)
        return t, t
    t = 512
    return t, _round_up(m, t)


def _pick_row_tile(h, w):
    # keep the 3x3-conv f32 accumulator at <= ~128 output rows per tile
    return max(1, min(h, 128 // max(w, 1)))


def _cparams(block_bytes, scratch_bytes=0):
    """Parallel 1-D grid + explicit VMEM budget for the double-buffered blocks."""
    vmem = int(2.5 * block_bytes) + int(1.25 * scratch_bytes) + (2 << 20)
    vmem = max(16 << 20, min(vmem, 64 << 20))   # stay under v7x physical VMEM
    return pltpu.CompilerParams(dimension_semantics=("parallel",),
                                vmem_limit_bytes=vmem)


def _bn_fold(psum, psumsq, gamma, beta, count):
    """Reduce per-tile partials -> fold BN into per-channel scale/bias (f32)."""
    s = jnp.sum(psum, axis=(0, 1))
    ss = jnp.sum(psumsq, axis=(0, 1))
    mean = s / count
    var = jnp.maximum(ss / count - mean * mean, 0.0)   # biased (training) var
    scale = gamma * lax.rsqrt(var + EPS)
    bias = beta - mean * scale
    return scale.reshape(1, -1), bias.reshape(1, -1)


# ----------------------------------------------------------------------------
# Pallas kernels
# ----------------------------------------------------------------------------
def _mm_stats_kernel(x_ref, w_ref, y_ref, s_ref, ss_ref):
    """conv1 (1x1) as matmul (bf16 in, f32 acc) + per-tile BN1 partial stats."""
    y = jnp.dot(x_ref[...], w_ref[...], preferred_element_type=jnp.float32)
    y_ref[...] = y.astype(y_ref.dtype)
    s_ref[...] = jnp.sum(y, axis=0, keepdims=True)[None]
    ss_ref[...] = jnp.sum(y * y, axis=0, keepdims=True)[None]


def _bn1_conv3x3_stats_kernel(y1_ref, sc_ref, b_ref, w_ref,
                              y2_ref, s_ref, ss_ref, xpad_ref,
                              *, H, W, d, col0, rt):
    """Fused BN1-apply + ReLU + 3x3 dilated conv (stride 1) + BN2 partial stats.

    One image per grid step.  The BN1-applied activation is written into a
    zero-initialised VMEM scratch at row offset d (major dim) / sublane-aligned
    column offset col0, so the spatially padded image never touches HBM.  The
    conv is 3 accumulating MXU dots per row tile (K = 3*C via lane-concat of
    the 3 column-shifted windows), row-tiled so the f32 accumulator stays small.
    """
    C = y1_ref.shape[-1]
    Cout = w_ref.shape[-1]
    hact = jnp.maximum(y1_ref[...].astype(jnp.float32) * sc_ref[...]
                       + b_ref[...], 0.0).astype(xpad_ref.dtype)
    # Zero the whole scratch every step (scratch persists across grid steps and
    # "parallel" may shard steps across cores, so a zero-once init is unsafe).
    xpad_ref[...] = jnp.zeros_like(xpad_ref)
    xpad_ref[d:d + H, col0:col0 + W, :] = hact          # aligned interior store

    s = jnp.zeros((1, Cout), jnp.float32)
    ss = jnp.zeros((1, Cout), jnp.float32)
    for r0 in range(0, H, rt):                          # static row tiling
        rr = min(rt, H - r0)
        acc = jnp.zeros((rr * W, Cout), jnp.float32)
        for ky in range(3):                             # 3 dots, K = 3*C each
            wins = [xpad_ref[r0 + ky * d:r0 + ky * d + rr,
                             col0 - d + kx * d:col0 - d + kx * d + W, :]
                    .reshape(rr * W, C) for kx in range(3)]
            acc = acc + jnp.dot(jnp.concatenate(wins, axis=-1), w_ref[ky],
                                preferred_element_type=jnp.float32)
        y2_ref[r0 * W:(r0 + rr) * W, :] = acc.astype(y2_ref.dtype)
        s = s + jnp.sum(acc, axis=0, keepdims=True)
        ss = ss + jnp.sum(acc * acc, axis=0, keepdims=True)
    s_ref[...] = s[None]
    ss_ref[...] = ss[None]


def _bn2_mm_stats_kernel(y_ref, sc_ref, b_ref, w_ref, o_ref, s_ref, ss_ref,
                         *, tile_m, m_valid, mask_rows):
    """Fused BN2-apply + ReLU + conv3 (1x1) matmul + BN3 partial stats."""
    h = jnp.maximum(y_ref[...].astype(jnp.float32) * sc_ref[...]
                    + b_ref[...], 0.0)
    if mask_rows:   # cdiv-grid tail: zero padded rows so BN3 stats stay exact
        row = (pl.program_id(0) * tile_m
               + lax.broadcasted_iota(jnp.int32, h.shape, 0))
        h = jnp.where(row < m_valid, h, 0.0)
    y = jnp.dot(h.astype(w_ref.dtype), w_ref[...],
                preferred_element_type=jnp.float32)
    o_ref[...] = y.astype(o_ref.dtype)
    s_ref[...] = jnp.sum(y, axis=0, keepdims=True)[None]
    ss_ref[...] = jnp.sum(y * y, axis=0, keepdims=True)[None]


def _bn3_add_relu_kernel(y_ref, sc_ref, b_ref, r_ref, o_ref):
    """BN3 apply + residual add + ReLU (f32 output)."""
    o_ref[...] = jnp.maximum(
        y_ref[...].astype(jnp.float32) * sc_ref[...] + b_ref[...]
        + r_ref[...].astype(jnp.float32), 0.0).astype(o_ref.dtype)


# ----------------------------------------------------------------------------
# Bottleneck forward, NHWC core
# ----------------------------------------------------------------------------
def bottleneck_forward_nhwc(x_nhwc, params, dilation=1):
    n, h, w, cin = x_nhwc.shape
    m = n * h * w
    d = int(dilation)
    planes = params["w1"].shape[0]
    cout = 4 * planes
    if cin != cout:
        raise ValueError(
            "residual add without downsample requires inplanes == 4*planes")

    f32 = jnp.float32
    cin_p = _round_up(cin, LANE)
    mid_p = _round_up(planes, LANE)
    cout_p = _round_up(cout, LANE)          # == cin_p since cin == cout
    # TODO(synk): for narrow layers (cin << 128, as in the demo) the lane
    #             padding inflates HBM/MXU work; real ResNet channel counts
    #             (256..2048) are multiples of 128 so it is free there.

    tile_m, m_pad = _pick_tiling(m)
    nt = m_pad // tile_m
    rt = _pick_row_tile(h, w)
    col0 = _round_up(max(d, 1), 8)          # sublane-aligned column offset

    # bf16 lane-dense operands.  Padded channels / rows carry zeros end-to-end
    # (weights, gamma, beta padded with 0), so slicing them off is exact.
    x2d = _pad_to(x_nhwc.reshape(m, cin), (m_pad, cin_p)).astype(CDTYPE)
    w1 = _pad_to(params["w1"][:, :, 0, 0].T, (cin_p, mid_p)).astype(CDTYPE)
    w2 = _pad_to(jnp.transpose(params["w2"], (2, 3, 1, 0)),
                 (3, 3, mid_p, mid_p)).reshape(3, 3 * mid_p, mid_p).astype(CDTYPE)
    w3 = _pad_to(params["w3"][:, :, 0, 0].T, (mid_p, cout_p)).astype(CDTYPE)
    g1 = _pad_to(params["g1"].astype(f32), (mid_p,))
    b1 = _pad_to(params["b1"].astype(f32), (mid_p,))
    g2 = _pad_to(params["g2"].astype(f32), (mid_p,))
    b2 = _pad_to(params["b2"].astype(f32), (mid_p,))
    g3 = _pad_to(params["g3"].astype(f32), (cout_p,))
    b3 = _pad_to(params["b3"].astype(f32), (cout_p,))

    # ---- Stage 1: conv1 (1x1) matmul + BN1 partial stats (tiled over M) -----
    bs1 = (_bytes((tile_m, cin_p), CDTYPE) + _bytes((cin_p, mid_p), CDTYPE)
           + _bytes((tile_m, mid_p), CDTYPE) + 2 * _bytes((1, 1, mid_p), f32))
    y1, s1, ss1 = pl.pallas_call(
        _mm_stats_kernel,
        grid=(nt,),
        in_specs=[pl.BlockSpec((tile_m, cin_p), lambda i: (i, 0)),
                  pl.BlockSpec((cin_p, mid_p), lambda i: (0, 0))],
        out_specs=[pl.BlockSpec((tile_m, mid_p), lambda i: (i, 0)),
                   pl.BlockSpec((1, 1, mid_p), lambda i: (i, 0, 0)),
                   pl.BlockSpec((1, 1, mid_p), lambda i: (i, 0, 0))],
        out_shape=[jax.ShapeDtypeStruct((m_pad, mid_p), CDTYPE),
                   jax.ShapeDtypeStruct((nt, 1, mid_p), f32),
                   jax.ShapeDtypeStruct((nt, 1, mid_p), f32)],
        compiler_params=_cparams(bs1),
    )(x2d, w1)
    sc1, bi1 = _bn_fold(s1, ss1, g1, b1, m)

    # ---- Stage 2: fused BN1-apply + ReLU + conv2 (3x3, dilated) + BN2 stats -
    # One image per grid step; spatial padding lives only in a VMEM scratch.
    # TODO(synk): for very large H*W (or small batch on v7x megacore), add an
    #             H-tile grid axis with a +2*d halo instead of whole images.
    y1_img = (y1 if m_pad == m else y1[:m]).reshape(n, h, w, mid_p)
    hp, wp = h + 2 * d, col0 + w + d
    scratch_bytes = _bytes((hp, wp, mid_p), CDTYPE)
    bs2 = (_bytes((h, w, mid_p), CDTYPE) + 2 * _bytes((1, mid_p), f32)
           + _bytes((3, 3 * mid_p, mid_p), CDTYPE)
           + _bytes((h * w, mid_p), CDTYPE) + 2 * _bytes((1, 1, mid_p), f32))
    conv2 = functools.partial(_bn1_conv3x3_stats_kernel,
                              H=h, W=w, d=d, col0=col0, rt=rt)
    y2, s2, ss2 = pl.pallas_call(
        conv2,
        grid=(n,),
        in_specs=[pl.BlockSpec((None, h, w, mid_p), lambda b: (b, 0, 0, 0)),
                  pl.BlockSpec((1, mid_p), lambda b: (0, 0)),
                  pl.BlockSpec((1, mid_p), lambda b: (0, 0)),
                  pl.BlockSpec((3, 3 * mid_p, mid_p), lambda b: (0, 0, 0))],
        out_specs=[pl.BlockSpec((h * w, mid_p), lambda b: (b, 0)),
                   pl.BlockSpec((1, 1, mid_p), lambda b: (b, 0, 0)),
                   pl.BlockSpec((1, 1, mid_p), lambda b: (b, 0, 0))],
        out_shape=[jax.ShapeDtypeStruct((m_pad, mid_p), CDTYPE),
                   jax.ShapeDtypeStruct((n, 1, mid_p), f32),
                   jax.ShapeDtypeStruct((n, 1, mid_p), f32)],
        scratch_shapes=[pltpu.VMEM((hp, wp, mid_p), CDTYPE)],
        compiler_params=_cparams(bs2, scratch_bytes),
    )(y1_img, sc1, bi1, w2)
    sc2, bi2 = _bn_fold(s2, ss2, g2, b2, m)

    # ---- Stage 3: fused BN2-apply + ReLU + conv3 (1x1) matmul + BN3 stats ---
    bs3 = (_bytes((tile_m, mid_p), CDTYPE) + 2 * _bytes((1, mid_p), f32)
           + _bytes((mid_p, cout_p), CDTYPE)
           + _bytes((tile_m, cout_p), CDTYPE) + 2 * _bytes((1, 1, cout_p), f32))
    k3 = functools.partial(_bn2_mm_stats_kernel, tile_m=tile_m, m_valid=m,
                           mask_rows=(m_pad != m))
    y3, s3, ss3 = pl.pallas_call(
        k3,
        grid=(nt,),
        in_specs=[pl.BlockSpec((tile_m, mid_p), lambda i: (i, 0)),
                  pl.BlockSpec((1, mid_p), lambda i: (0, 0)),
                  pl.BlockSpec((1, mid_p), lambda i: (0, 0)),
                  pl.BlockSpec((mid_p, cout_p), lambda i: (0, 0))],
        out_specs=[pl.BlockSpec((tile_m, cout_p), lambda i: (i, 0)),
                   pl.BlockSpec((1, 1, cout_p), lambda i: (i, 0, 0)),
                   pl.BlockSpec((1, 1, cout_p), lambda i: (i, 0, 0))],
        out_shape=[jax.ShapeDtypeStruct((m_pad, cout_p), CDTYPE),
                   jax.ShapeDtypeStruct((nt, 1, cout_p), f32),
                   jax.ShapeDtypeStruct((nt, 1, cout_p), f32)],
        compiler_params=_cparams(bs3),
    )(y2, sc2, bi2, w3)
    sc3, bi3 = _bn_fold(s3, ss3, g3, b3, m)

    # ---- Stage 4: BN3 apply + residual add + ReLU (tiled over M, f32 out) ---
    bs4 = (2 * _bytes((tile_m, cout_p), CDTYPE) + 2 * _bytes((1, cout_p), f32)
           + _bytes((tile_m, cout_p), f32))
    out = pl.pallas_call(
        _bn3_add_relu_kernel,
        grid=(nt,),
        in_specs=[pl.BlockSpec((tile_m, cout_p), lambda i: (i, 0)),
                  pl.BlockSpec((1, cout_p), lambda i: (0, 0)),
                  pl.BlockSpec((1, cout_p), lambda i: (0, 0)),
                  pl.BlockSpec((tile_m, cout_p), lambda i: (i, 0))],
        out_specs=pl.BlockSpec((tile_m, cout_p), lambda i: (i, 0)),
        out_shape=jax.ShapeDtypeStruct((m_pad, cout_p), f32),
        compiler_params=_cparams(bs4),
    )(y3, sc3, bi3, x2d)

    return out[:m, :cout].reshape(n, h, w, cout)


# ----------------------------------------------------------------------------
# PyTorch-compatible NCHW entry point (transposes are glue; prefer the NHWC
# entry point in an NHWC pipeline).
# ----------------------------------------------------------------------------
@functools.partial(jax.jit, static_argnames=("dilation",))
def bottleneck_forward(x_nchw, params, dilation=1):
    x = jnp.transpose(x_nchw, (0, 2, 3, 1))          # -> NHWC
    out = bottleneck_forward_nhwc(x, params, dilation)
    return jnp.transpose(out, (0, 3, 1, 2))          # -> NCHW


# ----------------------------------------------------------------------------
# Pure-JAX f32 reference (NCHW convs + training-mode BN) for verification.
# ----------------------------------------------------------------------------
def bottleneck_reference(x, params, dilation=1):
    dn = ("NCHW", "OIHW", "NCHW")

    def bn(y, g, b):
        mean = jnp.mean(y, axis=(0, 2, 3), keepdims=True)
        var = jnp.mean((y - mean) ** 2, axis=(0, 2, 3), keepdims=True)
        return ((y - mean) * lax.rsqrt(var + EPS) * g.reshape(1, -1, 1, 1)
                + b.reshape(1, -1, 1, 1))

    o = lax.conv_general_dilated(x, params["w1"], (1, 1), "VALID",
                                 dimension_numbers=dn)
    o = jnp.maximum(bn(o, params["g1"], params["b1"]), 0.0)
    o = lax.conv_general_dilated(
        o, params["w2"], (1, 1), [(dilation, dilation)] * 2,
        rhs_dilation=(dilation, dilation), dimension_numbers=dn)
    o = jnp.maximum(bn(o, params["g2"], params["b2"]), 0.0)
    o = lax.conv_general_dilated(o, params["w3"], (1, 1), "VALID",
                                 dimension_numbers=dn)
    o = bn(o, params["g3"], params["b3"])
    o = o + x
    return jnp.maximum(o, 0.0)


# ----------------------------------------------------------------------------
if __name__ == "__main__":
    # Small shapes: inplanes=16, planes=4 (expansion 4 -> out channels 16 ==
    # inplanes), batch=2, spatial=16x16, stride=1, dilation=1, downsample=None.
    inplanes, planes = 16, 4
    N, H, W = 2, 16, 16

    key = jax.random.PRNGKey(0)
    ks = jax.random.split(key, 10)
    x = jax.random.normal(ks[0], (N, inplanes, H, W), jnp.float32)

    params = {
        "w1": 0.1 * jax.random.normal(ks[1], (planes, inplanes, 1, 1), jnp.float32),
        "w2": 0.1 * jax.random.normal(ks[2], (planes, planes, 3, 3), jnp.float32),
        "w3": 0.1 * jax.random.normal(ks[3], (planes * 4, planes, 1, 1), jnp.float32),
        "g1": 1.0 + 0.1 * jax.random.normal(ks[4], (planes,), jnp.float32),
        "b1": 0.1 * jax.random.normal(ks[5], (planes,), jnp.float32),
        "g2": 1.0 + 0.1 * jax.random.normal(ks[6], (planes,), jnp.float32),
        "b2": 0.1 * jax.random.normal(ks[7], (planes,), jnp.float32),
        "g3": 1.0 + 0.1 * jax.random.normal(ks[8], (planes * 4,), jnp.float32),
        "b3": 0.1 * jax.random.normal(ks[9], (planes * 4,), jnp.float32),
    }

    out = bottleneck_forward(x, params)
    out = jax.block_until_ready(out)

    ref = bottleneck_reference(x, params)
    assert out.shape == (N, planes * 4, H, W)
    # bf16 matmul operands + bf16 inter-stage activations -> looser tolerance
    # than the old all-f32 version (reference is f32 end-to-end).
    max_err = float(jnp.max(jnp.abs(out - ref)))
    assert max_err < 1e-1, f"mismatch vs reference: max abs err {max_err}"

    print("KERNEL_OK")
</pallas_src>

<mosaic_0001>
module attributes {stable_mosaic.version = 11 : i64} {
  func.func @_mm_stats_kernel(%arg0: i32, %arg1: memref<256x128xbf16, #tpu.memory_space<vmem>>, %arg2: memref<128x128xbf16, #tpu.memory_space<vmem>>, %arg3: memref<256x128xbf16, #tpu.memory_space<vmem>>, %arg4: memref<1x1x128xf32, #tpu.memory_space<vmem>>, %arg5: memref<1x1x128xf32, #tpu.memory_space<vmem>>) attributes {dimension_semantics = [#tpu.dimension_semantics<parallel>], iteration_bounds = array<i64: 2>, scalar_prefetch = 0 : i64, scratch_operands = 0 : i64, tpu.core_type = #tpu.core_type<tc>, window_params = [{transform_indices = @transform_0, window_bounds = array<i64: 256, 128>}, {pipeline_mode = #tpu.pipeline_mode<synchronous>, transform_indices = @transform_1, window_bounds = array<i64: 128, 128>}, {transform_indices = @transform_2, window_bounds = array<i64: 256, 128>}, {transform_indices = @transform_3, window_bounds = array<i64: 1, 1, 128>}, {transform_indices = @transform_4, window_bounds = array<i64: 1, 1, 128>}]} {
    %c0 = arith.constant 0 : index
    %c0_0 = arith.constant 0 : index
    %0 = vector.load %arg1[%c0, %c0_0] : memref<256x128xbf16, #tpu.memory_space<vmem>>, vector<256x128xbf16>
    %c0_1 = arith.constant 0 : index
    %c0_2 = arith.constant 0 : index
    %1 = vector.load %arg2[%c0_1, %c0_2] : memref<128x128xbf16, #tpu.memory_space<vmem>>, vector<128x128xbf16>
    %cst = arith.constant dense<0.000000e+00> : vector<256x128xf32>
    %2 = tpu.matmul %0, %1, %cst {dimension_numbers = #tpu.dot_dimension_numbers<[1], [0], [0], [1], [0, 0, 1, 1], [], []>} : vector<256x128xbf16>, vector<128x128xbf16>, vector<256x128xf32> -> vector<256x128xf32>
    %3 = arith.truncf %2 : vector<256x128xf32> to vector<256x128xbf16>
    %c0_3 = arith.constant 0 : index
    %c0_4 = arith.constant 0 : index
    %4 = vector.load %arg3[%c0_3, %c0_4] : memref<256x128xbf16, #tpu.memory_space<vmem>>, vector<256x128xbf16>
    tpu.vector_store %arg3[%c0_3, %c0_4], %3 {strides = array<i32>} : memref<256x128xbf16, #tpu.memory_space<vmem>>, vector<256x128xbf16>,
    %cst_5 = arith.constant dense<0.000000e+00> : vector<128xf32>
    %5 = vector.multi_reduction <add>, %2, %cst_5 [0] : vector<256x128xf32> to vector<128xf32>
    %6 = vector.shape_cast %5 : vector<128xf32> to vector<1x128xf32>
    %7 = vector.shape_cast %6 : vector<1x128xf32> to vector<1x1x128xf32>
    %c0_6 = arith.constant 0 : index
    %c0_7 = arith.constant 0 : index
    %c0_8 = arith.constant 0 : index
    %8 = vector.load %arg4[%c0_6, %c0_7, %c0_8] : memref<1x1x128xf32, #tpu.memory_space<vmem>>, vector<1x1x128xf32>
    tpu.vector_store %arg4[%c0_6, %c0_7, %c0_8], %7 {strides = array<i32>} : memref<1x1x128xf32, #tpu.memory_space<vmem>>, vector<1x1x128xf32>,
    %9 = arith.mulf %2, %2 : vector<256x128xf32>
    %cst_9 = arith.constant dense<0.000000e+00> : vector<128xf32>
    %10 = vector.multi_reduction <add>, %9, %cst_9 [0] : vector<256x128xf32> to vector<128xf32>
    %11 = vector.shape_cast %10 : vector<128xf32> to vector<1x128xf32>
    %12 = vector.shape_cast %11 : vector<1x128xf32> to vector<1x1x128xf32>
    %c0_10 = arith.constant 0 : index
    %c0_11 = arith.constant 0 : index
    %c0_12 = arith.constant 0 : index
    %13 = vector.load %arg5[%c0_10, %c0_11, %c0_12] : memref<1x1x128xf32, #tpu.memory_space<vmem>>, vector<1x1x128xf32>
    tpu.vector_store %arg5[%c0_10, %c0_11, %c0_12], %12 {strides = array<i32>} : memref<1x1x128xf32, #tpu.memory_space<vmem>>, vector<1x1x128xf32>,
    return
  }
  func.func @transform_0(%arg0: i32) -> (i32, i32) {
    %c0_i32 = arith.constant 0 : i32
    %c0_i32_0 = arith.constant 0 : i32
    return %arg0, %c0_i32 : i32, i32
  }
  func.func @transform_1(%arg0: i32) -> (i32, i32) {
    %c0_i32 = arith.constant 0 : i32
    %c0_i32_0 = arith.constant 0 : i32
    %c0_i32_1 = arith.constant 0 : i32
    return %c0_i32, %c0_i32_0 : i32, i32
  }
  func.func @transform_2(%arg0: i32) -> (i32, i32) {
    %c0_i32 = arith.constant 0 : i32
    %c0_i32_0 = arith.constant 0 : i32
    return %arg0, %c0_i32 : i32, i32
  }
  func.func @transform_3(%arg0: i32) -> (i32, i32, i32) {
    %c0_i32 = arith.constant 0 : i32
    %c0_i32_0 = arith.constant 0 : i32
    %c0_i32_1 = arith.constant 0 : i32
    return %arg0, %c0_i32, %c0_i32_0 : i32, i32, i32
  }
  func.func @transform_4(%arg0: i32) -> (i32, i32, i32) {
    %c0_i32 = arith.constant 0 : i32
    %c0_i32_0 = arith.constant 0 : i32
    %c0_i32_1 = arith.constant 0 : i32
    return %arg0, %c0_i32, %c0_i32_0 : i32, i32, i32
  }
}

module attributes {stable_mosaic.version = 11 : i64} {
  func.func @_bn3_add_relu_kernel(%arg0: i32, %arg1: memref<256x128xbf16, #tpu.memory_space<vmem>>, %arg2: memref<1x128xf32, #tpu.memory_space<vmem>>, %arg3: memref<1x128xf32, #tpu.memory_space<vmem>>, %arg4: memref<256x128xbf16, #tpu.memory_space<vmem>>, %arg5: memref<256x128xf32, #tpu.memory_space<vmem>>) attributes {dimension_semantics = [#tpu.dimension_semantics<parallel>], iteration_bounds = array<i64: 2>, scalar_prefetch = 0 : i64, scratch_operands = 0 : i64, tpu.core_type = #tpu.core_type<tc>, window_params = [{transform_indices = @transform_0, window_bounds = array<i64: 256, 128>}, {pipeline_mode = #tpu.pipeline_mode<synchronous>, transform_indices = @transform_1, window_bounds = array<i64: 1, 128>}, {pipeline_mode = #tpu.pipeline_mode<synchronous>, transform_indices = @transform_2, window_bounds = array<i64: 1, 128>}, {transform_indices = @transform_3, window_bounds = array<i64: 256, 128>}, {transform_indices = @transform_4, window_bounds = array<i64: 256, 128>}]} {
    %c0 = arith.constant 0 : index
    %c0_0 = arith.constant 0 : index
    %0 = vector.load %arg1[%c0, %c0_0] : memref<256x128xbf16, #tpu.memory_space<vmem>>, vector<256x128xbf16>
    %1 = arith.extf %0 : vector<256x128xbf16> to vector<256x128xf32>
    %c0_1 = arith.constant 0 : index
    %c0_2 = arith.constant 0 : index
    %2 = vector.load %arg2[%c0_1, %c0_2] : memref<1x128xf32, #tpu.memory_space<vmem>>, vector<1x128xf32>
    %3 = vector.broadcast %2 : vector<1x128xf32> to vector<256x128xf32>
    %4 = arith.mulf %1, %3 : vector<256x128xf32>
    %c0_3 = arith.constant 0 : index
    %c0_4 = arith.constant 0 : index
    %5 = vector.load %arg3[%c0_3, %c0_4] : memref<1x128xf32, #tpu.memory_space<vmem>>, vector<1x128xf32>
    %6 = vector.broadcast %5 : vector<1x128xf32> to vector<256x128xf32>
    %7 = arith.addf %4, %6 : vector<256x128xf32>
    %c0_5 = arith.constant 0 : index
    %c0_6 = arith.constant 0 : index
    %8 = vector.load %arg4[%c0_5, %c0_6] : memref<256x128xbf16, #tpu.memory_space<vmem>>, vector<256x128xbf16>
    %9 = arith.extf %8 : vector<256x128xbf16> to vector<256x128xf32>
    %10 = arith.addf %7, %9 : vector<256x128xf32>
    %cst = arith.constant 0.000000e+00 : f32
    %11 = vector.broadcast %cst : f32 to vector<256x128xf32>
    %12 = arith.maximumf %10, %11 : vector<256x128xf32>
    %c0_7 = arith.constant 0 : index
    %c0_8 = arith.constant 0 : index
    %13 = vector.load %arg5[%c0_7, %c0_8] : memref<256x128xf32, #tpu.memory_space<vmem>>, vector<256x128xf32>
    tpu.vector_store %arg5[%c0_7, %c0_8], %12 {strides = array<i32>} : memref<256x128xf32, #tpu.memory_space<vmem>>, vector<256x128xf32>,
    return
  }
  func.func @transform_0(%arg0: i32) -> (i32, i32) {
    %c0_i32 = arith.constant 0 : i32
    %c0_i32_0 = arith.constant 0 : i32
    return %arg0, %c0_i32 : i32, i32
  }
  func.func @transform_1(%arg0: i32) -> (i32, i32) {
    %c0_i32 = arith.constant 0 : i32
    %c0_i32_0 = arith.constant 0 : i32
    %c0_i32_1 = arith.constant 0 : i32
    return %c0_i32, %c0_i32_0 : i32, i32
  }
  func.func @transform_2(%arg0: i32) -> (i32, i32) {
    %c0_i32 = arith.constant 0 : i32
    %c0_i32_0 = arith.constant 0 : i32
    %c0_i32_1 = arith.constant 0 : i32
    return %c0_i32, %c0_i32_0 : i32, i32
  }
  func.func @transform_3(%arg0: i32) -> (i32, i32) {
    %c0_i32 = arith.constant 0 : i32
    %c0_i32_0 = arith.constant 0 : i32
    return %arg0, %c0_i32 : i32, i32
  }
  func.func @transform_4(%arg0: i32) -> (i32, i32) {
    %c0_i32 = arith.constant 0 : i32
    %c0_i32_0 = arith.constant 0 : i32
    return %arg0, %c0_i32 : i32, i32
  }
}

module attributes {stable_mosaic.version = 11 : i64} {
  func.func @_bn1_conv3x3_stats_kernel(%arg0: i32, %arg1: memref<1x16x16x128xbf16, #tpu.memory_space<vmem>>, %arg2: memref<1x128xf32, #tpu.memory_space<vmem>>, %arg3: memref<1x128xf32, #tpu.memory_space<vmem>>, %arg4: memref<3x384x128xbf16, #tpu.memory_space<vmem>>, %arg5: memref<256x128xbf16, #tpu.memory_space<vmem>>, %arg6: memref<1x1x128xf32, #tpu.memory_space<vmem>>, %arg7: memref<1x1x128xf32, #tpu.memory_space<vmem>>, %arg8: memref<18x25x128xbf16, #tpu.memory_space<vmem>>) attributes {dimension_semantics = [#tpu.dimension_semantics<parallel>], iteration_bounds = array<i64: 2>, scalar_prefetch = 0 : i64, scratch_operands = 1 : i64, tpu.core_type = #tpu.core_type<tc>, window_params = [{transform_indices = @transform_0, window_bounds = array<i64: 1, 16, 16, 128>}, {pipeline_mode = #tpu.pipeline_mode<synchronous>, transform_indices = @transform_1, window_bounds = array<i64: 1, 128>}, {pipeline_mode = #tpu.pipeline_mode<synchronous>, transform_indices = @transform_2, window_bounds = array<i64: 1, 128>}, {pipeline_mode = #tpu.pipeline_mode<synchronous>, transform_indices = @transform_3, window_bounds = array<i64: 3, 384, 128>}, {transform_indices = @transform_4, window_bounds = array<i64: 256, 128>}, {transform_indices = @transform_5, window_bounds = array<i64: 1, 1, 128>}, {transform_indices = @transform_6, window_bounds = array<i64: 1, 1, 128>}]} {
    %c0 = arith.constant 0 : index
    %c0_0 = arith.constant 0 : index
    %c0_1 = arith.constant 0 : index
    %c0_2 = arith.constant 0 : index
    %0 = vector.load %arg1[%c0, %c0_0, %c0_1, %c0_2] : memref<1x16x16x128xbf16, #tpu.memory_space<vmem>>, vector<1x16x16x128xbf16>
    %1 = vector.shape_cast %0 : vector<1x16x16x128xbf16> to vector<16x16x128xbf16>
    %2 = arith.extf %1 : vector<16x16x128xbf16> to vector<16x16x128xf32>
    %c0_3 = arith.constant 0 : index
    %c0_4 = arith.constant 0 : index
    %3 = vector.load %arg2[%c0_3, %c0_4] : memref<1x128xf32, #tpu.memory_space<vmem>>, vector<1x128xf32>
    %4 = vector.shape_cast %3 : vector<1x128xf32> to vector<1x1x128xf32>
    %5 = vector.broadcast %4 : vector<1x1x128xf32> to vector<16x16x128xf32>
    %6 = arith.mulf %2, %5 : vector<16x16x128xf32>
    %c0_5 = arith.constant 0 : index
    %c0_6 = arith.constant 0 : index
    %7 = vector.load %arg3[%c0_5, %c0_6] : memref<1x128xf32, #tpu.memory_space<vmem>>, vector<1x128xf32>
    %8 = vector.shape_cast %7 : vector<1x128xf32> to vector<1x1x128xf32>
    %9 = vector.broadcast %8 : vector<1x1x128xf32> to vector<16x16x128xf32>
    %10 = arith.addf %6, %9 : vector<16x16x128xf32>
    %cst = arith.constant 0.000000e+00 : f32
    %11 = vector.broadcast %cst : f32 to vector<16x16x128xf32>
    %12 = arith.maximumf %10, %11 : vector<16x16x128xf32>
    %13 = arith.truncf %12 : vector<16x16x128xf32> to vector<16x16x128xbf16>
    %cst_7 = arith.constant 0.000000e+00 : bf16
    %14 = vector.broadcast %cst_7 : bf16 to vector<18x25x128xbf16>
    %c0_8 = arith.constant 0 : index
    %c0_9 = arith.constant 0 : index
    %c0_10 = arith.constant 0 : index
    %15 = vector.load %arg8[%c0_8, %c0_9, %c0_10] : memref<18x25x128xbf16, #tpu.memory_space<vmem>>, vector<18x25x128xbf16>
    tpu.vector_store %arg8[%c0_8, %c0_9, %c0_10], %14 {strides = array<i32>} : memref<18x25x128xbf16, #tpu.memory_space<vmem>>, vector<18x25x128xbf16>,
    %c1 = arith.constant 1 : index
    %c8 = arith.constant 8 : index
    %c0_11 = arith.constant 0 : index
    %16 = vector.load %arg8[%c1, %c8, %c0_11] : memref<18x25x128xbf16, #tpu.memory_space<vmem>>, vector<16x16x128xbf16>
    tpu.vector_store %arg8[%c1, %c8, %c0_11], %13 {strides = array<i32>} : memref<18x25x128xbf16, #tpu.memory_space<vmem>>, vector<16x16x128xbf16>,
    %cst_12 = arith.constant 0.000000e+00 : f32
    %17 = vector.broadcast %cst_12 : f32 to vector<1x128xf32>
    %cst_13 = arith.constant 0.000000e+00 : f32
    %18 = vector.broadcast %cst_13 : f32 to vector<1x128xf32>
    %cst_14 = arith.constant 0.000000e+00 : f32
    %19 = vector.broadcast %cst_14 : f32 to vector<128x128xf32>
    %c0_15 = arith.constant 0 : index
    %c7 = arith.constant 7 : index
    %c0_16 = arith.constant 0 : index
    %20 = vector.load %arg8[%c0_15, %c7, %c0_16] : memref<18x25x128xbf16, #tpu.memory_space<vmem>>, vector<8x16x128xbf16>
    %21 = vector.shape_cast %20 : vector<8x16x128xbf16> to vector<128x128xbf16>
    %c0_17 = arith.constant 0 : index
    %c8_18 = arith.constant 8 : index
    %c0_19 = arith.constant 0 : index
    %22 = vector.load %arg8[%c0_17, %c8_18, %c0_19] : memref<18x25x128xbf16, #tpu.memory_space<vmem>>, vector<8x16x128xbf16>
    %23 = vector.shape_cast %22 : vector<8x16x128xbf16> to vector<128x128xbf16>
    %c0_20 = arith.constant 0 : index
    %c9 = arith.constant 9 : index
    %c0_21 = arith.constant 0 : index
    %24 = vector.load %arg8[%c0_20, %c9, %c0_21] : memref<18x25x128xbf16, #tpu.memory_space<vmem>>, vector<8x16x128xbf16>
    %25 = vector.shape_cast %24 : vector<8x16x128xbf16> to vector<128x128xbf16>
    %26 = tpu.concatenate %21, %23, %25 in 1 : vector<128x128xbf16>, vector<128x128xbf16>, vector<128x128xbf16> -> vector<128x384xbf16>
    %c0_22 = arith.constant 0 : index
    %c0_23 = arith.constant 0 : index
    %c0_24 = arith.constant 0 : index
    %27 = vector.load %arg4[%c0_22, %c0_23, %c0_24] : memref<3x384x128xbf16, #tpu.memory_space<vmem>>, vector<1x384x128xbf16>
    %28 = vector.shape_cast %27 : vector<1x384x128xbf16> to vector<384x128xbf16>
    %cst_25 = arith.constant dense<0.000000e+00> : vector<128x128xf32>
    %29 = tpu.matmul %26, %28, %cst_25 {dimension_numbers = #tpu.dot_dimension_numbers<[1], [0], [0], [1], [0, 0, 1, 1], [], []>} : vector<128x384xbf16>, vector<384x128xbf16>, vector<128x128xf32> -> vector<128x128xf32>
    %30 = arith.addf %19, %29 : vector<128x128xf32>
    %c1_26 = arith.constant 1 : index
    %c7_27 = arith.constant 7 : index
    %c0_28 = arith.constant 0 : index
    %31 = vector.load %arg8[%c1_26, %c7_27, %c0_28] : memref<18x25x128xbf16, #tpu.memory_space<vmem>>, vector<8x16x128xbf16>
    %32 = vector.shape_cast %31 : vector<8x16x128xbf16> to vector<128x128xbf16>
    %c1_29 = arith.constant 1 : index
    %c8_30 = arith.constant 8 : index
    %c0_31 = arith.constant 0 : index
    %33 = vector.load %arg8[%c1_29, %c8_30, %c0_31] : memref<18x25x128xbf16, #tpu.memory_space<vmem>>, vector<8x16x128xbf16>
    %34 = vector.shape_cast %33 : vector<8x16x128xbf16> to vector<128x128xbf16>
    %c1_32 = arith.constant 1 : index
    %c9_33 = arith.constant 9 : index
    %c0_34 = arith.constant 0 : index
    %35 = vector.load %arg8[%c1_32, %c9_33, %c0_34] : memref<18x25x128xbf16, #tpu.memory_space<vmem>>, vector<8x16x128xbf16>
    %36 = vector.shape_cast %35 : vector<8x16x128xbf16> to vector<128x128xbf16>
    %37 = tpu.concatenate %32, %34, %36 in 1 : vector<128x128xbf16>, vector<128x128xbf16>, vector<128x128xbf16> -> vector<128x384xbf16>
    %c1_35 = arith.constant 1 : index
    %c0_36 = arith.constant 0 : index
    %c0_37 = arith.constant 0 : index
    %38 = vector.load %arg4[%c1_35, %c0_36, %c0_37] : memref<3x384x128xbf16, #tpu.memory_space<vmem>>, vector<1x384x128xbf16>
    %39 = vector.shape_cast %38 : vector<1x384x128xbf16> to vector<384x128xbf16>
    %cst_38 = arith.constant dense<0.000000e+00> : vector<128x128xf32>
    %40 = tpu.matmul %37, %39, %cst_38 {dimension_numbers = #tpu.dot_dimension_numbers<[1], [0], [0], [1], [0, 0, 1, 1], [], []>} : vector<128x384xbf16>, vector<384x128xbf16>, vector<128x128xf32> -> vector<128x128xf32>
    %41 = arith.addf %30, %40 : vector<128x128xf32>
    %c2 = arith.constant 2 : index
    %c7_39 = arith.constant 7 : index
    %c0_40 = arith.constant 0 : index
    %42 = vector.load %arg8[%c2, %c7_39, %c0_40] : memref<18x25x128xbf16, #tpu.memory_space<vmem>>, vector<8x16x128xbf16>
    %43 = vector.shape_cast %42 : vector<8x16x128xbf16> to vector<128x128xbf16>
    %c2_41 = arith.constant 2 : index
    %c8_42 = arith.constant 8 : index
    %c0_43 = arith.constant 0 : index
    %44 = vector.load %arg8[%c2_41, %c8_42, %c0_43] : memref<18x25x128xbf16, #tpu.memory_space<vmem>>, vector<8x16x128xbf16>
    %45 = vector.shape_cast %44 : vector<8x16x128xbf16> to vector<128x128xbf16>
    %c2_44 = arith.constant 2 : index
    %c9_45 = arith.constant 9 : index
    %c0_46 = arith.constant 0 : index
    %46 = vector.load %arg8[%c2_44, %c9_45, %c0_46] : memref<18x25x128xbf16, #tpu.memory_space<vmem>>, vector<8x16x128xbf16>
    %47 = vector.shape_cast %46 : vector<8x16x128xbf16> to vector<128x128xbf16>
    %48 = tpu.concatenate %43, %45, %47 in 1 : vector<128x128xbf16>, vector<128x128xbf16>, vector<128x128xbf16> -> vector<128x384xbf16>
    %c2_47 = arith.constant 2 : index
    %c0_48 = arith.constant 0 : index
    %c0_49 = arith.constant 0 : index
    %49 = vector.load %arg4[%c2_47, %c0_48, %c0_49] : memref<3x384x128xbf16, #tpu.memory_space<vmem>>, vector<1x384x128xbf16>
    %50 = vector.shape_cast %49 : vector<1x384x128xbf16> to vector<384x128xbf16>
    %cst_50 = arith.constant dense<0.000000e+00> : vector<128x128xf32>
    %51 = tpu.matmul %48, %50, %cst_50 {dimension_numbers = #tpu.dot_dimension_numbers<[1], [0], [0], [1], [0, 0, 1, 1], [], []>} : vector<128x384xbf16>, vector<384x128xbf16>, vector<128x128xf32> -> vector<128x128xf32>
    %52 = arith.addf %41, %51 : vector<128x128xf32>
    %53 = arith.truncf %52 : vector<128x128xf32> to vector<128x128xbf16>
    %c0_51 = arith.constant 0 : index
    %c0_52 = arith.constant 0 : index
    %54 = vector.load %arg5[%c0_51, %c0_52] : memref<256x128xbf16, #tpu.memory_space<vmem>>, vector<128x128xbf16>
    tpu.vector_store %arg5[%c0_51, %c0_52], %53 {strides = array<i32>} : memref<256x128xbf16, #tpu.memory_space<vmem>>, vector<128x128xbf16>,
    %cst_53 = arith.constant dense<0.000000e+00> : vector<128xf32>
    %55 = vector.multi_reduction <add>, %52, %cst_53 [0] : vector<128x128xf32> to vector<128xf32>
    %56 = vector.shape_cast %55 : vector<128xf32> to vector<1x128xf32>
    %57 = arith.addf %17, %56 : vector<1x128xf32>
    %58 = arith.mulf %52, %52 : vector<128x128xf32>
    %cst_54 = arith.constant dense<0.000000e+00> : vector<128xf32>
    %59 = vector.multi_reduction <add>, %58, %cst_54 [0] : vector<128x128xf32> to vector<128xf32>
    %60 = vector.shape_cast %59 : vector<128xf32> to vector<1x128xf32>
    %61 = arith.addf %18, %60 : vector<1x128xf32>
    %cst_55 = arith.constant 0.000000e+00 : f32
    %62 = vector.broadcast %cst_55 : f32 to vector<128x128xf32>
    %c8_56 = arith.constant 8 : index
    %c7_57 = arith.constant 7 : index
    %c0_58 = arith.constant 0 : index
    %63 = vector.load %arg8[%c8_56, %c7_57, %c0_58] : memref<18x25x128xbf16, #tpu.memory_space<vmem>>, vector<8x16x128xbf16>
    %64 = vector.shape_cast %63 : vector<8x16x128xbf16> to vector<128x128xbf16>
    %c8_59 = arith.constant 8 : index
    %c8_60 = arith.constant 8 : index
    %c0_61 = arith.constant 0 : index
    %65 = vector.load %arg8[%c8_59, %c8_60, %c0_61] : memref<18x25x128xbf16, #tpu.memory_space<vmem>>, vector<8x16x128xbf16>
    %66 = vector.shape_cast %65 : vector<8x16x128xbf16> to vector<128x128xbf16>
    %c8_62 = arith.constant 8 : index
    %c9_63 = arith.constant 9 : index
    %c0_64 = arith.constant 0 : index
    %67 = vector.load %arg8[%c8_62, %c9_63, %c0_64] : memref<18x25x128xbf16, #tpu.memory_space<vmem>>, vector<8x16x128xbf16>
    %68 = vector.shape_cast %67 : vector<8x16x128xbf16> to vector<128x128xbf16>
    %69 = tpu.concatenate %64, %66, %68 in 1 : vector<128x128xbf16>, vector<128x128xbf16>, vector<128x128xbf16> -> vector<128x384xbf16>
    %c0_65 = arith.constant 0 : index
    %c0_66 = arith.constant 0 : index
    %c0_67 = arith.constant 0 : index
    %70 = vector.load %arg4[%c0_65, %c0_66, %c0_67] : memref<3x384x128xbf16, #tpu.memory_space<vmem>>, vector<1x384x128xbf16>
    %71 = vector.shape_cast %70 : vector<1x384x128xbf16> to vector<384x128xbf16>
    %cst_68 = arith.constant dense<0.000000e+00> : vector<128x128xf32>
    %72 = tpu.matmul %69, %71, %cst_68 {dimension_numbers = #tpu.dot_dimension_numbers<[1], [0], [0], [1], [0, 0, 1, 1], [], []>} : vector<128x384xbf16>, vector<384x128xbf16>, vector<128x128xf32> -> vector<128x128xf32>
    %73 = arith.addf %62, %72 : vector<128x128xf32>
    %c9_69 = arith.constant 9 : index
    %c7_70 = arith.constant 7 : index
    %c0_71 = arith.constant 0 : index
    %74 = vector.load %arg8[%c9_69, %c7_70, %c0_71] : memref<18x25x128xbf16, #tpu.memory_space<vmem>>, vector<8x16x128xbf16>
    %75 = vector.shape_cast %74 : vector<8x16x128xbf16> to vector<128x128xbf16>
    %c9_72 = arith.constant 9 : index
    %c8_73 = arith.constant 8 : index
    %c0_74 = arith.constant 0 : index
    %76 = vector.load %arg8[%c9_72, %c8_73, %c0_74] : memref<18x25x128xbf16, #tpu.memory_space<vmem>>, vector<8x16x128xbf16>
    %77 = vector.shape_cast %76 : vector<8x16x128xbf16> to vector<128x128xbf16>
    %c9_75 = arith.constant 9 : index
    %c9_76 = arith.constant 9 : index
    %c0_77 = arith.constant 0 : index
    %78 = vector.load %arg8[%c9_75, %c9_76, %c0_77] : memref<18x25x128xbf16, #tpu.memory_space<vmem>>, vector<8x16x128xbf16>
    %79 = vector.shape_cast %78 : vector<8x16x128xbf16> to vector<128x128xbf16>
    %80 = tpu.concatenate %75, %77, %79 in 1 : vector<128x128xbf16>, vector<128x128xbf16>, vector<128x128xbf16> -> vector<128x384xbf16>
    %c1_78 = arith.constant 1 : index
    %c0_79 = arith.constant 0 : index
    %c0_80 = arith.constant 0 : index
    %81 = vector.load %arg4[%c1_78, %c0_79, %c0_80] : memref<3x384x128xbf16, #tpu.memory_space<vmem>>, vector<1x384x128xbf16>
    %82 = vector.shape_cast %81 : vector<1x384x128xbf16> to vector<384x128xbf16>
    %cst_81 = arith.constant dense<0.000000e+00> : vector<128x128xf32>
    %83 = tpu.matmul %80, %82, %cst_81 {dimension_numbers = #tpu.dot_dimension_numbers<[1], [0], [0], [1], [0, 0, 1, 1], [], []>} : vector<128x384xbf16>, vector<384x128xbf16>, vector<128x128xf32> -> vector<128x128xf32>
    %84 = arith.addf %73, %83 : vector<128x128xf32>
    %c10 = arith.constant 10 : index
    %c7_82 = arith.constant 7 : index
    %c0_83 = arith.constant 0 : index
    %85 = vector.load %arg8[%c10, %c7_82, %c0_83] : memref<18x25x128xbf16, #tpu.memory_space<vmem>>, vector<8x16x128xbf16>
    %86 = vector.shape_cast %85 : vector<8x16x128xbf16> to vector<128x128xbf16>
    %c10_84 = arith.constant 10 : index
    %c8_85 = arith.constant 8 : index
    %c0_86 = arith.constant 0 : index
    %87 = vector.load %arg8[%c10_84, %c8_85, %c0_86] : memref<18x25x128xbf16, #tpu.memory_space<vmem>>, vector<8x16x128xbf16>
    %88 = vector.shape_cast %87 : vector<8x16x128xbf16> to vector<128x128xbf16>
    %c10_87 = arith.constant 10 : index
    %c9_88 = arith.constant 9 : index
    %c0_89 = arith.constant 0 : index
    %89 = vector.load %arg8[%c10_87, %c9_88, %c0_89] : memref<18x25x128xbf16, #tpu.memory_space<vmem>>, vector<8x16x128xbf16>
    %90 = vector.shape_cast %89 : vector<8x16x128xbf16> to vector<128x128xbf16>
    %91 = tpu.concatenate %86, %88, %90 in 1 : vector<128x128xbf16>, vector<128x128xbf16>, vector<128x128xbf16> -> vector<128x384xbf16>
    %c2_90 = arith.constant 2 : index
    %c0_91 = arith.constant 0 : index
    %c0_92 = arith.constant 0 : index
    %92 = vector.load %arg4[%c2_90, %c0_91, %c0_92] : memref<3x384x128xbf16, #tpu.memory_space<vmem>>, vector<1x384x128xbf16>
    %93 = vector.shape_cast %92 : vector<1x384x128xbf16> to vector<384x128xbf16>
    %cst_93 = arith.constant dense<0.000000e+00> : vector<128x128xf32>
    %94 = tpu.matmul %91, %93, %cst_93 {dimension_numbers = #tpu.dot_dimension_numbers<[1], [0], [0], [1], [0, 0, 1, 1], [], []>} : vector<128x384xbf16>, vector<384x128xbf16>, vector<128x128xf32> -> vector<128x128xf32>
    %95 = arith.addf %84, %94 : vector<128x128xf32>
    %96 = arith.truncf %95 : vector<128x128xf32> to vector<128x128xbf16>
    %c128 = arith.constant 128 : index
    %c0_94 = arith.constant 0 : index
    %97 = vector.load %arg5[%c128, %c0_94] : memref<256x128xbf16, #tpu.memory_space<vmem>>, vector<128x128xbf16>
    tpu.vector_store %arg5[%c128, %c0_94], %96 {strides = array<i32>} : memref<256x128xbf16, #tpu.memory_space<vmem>>, vector<128x128xbf16>,
    %cst_95 = arith.constant dense<0.000000e+00> : vector<128xf32>
    %98 = vector.multi_reduction <add>, %95, %cst_95 [0] : vector<128x128xf32> to vector<128xf32>
    %99 = vector.shape_cast %98 : vector<128xf32> to vector<1x128xf32>
    %100 = arith.addf %57, %99 : vector<1x128xf32>
    %101 = arith.mulf %95, %95 : vector<128x128xf32>
    %cst_96 = arith.constant dense<0.000000e+00> : vector<128xf32>
    %102 = vector.multi_reduction <add>, %101, %cst_96 [0] : vector<128x128xf32> to vector<128xf32>
    %103 = vector.shape_cast %102 : vector<128xf32> to vector<1x128xf32>
    %104 = arith.addf %61, %103 : vector<1x128xf32>
    %105 = vector.shape_cast %100 : vector<1x128xf32> to vector<1x1x128xf32>
    %c0_97 = arith.constant 0 : index
    %c0_98 = arith.constant 0 : index
    %c0_99 = arith.constant 0 : index
    %106 = vector.load %arg6[%c0_97, %c0_98, %c0_99] : memref<1x1x128xf32, #tpu.memory_space<vmem>>, vector<1x1x128xf32>
    tpu.vector_store %arg6[%c0_97, %c0_98, %c0_99], %105 {strides = array<i32>} : memref<1x1x128xf32, #tpu.memory_space<vmem>>, vector<1x1x128xf32>,
    %107 = vector.shape_cast %104 : vector<1x128xf32> to vector<1x1x128xf32>
    %c0_100 = arith.constant 0 : index
    %c0_101 = arith.constant 0 : index
    %c0_102 = arith.constant 0 : index
    %108 = vector.load %arg7[%c0_100, %c0_101, %c0_102] : memref<1x1x128xf32, #tpu.memory_space<vmem>>, vector<1x1x128xf32>
    tpu.vector_store %arg7[%c0_100, %c0_101, %c0_102], %107 {strides = array<i32>} : memref<1x1x128xf32, #tpu.memory_space<vmem>>, vector<1x1x128xf32>,
    return
  }
  func.func @transform_0(%arg0: i32) -> (i32, i32, i32, i32) {
    %c0_i32 = arith.constant 0 : i32
    %c0_i32_0 = arith.constant 0 : i32
    %c0_i32_1 = arith.constant 0 : i32
    %c0_i32_2 = arith.constant 0 : i32
    return %arg0, %c0_i32, %c0_i32_0, %c0_i32_1 : i32, i32, i32, i32
  }
  func.func @transform_1(%arg0: i32) -> (i32, i32) {
    %c0_i32 = arith.constant 0 : i32
    %c0_i32_0 = arith.constant 0 : i32
    %c0_i32_1 = arith.constant 0 : i32
    return %c0_i32, %c0_i32_0 : i32, i32
  }
  func.func @transform_2(%arg0: i32) -> (i32, i32) {
    %c0_i32 = arith.constant 0 : i32
    %c0_i32_0 = arith.constant 0 : i32
    %c0_i32_1 = arith.constant 0 : i32
    return %c0_i32, %c0_i32_0 : i32, i32
  }
  func.func @transform_3(%arg0: i32) -> (i32, i32, i32) {
    %c0_i32 = arith.constant 0 : i32
    %c0_i32_0 = arith.constant 0 : i32
    %c0_i32_1 = arith.constant 0 : i32
    %c0_i32_2 = arith.constant 0 : i32
    return %c0_i32, %c0_i32_0, %c0_i32_1 : i32, i32, i32
  }
  func.func @transform_4(%arg0: i32) -> (i32, i32) {
    %c0_i32 = arith.constant 0 : i32
    %c0_i32_0 = arith.constant 0 : i32
    return %arg0, %c0_i32 : i32, i32
  }
  func.func @transform_5(%arg0: i32) -> (i32, i32, i32) {
    %c0_i32 = arith.constant 0 : i32
    %c0_i32_0 = arith.constant 0 : i32
    %c0_i32_1 = arith.constant 0 : i32
    return %arg0, %c0_i32, %c0_i32_0 : i32, i32, i32
  }
  func.func @transform_6(%arg0: i32) -> (i32, i32, i32) {
    %c0_i32 = arith.constant 0 : i32
    %c0_i32_0 = arith.constant 0 : i32
    %c0_i32_1 = arith.constant 0 : i32
    return %arg0, %c0_i32, %c0_i32_0 : i32, i32, i32
  }
}

module attributes {stable_mosaic.version = 11 : i64} {
  func.func @_bn2_mm_stats_kernel(%arg0: i32, %arg1: memref<256x128xbf16, #tpu.memory_space<vmem>>, %arg2: memref<1x128xf32, #tpu.memory_space<vmem>>, %arg3: memref<1x128xf32, #tpu.memory_space<vmem>>, %arg4: memref<128x128xbf16, #tpu.memory_space<vmem>>, %arg5: memref<256x128xbf16, #tpu.memory_space<vmem>>, %arg6: memref<1x1x128xf32, #tpu.memory_space<vmem>>, %arg7: memref<1x1x128xf32, #tpu.memory_space<vmem>>) attributes {dimension_semantics = [#tpu.dimension_semantics<parallel>], iteration_bounds = array<i64: 2>, scalar_prefetch = 0 : i64, scratch_operands = 0 : i64, tpu.core_type = #tpu.core_type<tc>, window_params = [{transform_indices = @transform_0, window_bounds = array<i64: 256, 128>}, {pipeline_mode = #tpu.pipeline_mode<synchronous>, transform_indices = @transform_1, window_bounds = array<i64: 1, 128>}, {pipeline_mode = #tpu.pipeline_mode<synchronous>, transform_indices = @transform_2, window_bounds = array<i64: 1, 128>}, {pipeline_mode = #tpu.pipeline_mode<synchronous>, transform_indices = @transform_3, window_bounds = array<i64: 128, 128>}, {transform_indices = @transform_4, window_bounds = array<i64: 256, 128>}, {transform_indices = @transform_5, window_bounds = array<i64: 1, 1, 128>}, {transform_indices = @transform_6, window_bounds = array<i64: 1, 1, 128>}]} {
    %c0 = arith.constant 0 : index
    %c0_0 = arith.constant 0 : index
    %0 = vector.load %arg1[%c0, %c0_0] : memref<256x128xbf16, #tpu.memory_space<vmem>>, vector<256x128xbf16>
    %1 = arith.extf %0 : vector<256x128xbf16> to vector<256x128xf32>
    %c0_1 = arith.constant 0 : index
    %c0_2 = arith.constant 0 : index
    %2 = vector.load %arg2[%c0_1, %c0_2] : memref<1x128xf32, #tpu.memory_space<vmem>>, vector<1x128xf32>
    %3 = vector.broadcast %2 : vector<1x128xf32> to vector<256x128xf32>
    %4 = arith.mulf %1, %3 : vector<256x128xf32>
    %c0_3 = arith.constant 0 : index
    %c0_4 = arith.constant 0 : index
    %5 = vector.load %arg3[%c0_3, %c0_4] : memref<1x128xf32, #tpu.memory_space<vmem>>, vector<1x128xf32>
    %6 = vector.broadcast %5 : vector<1x128xf32> to vector<256x128xf32>
    %7 = arith.addf %4, %6 : vector<256x128xf32>
    %cst = arith.constant 0.000000e+00 : f32
    %8 = vector.broadcast %cst : f32 to vector<256x128xf32>
    %9 = arith.maximumf %7, %8 : vector<256x128xf32>
    %10 = arith.truncf %9 : vector<256x128xf32> to vector<256x128xbf16>
    %c0_5 = arith.constant 0 : index
    %c0_6 = arith.constant 0 : index
    %11 = vector.load %arg4[%c0_5, %c0_6] : memref<128x128xbf16, #tpu.memory_space<vmem>>, vector<128x128xbf16>
    %cst_7 = arith.constant dense<0.000000e+00> : vector<256x128xf32>
    %12 = tpu.matmul %10, %11, %cst_7 {dimension_numbers = #tpu.dot_dimension_numbers<[1], [0], [0], [1], [0, 0, 1, 1], [], []>} : vector<256x128xbf16>, vector<128x128xbf16>, vector<256x128xf32> -> vector<256x128xf32>
    %13 = arith.truncf %12 : vector<256x128xf32> to vector<256x128xbf16>
    %c0_8 = arith.constant 0 : index
    %c0_9 = arith.constant 0 : index
    %14 = vector.load %arg5[%c0_8, %c0_9] : memref<256x128xbf16, #tpu.memory_space<vmem>>, vector<256x128xbf16>
    tpu.vector_store %arg5[%c0_8, %c0_9], %13 {strides = array<i32>} : memref<256x128xbf16, #tpu.memory_space<vmem>>, vector<256x128xbf16>,
    %cst_10 = arith.constant dense<0.000000e+00> : vector<128xf32>
    %15 = vector.multi_reduction <add>, %12, %cst_10 [0] : vector<256x128xf32> to vector<128xf32>
    %16 = vector.shape_cast %15 : vector<128xf32> to vector<1x128xf32>
    %17 = vector.shape_cast %16 : vector<1x128xf32> to vector<1x1x128xf32>
    %c0_11 = arith.constant 0 : index
    %c0_12 = arith.constant 0 : index
    %c0_13 = arith.constant 0 : index
    %18 = vector.load %arg6[%c0_11, %c0_12, %c0_13] : memref<1x1x128xf32, #tpu.memory_space<vmem>>, vector<1x1x128xf32>
    tpu.vector_store %arg6[%c0_11, %c0_12, %c0_13], %17 {strides = array<i32>} : memref<1x1x128xf32, #tpu.memory_space<vmem>>, vector<1x1x128xf32>,
    %19 = arith.mulf %12, %12 : vector<256x128xf32>
    %cst_14 = arith.constant dense<0.000000e+00> : vector<128xf32>
    %20 = vector.multi_reduction <add>, %19, %cst_14 [0] : vector<256x128xf32> to vector<128xf32>
    %21 = vector.shape_cast %20 : vector<128xf32> to vector<1x128xf32>
    %22 = vector.shape_cast %21 : vector<1x128xf32> to vector<1x1x128xf32>
    %c0_15 = arith.constant 0 : index
    %c0_16 = arith.constant 0 : index
    %c0_17 = arith.constant 0 : index
    %23 = vector.load %arg7[%c0_15, %c0_16, %c0_17] : memref<1x1x128xf32, #tpu.memory_space<vmem>>, vector<1x1x128xf32>
    tpu.vector_store %arg7[%c0_15, %c0_16, %c0_17], %22 {strides = array<i32>} : memref<1x1x128xf32, #tpu.memory_space<vmem>>, vector<1x1x128xf32>,
    return
  }
  func.func @transform_0(%arg0: i32) -> (i32, i32) {
    %c0_i32 = arith.constant 0 : i32
    %c0_i32_0 = arith.constant 0 : i32
    return %arg0, %c0_i32 : i32, i32
  }
  func.func @transform_1(%arg0: i32) -> (i32, i32) {
    %c0_i32 = arith.constant 0 : i32
    %c0_i32_0 = arith.constant 0 : i32
    %c0_i32_1 = arith.constant 0 : i32
    return %c0_i32, %c0_i32_0 : i32, i32
  }
  func.func @transform_2(%arg0: i32) -> (i32, i32) {
    %c0_i32 = arith.constant 0 : i32
    %c0_i32_0 = arith.constant 0 : i32
    %c0_i32_1 = arith.constant 0 : i32
    return %c0_i32, %c0_i32_0 : i32, i32
  }
  func.func @transform_3(%arg0: i32) -> (i32, i32) {
    %c0_i32 = arith.constant 0 : i32
    %c0_i32_0 = arith.constant 0 : i32
    %c0_i32_1 = arith.constant 0 : i32
    return %c0_i32, %c0_i32_0 : i32, i32
  }
  func.func @transform_4(%arg0: i32) -> (i32, i32) {
    %c0_i32 = arith.constant 0 : i32
    %c0_i32_0 = arith.constant 0 : i32
    return %arg0, %c0_i32 : i32, i32
  }
  func.func @transform_5(%arg0: i32) -> (i32, i32, i32) {
    %c0_i32 = arith.constant 0 : i32
    %c0_i32_0 = arith.constant 0 : i32
    %c0_i32_1 = arith.constant 0 : i32
    return %arg0, %c0_i32, %c0_i32_0 : i32, i32, i32
  }
  func.func @transform_6(%arg0: i32) -> (i32, i32, i32) {
    %c0_i32 = arith.constant 0 : i32
    %c0_i32_0 = arith.constant 0 : i32
    %c0_i32_1 = arith.constant 0 : i32
    return %arg0, %c0_i32, %c0_i32_0 : i32, i32, i32
  }
}

</mosaic_0001>

<bundles_post_ra>
// kernel: bottleneck_forward.7
= control target key start
LH: loop header
LB: loop body
LE: loop exit
PB: predicated region body
PF: predicated region fallthrough
CT: control target
= control target key end

     0   :  { %s807_s15 = smov 0   ;;  %s975_s0 = inlined_call_operand.vmem [shape: bf16[512,128], index: 0, kind: input, shape index: {}]   ;;  %s976_s1 = inlined_call_operand.vmem [shape: f32[1,128], index: 1, kind: input, shape index: {}]   ;;  %s977_s2 = inlined_call_operand.vmem [shape: f32[1,128], index: 2, kind: input, shape index: {}]   ;;  %s978_s3 = inlined_call_operand.vmem [shape: bf16[512,128], index: 3, kind: input, shape index: {}]   ;;  %s979_s4 = inlined_call_operand.vmem [shape: f32[512,128], index: 4, kind: output, shape index: {}]  }
   0x1 LB: > { %s593_s16 = sadd.s32 4294967295, %s780_s15   ;;  %p597_p0 = scmp.ge.s32.totalorder %s780_s15, 1  ;;  %s780_s15 = sphi %s807_s15, %s14_s15  }
   0x2   : > { %p174_p1 = scmp.lt.s32.totalorder %s780_s15, 3 }
   0x4   : > { %p175_p2 = pnand %p597_p0, %p174_p1 }
   0x5   : > { %s598_s17 = sshll.u32 (!%p175_p2), %s593_s16, 5  ;;  %v831_v0 = vld [vmem:[%s976_s1] ss:$0 sm:$0xff] (!%p175_p2) }
   0x6   : > { %178 = sbr.rel (%p175_p2) target bundleno = 71 (0x47), region = 36  ;;  %p206_p3 = scmp.lt.s32.totalorder (!%p175_p2), %s598_s17, 63  ;;  %v842_v11 = vld [vmem:[%s977_s2] ss:$0 sm:$0xff] (!%p175_p2) }
   0xd   : > { %s981_s17 = smov (!%p206_p3, %s598_s17), 63 }
   0xe   : > { %s599_s18 = sshll.u32 %s981_s17, 2  ;;  %s603_s29 = sshll.u32 %s981_s17, 3 }
   0xf   : > { %s821_s21 = scalar_lea.vmem %s975_s0, %s599_s18  ;;  %s826_s24 = scalar_lea.vmem %s978_s3, %s599_s18 }
  0x10   : > { %v609_v1 = vld [vmem:[%s821_s21] sm:$0xff]   ;;  %v736_v3 = vld [vmem:[%s821_s21 + $0x8] sm:$0xff]   ;;  %v737_v9 = vld [vmem:[%s821_s21 + $0x10] sm:$0xff]   ;;  %s862_s6 = scalar_lea.vmem %s979_s4, %s603_s29 }
  0x11   : > { %v673_v2 = vld [vmem:[%s826_s24] sm:$0xff]   ;;  %v610_v4 = vunpack.c.l.bf16 %v609_v1  ;;  %v611_v6 = vunpack.c.h.bf16 %v609_v1  ;;  %v751_v8 = vld [vmem:[%s826_s24 + $0x8] sm:$0xff]   ;;  %v752_v10 = vld [vmem:[%s826_s24 + $0x10] sm:$0xff]   ;;  %v614_v12 = vunpack.c.l.bf16 %v736_v3  ;;  %v615_v14 = vunpack.c.h.bf16 %v736_v3 }
  0x12   : > { %v674_v5 = vunpack.c.l.bf16 %v673_v2  ;;  %v675_v7 = vunpack.c.h.bf16 %v673_v2  ;;  %v678_v13 = vunpack.c.l.bf16 %v751_v8  ;;  %v679_v15 = vunpack.c.h.bf16 %v751_v8  ;;  %v738_v16 = vld [vmem:[%s821_s21 + $0x18] sm:$0xff]   ;;  %v739_v42 = vld [vmem:[%s821_s21 + $0x20] sm:$0xff]   ;;  %v740_v52 = vld [vmem:[%s821_s21 + $0x28] sm:$0xff]  }
  0x13   : > { %v294_v17 = vmul.f32 %v610_v4, %v831_v0  ;;  %v295_v18 = vmul.f32 %v611_v6, %v831_v0  ;;  %v618_v19 = vunpack.c.l.bf16 %v737_v9  ;;  %v682_v20 = vunpack.c.l.bf16 %v752_v10  ;;  %v753_v21 = vld [vmem:[%s826_s24 + $0x18] sm:$0xff]   ;;  %v754_v47 = vld [vmem:[%s826_s24 + $0x20] sm:$0xff]   ;;  %v755_v57 = vld [vmem:[%s826_s24 + $0x28] sm:$0xff]  }
  0x14   : > { %v296_v22 = vmul.f32 %v614_v12, %v831_v0  ;;  %v297_v23 = vmul.f32 %v615_v14, %v831_v0  ;;  %v619_v24 = vunpack.c.h.bf16 %v737_v9  ;;  %v683_v25 = vunpack.c.h.bf16 %v752_v10  ;;  %v741_v62 = vld [vmem:[%s821_s21 + $0x30] sm:$0xff]   ;;  %v742_v14 = vld [vmem:[%s821_s21 + $0x38] sm:$0xff]  }
  0x15   : > { %v333_v26 = vadd.f32 %v842_v11, %v294_v17  ;;  %v334_v27 = vadd.f32 %v842_v11, %v295_v18  ;;  %v298_v28 = vmul.f32 %v618_v19, %v831_v0  ;;  %v622_v29 = vunpack.c.l.bf16 %v738_v16  ;;  %v756_v4 = vld [vmem:[%s826_s24 + $0x30] sm:$0xff]  }
  0x16   : > { %v335_v30 = vadd.f32 %v842_v11, %v296_v22  ;;  %v336_v31 = vadd.f32 %v842_v11, %v297_v23  ;;  %v299_v32 = vmul.f32 %v619_v24, %v831_v0  ;;  %v686_v33 = vunpack.c.l.bf16 %v753_v21  ;;  %v757_v23 = vld [vmem:[%s826_s24 + $0x38] sm:$0xff]  }
  0x17   : > { %v429_v34 = vadd.f32 %v674_v5, %v333_v26  ;;  %v430_v35 = vadd.f32 %v675_v7, %v334_v27  ;;  %v337_v36 = vadd.f32 %v842_v11, %v298_v28  ;;  %v300_v37 = vmul.f32 %v622_v29, %v831_v0 }
  0x18   : > { %v431_v38 = vadd.f32 %v678_v13, %v335_v30  ;;  %v432_v39 = vadd.f32 %v679_v15, %v336_v31  ;;  %v338_v40 = vadd.f32 %v842_v11, %v299_v32  ;;  %v623_v41 = vunpack.c.h.bf16 %v738_v16  ;;  %v743_v32 = vld [vmem:[%s821_s21 + $0x40] sm:$0xff]  }
  0x19   : > { %v461_v43 = vmax.f32 %v429_v34, 0.0  ;;  %v462_v44 = vmax.f32 %v430_v35, 0.0  ;;  %v433_v45 = vadd.f32 %v682_v20, %v337_v36  ;;  %v339_v46 = vadd.f32 %v842_v11, %v300_v37  ;;  %v758_v37 = vld [vmem:[%s826_s24 + $0x40] sm:$0xff]  }
  0x1a   : > { %v463_v48 = vmax.f32 %v431_v38, 0.0  ;;  %v464_v49 = vmax.f32 %v432_v39, 0.0  ;;  %v434_v50 = vadd.f32 %v683_v25, %v338_v40  ;;  %v301_v51 = vmul.f32 %v623_v41, %v831_v0 }
  0x1b   : > { %493 = vst [vmem:[%s862_s6] sm:$0xff] %v461_v43  ;;  %494 = vst [vmem:[%s862_s6 + $0x8] sm:$0xff] %v462_v44  ;;  %v465_v53 = vmax.f32 %v433_v45, 0.0  ;;  %v435_v54 = vadd.f32 %v686_v33, %v339_v46  ;;  %v687_v55 = vunpack.c.h.bf16 %v753_v21  ;;  %v626_v56 = vunpack.c.l.bf16 %v739_v42  ;;  %v744_v46 = vld [vmem:[%s821_s21 + $0x48] sm:$0xff]  }
  0x1c   : > { %495 = vst [vmem:[%s862_s6 + $0x10] sm:$0xff] %v463_v48  ;;  %496 = vst [vmem:[%s862_s6 + $0x18] sm:$0xff] %v464_v49  ;;  %v466_v58 = vmax.f32 %v434_v50, 0.0  ;;  %v340_v59 = vadd.f32 %v842_v11, %v301_v51  ;;  %v690_v60 = vunpack.c.l.bf16 %v754_v47  ;;  %v627_v61 = vunpack.c.h.bf16 %v739_v42 }
  0x1d   : > { %497 = vst [vmem:[%s862_s6 + $0x20] sm:$0xff] %v465_v53  ;;  %v467_v63 = vmax.f32 %v435_v54, 0.0  ;;  %v302_v1 = vmul.f32 %v626_v56, %v831_v0  ;;  %v691_v2 = vunpack.c.h.bf16 %v754_v47  ;;  %v630_v3 = vunpack.c.l.bf16 %v740_v52  ;;  %v759_v47 = vld [vmem:[%s826_s24 + $0x48] sm:$0xff]   ;;  %v745_v56 = vld [vmem:[%s821_s21 + $0x50] sm:$0xff]  }
  0x1e   : > { %498 = vst [vmem:[%s862_s6 + $0x28] sm:$0xff] %v466_v58  ;;  %v436_v5 = vadd.f32 %v687_v55, %v340_v59  ;;  %v303_v6 = vmul.f32 %v627_v61, %v831_v0  ;;  %v694_v7 = vunpack.c.l.bf16 %v755_v57  ;;  %v631_v8 = vunpack.c.h.bf16 %v740_v52  ;;  %v760_v61 = vld [vmem:[%s826_s24 + $0x50] sm:$0xff]  }
  0x1f   : > { %499 = vst [vmem:[%s862_s6 + $0x30] sm:$0xff] %v467_v63  ;;  %v341_v9 = vadd.f32 %v842_v11, %v302_v1  ;;  %v304_v10 = vmul.f32 %v630_v3, %v831_v0  ;;  %v695_v12 = vunpack.c.h.bf16 %v755_v57  ;;  %v634_v13 = vunpack.c.l.bf16 %v741_v62 }
  0x20   : > { %v468_v15 = vmax.f32 %v436_v5, 0.0  ;;  %v342_v16 = vadd.f32 %v842_v11, %v303_v6  ;;  %v305_v17 = vmul.f32 %v631_v8, %v831_v0  ;;  %v698_v18 = vunpack.c.l.bf16 %v756_v4 }
  0x21   : > { %v437_v19 = vadd.f32 %v690_v60, %v341_v9  ;;  %v343_v20 = vadd.f32 %v842_v11, %v304_v10  ;;  %v306_v21 = vmul.f32 %v634_v13, %v831_v0  ;;  %v635_v22 = vunpack.c.h.bf16 %v741_v62 }
  0x22   : > { %500 = vst [vmem:[%s862_s6 + $0x38] sm:$0xff] %v468_v15  ;;  %v438_v24 = vadd.f32 %v691_v2, %v342_v16  ;;  %v344_v25 = vadd.f32 %v842_v11, %v305_v17  ;;  %v699_v26 = vunpack.c.h.bf16 %v756_v4  ;;  %v638_v27 = vunpack.c.l.bf16 %v742_v14  ;;  %v761_v17 = vld [vmem:[%s826_s24 + $0x58] sm:$0xff]  }
  0x23   : > { %v469_v28 = vmax.f32 %v437_v19, 0.0  ;;  %v439_v29 = vadd.f32 %v694_v7, %v343_v20  ;;  %v345_v30 = vadd.f32 %v842_v11, %v306_v21  ;;  %v307_v31 = vmul.f32 %v635_v22, %v831_v0 }
  0x24   : > { %v470_v33 = vmax.f32 %v438_v24, 0.0  ;;  %v440_v34 = vadd.f32 %v695_v12, %v344_v25  ;;  %v308_v35 = vmul.f32 %v638_v27, %v831_v0  ;;  %v702_v36 = vunpack.c.l.bf16 %v757_v23  ;;  %v746_v12 = vld [vmem:[%s821_s21 + $0x58] sm:$0xff]  }
  0x25   : > { %501 = vst [vmem:[%s862_s6 + $0x40] sm:$0xff] %v469_v28  ;;  %v471_v38 = vmax.f32 %v439_v29, 0.0  ;;  %v441_v39 = vadd.f32 %v698_v18, %v345_v30  ;;  %v346_v40 = vadd.f32 %v842_v11, %v307_v31  ;;  %v639_v41 = vunpack.c.h.bf16 %v742_v14  ;;  %v762_v31 = vld [vmem:[%s826_s24 + $0x60] sm:$0xff]  }
  0x26   : > { %502 = vst [vmem:[%s862_s6 + $0x48] sm:$0xff] %v470_v33  ;;  %v472_v42 = vmax.f32 %v440_v34, 0.0  ;;  %v347_v43 = vadd.f32 %v842_v11, %v308_v35  ;;  %v703_v44 = vunpack.c.h.bf16 %v757_v23  ;;  %v642_v45 = vunpack.c.l.bf16 %v743_v32 }
  0x27   : > { %503 = vst [vmem:[%s862_s6 + $0x50] sm:$0xff] %v471_v38  ;;  %v473_v48 = vmax.f32 %v441_v39, 0.0  ;;  %v442_v49 = vadd.f32 %v699_v26, %v346_v40  ;;  %v309_v50 = vmul.f32 %v639_v41, %v831_v0  ;;  %v706_v51 = vunpack.c.l.bf16 %v758_v37  ;;  %v747_v26 = vld [vmem:[%s821_s21 + $0x60] sm:$0xff]   ;;  %v748_v40 = vld [vmem:[%s821_s21 + $0x68] sm:$0xff]  }
  0x28   : > { %504 = vst [vmem:[%s862_s6 + $0x58] sm:$0xff] %v472_v42  ;;  %v443_v52 = vadd.f32 %v702_v36, %v347_v43  ;;  %v310_v53 = vmul.f32 %v642_v45, %v831_v0  ;;  %v643_v54 = vunpack.c.h.bf16 %v743_v32  ;;  %v707_v55 = vunpack.c.h.bf16 %v758_v37  ;;  %v763_v41 = vld [vmem:[%s826_s24 + $0x68] sm:$0xff]  }
  0x29   : > { %505 = vst [vmem:[%s862_s6 + $0x60] sm:$0xff] %v473_v48  ;;  %v474_v57 = vmax.f32 %v442_v49, 0.0  ;;  %v348_v58 = vadd.f32 %v842_v11, %v309_v50  ;;  %v646_v59 = vunpack.c.l.bf16 %v744_v46  ;;  %v710_v60 = vunpack.c.l.bf16 %v759_v47  ;;  %v749_v50 = vld [vmem:[%s821_s21 + $0x70] sm:$0xff]  }
  0x2a   : > { %v475_v62 = vmax.f32 %v443_v52, 0.0  ;;  %v349_v63 = vadd.f32 %v842_v11, %v310_v53  ;;  %v311_v1 = vmul.f32 %v643_v54, %v831_v0  ;;  %v647_v2 = vunpack.c.h.bf16 %v744_v46 }
  0x2b   : > { %506 = vst [vmem:[%s862_s6 + $0x68] sm:$0xff] %v474_v57  ;;  %v444_v3 = vadd.f32 %v703_v44, %v348_v58  ;;  %v312_v4 = vmul.f32 %v646_v59, %v831_v0  ;;  %v711_v5 = vunpack.c.h.bf16 %v759_v47  ;;  %v650_v6 = vunpack.c.l.bf16 %v745_v56  ;;  %v764_v59 = vld [vmem:[%s826_s24 + $0x70] sm:$0xff]  }
  0x2c   : > { %507 = vst [vmem:[%s862_s6 + $0x70] sm:$0xff] %v475_v62  ;;  %v445_v7 = vadd.f32 %v706_v51, %v349_v63  ;;  %v350_v8 = vadd.f32 %v842_v11, %v311_v1  ;;  %v313_v9 = vmul.f32 %v647_v2, %v831_v0  ;;  %v714_v10 = vunpack.c.l.bf16 %v760_v61 }
  0x2d   : > { %v476_v13 = vmax.f32 %v444_v3, 0.0  ;;  %v351_v14 = vadd.f32 %v842_v11, %v312_v4  ;;  %v314_v15 = vmul.f32 %v650_v6, %v831_v0  ;;  %v651_v16 = vunpack.c.h.bf16 %v745_v56 }
  0x2e   : > { %v477_v18 = vmax.f32 %v445_v7, 0.0  ;;  %v446_v19 = vadd.f32 %v707_v55, %v350_v8  ;;  %v352_v20 = vadd.f32 %v842_v11, %v313_v9  ;;  %v715_v21 = vunpack.c.h.bf16 %v760_v61 }
  0x2f   : > { %508 = vst [vmem:[%s862_s6 + $0x78] sm:$0xff] %v476_v13  ;;  %v447_v22 = vadd.f32 %v710_v60, %v351_v14  ;;  %v353_v23 = vadd.f32 %v842_v11, %v314_v15  ;;  %v315_v24 = vmul.f32 %v651_v16, %v831_v0  ;;  %v654_v25 = vunpack.c.l.bf16 %v746_v12 }
  0x30   : > { %509 = vst [vmem:[%s862_s6 + $0x80] sm:$0xff] %v477_v18  ;;  %v478_v27 = vmax.f32 %v446_v19, 0.0  ;;  %v448_v28 = vadd.f32 %v711_v5, %v352_v20  ;;  %v718_v29 = vunpack.c.l.bf16 %v761_v17  ;;  %v655_v30 = vunpack.c.h.bf16 %v746_v12  ;;  %v750_v5 = vld [vmem:[%s821_s21 + $0x78] sm:$0xff]  }
  0x31   : > { %v479_v32 = vmax.f32 %v447_v22, 0.0  ;;  %v449_v33 = vadd.f32 %v714_v10, %v353_v23  ;;  %v354_v34 = vadd.f32 %v842_v11, %v315_v24  ;;  %v316_v35 = vmul.f32 %v654_v25, %v831_v0  ;;  %v765_v10 = vld [vmem:[%s826_s24 + $0x78] sm:$0xff]  }
  0x32   : > { %510 = vst [vmem:[%s862_s6 + $0x88] sm:$0xff] %v478_v27  ;;  %v480_v36 = vmax.f32 %v448_v28, 0.0  ;;  %v317_v37 = vmul.f32 %v655_v30, %v831_v0  ;;  %v719_v38 = vunpack.c.h.bf16 %v761_v17  ;;  %v658_v39 = vunpack.c.l.bf16 %v747_v26 }
  0x33   : > { %511 = vst [vmem:[%s862_s6 + $0x90] sm:$0xff] %v479_v32  ;;  %v481_v42 = vmax.f32 %v449_v33, 0.0  ;;  %v450_v43 = vadd.f32 %v715_v21, %v354_v34  ;;  %v355_v44 = vadd.f32 %v842_v11, %v316_v35  ;;  %v722_v45 = vunpack.c.l.bf16 %v762_v31 }
  0x34   : > { %512 = vst [vmem:[%s862_s6 + $0x98] sm:$0xff] %v480_v36  ;;  %v356_v46 = vadd.f32 %v842_v11, %v317_v37  ;;  %v318_v47 = vmul.f32 %v658_v39, %v831_v0  ;;  %v659_v48 = vunpack.c.h.bf16 %v747_v26  ;;  %v723_v49 = vunpack.c.h.bf16 %v762_v31 }
  0x35   : > { %513 = vst [vmem:[%s862_s6 + $0xa0] sm:$0xff] %v481_v42  ;;  %v482_v51 = vmax.f32 %v450_v43, 0.0  ;;  %v451_v52 = vadd.f32 %v718_v29, %v355_v44  ;;  %v662_v53 = vunpack.c.l.bf16 %v748_v40  ;;  %v726_v54 = vunpack.c.l.bf16 %v763_v41 }
  0x36   : > { %v452_v55 = vadd.f32 %v719_v38, %v356_v46  ;;  %v357_v56 = vadd.f32 %v842_v11, %v318_v47  ;;  %v319_v57 = vmul.f32 %v659_v48, %v831_v0  ;;  %v663_v58 = vunpack.c.h.bf16 %v748_v40 }
  0x37   : > { %514 = vst [vmem:[%s862_s6 + $0xa8] sm:$0xff] %v482_v51  ;;  %v483_v60 = vmax.f32 %v451_v52, 0.0  ;;  %v320_v61 = vmul.f32 %v662_v53, %v831_v0  ;;  %v727_v62 = vunpack.c.h.bf16 %v763_v41  ;;  %v666_v63 = vunpack.c.l.bf16 %v749_v50 }
  0x38   : > { %v484_v1 = vmax.f32 %v452_v55, 0.0  ;;  %v453_v2 = vadd.f32 %v722_v45, %v357_v56  ;;  %v358_v3 = vadd.f32 %v842_v11, %v319_v57  ;;  %v321_v4 = vmul.f32 %v663_v58, %v831_v0 }
  0x39   : > { %515 = vst [vmem:[%s862_s6 + $0xb0] sm:$0xff] %v483_v60  ;;  %v359_v6 = vadd.f32 %v842_v11, %v320_v61  ;;  %v322_v7 = vmul.f32 %v666_v63, %v831_v0  ;;  %v730_v8 = vunpack.c.l.bf16 %v764_v59  ;;  %v667_v9 = vunpack.c.h.bf16 %v749_v50 }
  0x3a   : > { %516 = vst [vmem:[%s862_s6 + $0xb8] sm:$0xff] %v484_v1  ;;  %v485_v12 = vmax.f32 %v453_v2, 0.0  ;;  %v454_v13 = vadd.f32 %v723_v49, %v358_v3  ;;  %v360_v14 = vadd.f32 %v842_v11, %v321_v4  ;;  %v731_v15 = vunpack.c.h.bf16 %v764_v59 }
  0x3b   : > { %v455_v16 = vadd.f32 %v726_v54, %v359_v6  ;;  %v361_v17 = vadd.f32 %v842_v11, %v322_v7  ;;  %v323_v18 = vmul.f32 %v667_v9, %v831_v0  ;;  %v670_v19 = vunpack.c.l.bf16 %v750_v5 }
  0x3c   : > { %517 = vst [vmem:[%s862_s6 + $0xc0] sm:$0xff] %v485_v12  ;;  %v486_v20 = vmax.f32 %v454_v13, 0.0  ;;  %v456_v21 = vadd.f32 %v727_v62, %v360_v14  ;;  %v734_v22 = vunpack.c.l.bf16 %v765_v10  ;;  %v671_v23 = vunpack.c.h.bf16 %v750_v5 }
  0x3d   : > { %v487_v24 = vmax.f32 %v455_v16, 0.0  ;;  %v457_v25 = vadd.f32 %v730_v8, %v361_v17  ;;  %v362_v26 = vadd.f32 %v842_v11, %v323_v18  ;;  %v324_v27 = vmul.f32 %v670_v19, %v831_v0 }
  0x3e   : > { %518 = vst [vmem:[%s862_s6 + $0xc8] sm:$0xff] %v486_v20  ;;  %v488_v28 = vmax.f32 %v456_v21, 0.0  ;;  %v325_v29 = vmul.f32 %v671_v23, %v831_v0  ;;  %v735_v30 = vunpack.c.h.bf16 %v765_v10 }
  0x3f   : > { %519 = vst [vmem:[%s862_s6 + $0xd0] sm:$0xff] %v487_v24  ;;  %v489_v31 = vmax.f32 %v457_v25, 0.0  ;;  %v458_v32 = vadd.f32 %v731_v15, %v362_v26  ;;  %v363_v33 = vadd.f32 %v842_v11, %v324_v27 }
  0x40   : > { %520 = vst [vmem:[%s862_s6 + $0xd8] sm:$0xff] %v488_v28  ;;  %v364_v34 = vadd.f32 %v842_v11, %v325_v29 }
  0x41   : > { %521 = vst [vmem:[%s862_s6 + $0xe0] sm:$0xff] %v489_v31  ;;  %v490_v35 = vmax.f32 %v458_v32, 0.0  ;;  %v459_v36 = vadd.f32 %v734_v22, %v363_v33 }
  0x42   : > { %v460_v37 = vadd.f32 %v735_v30, %v364_v34 }
  0x43   : > { %522 = vst [vmem:[%s862_s6 + $0xe8] sm:$0xff] %v490_v35  ;;  %v491_v38 = vmax.f32 %v459_v36, 0.0 }
  0x44   : > { %v492_v39 = vmax.f32 %v460_v37, 0.0 }
  0x45   : > { %523 = vst [vmem:[%s862_s6 + $0xf0] sm:$0xff] %v491_v38 }
  0x46   : > { %524 = vst [vmem:[%s862_s6 + $0xf8] sm:$0xff] %v492_v39 }
  0x47 PF: > { %s14_s15 = sadd.s32 1, %s780_s15  }
  0x48   : > { %p11_p4 = scmp.ge.s32.totalorder %s14_s15, 4  }
  0x4a   :  { %13 = sbr.rel (!%p11_p4) target bundleno = 1 (0x1), region = 69 }

// kernel: bottleneck_forward.4
= control target key start
LH: loop header
LB: loop body
LE: loop exit
PB: predicated region body
PF: predicated region fallthrough
CT: control target
= control target key end

     0   :  { %s1293_s15 = smov 0   ;;  %s1472_s0 = inlined_call_operand.vmem [shape: bf16[512,128], index: 0, kind: input, shape index: {}]   ;;  %s1473_s1 = inlined_call_operand.vmem [shape: bf16[128,128], index: 1, kind: input, shape index: {}]   ;;  %s1474_s2 = inlined_call_operand.vmem [shape: bf16[512,128], index: 2, kind: output, shape index: {0}]   ;;  %s1475_s3 = inlined_call_operand.vmem [shape: f32[2,1,128], index: 3, kind: output, shape index: {1}]   ;;  %s1476_s4 = inlined_call_operand.vmem [shape: f32[2,1,128], index: 4, kind: output, shape index: {2}]  }
   0x1 LB: > { %s1299_s16 = sadd.s32 4294967295, %s1266_s15   ;;  %p950_p0 = scmp.ge.s32.totalorder %s1266_s15, 1  ;;  %s1266_s15 = sphi %s1293_s15, %s15_s15  }
   0x2   : > { %p168_p1 = scmp.lt.s32.totalorder %s1266_s15, 3 }
   0x4   : > { %p169_p2 = pnand %p950_p0, %p168_p1 }
   0x5   : > { %v1236_v0 = vld [vmem:[%s1473_s1] sm:$0xff] (!%p169_p2)   ;;  %s951_s19 = sshll.u32 (!%p169_p2), %s1299_s16, 5  ;;  %v1237_v1 = vld [vmem:[%s1473_s1 + $0x8] sm:$0xff] (!%p169_p2)   ;;  %v1238_v2 = vld [vmem:[%s1473_s1 + $0x10] sm:$0xff] (!%p169_p2)   ;;  %p212_p4 = scmp.lt.s32.totalorder (!%p169_p2), %s1299_s16, 1 }
   0x6   : > { %172 = sbr.rel (%p169_p2) target bundleno = 330 (0x14a), region = 28  ;;  %p201_p3 = scmp.lt.s32.totalorder (!%p169_p2), %s951_s19, 63  ;;  %1164 = vmatprep.subr.bf16.mxu0 (!%p169_p2), %v1236_v0  ;;  %1212 = vmatprep.subr.bf16.mxu1 (!%p169_p2), %v1236_v0  ;;  %v1239_v3 = vld [vmem:[%s1473_s1 + $0x18] sm:$0xff] (!%p169_p2)   ;;  %v1240_v5 = vld [vmem:[%s1473_s1 + $0x20] sm:$0xff] (!%p169_p2)   ;;  %v1241_v6 = vld [vmem:[%s1473_s1 + $0x28] sm:$0xff] (!%p169_p2)  }
   0x7   : > { %1165 = vmatpush3.bf16.msra.mxu0 (!%p169_p2), %v1236_v0  ;;  %1220 = vmatpush3.bf16.msra.mxu1 (!%p169_p2), %v1236_v0  ;;  %v1242_v8 = vld [vmem:[%s1473_s1 + $0x30] sm:$0xff] (!%p169_p2)   ;;  %v1243_v9 = vld [vmem:[%s1473_s1 + $0x38] sm:$0xff] (!%p169_p2)  }
   0x8   : > { %1166 = vmatprep.subr.bf16.mxu0 (!%p169_p2), %v1237_v1  ;;  %1213 = vmatprep.subr.bf16.mxu1 (!%p169_p2), %v1237_v1 }
   0xb   : > { %1167 = vmatpush3.bf16.msra.mxu0 (!%p169_p2), %v1237_v1  ;;  %1221 = vmatpush3.bf16.msra.mxu1 (!%p169_p2), %v1237_v1 }
   0xc   : > { %1168 = vmatprep.subr.bf16.mxu0 (!%p169_p2), %v1238_v2  ;;  %1214 = vmatprep.subr.bf16.mxu1 (!%p169_p2), %v1238_v2 }
   0xd   : > { %s1478_s19 = smov (!%p201_p3, %s951_s19), 63  ;;  %s1480_s16 = smov (!%p212_p4, %s1299_s16), 1 }
   0xe   : > { %s952_s24 = sshll.u32 %s1478_s19, 2  ;;  %s214_s19 = scalar_lea.vmem %s1475_s3, %s1480_s16 }
   0xf   : > { %s1321_s27 = scalar_lea.vmem %s1472_s0, %s952_s24  ;;  %1169 = vmatpush3.bf16.msra.mxu0 %v1238_v2  ;;  %1222 = vmatpush3.bf16.msra.mxu1 %v1238_v2  ;;  %s1363_s14 = scalar_lea.vmem %s1474_s2, %s952_s24 }
  0x10   : > { %v1244_v4 = vld [vmem:[%s1321_s27] sm:$0xff]   ;;  %1170 = vmatprep.subr.bf16.mxu0 %v1239_v3  ;;  %1215 = vmatprep.subr.bf16.mxu1 %v1239_v3  ;;  %v1245_v10 = vld [vmem:[%s1321_s27 + $0x8] sm:$0xff]   ;;  %v1246_v12 = vld [vmem:[%s1321_s27 + $0x10] sm:$0xff]   ;;  %s217_s22 = scalar_lea.vmem %s1476_s4, %s1480_s16 }
  0x11   : > { %1180 = vmatprep.mubr.bf16.mxu0 %v1244_v4  ;;  %v1252_v7 = vld [vmem:[%s1321_s27 + $0x40] sm:$0xff]   ;;  %v1253_v11 = vld [vmem:[%s1321_s27 + $0x48] sm:$0xff]   ;;  %v1254_v13 = vld [vmem:[%s1321_s27 + $0x50] sm:$0xff]  }
  0x12   : > { %1196 = vmatprep.mubr.bf16.mxu1 %v1252_v7  ;;  %v1247_v14 = vld [vmem:[%s1321_s27 + $0x18] sm:$0xff]   ;;  %v1248_v16 = vld [vmem:[%s1321_s27 + $0x20] sm:$0xff]   ;;  %v1249_v18 = vld [vmem:[%s1321_s27 + $0x28] sm:$0xff]  }
  0x13   : > { %1171 = vmatpush3.bf16.msra.mxu0 %v1239_v3  ;;  %1223 = vmatpush3.bf16.msra.mxu1 %v1239_v3  ;;  %v1255_v15 = vld [vmem:[%s1321_s27 + $0x58] sm:$0xff]   ;;  %v1256_v17 = vld [vmem:[%s1321_s27 + $0x60] sm:$0xff]   ;;  %v1257_v19 = vld [vmem:[%s1321_s27 + $0x68] sm:$0xff]  }
  0x14   : > { %1172 = vmatprep.subr.bf16.mxu0 %v1240_v5  ;;  %1216 = vmatprep.subr.bf16.mxu1 %v1240_v5  ;;  %v1250_v20 = vld [vmem:[%s1321_s27 + $0x30] sm:$0xff]   ;;  %v1251_v22 = vld [vmem:[%s1321_s27 + $0x38] sm:$0xff]  }
  0x15   : > { %v1258_v21 = vld [vmem:[%s1321_s27 + $0x70] sm:$0xff]   ;;  %v1259_v23 = vld [vmem:[%s1321_s27 + $0x78] sm:$0xff]  }
  0x17   : > { %1173 = vmatpush3.bf16.msra.mxu0 %v1240_v5  ;;  %1224 = vmatpush3.bf16.msra.mxu1 %v1240_v5 }
  0x18   : > { %1174 = vmatprep.subr.bf16.mxu0 %v1241_v6  ;;  %1217 = vmatprep.subr.bf16.mxu1 %v1241_v6 }
  0x1b   : > { %1175 = vmatpush3.bf16.msra.mxu0 %v1241_v6  ;;  %1225 = vmatpush3.bf16.msra.mxu1 %v1241_v6 }
  0x1c   : > { %1176 = vmatprep.subr.bf16.mxu0 %v1242_v8  ;;  %1218 = vmatprep.subr.bf16.mxu1 %v1242_v8 }
  0x1f   : > { %1177 = vmatpush3.bf16.msra.mxu0 %v1242_v8  ;;  %1226 = vmatpush3.bf16.msra.mxu1 %v1242_v8 }
  0x20   : > { %1178 = vmatprep.subr.bf16.mxu0 %v1243_v9  ;;  %1219 = vmatprep.subr.bf16.mxu1 %v1243_v9 }
  0x23   : > { %1179 = vmatpush3.bf16.msra.mxu0 %v1243_v9  ;;  %1227 = vmatpush3.bf16.msra.mxu1 %v1243_v9 }
  0x26   : > { %1181 = vmatmul.mubr.bf16.vlgmr.msra.gmra.mrb[0].mxu0 %v1245_v10  ;;  %1197 = vmatmul.mubr.bf16.vlgmr.msra.gmra.mrb[0].mxu1 %v1253_v11 }
  0x27   : > { %1184 = vmatprep.mubr.bf16.mxu0 %v1246_v12  ;;  %1200 = vmatprep.mubr.bf16.mxu1 %v1254_v13 }
  0x2e   : > { %1185 = vmatmul.mubr.bf16.gmra.mrb[4].mxu0 %v1247_v14  ;;  %1201 = vmatmul.mubr.bf16.gmra.mrb[4].mxu1 %v1255_v15 }
  0x2f   : > { %1188 = vmatprep.mubr.bf16.mxu0 %v1248_v16  ;;  %1204 = vmatprep.mubr.bf16.mxu1 %v1256_v17 }
  0x36   : > { %1189 = vmatmul.mubr.bf16.gmra.mrb[8].mxu0 %v1249_v18  ;;  %1205 = vmatmul.mubr.bf16.gmra.mrb[8].mxu1 %v1257_v19 }
  0x37   : > { %1192 = vmatprep.mubr.bf16.mxu0 %v1250_v20  ;;  %1208 = vmatprep.mubr.bf16.mxu1 %v1258_v21 }
  0x3e   : > { %1193 = vmatmul.mubr.bf16.gmra.mrb[12].mxu0 %v1251_v22  ;;  %1209 = vmatmul.mubr.bf16.gmra.mrb[12].mxu1 %v1259_v23 }
  0xf9   : > { %v1182_v24 = vpop.f32.mrb[0].mxu0  ;;  %v1354_v25 = vpop.f32.mrb[0].mxu1 }
  0xfa   : > { %v445_v26 = vpop.f32.mrb[1].mxu0  ;;  %v1356_v27 = vpop.f32.mrb[1].mxu1  ;;  %v772_v39 = vmul.f32 %v1182_v24, %v1182_v24 }
  0xfb   : > { %v1183_v28 = vpop.f32.mrb[2].mxu0  ;;  %v1365_v29 = vpop.f32.mrb[2].mxu1  ;;  %v770_v30 = vmul.f32 %v445_v26, %v445_v26 }
  0xfc   : > { %v1053_v31 = vpack.c.bf16 %v1183_v28, %v1182_v24  ;;  %v448_v32 = vpop.f32.mrb[3].mxu0  ;;  %v1093_v33 = vpack.c.bf16 %v1365_v29, %v1354_v25  ;;  %v1369_v34 = vpop.f32.mrb[3].mxu1  ;;  %v773_v42 = vmul.f32 %v1183_v28, %v1183_v28 }
  0xfd   : > { %v1048_v35 = vpack.c.bf16 %v448_v32, %v445_v26  ;;  %v732_v36 = vadd.f32 %v448_v32, %v445_v26  ;;  %v771_v37 = vmul.f32 %v448_v32, %v448_v32  ;;  %v1088_v38 = vpack.c.bf16 %v1369_v34, %v1356_v27 }
  0xfe   : > { %1125 = vst [vmem:[%s1363_s14 + $0x8] sm:$0xff] %v1053_v31   ;;  %1133 = vst [vmem:[%s1363_s14 + $0x48] sm:$0xff] %v1093_v33  }
  0xff   : > { %1049 = vst [vmem:[%s1363_s14] sm:$0xff] %v1048_v35   ;;  %v733_v40 = vadd.f32 %v1182_v24, %v732_v36  ;;  %v802_v41 = vadd.f32 %v771_v37, %v770_v30  ;;  %1132 = vst [vmem:[%s1363_s14 + $0x40] sm:$0xff] %v1088_v38  }
 0x101   : > { %v803_v43 = vadd.f32 %v802_v41, %v772_v39  ;;  %v1186_v44 = vpop.f32.mrb[4].mxu0  ;;  %v734_v45 = vadd.f32 %v1183_v28, %v733_v40  ;;  %v1377_v46 = vpop.f32.mrb[4].mxu1 }
 0x102   : > { %v461_v47 = vpop.f32.mrb[5].mxu0  ;;  %v1379_v48 = vpop.f32.mrb[5].mxu1  ;;  %v776_v63 = vmul.f32 %v1186_v44, %v1186_v44 }
 0x103   : > { %v735_v49 = vadd.f32 %v734_v45, %v461_v47  ;;  %v774_v50 = vmul.f32 %v461_v47, %v461_v47  ;;  %v804_v51 = vadd.f32 %v803_v43, %v773_v42  ;;  %v1187_v52 = vpop.f32.mrb[6].mxu0  ;;  %v1381_v53 = vpop.f32.mrb[6].mxu1 }
 0x104   : > { %v1063_v54 = vpack.c.bf16 %v1187_v52, %v1186_v44  ;;  %v464_v55 = vpop.f32.mrb[7].mxu0  ;;  %v1103_v56 = vpack.c.bf16 %v1381_v53, %v1377_v46  ;;  %v1385_v57 = vpop.f32.mrb[7].mxu1  ;;  %v777_v2 = vmul.f32 %v1187_v52, %v1187_v52 }
 0x105   : > { %v805_v58 = vadd.f32 %v804_v51, %v774_v50  ;;  %v1058_v59 = vpack.c.bf16 %v464_v55, %v461_v47  ;;  %v736_v60 = vadd.f32 %v735_v49, %v464_v55  ;;  %v775_v61 = vmul.f32 %v464_v55, %v464_v55 }
 0x106   : > { %1127 = vst [vmem:[%s1363_s14 + $0x18] sm:$0xff] %v1063_v54   ;;  %1135 = vst [vmem:[%s1363_s14 + $0x58] sm:$0xff] %v1103_v56   ;;  %v1098_v62 = vpack.c.bf16 %v1385_v57, %v1379_v48 }
 0x107   : > { %1126 = vst [vmem:[%s1363_s14 + $0x10] sm:$0xff] %v1058_v59   ;;  %v737_v0 = vadd.f32 %v1186_v44, %v736_v60  ;;  %v806_v1 = vadd.f32 %v805_v58, %v775_v61  ;;  %v786_v61 = vmul.f32 %v1356_v27, %v1356_v27 }
 0x108   : > { %1134 = vst [vmem:[%s1363_s14 + $0x50] sm:$0xff] %v1098_v62  }
 0x109   : > { %v807_v3 = vadd.f32 %v806_v1, %v776_v63  ;;  %v1190_v4 = vpop.f32.mrb[8].mxu0  ;;  %v738_v5 = vadd.f32 %v1187_v52, %v737_v0  ;;  %v1393_v6 = vpop.f32.mrb[8].mxu1 }
 0x10a   : > { %v477_v7 = vpop.f32.mrb[9].mxu0  ;;  %v1395_v8 = vpop.f32.mrb[9].mxu1  ;;  %v780_v23 = vmul.f32 %v1190_v4, %v1190_v4 }
 0x10b   : > { %v739_v9 = vadd.f32 %v738_v5, %v477_v7  ;;  %v778_v10 = vmul.f32 %v477_v7, %v477_v7  ;;  %v808_v11 = vadd.f32 %v807_v3, %v777_v2  ;;  %v1191_v12 = vpop.f32.mrb[10].mxu0  ;;  %v1397_v13 = vpop.f32.mrb[10].mxu1  ;;  %v787_v2 = vmul.f32 %v1369_v34, %v1369_v34 }
 0x10c   : > { %v1073_v14 = vpack.c.bf16 %v1191_v12, %v1190_v4  ;;  %v480_v15 = vpop.f32.mrb[11].mxu0  ;;  %v1113_v16 = vpack.c.bf16 %v1397_v13, %v1393_v6  ;;  %v1401_v17 = vpop.f32.mrb[11].mxu1  ;;  %v781_v28 = vmul.f32 %v1191_v12, %v1191_v12  ;;  %v788_v3 = vmul.f32 %v1354_v25, %v1354_v25 }
 0x10d   : > { %v809_v18 = vadd.f32 %v808_v11, %v778_v10  ;;  %v1068_v19 = vpack.c.bf16 %v480_v15, %v477_v7  ;;  %v740_v20 = vadd.f32 %v739_v9, %v480_v15  ;;  %v779_v21 = vmul.f32 %v480_v15, %v480_v15 }
 0x10e   : > { %1129 = vst [vmem:[%s1363_s14 + $0x28] sm:$0xff] %v1073_v14   ;;  %1137 = vst [vmem:[%s1363_s14 + $0x68] sm:$0xff] %v1113_v16   ;;  %v1108_v22 = vpack.c.bf16 %v1401_v17, %v1395_v8  ;;  %v789_v7 = vmul.f32 %v1365_v29, %v1365_v29  ;;  %v791_v15 = vmul.f32 %v1385_v57, %v1385_v57 }
 0x10f   : > { %1128 = vst [vmem:[%s1363_s14 + $0x20] sm:$0xff] %v1068_v19   ;;  %v741_v24 = vadd.f32 %v1190_v4, %v740_v20  ;;  %v810_v26 = vadd.f32 %v809_v18, %v779_v21 }
 0x110   : > { %1136 = vst [vmem:[%s1363_s14 + $0x60] sm:$0xff] %v1108_v22  }
 0x111   : > { %v811_v30 = vadd.f32 %v810_v26, %v780_v23  ;;  %v1194_v31 = vpop.f32.mrb[12].mxu0  ;;  %v742_v32 = vadd.f32 %v1191_v12, %v741_v24  ;;  %v1409_v33 = vpop.f32.mrb[12].mxu1  ;;  %v795_v24 = vmul.f32 %v1401_v17, %v1401_v17 }
 0x112   : > { %v493_v35 = vpop.f32.mrb[13].mxu0  ;;  %v557_v36 = vpop.f32.mrb[13].mxu1  ;;  %v784_v54 = vmul.f32 %v1194_v31, %v1194_v31 }
 0x113   : > { %v743_v37 = vadd.f32 %v742_v32, %v493_v35  ;;  %v782_v38 = vmul.f32 %v493_v35, %v493_v35  ;;  %v812_v39 = vadd.f32 %v811_v30, %v781_v28  ;;  %v1195_v40 = vpop.f32.mrb[14].mxu0  ;;  %v1411_v41 = vpop.f32.mrb[14].mxu1 }
 0x114   : > { %v1083_v42 = vpack.c.bf16 %v1195_v40, %v1194_v31  ;;  %v496_v43 = vpop.f32.mrb[15].mxu0  ;;  %v1123_v44 = vpack.c.bf16 %v1411_v41, %v1409_v33  ;;  %v560_v45 = vpop.f32.mrb[15].mxu1  ;;  %v785_v58 = vmul.f32 %v1195_v40, %v1195_v40 }
 0x115   : > { %v813_v47 = vadd.f32 %v812_v39, %v782_v38  ;;  %v1078_v49 = vpack.c.bf16 %v496_v43, %v493_v35  ;;  %v744_v50 = vadd.f32 %v743_v37, %v496_v43  ;;  %v783_v51 = vmul.f32 %v496_v43, %v496_v43 }
 0x116   : > { %1131 = vst [vmem:[%s1363_s14 + $0x38] sm:$0xff] %v1083_v42   ;;  %1139 = vst [vmem:[%s1363_s14 + $0x78] sm:$0xff] %v1123_v44   ;;  %v1118_v52 = vpack.c.bf16 %v560_v45, %v557_v36  ;;  %v800_v39 = vmul.f32 %v1409_v33, %v1409_v33  ;;  %v801_v42 = vmul.f32 %v1411_v41, %v1411_v41 }
 0x117   : > { %1130 = vst [vmem:[%s1363_s14 + $0x30] sm:$0xff] %v1078_v49   ;;  %v745_v55 = vadd.f32 %v1194_v31, %v744_v50  ;;  %v814_v56 = vadd.f32 %v813_v47, %v783_v51  ;;  %v798_v31 = vmul.f32 %v557_v36, %v557_v36 }
 0x118   : > { %1138 = vst [vmem:[%s1363_s14 + $0x70] sm:$0xff] %v1118_v52  }
 0x119   : > { %v815_v59 = vadd.f32 %v814_v56, %v784_v54  ;;  %v746_v60 = vadd.f32 %v1195_v40, %v745_v55 }
 0x11b   : > { %v747_v62 = vadd.f32 %v746_v60, %v1356_v27  ;;  %v816_v63 = vadd.f32 %v815_v59, %v785_v58  ;;  %v790_v27 = vmul.f32 %v1379_v48, %v1379_v48 }
 0x11d   : > { %v817_v0 = vadd.f32 %v816_v63, %v786_v61  ;;  %v748_v1 = vadd.f32 %v747_v62, %v1369_v34 }
 0x11f   : > { %v749_v4 = vadd.f32 %v1354_v25, %v748_v1  ;;  %v818_v5 = vadd.f32 %v817_v0, %v787_v2  ;;  %v792_v25 = vmul.f32 %v1377_v46, %v1377_v46 }
 0x121   : > { %v819_v9 = vadd.f32 %v818_v5, %v788_v3  ;;  %v750_v10 = vadd.f32 %v1365_v29, %v749_v4  ;;  %v793_v29 = vmul.f32 %v1381_v53, %v1381_v53 }
 0x123   : > { %v751_v11 = vadd.f32 %v750_v10, %v1379_v48  ;;  %v820_v12 = vadd.f32 %v819_v9, %v789_v7  ;;  %v794_v48 = vmul.f32 %v1395_v8, %v1395_v8 }
 0x125   : > { %v821_v14 = vadd.f32 %v820_v12, %v790_v27  ;;  %v752_v34 = vadd.f32 %v751_v11, %v1385_v57 }
 0x127   : > { %v753_v16 = vadd.f32 %v1377_v46, %v752_v34  ;;  %v822_v18 = vadd.f32 %v821_v14, %v791_v15  ;;  %v796_v46 = vmul.f32 %v1393_v6, %v1393_v6 }
 0x129   : > { %v823_v19 = vadd.f32 %v822_v18, %v792_v25  ;;  %v754_v20 = vadd.f32 %v1381_v53, %v753_v16  ;;  %v797_v53 = vmul.f32 %v1397_v13, %v1397_v13 }
 0x12b   : > { %v755_v21 = vadd.f32 %v754_v20, %v1395_v8  ;;  %v824_v22 = vadd.f32 %v823_v19, %v793_v29 }
 0x12d   : > { %v825_v23 = vadd.f32 %v824_v22, %v794_v48  ;;  %v756_v57 = vadd.f32 %v755_v21, %v1401_v17  ;;  %v799_v17 = vmul.f32 %v560_v45, %v560_v45 }
 0x12f   : > { %v757_v26 = vadd.f32 %v1393_v6, %v756_v57  ;;  %v826_v28 = vadd.f32 %v825_v23, %v795_v24 }
 0x131   : > { %v827_v30 = vadd.f32 %v826_v28, %v796_v46  ;;  %v758_v8 = vadd.f32 %v1397_v13, %v757_v26 }
 0x133   : > { %v759_v32 = vadd.f32 %v758_v8, %v557_v36  ;;  %v828_v35 = vadd.f32 %v827_v30, %v797_v53 }
 0x135   : > { %v829_v37 = vadd.f32 %v828_v35, %v798_v31  ;;  %v760_v38 = vadd.f32 %v759_v32, %v560_v45 }
 0x137   : > { %v761_v6 = vadd.f32 %v1409_v33, %v760_v38  ;;  %v830_v40 = vadd.f32 %v829_v37, %v799_v17 }
 0x139   : > { %v762_v43 = vadd.f32 %v1411_v41, %v761_v6  ;;  %v831_v44 = vadd.f32 %v830_v40, %v800_v39 }
 0x13b   : > { %v763_v13 = vrot.slane %v762_v43, 4  ;;  %v832_v47 = vadd.f32 %v831_v44, %v801_v42 }
 0x13d   : > { %v764_v36 = vadd.f32 %v763_v13, %v762_v43  ;;  %v833_v49 = vrot.slane %v832_v47, 4 }
 0x13f   : > { %v765_v50 = vrot.slane %v764_v36, 2  ;;  %v834_v51 = vadd.f32 %v833_v49, %v832_v47 }
 0x141   : > { %v766_v45 = vadd.f32 %v765_v50, %v764_v36  ;;  %v835_v52 = vrot.slane %v834_v51, 2 }
 0x143   : > { %v767_v54 = vrot.slane %v766_v45, 1  ;;  %v836_v55 = vadd.f32 %v835_v52, %v834_v51 }
 0x145   : > { %v768_v33 = vadd.f32 %v767_v54, %v766_v45  ;;  %v837_v56 = vrot.slane %v836_v55, 1 }
 0x147   : > { %769 = vst [vmem:[%s214_s19] sm:$0x1] %v768_v33  ;;  %v838_v41 = vadd.f32 %v837_v56, %v836_v55 }
 0x149   : > { %839 = vst [vmem:[%s217_s22] sm:$0x1] %v838_v41 }
 0x14a PF: > { %s15_s15 = sadd.s32 1, %s1266_s15  }
 0x14b   : > { %p12_p5 = scmp.ge.s32.totalorder %s15_s15, 4  }
 0x14d   :  { %14 = sbr.rel (!%p12_p5) target bundleno = 1 (0x1), region = 82 }

// kernel: bottleneck_forward.6
= control target key start
LH: loop header
LB: loop body
LE: loop exit
PB: predicated region body
PF: predicated region fallthrough
CT: control target
= control target key end

     0   :  { %s1468_s21 = smov 0   ;;  %s1739_s0 = inlined_call_operand.vmem [shape: bf16[512,128], index: 0, kind: input, shape index: {}]   ;;  %s1740_s1 = inlined_call_operand.vmem [shape: f32[1,128], index: 1, kind: input, shape index: {}]   ;;  %s1741_s2 = inlined_call_operand.vmem [shape: f32[1,128], index: 2, kind: input, shape index: {}]   ;;  %s1742_s3 = inlined_call_operand.vmem [shape: bf16[128,128], index: 3, kind: input, shape index: {}]   ;;  %s1743_s4 = inlined_call_operand.vmem [shape: bf16[512,128], index: 4, kind: output, shape index: {0}]   ;;  %s1744_s5 = inlined_call_operand.vmem [shape: f32[2,1,128], index: 5, kind: output, shape index: {1}]   ;;  %s1745_s6 = inlined_call_operand.vmem [shape: f32[2,1,128], index: 6, kind: output, shape index: {2}]  }
   0x1 LB: > { %s1474_s22 = sadd.s32 4294967295, %s1431_s21   ;;  %p1066_p0 = scmp.ge.s32.totalorder %s1431_s21, 1  ;;  %s1431_s21 = sphi %s1468_s21, %s17_s21  }
   0x2   : > { %p218_p1 = scmp.lt.s32.totalorder %s1431_s21, 3 }
   0x4   : > { %p219_p2 = pnand %p1066_p0, %p218_p1 }
   0x5   : > { %v1417_v0 = vld [vmem:[%s1742_s3] sm:$0xff] (!%p219_p2)   ;;  %s1067_s25 = sshll.u32 (!%p219_p2), %s1474_s22, 5  ;;  %v1418_v1 = vld [vmem:[%s1742_s3 + $0x8] sm:$0xff] (!%p219_p2)   ;;  %v1419_v2 = vld [vmem:[%s1742_s3 + $0x10] sm:$0xff] (!%p219_p2)   ;;  %p266_p4 = scmp.lt.s32.totalorder (!%p219_p2), %s1474_s22, 1 }
   0x6   : > { %222 = sbr.rel (%p219_p2) target bundleno = 330 (0x14a), region = 36  ;;  %p255_p3 = scmp.lt.s32.totalorder (!%p219_p2), %s1067_s25, 63  ;;  %1345 = vmatprep.subr.bf16.mxu0 (!%p219_p2), %v1417_v0  ;;  %1393 = vmatprep.subr.bf16.mxu1 (!%p219_p2), %v1417_v0  ;;  %v1420_v3 = vld [vmem:[%s1742_s3 + $0x18] sm:$0xff] (!%p219_p2)   ;;  %v1505_v5 = vld [vmem:[%s1740_s1] ss:$0 sm:$0xff] (!%p219_p2)  ;;  %v1422_v34 = vld [vmem:[%s1742_s3 + $0x28] sm:$0xff] (!%p219_p2)  }
   0x7   : > { %1346 = vmatpush3.bf16.msra.mxu0 (!%p219_p2), %v1417_v0  ;;  %1401 = vmatpush3.bf16.msra.mxu1 (!%p219_p2), %v1417_v0  ;;  %v1513_v11 = vld [vmem:[%s1741_s2] ss:$0 sm:$0xff] (!%p219_p2)  ;;  %v1423_v49 = vld [vmem:[%s1742_s3 + $0x30] sm:$0xff] (!%p219_p2)   ;;  %v1424_v63 = vld [vmem:[%s1742_s3 + $0x38] sm:$0xff] (!%p219_p2)  }
   0x8   : > { %1347 = vmatprep.subr.bf16.mxu0 (!%p219_p2), %v1418_v1  ;;  %1394 = vmatprep.subr.bf16.mxu1 (!%p219_p2), %v1418_v1  ;;  %v1421_v20 = vld [vmem:[%s1742_s3 + $0x20] sm:$0xff] (!%p219_p2)  }
   0xb   : > { %1348 = vmatpush3.bf16.msra.mxu0 (!%p219_p2), %v1418_v1  ;;  %1402 = vmatpush3.bf16.msra.mxu1 (!%p219_p2), %v1418_v1 }
   0xc   : > { %1349 = vmatprep.subr.bf16.mxu0 (!%p219_p2), %v1419_v2  ;;  %1395 = vmatprep.subr.bf16.mxu1 (!%p219_p2), %v1419_v2 }
   0xd   : > { %s1747_s25 = smov (!%p255_p3, %s1067_s25), 63  ;;  %s1749_s22 = smov (!%p266_p4, %s1474_s22), 1 }
   0xe   : > { %s1068_s30 = sshll.u32 %s1747_s25, 2  ;;  %s268_s7 = scalar_lea.vmem %s1744_s5, %s1749_s22 }
   0xf   : > { %s1496_s9 = scalar_lea.vmem %s1739_s0, %s1068_s30  ;;  %1350 = vmatpush3.bf16.msra.mxu0 %v1419_v2  ;;  %1403 = vmatpush3.bf16.msra.mxu1 %v1419_v2  ;;  %s1638_s29 = scalar_lea.vmem %s1743_s4, %s1068_s30 }
  0x10   : > { %v1148_v4 = vld [vmem:[%s1496_s9] sm:$0xff]   ;;  %v1291_v8 = vld [vmem:[%s1496_s9 + $0x8] sm:$0xff]   ;;  %v1292_v9 = vld [vmem:[%s1496_s9 + $0x10] sm:$0xff]   ;;  %1351 = vmatprep.subr.bf16.mxu0 %v1420_v3  ;;  %1396 = vmatprep.subr.bf16.mxu1 %v1420_v3  ;;  %s271_s10 = scalar_lea.vmem %s1745_s6, %s1749_s22 }
  0x11   : > { %v1149_v6 = vunpack.c.l.bf16 %v1148_v4  ;;  %v1150_v7 = vunpack.c.h.bf16 %v1148_v4  ;;  %v1293_v10 = vld [vmem:[%s1496_s9 + $0x18] sm:$0xff]   ;;  %v1153_v12 = vunpack.c.l.bf16 %v1291_v8  ;;  %v1154_v13 = vunpack.c.h.bf16 %v1291_v8  ;;  %v1294_v29 = vld [vmem:[%s1496_s9 + $0x20] sm:$0xff]   ;;  %v1295_v33 = vld [vmem:[%s1496_s9 + $0x28] sm:$0xff]  }
  0x12   : > { %v1157_v14 = vunpack.c.l.bf16 %v1292_v9  ;;  %v1158_v15 = vunpack.c.h.bf16 %v1292_v9  ;;  %v1161_v18 = vunpack.c.l.bf16 %v1293_v10  ;;  %v1162_v19 = vunpack.c.h.bf16 %v1293_v10  ;;  %v1296_v42 = vld [vmem:[%s1496_s9 + $0x30] sm:$0xff]   ;;  %v1542_v48 = vld [vmem:[%s1496_s9 + $0x38] sm:$0xff]   ;;  %v1298_v60 = vld [vmem:[%s1496_s9 + $0x40] sm:$0xff]  }
  0x13   : > { %v344_v16 = vmul.f32 %v1149_v6, %v1505_v5  ;;  %v345_v17 = vmul.f32 %v1150_v7, %v1505_v5  ;;  %v346_v21 = vmul.f32 %v1153_v12, %v1505_v5  ;;  %v347_v22 = vmul.f32 %v1154_v13, %v1505_v5  ;;  %1352 = vmatpush3.bf16.msra.mxu0 %v1420_v3  ;;  %v1300_v9 = vld [vmem:[%s1496_s9 + $0x50] sm:$0xff]  }
  0x14   : > { %v348_v23 = vmul.f32 %v1157_v14, %v1505_v5  ;;  %v349_v24 = vmul.f32 %v1158_v15, %v1505_v5  ;;  %v350_v27 = vmul.f32 %v1161_v18, %v1505_v5  ;;  %v351_v28 = vmul.f32 %v1162_v19, %v1505_v5  ;;  %1404 = vmatpush3.bf16.msra.mxu1 %v1420_v3  ;;  %v1299_v3 = vld [vmem:[%s1496_s9 + $0x48] sm:$0xff]   ;;  %v1301_v19 = vld [vmem:[%s1496_s9 + $0x58] sm:$0xff]  }
  0x15   : > { %v383_v25 = vadd.f32 %v1513_v11, %v344_v16  ;;  %v384_v26 = vadd.f32 %v1513_v11, %v345_v17  ;;  %v385_v32 = vadd.f32 %v1513_v11, %v346_v21  ;;  %1353 = vmatprep.subr.bf16.mxu0 %v1421_v20  ;;  %v386_v35 = vadd.f32 %v1513_v11, %v347_v22 }
  0x16   : > { %v387_v36 = vadd.f32 %v1513_v11, %v348_v23  ;;  %v388_v37 = vadd.f32 %v1513_v11, %v349_v24  ;;  %1397 = vmatprep.subr.bf16.mxu1 %v1421_v20  ;;  %v389_v39 = vadd.f32 %v1513_v11, %v350_v27  ;;  %v390_v40 = vadd.f32 %v1513_v11, %v351_v28 }
  0x17   : > { %v415_v30 = vmax.f32 %v383_v25, 0.0  ;;  %v416_v31 = vmax.f32 %v384_v26, 0.0  ;;  %v1165_v41 = vunpack.c.l.bf16 %v1294_v29  ;;  %v1166_v43 = vunpack.c.h.bf16 %v1294_v29  ;;  %1354 = vmatpush3.bf16.msra.mxu0 %v1421_v20 }
  0x18   : > { %v1169_v44 = vunpack.c.l.bf16 %v1295_v33  ;;  %v417_v45 = vmax.f32 %v385_v32, 0.0  ;;  %v1170_v47 = vunpack.c.h.bf16 %v1295_v33  ;;  %1355 = vmatprep.subr.bf16.mxu0 %v1422_v34  ;;  %v418_v50 = vmax.f32 %v386_v35, 0.0  ;;  %1405 = vmatpush3.bf16.msra.mxu1 %v1421_v20  ;;  %v1302_v32 = vld [vmem:[%s1496_s9 + $0x60] sm:$0xff]  }
  0x19   : > { %v447_v38 = vpack.c.bf16 %v416_v31, %v415_v30  ;;  %v352_v46 = vmul.f32 %v1165_v41, %v1505_v5  ;;  %v419_v51 = vmax.f32 %v387_v36, 0.0  ;;  %v420_v52 = vmax.f32 %v388_v37, 0.0  ;;  %1398 = vmatprep.subr.bf16.mxu1 %v1422_v34 }
  0x1a   : > { %v1173_v53 = vunpack.c.l.bf16 %v1296_v42  ;;  %v421_v54 = vmax.f32 %v389_v39, 0.0  ;;  %v422_v55 = vmax.f32 %v390_v40, 0.0  ;;  %v353_v56 = vmul.f32 %v1166_v43, %v1505_v5 }
  0x1b   : > { %1361 = vmatprep.mubr.bf16.mxu0 %v447_v38  ;;  %v354_v57 = vmul.f32 %v1169_v44, %v1505_v5  ;;  %v1174_v58 = vunpack.c.h.bf16 %v1296_v42  ;;  %v1177_v59 = vunpack.c.l.bf16 %v1542_v48  ;;  %1356 = vmatpush3.bf16.msra.mxu0 %v1422_v34  ;;  %v1552_v61 = vadd.f32 %v1513_v11, %v352_v46 }
  0x1c   : > { %v355_v62 = vmul.f32 %v1170_v47, %v1505_v5  ;;  %1357 = vmatprep.subr.bf16.mxu0 %v1423_v49  ;;  %v448_v0 = vpack.c.bf16 %v418_v50, %v417_v45  ;;  %v449_v1 = vpack.c.bf16 %v420_v52, %v419_v51  ;;  %1406 = vmatpush3.bf16.msra.mxu1 %v1422_v34  ;;  %v1178_v7 = vunpack.c.h.bf16 %v1542_v48  ;;  %v1303_v45 = vld [vmem:[%s1496_s9 + $0x68] sm:$0xff]  }
  0x1d   : > { %v356_v2 = vmul.f32 %v1173_v53, %v1505_v5  ;;  %v1560_v4 = vpack.c.bf16 %v422_v55, %v421_v54  ;;  %v1563_v6 = vadd.f32 %v1513_v11, %v353_v56  ;;  %1399 = vmatprep.subr.bf16.mxu1 %v1423_v49  ;;  %v1181_v8 = vunpack.c.l.bf16 %v1298_v60  ;;  %v1304_v55 = vld [vmem:[%s1496_s9 + $0x70] sm:$0xff]  }
  0x1e   : > { %v1568_v10 = vadd.f32 %v1513_v11, %v354_v57  ;;  %v1571_v12 = vmul.f32 %v1174_v58, %v1505_v5  ;;  %v1574_v13 = vmul.f32 %v1177_v59, %v1505_v5  ;;  %v1182_v14 = vunpack.c.h.bf16 %v1298_v60 }
  0x1f   : > { %1358 = vmatpush3.bf16.msra.mxu0 %v1423_v49  ;;  %v423_v15 = vmax.f32 %v1552_v61, 0.0  ;;  %v1578_v16 = vadd.f32 %v1513_v11, %v355_v62  ;;  %v360_v17 = vmul.f32 %v1181_v8, %v1505_v5  ;;  %v1185_v18 = vunpack.c.l.bf16 %v1299_v3 }
  0x20   : > { %1359 = vmatprep.subr.bf16.mxu0 %v1424_v63  ;;  %1407 = vmatpush3.bf16.msra.mxu1 %v1423_v49  ;;  %v1583_v20 = vadd.f32 %v1513_v11, %v356_v2  ;;  %v361_v21 = vmul.f32 %v1182_v14, %v1505_v5  ;;  %v1186_v22 = vunpack.c.h.bf16 %v1299_v3  ;;  %v1189_v23 = vunpack.c.l.bf16 %v1300_v9 }
  0x21   : > { %v424_v24 = vmax.f32 %v1563_v6, 0.0  ;;  %1400 = vmatprep.subr.bf16.mxu1 %v1424_v63  ;;  %v399_v25 = vadd.f32 %v1513_v11, %v360_v17  ;;  %v362_v26 = vmul.f32 %v1185_v18, %v1505_v5  ;;  %v1190_v27 = vunpack.c.h.bf16 %v1300_v9  ;;  %v1305_v17 = vld [vmem:[%s1496_s9 + $0x78] sm:$0xff]  }
  0x22   : > { %v400_v28 = vadd.f32 %v1513_v11, %v361_v21  ;;  %v363_v29 = vmul.f32 %v1186_v22, %v1505_v5  ;;  %v364_v30 = vmul.f32 %v1189_v23, %v1505_v5  ;;  %v1193_v31 = vunpack.c.l.bf16 %v1301_v19 }
  0x23   : > { %1360 = vmatpush3.bf16.msra.mxu0 %v1424_v63  ;;  %v431_v33 = vmax.f32 %v399_v25, 0.0  ;;  %v401_v34 = vadd.f32 %v1513_v11, %v362_v26  ;;  %v365_v35 = vmul.f32 %v1190_v27, %v1505_v5  ;;  %v1194_v36 = vunpack.c.h.bf16 %v1301_v19 }
  0x24   : > { %1408 = vmatpush3.bf16.msra.mxu1 %v1424_v63  ;;  %v432_v37 = vmax.f32 %v400_v28, 0.0  ;;  %v402_v38 = vadd.f32 %v1513_v11, %v363_v29  ;;  %v403_v39 = vadd.f32 %v1513_v11, %v364_v30  ;;  %v366_v40 = vmul.f32 %v1193_v31, %v1505_v5 }
  0x25   : > { %v433_v41 = vmax.f32 %v401_v34, 0.0  ;;  %v404_v42 = vadd.f32 %v1513_v11, %v365_v35  ;;  %v367_v43 = vmul.f32 %v1194_v36, %v1505_v5  ;;  %v1197_v44 = vunpack.c.l.bf16 %v1302_v32 }
  0x26   : > { %1362 = vmatmul.mubr.bf16.vlgmr.msra.gmra.mrb[0].mxu0 %v448_v0  ;;  %v455_v46 = vpack.c.bf16 %v432_v37, %v431_v33  ;;  %v434_v47 = vmax.f32 %v402_v38, 0.0  ;;  %v435_v49 = vmax.f32 %v403_v39, 0.0  ;;  %v405_v50 = vadd.f32 %v1513_v11, %v366_v40 }
  0x27   : > { %1365 = vmatprep.mubr.bf16.mxu0 %v449_v1  ;;  %v436_v51 = vmax.f32 %v404_v42, 0.0  ;;  %v406_v52 = vadd.f32 %v1513_v11, %v367_v43  ;;  %v1198_v53 = vunpack.c.h.bf16 %v1302_v32  ;;  %v368_v54 = vmul.f32 %v1197_v44, %v1505_v5 }
  0x28   : > { %1377 = vmatprep.mubr.bf16.mxu1 %v455_v46  ;;  %v456_v56 = vpack.c.bf16 %v434_v47, %v433_v41  ;;  %v437_v57 = vmax.f32 %v405_v50, 0.0  ;;  %v1201_v58 = vunpack.c.l.bf16 %v1303_v45  ;;  %v1202_v59 = vunpack.c.h.bf16 %v1303_v45 }
  0x29   : > { %v457_v60 = vpack.c.bf16 %v436_v51, %v435_v49  ;;  %v438_v61 = vmax.f32 %v406_v52, 0.0  ;;  %v369_v62 = vmul.f32 %v1198_v53, %v1505_v5  ;;  %v407_v63 = vadd.f32 %v1513_v11, %v368_v54 }
  0x2a   : > { %1378 = vmatmul.mubr.bf16.vlgmr.msra.gmra.mrb[0].mxu1 %v456_v56  ;;  %v370_v0 = vmul.f32 %v1201_v58, %v1505_v5  ;;  %v371_v1 = vmul.f32 %v1202_v59, %v1505_v5  ;;  %v1205_v2 = vunpack.c.l.bf16 %v1304_v55  ;;  %v1206_v3 = vunpack.c.h.bf16 %v1304_v55 }
  0x2b   : > { %v451_v6 = vpack.c.bf16 %v424_v24, %v423_v15  ;;  %v396_v8 = vadd.f32 %v1513_v11, %v1571_v12  ;;  %1381 = vmatprep.mubr.bf16.mxu1 %v457_v60  ;;  %v408_v9 = vadd.f32 %v1513_v11, %v369_v62  ;;  %v439_v14 = vmax.f32 %v407_v63, 0.0 }
  0x2c   : > { %v425_v18 = vmax.f32 %v1568_v10, 0.0  ;;  %v359_v19 = vmul.f32 %v1178_v7, %v1505_v5  ;;  %v372_v21 = vmul.f32 %v1205_v2, %v1505_v5  ;;  %v373_v22 = vmul.f32 %v1206_v3, %v1505_v5 }
  0x2d   : > { %v426_v15 = vmax.f32 %v1578_v16, 0.0  ;;  %v427_v23 = vmax.f32 %v1583_v20, 0.0  ;;  %v458_v12 = vpack.c.bf16 %v438_v61, %v437_v57  ;;  %v440_v24 = vmax.f32 %v408_v9, 0.0 }
  0x2e   : > { %1366 = vmatmul.mubr.bf16.gmra.mrb[4].mxu0 %v1560_v4  ;;  %v409_v25 = vadd.f32 %v1513_v11, %v370_v0  ;;  %v410_v10 = vadd.f32 %v1513_v11, %v371_v1  ;;  %v1209_v26 = vunpack.c.l.bf16 %v1305_v17  ;;  %v1210_v27 = vunpack.c.h.bf16 %v1305_v17 }
  0x2f   : > { %1369 = vmatprep.mubr.bf16.mxu0 %v451_v6  ;;  %v428_v48 = vmax.f32 %v396_v8, 0.0  ;;  %v459_v7 = vpack.c.bf16 %v440_v24, %v439_v14  ;;  %v411_v28 = vadd.f32 %v1513_v11, %v372_v21  ;;  %v412_v29 = vadd.f32 %v1513_v11, %v373_v22 }
  0x30   : > { %v452_v16 = vpack.c.bf16 %v426_v15, %v425_v18  ;;  %v397_v20 = vadd.f32 %v1513_v11, %v1574_v13  ;;  %v398_v30 = vadd.f32 %v1513_v11, %v359_v19  ;;  %v441_v4 = vmax.f32 %v409_v25, 0.0 }
  0x31   : > { %v442_v31 = vmax.f32 %v410_v10, 0.0  ;;  %v374_v32 = vmul.f32 %v1209_v26, %v1505_v5  ;;  %v375_v33 = vmul.f32 %v1210_v27, %v1505_v5  ;;  %v453_v34 = vpack.c.bf16 %v428_v48, %v427_v23 }
  0x32   : > { %1382 = vmatmul.mubr.bf16.gmra.mrb[4].mxu1 %v458_v12  ;;  %v443_v35 = vmax.f32 %v411_v28, 0.0  ;;  %v444_v36 = vmax.f32 %v412_v29, 0.0  ;;  %v429_v37 = vmax.f32 %v397_v20, 0.0  ;;  %v430_v38 = vmax.f32 %v398_v30, 0.0 }
  0x33   : > { %1385 = vmatprep.mubr.bf16.mxu1 %v459_v7  ;;  %v460_v39 = vpack.c.bf16 %v442_v31, %v441_v4  ;;  %v413_v13 = vadd.f32 %v1513_v11, %v374_v32  ;;  %v414_v40 = vadd.f32 %v1513_v11, %v375_v33 }
  0x34   : > { %v461_v41 = vpack.c.bf16 %v444_v36, %v443_v35  ;;  %v454_v42 = vpack.c.bf16 %v430_v38, %v429_v37 }
  0x35   : > { %v445_v43 = vmax.f32 %v413_v13, 0.0  ;;  %v446_v44 = vmax.f32 %v414_v40, 0.0 }
  0x36   : > { %1370 = vmatmul.mubr.bf16.gmra.mrb[8].mxu0 %v452_v16 }
  0x37   : > { %1373 = vmatprep.mubr.bf16.mxu0 %v453_v34  ;;  %v462_v5 = vpack.c.bf16 %v446_v44, %v445_v43 }
  0x3a   : > { %1386 = vmatmul.mubr.bf16.gmra.mrb[8].mxu1 %v460_v39 }
  0x3b   : > { %1389 = vmatprep.mubr.bf16.mxu1 %v461_v41 }
  0x3e   : > { %1374 = vmatmul.mubr.bf16.gmra.mrb[12].mxu0 %v454_v42 }
  0x42   : > { %1390 = vmatmul.mubr.bf16.gmra.mrb[12].mxu1 %v462_v5 }
  0xf9   : > { %v1363_v45 = vpop.f32.mrb[0].mxu0 }
  0xfa   : > { %v561_v46 = vpop.f32.mrb[1].mxu0  ;;  %v888_v56 = vmul.f32 %v1363_v45, %v1363_v45 }
  0xfb   : > { %v1364_v11 = vpop.f32.mrb[2].mxu0  ;;  %v886_v50 = vmul.f32 %v561_v46, %v561_v46 }
  0xfc   : > { %v1219_v47 = vpack.c.bf16 %v1364_v11, %v1363_v45  ;;  %v564_v49 = vpop.f32.mrb[3].mxu0  ;;  %v889_v62 = vmul.f32 %v1364_v11, %v1364_v11 }
  0xfd   : > { %v1214_v51 = vpack.c.bf16 %v564_v49, %v561_v46  ;;  %v848_v52 = vadd.f32 %v564_v49, %v561_v46  ;;  %v887_v53 = vmul.f32 %v564_v49, %v564_v49  ;;  %v1640_v54 = vpop.f32.mrb[0].mxu1 }
  0xfe   : > { %1306 = vst [vmem:[%s1638_s29 + $0x8] sm:$0xff] %v1219_v47   ;;  %v1643_v55 = vpop.f32.mrb[1].mxu1 }
  0xff   : > { %1215 = vst [vmem:[%s1638_s29] sm:$0xff] %v1214_v51   ;;  %v849_v57 = vadd.f32 %v1363_v45, %v848_v52  ;;  %v918_v58 = vadd.f32 %v887_v53, %v886_v50  ;;  %v1646_v59 = vpop.f32.mrb[2].mxu1 }
 0x100   : > { %v1259_v60 = vpack.c.bf16 %v1646_v59, %v1640_v54  ;;  %v1650_v61 = vpop.f32.mrb[3].mxu1 }
 0x101   : > { %v919_v63 = vadd.f32 %v918_v58, %v888_v56  ;;  %v1367_v0 = vpop.f32.mrb[4].mxu0  ;;  %v850_v1 = vadd.f32 %v1364_v11, %v849_v57  ;;  %v1254_v2 = vpack.c.bf16 %v1650_v61, %v1643_v55 }
 0x102   : > { %v577_v3 = vpop.f32.mrb[5].mxu0  ;;  %1314 = vst [vmem:[%s1638_s29 + $0x48] sm:$0xff] %v1259_v60   ;;  %v892_v24 = vmul.f32 %v1367_v0, %v1367_v0 }
 0x103   : > { %v851_v6 = vadd.f32 %v850_v1, %v577_v3  ;;  %v890_v8 = vmul.f32 %v577_v3, %v577_v3  ;;  %v920_v9 = vadd.f32 %v919_v63, %v889_v62  ;;  %v1368_v14 = vpop.f32.mrb[6].mxu0  ;;  %1313 = vst [vmem:[%s1638_s29 + $0x40] sm:$0xff] %v1254_v2  }
 0x104   : > { %v1229_v17 = vpack.c.bf16 %v1368_v14, %v1367_v0  ;;  %v580_v18 = vpop.f32.mrb[7].mxu0  ;;  %v893_v7 = vmul.f32 %v1368_v14, %v1368_v14 }
 0x105   : > { %v921_v19 = vadd.f32 %v920_v9, %v890_v8  ;;  %v1224_v21 = vpack.c.bf16 %v580_v18, %v577_v3  ;;  %v852_v22 = vadd.f32 %v851_v6, %v580_v18  ;;  %v891_v15 = vmul.f32 %v580_v18, %v580_v18  ;;  %v1656_v23 = vpop.f32.mrb[4].mxu1 }
 0x106   : > { %1308 = vst [vmem:[%s1638_s29 + $0x18] sm:$0xff] %v1229_v17   ;;  %v1659_v12 = vpop.f32.mrb[5].mxu1  ;;  %v902_v17 = vmul.f32 %v1643_v55, %v1643_v55 }
 0x107   : > { %1307 = vst [vmem:[%s1638_s29 + $0x10] sm:$0xff] %v1224_v21   ;;  %v853_v25 = vadd.f32 %v1367_v0, %v852_v22  ;;  %v922_v10 = vadd.f32 %v921_v19, %v891_v15  ;;  %v1662_v26 = vpop.f32.mrb[6].mxu1 }
 0x108   : > { %v1269_v27 = vpack.c.bf16 %v1662_v26, %v1656_v23  ;;  %v1666_v48 = vpop.f32.mrb[7].mxu1 }
 0x109   : > { %v923_v28 = vadd.f32 %v922_v10, %v892_v24  ;;  %v1371_v29 = vpop.f32.mrb[8].mxu0  ;;  %v854_v16 = vadd.f32 %v1368_v14, %v853_v25  ;;  %v1264_v20 = vpack.c.bf16 %v1666_v48, %v1659_v12 }
 0x10a   : > { %v593_v30 = vpop.f32.mrb[9].mxu0  ;;  %1316 = vst [vmem:[%s1638_s29 + $0x58] sm:$0xff] %v1269_v27   ;;  %v896_v41 = vmul.f32 %v1371_v29, %v1371_v29 }
 0x10b   : > { %v855_v4 = vadd.f32 %v854_v16, %v593_v30  ;;  %v894_v31 = vmul.f32 %v593_v30, %v593_v30  ;;  %v924_v32 = vadd.f32 %v923_v28, %v893_v7  ;;  %v1372_v33 = vpop.f32.mrb[10].mxu0  ;;  %1315 = vst [vmem:[%s1638_s29 + $0x50] sm:$0xff] %v1264_v20   ;;  %v903_v28 = vmul.f32 %v1650_v61, %v1650_v61 }
 0x10c   : > { %v1239_v34 = vpack.c.bf16 %v1372_v33, %v1371_v29  ;;  %v596_v35 = vpop.f32.mrb[11].mxu0  ;;  %v897_v46 = vmul.f32 %v1372_v33, %v1372_v33 }
 0x10d   : > { %v925_v36 = vadd.f32 %v924_v32, %v894_v31  ;;  %v1234_v37 = vpack.c.bf16 %v596_v35, %v593_v30  ;;  %v856_v38 = vadd.f32 %v855_v4, %v596_v35  ;;  %v895_v39 = vmul.f32 %v596_v35, %v596_v35  ;;  %v1672_v13 = vpop.f32.mrb[8].mxu1 }
 0x10e   : > { %1310 = vst [vmem:[%s1638_s29 + $0x28] sm:$0xff] %v1239_v34   ;;  %v1675_v40 = vpop.f32.mrb[9].mxu1  ;;  %v905_v30 = vmul.f32 %v1646_v59, %v1646_v59  ;;  %v906_v31 = vmul.f32 %v1659_v12, %v1659_v12  ;;  %v907_v35 = vmul.f32 %v1666_v48, %v1666_v48 }
 0x10f   : > { %1309 = vst [vmem:[%s1638_s29 + $0x20] sm:$0xff] %v1234_v37   ;;  %v857_v42 = vadd.f32 %v1371_v29, %v856_v38  ;;  %v926_v43 = vadd.f32 %v925_v36, %v895_v39  ;;  %v1678_v44 = vpop.f32.mrb[10].mxu1  ;;  %v904_v29 = vmul.f32 %v1640_v54, %v1640_v54 }
 0x110   : > { %v1279_v5 = vpack.c.bf16 %v1678_v44, %v1672_v13  ;;  %v1682_v45 = vpop.f32.mrb[11].mxu1 }
 0x111   : > { %v927_v11 = vadd.f32 %v926_v43, %v896_v41  ;;  %v1375_v47 = vpop.f32.mrb[12].mxu0  ;;  %v858_v49 = vadd.f32 %v1372_v33, %v857_v42  ;;  %v1274_v50 = vpack.c.bf16 %v1682_v45, %v1675_v40 }
 0x112   : > { %v609_v51 = vpop.f32.mrb[13].mxu0  ;;  %1318 = vst [vmem:[%s1638_s29 + $0x68] sm:$0xff] %v1279_v5   ;;  %v900_v6 = vmul.f32 %v1375_v47, %v1375_v47  ;;  %v911_v5 = vmul.f32 %v1682_v45, %v1682_v45 }
 0x113   : > { %v859_v52 = vadd.f32 %v858_v49, %v609_v51  ;;  %v898_v53 = vmul.f32 %v609_v51, %v609_v51  ;;  %v928_v56 = vadd.f32 %v927_v11, %v897_v46  ;;  %v1376_v57 = vpop.f32.mrb[14].mxu0  ;;  %1317 = vst [vmem:[%s1638_s29 + $0x60] sm:$0xff] %v1274_v50  }
 0x114   : > { %v1249_v58 = vpack.c.bf16 %v1376_v57, %v1375_v47  ;;  %v612_v60 = vpop.f32.mrb[15].mxu0  ;;  %v901_v21 = vmul.f32 %v1376_v57, %v1376_v57 }
 0x115   : > { %v929_v62 = vadd.f32 %v928_v56, %v898_v53  ;;  %v1244_v63 = vpack.c.bf16 %v612_v60, %v609_v51  ;;  %v860_v0 = vadd.f32 %v859_v52, %v612_v60  ;;  %v899_v1 = vmul.f32 %v612_v60, %v612_v60  ;;  %v1391_v2 = vpop.f32.mrb[12].mxu1 }
 0x116   : > { %1312 = vst [vmem:[%s1638_s29 + $0x38] sm:$0xff] %v1249_v58   ;;  %v673_v3 = vpop.f32.mrb[13].mxu1  ;;  %v916_v56 = vmul.f32 %v1391_v2, %v1391_v2 }
 0x117   : > { %1311 = vst [vmem:[%s1638_s29 + $0x30] sm:$0xff] %v1244_v63   ;;  %v861_v8 = vadd.f32 %v1375_v47, %v860_v0  ;;  %v930_v9 = vadd.f32 %v929_v62, %v899_v1  ;;  %v1392_v14 = vpop.f32.mrb[14].mxu1  ;;  %v914_v49 = vmul.f32 %v673_v3, %v673_v3 }
 0x118   : > { %v1289_v18 = vpack.c.bf16 %v1392_v14, %v1391_v2  ;;  %v676_v19 = vpop.f32.mrb[15].mxu1  ;;  %v917_v60 = vmul.f32 %v1392_v14, %v1392_v14 }
 0x119   : > { %v931_v22 = vadd.f32 %v930_v9, %v900_v6  ;;  %v862_v15 = vadd.f32 %v1376_v57, %v861_v8  ;;  %v1284_v24 = vpack.c.bf16 %v676_v19, %v673_v3 }
 0x11a   : > { %1320 = vst [vmem:[%s1638_s29 + $0x78] sm:$0xff] %v1289_v18  }
 0x11b   : > { %v863_v25 = vadd.f32 %v862_v15, %v1643_v55  ;;  %v932_v10 = vadd.f32 %v931_v22, %v901_v21  ;;  %1319 = vst [vmem:[%s1638_s29 + $0x70] sm:$0xff] %v1284_v24  }
 0x11d   : > { %v933_v27 = vadd.f32 %v932_v10, %v902_v17  ;;  %v864_v7 = vadd.f32 %v863_v25, %v1650_v61 }
 0x11f   : > { %v865_v16 = vadd.f32 %v1640_v54, %v864_v7  ;;  %v934_v20 = vadd.f32 %v933_v27, %v903_v28  ;;  %v908_v54 = vmul.f32 %v1656_v23, %v1656_v23 }
 0x121   : > { %v935_v4 = vadd.f32 %v934_v20, %v904_v29  ;;  %v866_v55 = vadd.f32 %v1646_v59, %v865_v16  ;;  %v909_v59 = vmul.f32 %v1662_v26, %v1662_v26 }
 0x123   : > { %v867_v32 = vadd.f32 %v866_v55, %v1659_v12  ;;  %v936_v33 = vadd.f32 %v935_v4, %v905_v30  ;;  %v910_v12 = vmul.f32 %v1675_v40, %v1675_v40 }
 0x125   : > { %v937_v34 = vadd.f32 %v936_v33, %v906_v31  ;;  %v868_v61 = vadd.f32 %v867_v32, %v1666_v48 }
 0x127   : > { %v869_v36 = vadd.f32 %v1656_v23, %v868_v61  ;;  %v938_v37 = vadd.f32 %v937_v34, %v907_v35  ;;  %v912_v23 = vmul.f32 %v1672_v13, %v1672_v13 }
 0x129   : > { %v939_v38 = vadd.f32 %v938_v37, %v908_v54  ;;  %v870_v39 = vadd.f32 %v1662_v26, %v869_v36  ;;  %v913_v26 = vmul.f32 %v1678_v44, %v1678_v44 }
 0x12b   : > { %v871_v41 = vadd.f32 %v870_v39, %v1675_v40  ;;  %v940_v42 = vadd.f32 %v939_v38, %v909_v59 }
 0x12d   : > { %v941_v43 = vadd.f32 %v940_v42, %v910_v12  ;;  %v872_v48 = vadd.f32 %v871_v41, %v1682_v45  ;;  %v915_v45 = vmul.f32 %v676_v19, %v676_v19 }
 0x12f   : > { %v873_v46 = vadd.f32 %v1672_v13, %v872_v48  ;;  %v942_v11 = vadd.f32 %v941_v43, %v911_v5 }
 0x131   : > { %v943_v47 = vadd.f32 %v942_v11, %v912_v23  ;;  %v874_v40 = vadd.f32 %v1678_v44, %v873_v46 }
 0x133   : > { %v875_v50 = vadd.f32 %v874_v40, %v673_v3  ;;  %v944_v51 = vadd.f32 %v943_v47, %v913_v26 }
 0x135   : > { %v945_v52 = vadd.f32 %v944_v51, %v914_v49  ;;  %v876_v53 = vadd.f32 %v875_v50, %v676_v19 }
 0x137   : > { %v877_v57 = vadd.f32 %v1391_v2, %v876_v53  ;;  %v946_v58 = vadd.f32 %v945_v52, %v915_v45 }
 0x139   : > { %v878_v13 = vadd.f32 %v1392_v14, %v877_v57  ;;  %v947_v62 = vadd.f32 %v946_v58, %v916_v56 }
 0x13b   : > { %v879_v63 = vrot.slane %v878_v13, 4  ;;  %v948_v0 = vadd.f32 %v947_v62, %v917_v60 }
 0x13d   : > { %v880_v1 = vadd.f32 %v879_v63, %v878_v13  ;;  %v949_v6 = vrot.slane %v948_v0, 4 }
 0x13f   : > { %v881_v8 = vrot.slane %v880_v1, 2  ;;  %v950_v44 = vadd.f32 %v949_v6, %v948_v0 }
 0x141   : > { %v882_v3 = vadd.f32 %v881_v8, %v880_v1  ;;  %v951_v9 = vrot.slane %v950_v44, 2 }
 0x143   : > { %v883_v17 = vrot.slane %v882_v3, 1  ;;  %v952_v18 = vadd.f32 %v951_v9, %v950_v44 }
 0x145   : > { %v884_v2 = vadd.f32 %v883_v17, %v882_v3  ;;  %v953_v19 = vrot.slane %v952_v18, 1 }
 0x147   : > { %885 = vst [vmem:[%s268_s7] sm:$0x1] %v884_v2  ;;  %v954_v14 = vadd.f32 %v953_v19, %v952_v18 }
 0x149   : > { %955 = vst [vmem:[%s271_s10] sm:$0x1] %v954_v14 }
 0x14a PF: > { %s17_s21 = sadd.s32 1, %s1431_s21  }
 0x14b   : > { %p14_p5 = scmp.ge.s32.totalorder %s17_s21, 4  }
 0x14d   :  { %16 = sbr.rel (!%p14_p5) target bundleno = 1 (0x1), region = 90 }

// kernel: bottleneck_forward.5
= control target key start
LH: loop header
LB: loop body
LE: loop exit
PB: predicated region body
PF: predicated region fallthrough
CT: control target
= control target key end

     0   :  { %s7996_s21 = smov 0   ;;  %s10785_s0 = inlined_call_operand.vmem [shape: bf16[2,16,16,128], index: 0, kind: input, shape index: {}]   ;;  %s10786_s1 = inlined_call_operand.vmem [shape: f32[1,128], index: 1, kind: input, shape index: {}]   ;;  %s10787_s2 = inlined_call_operand.vmem [shape: f32[1,128], index: 2, kind: input, shape index: {}]   ;;  %s10788_s3 = inlined_call_operand.vmem [shape: bf16[3,384,128], index: 3, kind: input, shape index: {}]   ;;  %s10789_s4 = inlined_call_operand.vmem [shape: bf16[512,128], index: 4, kind: output, shape index: {0}]   ;;  %s10790_s5 = inlined_call_operand.vmem [shape: f32[2,1,128], index: 5, kind: output, shape index: {1}]   ;;  %s10791_s6 = inlined_call_operand.vmem [shape: f32[2,1,128], index: 6, kind: output, shape index: {2}]  }
   0x1 LB: > { %s8002_s22 = sadd.s32 4294967295, %s7958_s21   ;;  %p6060_p0 = scmp.ge.s32.totalorder %s7958_s21, 1  ;;  %s7958_s21 = sphi %s7996_s21, %s17_s21  }
   0x2   : > { %p217_p1 = scmp.lt.s32.totalorder %s7958_s21, 3 }
   0x4   : > { %p218_p2 = pnand %p6060_p0, %p217_p1 }
   0x6   : > { %221 = sbr.rel (%p218_p2) target bundleno = 706 (0x2c2), region = 36 }
   0xd   : > { %v7741_v0 = vld [vmem:[%s10788_s3 + $0x100] sm:$0xff]   ;;  %v7960_v3 = vmov 0   ;;  %v7745_v5 = vld [vmem:[%s10788_s3 + $0x108] sm:$0xff]   ;;  %v7749_v9 = vld [vmem:[%s10788_s3 + $0x110] sm:$0xff]   ;;  %p253_p3 = scmp.lt.s32.totalorder %s8002_s22, 1  ;;  %vm464_vm3 = vcmask 1040384  }
   0xe   : > { %v7742_v1 = vld [vmem:[%s10788_s3 + $0x40] sm:$0xff]   ;;  %6900 = vmatprep.subr.bf16.mxu0 %v7741_v0  ;;  %471 = vst [vmem:[#allocation2 + $0x14] sm:$0xf] %v7960_v3  ;;  %472 = vst [vmem:[#allocation2 + $0x18] sm:$0xf] %v7960_v3  ;;  %v7746_v6 = vld [vmem:[%s10788_s3 + $0x48] sm:$0xff]  }
   0xf   : > { %v7743_v2 = vld [vmem:[%s10788_s3 + $0xc0] sm:$0xff]   ;;  %461 = vst [vmem:[#allocation2] sm:$0xf] %v7960_v3  ;;  %462 = vst [vmem:[#allocation2 + $0x4] sm:$0xf] %v7960_v3  ;;  %6980 = vmatprep.subr.bf16.mxu1 %v7742_v1  ;;  %v7747_v7 = vld [vmem:[%s10788_s3 + $0xc8] sm:$0xff]  }
  0x10   : > { %463 = vst [vmem:[#allocation2 + $0x8] sm:$0xf] %v7960_v3  ;;  %470 = vst [vmem:[#allocation2 + $0x10] sm:$0xf] %v7960_v3  ;;  %v7744_v4 = vld [vmem:[%s10788_s3] sm:$0xff]   ;;  %6901 = vmatpush3.bf16.msra.mxu0 %v7743_v2  ;;  %v7748_v8 = vld [vmem:[%s10788_s3 + $0x8] sm:$0xff]  }
  0x11   : > { %476 = vst [vmem:[#allocation2 + $0x20] sm:$0xf] %v7960_v3  ;;  %477 = vst [vmem:[#allocation2 + $0x24] sm:$0xf] %v7960_v3  ;;  %6981 = vmatpush3.bf16.msra.mxu1 %v7744_v4  ;;  %6902 = vmatprep.subr.bf16.mxu0 %v7745_v5  ;;  %v7750_v10 = vld [vmem:[%s10788_s3 + $0x50] sm:$0xff]   ;;  %v7753_v13 = vld [vmem:[%s10788_s3 + $0x118] sm:$0xff]  }
  0x12   : > { %478 = vst [vmem:[#allocation2 + $0x28] sm:$0xf] %v7960_v3  ;;  %482 = vst [vmem:[#allocation2 + $0x30] sm:$0xf] %v7960_v3  ;;  %6982 = vmatprep.subr.bf16.mxu1 %v7746_v6  ;;  %v7751_v11 = vld [vmem:[%s10788_s3 + $0xd0] sm:$0xff]   ;;  %v7754_v14 = vld [vmem:[%s10788_s3 + $0x58] sm:$0xff]  }
  0x13   : > { %483 = vst [vmem:[#allocation2 + $0x34] sm:$0xf] %v7960_v3  ;;  %484 = vst [vmem:[#allocation2 + $0x38] sm:$0xf] %v7960_v3  ;;  %v7752_v12 = vld [vmem:[%s10788_s3 + $0x10] sm:$0xff]   ;;  %v7755_v15 = vld [vmem:[%s10788_s3 + $0xd8] sm:$0xff]  }
  0x14   : > { %488 = vst [vmem:[#allocation2 + $0x40] sm:$0xf] %v7960_v3  ;;  %489 = vst [vmem:[#allocation2 + $0x44] sm:$0xf] %v7960_v3  ;;  %6903 = vmatpush3.bf16.msra.mxu0 %v7747_v7  ;;  %v7756_v16 = vld [vmem:[%s10788_s3 + $0x18] sm:$0xff]   ;;  %v7757_v17 = vld [vmem:[%s10788_s3 + $0x120] sm:$0xff]  }
  0x15   : > { %490 = vst [vmem:[#allocation2 + $0x48] sm:$0xf] %v7960_v3  ;;  %494 = vst [vmem:[#allocation2 + $0x50] sm:$0xf] %v7960_v3  ;;  %6983 = vmatpush3.bf16.msra.mxu1 %v7748_v8  ;;  %6904 = vmatprep.subr.bf16.mxu0 %v7749_v9  ;;  %v7758_v18 = vld [vmem:[%s10788_s3 + $0x60] sm:$0xff]   ;;  %v7761_v21 = vld [vmem:[%s10788_s3 + $0x128] sm:$0xff]  }
  0x16   : > { %495 = vst [vmem:[#allocation2 + $0x54] sm:$0xf] %v7960_v3  ;;  %496 = vst [vmem:[#allocation2 + $0x58] sm:$0xf] %v7960_v3  ;;  %6984 = vmatprep.subr.bf16.mxu1 %v7750_v10  ;;  %v7759_v19 = vld [vmem:[%s10788_s3 + $0xe0] sm:$0xff]   ;;  %v7762_v22 = vld [vmem:[%s10788_s3 + $0x68] sm:$0xff]  }
  0x17   : > { %500 = vst [vmem:[#allocation2 + $0x60] sm:$0xf] %v7960_v3  ;;  %501 = vst [vmem:[#allocation2 + $0x64] sm:$0xf] %v7960_v3  ;;  %v7760_v20 = vld [vmem:[%s10788_s3 + $0x20] sm:$0xff]   ;;  %v7763_v23 = vld [vmem:[%s10788_s3 + $0xe8] sm:$0xff]  }
  0x18   : > { %502 = vst [vmem:[#allocation2 + $0x68] sm:$0xf] %v7960_v3  ;;  %506 = vst [vmem:[#allocation2 + $0x70] sm:$0xf] %v7960_v3  ;;  %6905 = vmatpush3.bf16.msra.mxu0 %v7751_v11  ;;  %s8077_s25 = scalar_select %p253_p3, %s8002_s22, 1  ;;  %v7764_v24 = vld [vmem:[%s10788_s3 + $0x28] sm:$0xff]  }
  0x19   : > { %507 = vst [vmem:[#allocation2 + $0x74] sm:$0xf] %v7960_v3  ;;  %508 = vst [vmem:[#allocation2 + $0x78] sm:$0xf] %v7960_v3  ;;  %6985 = vmatpush3.bf16.msra.mxu1 %v7752_v12  ;;  %6906 = vmatprep.subr.bf16.mxu0 %v7753_v13  ;;  %v7765_v25 = vld [vmem:[%s10788_s3 + $0x130] sm:$0xff]   ;;  %v7769_v29 = vld [vmem:[%s10788_s3 + $0x138] sm:$0xff]  }
  0x1a   : > { %512 = vst [vmem:[#allocation2 + $0x80] sm:$0xf] %v7960_v3  ;;  %513 = vst [vmem:[#allocation2 + $0x84] sm:$0xf] %v7960_v3  ;;  %6986 = vmatprep.subr.bf16.mxu1 %v7754_v14  ;;  %v7766_v26 = vld [vmem:[%s10788_s3 + $0x70] sm:$0xff]   ;;  %s6661_s10 = sshll.u32 %s8077_s25, 7  ;;  %s266_s20 = scalar_lea.vmem %s10790_s5, %s8077_s25 }
  0x1b   : > { %514 = vst [vmem:[#allocation2 + $0x88] sm:$0xf] %v7960_v3  ;;  %518 = vst [vmem:[#allocation2 + $0x90] sm:$0xf] %v7960_v3  ;;  %v7767_v27 = vld [vmem:[%s10788_s3 + $0xf0] sm:$0xff]   ;;  %v7770_v30 = vld [vmem:[%s10788_s3 + $0x78] sm:$0xff]   ;;  %s8104_s19 = scalar_lea.vmem %s10785_s0, %s6661_s10  ;;  %s269_s26 = scalar_lea.vmem %s10791_s6, %s8077_s25 }
  0x1c   : > { %519 = vst [vmem:[#allocation2 + $0x94] sm:$0xf] %v7960_v3  ;;  %520 = vst [vmem:[#allocation2 + $0x98] sm:$0xf] %v7960_v3  ;;  %6907 = vmatpush3.bf16.msra.mxu0 %v7755_v15  ;;  %v7768_v28 = vld [vmem:[%s10788_s3 + $0x30] sm:$0xff]   ;;  %v7771_v31 = vld [vmem:[%s10788_s3 + $0xf8] sm:$0xff]  }
  0x1d   : > { %524 = vst [vmem:[#allocation2 + $0xa0] sm:$0xf] %v7960_v3  ;;  %525 = vst [vmem:[#allocation2 + $0xa4] sm:$0xf] %v7960_v3  ;;  %6987 = vmatpush3.bf16.msra.mxu1 %v7756_v16  ;;  %6908 = vmatprep.subr.bf16.mxu0 %v7757_v17  ;;  %v7772_v32 = vld [vmem:[%s10788_s3 + $0x38] sm:$0xff]   ;;  %v6727_v33 = vld [vmem:[%s8104_s19] sm:$0xff]  }
  0x1e   : > { %526 = vst [vmem:[#allocation2 + $0xa8] sm:$0xf] %v7960_v3  ;;  %530 = vst [vmem:[#allocation2 + $0xb0] sm:$0xf] %v7960_v3  ;;  %6988 = vmatprep.subr.bf16.mxu1 %v7758_v18  ;;  %v8116_v34 = vld [vmem:[%s10786_s1] ss:$0 sm:$0xff]  ;;  %v6728_v36 = vunpack.c.l.bf16 %v6727_v33  ;;  %v6729_v37 = vunpack.c.h.bf16 %v6727_v33 }
  0x1f   : > { %531 = vst [vmem:[#allocation2 + $0xb4] sm:$0xf] %v7960_v3  ;;  %532 = vst [vmem:[#allocation2 + $0xb8] sm:$0xf] %v7960_v3  ;;  %v8121_v35 = vld [vmem:[%s10787_s2] ss:$0 sm:$0xff] }
  0x20   : > { %536 = vst [vmem:[#allocation2 + $0xc0] sm:$0xf] %v7960_v3  ;;  %537 = vst [vmem:[#allocation2 + $0xc4] sm:$0xf] %v7960_v3  ;;  %6909 = vmatpush3.bf16.msra.mxu0 %v7759_v19  ;;  %v718_v38 = vld [vmem:[#allocation2 + $0x4] sm:$0xf]  ;;  %v342_v45 = vmul.f32 %v6728_v36, %v8116_v34  ;;  %v343_v46 = vmul.f32 %v6729_v37, %v8116_v34 }
  0x21   : > { %538 = vst [vmem:[#allocation2 + $0xc8] sm:$0xf] %v7960_v3  ;;  %542 = vst [vmem:[#allocation2 + $0xd0] sm:$0xf] %v7960_v3  ;;  %6989 = vmatpush3.bf16.msra.mxu1 %v7760_v20  ;;  %6910 = vmatprep.subr.bf16.mxu0 %v7761_v21  ;;  %v719_v39 = vld [vmem:[#allocation2 + $0x8] sm:$0xf] }
  0x22   : > { %543 = vst [vmem:[#allocation2 + $0xd4] sm:$0xf] %v7960_v3  ;;  %544 = vst [vmem:[#allocation2 + $0xd8] sm:$0xf] %v7960_v3  ;;  %6990 = vmatprep.subr.bf16.mxu1 %v7762_v22  ;;  %vm465_vm0 = vsmask.f32 256  ;;  %v6115_v47 = vcombine.low %v718_v38, %v719_v39  ;;  %v381_v54 = vadd.f32 %v8121_v35, %v342_v45  ;;  %v382_v55 = vadd.f32 %v8121_v35, %v343_v46 }
  0x23   : > { %548 = vst [vmem:[#allocation2 + $0xe0] sm:$0xf] %v7960_v3  ;;  %549 = vst [vmem:[#allocation2 + $0xe4] sm:$0xf] %v7960_v3  ;;  %v749_v40 = vshrl.u32 %v718_v38, 16  ;;  %v752_v41 = vshll.u32 %v718_v38, 16 }
  0x24   : > { %550 = vst [vmem:[#allocation2 + $0xe8] sm:$0xf] %v7960_v3  ;;  %554 = vst [vmem:[#allocation2 + $0xf0] sm:$0xf] %v7960_v3  ;;  %6911 = vmatpush3.bf16.msra.mxu0 %v7763_v23  ;;  %v758_v42 = vshrl.u32 %v719_v39, 16  ;;  %v761_v43 = vshll.u32 %v719_v39, 16  ;;  %2197 = vmatprep.mubr.bf16.mxu1 %v6115_v47 }
  0x25   : > { %555 = vst [vmem:[#allocation2 + $0xf4] sm:$0xf] %v7960_v3  ;;  %556 = vst [vmem:[#allocation2 + $0xf8] sm:$0xf] %v7960_v3  ;;  %6991 = vmatpush3.bf16.msra.mxu1 %v7764_v24  ;;  %6912 = vmatprep.subr.bf16.mxu0 %v7765_v25  ;;  %v1202_v44 = vld [vmem:[#allocation2 + $0x10] sm:$0x8] }
  0x26   : > { %560 = vst [vmem:[#allocation2 + $0x100] sm:$0xf] %v7960_v3  ;;  %561 = vst [vmem:[#allocation2 + $0x104] sm:$0xf] %v7960_v3  ;;  %6992 = vmatprep.subr.bf16.mxu1 %v7766_v26  ;;  %vm741_vm1 = vsmask.f32 4368 }
  0x27   : > { %562 = vst [vmem:[#allocation2 + $0x108] sm:$0xf] %v7960_v3  ;;  %566 = vst [vmem:[#allocation2 + $0x110] sm:$0xf] %v7960_v3  ;;  %v751_v48 = vrot.slane %v749_v40, 7  ;;  %v760_v49 = vrot.slane %v758_v42, 7 }
  0x28   : > { %567 = vst [vmem:[#allocation2 + $0x114] sm:$0xf] %v7960_v3  ;;  %568 = vst [vmem:[#allocation2 + $0x118] sm:$0xf] %v7960_v3  ;;  %6913 = vmatpush3.bf16.msra.mxu0 %v7767_v27  ;;  %v930_v50 = vrot.slane %v749_v40, 4  ;;  %v931_v51 = vrot.slane %v752_v41, 5 }
  0x29   : > { %6993 = vmatpush3.bf16.msra.mxu1 %v7768_v28  ;;  %6914 = vmatprep.subr.bf16.mxu0 %v7769_v29  ;;  %v8128_v52 = vld [vmem:[%s10788_s3 + $0x140] sm:$0xff]   ;;  %v8135_v56 = vrot.slane %v761_v43, 5  ;;  %v936_v57 = vrot.slane %v758_v42, 4  ;;  %vm8138_vm2 = vmor %vm465_vm0, %vm741_vm1  ;;  %v756_v60 = vrot.slane %v751_v48, 4  ;;  %v763_v61 = vor.u32 %v761_v43, %v760_v49  ;;  %v6870_v63 = vld [vmem:[%s8104_s19 + $0x8] sm:$0xff]   ;;  %s6063_s13 = sshll.u32 %s8002_s22, 5 }
  0x2a   : > { %6994 = vmatprep.subr.bf16.mxu1 %v7770_v30  ;;  %v7776_v53 = vld [vmem:[%s10788_s3 + $0x80] sm:$0xff]   ;;  %v932_v62 = vor.u32 %v931_v51, %v930_v50  ;;  %v413_v1 = vmax.f32 %v381_v54, 0.0  ;;  %v414_v2 = vmax.f32 %v382_v55, 0.0  ;;  %v1227_v4 = vshrl.u32 %v1202_v44, 16  ;;  %v720_v9 = vld [vmem:[#allocation2 + $0x10] sm:$0x8]  ;;  %vm8560_vm4 = vmand %vm464_vm3, %vm465_vm0 }
  0x2b   : > { %v717_v59 = vld [vmem:[#allocation2] sm:$0x8]  ;;  %v937_v3 = vor.u32 %v936_v57, %v8135_v56  ;;  %v754_v5 = vor.u32 %v752_v41, %v751_v48  ;;  %v6732_v8 = vunpack.c.l.bf16 %v6870_v63  ;;  %v764_v13 = vsel %vm8138_vm2, %v756_v60, %v763_v61  ;;  %v6871_v18 = vld [vmem:[%s8104_s19 + $0x10] sm:$0xff]   ;;  %v6872_v36 = vld [vmem:[%s8104_s19 + $0x18] sm:$0xff]   ;;  %p10565_p4 = scmp.lt.s32.totalorder %s6063_s13, 63 }
  0x2c   : > { %6915 = vmatpush3.bf16.msra.mxu0 %v7771_v31  ;;  %v1205_v0 = vld [vmem:[#allocation2 + $0x20] sm:$0x8]  ;;  %v8145_v6 = vrot.slane %v932_v62, 4  ;;  %v744_v7 = vshrl.u32 %v717_v59, 16  ;;  %v6662_v10 = vpack.c.bf16 %v413_v1, %v413_v1  ;;  %v6663_v11 = vpack.c.bf16 %v414_v2, %v414_v2  ;;  %v1208_v19 = vld [vmem:[#allocation2 + $0x30] sm:$0x8] }
  0x2d   : > { %6995 = vmatpush3.bf16.msra.mxu1 %v7772_v32  ;;  %7380 = vmatprep.subr.bf16.mxu0 %v8128_v52  ;;  %v8147_v12 = vrot.slane %v937_v3, 4  ;;  %v6733_v15 = vunpack.c.h.bf16 %v6870_v63  ;;  %v344_v16 = vmul.f32 %v6732_v8, %v8116_v34  ;;  %v1249_v17 = vshrl.u32 %v1205_v0, 16  ;;  %v723_v28 = vld [vmem:[#allocation2 + $0x20] sm:$0x8]  ;;  %v7780_v31 = vld [vmem:[%s10788_s3 + $0x88] sm:$0xff]   ;;  %v7784_v50 = vld [vmem:[%s10788_s3 + $0x90] sm:$0xff]  }
  0x2e   : > { %7412 = vmatprep.subr.bf16.mxu1 %v7776_v53  ;;  %v6099_v14 = vrot.slane %v744_v7, 11  ;;  %685 = vst [vmem:[#allocation2 + $0x14] sm:$0xf] %v6662_v10  ;;  %686 = vst [vmem:[#allocation2 + $0x18] sm:$0xf] %v6663_v11  ;;  %v8153_v20 = vrot.slane %v1227_v4, 11  ;;  %v6736_v22 = vunpack.c.l.bf16 %v6871_v18  ;;  %v6737_v23 = vunpack.c.h.bf16 %v6871_v18 }
  0x2f   : > { %v766_v21 = vshrl.u32 %v720_v9, 16  ;;  %v345_v25 = vmul.f32 %v6733_v15, %v8116_v34  ;;  %v383_v26 = vadd.f32 %v8121_v35, %v344_v16  ;;  %v1271_v27 = vshrl.u32 %v1208_v19, 16  ;;  %v8170_v41 = vld [vmem:[#allocation2 + $0x40] sm:$0x8]  ;;  %s11216_s13 = smov (!%p10565_p4, %s6063_s13), 63 }
  0x30   : > { %v755_v24 = vsel %vm8138_vm2, %v6099_v14, %v754_v5  ;;  %v8159_v30 = vrot.slane %v1249_v17, 11  ;;  %v346_v32 = vmul.f32 %v6736_v22, %v8116_v34  ;;  %v347_v33 = vmul.f32 %v6737_v23, %v8116_v34  ;;  %v8192_v57 = vld [vmem:[%s8104_s19 + $0x20] sm:$0xff]   ;;  %s6064_s22 = sshll.u32 %s11216_s13, 2 }
  0x31   : > { %v6107_v29 = vcombine.low %v755_v24, %v764_v13  ;;  %v384_v37 = vadd.f32 %v8121_v35, %v345_v25  ;;  %v415_v38 = vmax.f32 %v383_v26, 0.0  ;;  %v8168_v39 = vrot.slane %v766_v21, 11  ;;  %v7788_v13 = vld [vmem:[%s10788_s3 + $0x98] sm:$0xff]  }
  0x32   : > { %v788_v40 = vshrl.u32 %v723_v28, 16  ;;  %v8173_v42 = vadd.f32 %v8121_v35, %v346_v32  ;;  %v8176_v43 = vadd.f32 %v8121_v35, %v347_v33  ;;  %v6740_v44 = vunpack.c.l.bf16 %v6872_v36 }
  0x33   : > { %2198 = vmatmul.mubr.bf16.vlgmr.msra.gmra.mrb[0].mxu1 %v6107_v29  ;;  %v6741_v45 = vunpack.c.h.bf16 %v6872_v36  ;;  %v416_v46 = vmax.f32 %v384_v37, 0.0  ;;  %v6664_v47 = vpack.c.bf16 %v415_v38, %v415_v38  ;;  %v8178_v48 = vrot.slane %v1271_v27, 11 }
  0x34   : > { %7413 = vmatpush3.bf16.msra.mxu1 %v7776_v53  ;;  %v8180_v49 = vrot.slane %v788_v40, 11  ;;  %v417_v51 = vmax.f32 %v8173_v42, 0.0  ;;  %v418_v54 = vmax.f32 %v8176_v43, 0.0  ;;  %v8188_v55 = vmul.f32 %v6740_v44, %v8116_v34  ;;  %v7787_v42 = vld [vmem:[%s10788_s3 + $0x158] sm:$0xff]   ;;  %v726_v43 = vld [vmem:[#allocation2 + $0x30] sm:$0x8] }
  0x35   : > { %7414 = vmatprep.subr.bf16.mxu1 %v7780_v31  ;;  %v1293_v53 = vshrl.u32 %v8170_v41, 16  ;;  %v1203_v59 = vld [vmem:[#allocation2 + $0x14] sm:$0xf]  ;;  %v1204_v60 = vld [vmem:[#allocation2 + $0x18] sm:$0xf]  ;;  %v6665_v61 = vpack.c.bf16 %v416_v46, %v416_v46  ;;  %v8197_v63 = vmul.f32 %v6741_v45, %v8116_v34  ;;  %v6744_v0 = vunpack.c.l.bf16 %v8192_v57 }
  0x36   : > { %687 = vst [vmem:[#allocation2 + $0x24] sm:$0xf] %v6664_v47  ;;  %v8194_v62 = vld [vmem:[#allocation2 + $0x14] sm:$0xf]  ;;  %v6745_v1 = vunpack.c.h.bf16 %v8192_v57  ;;  %v1232_v2 = vshrl.u32 %v1203_v59, 16  ;;  %v1235_v3 = vshll.u32 %v1203_v59, 16  ;;  %v6147_v8 = vcombine.low %v1203_v59, %v1204_v60 }
  0x37   : > { %v1241_v4 = vshrl.u32 %v1204_v60, 16  ;;  %v1244_v5 = vshll.u32 %v1204_v60, 16  ;;  %v8201_v7 = vld [vmem:[#allocation2 + $0x18] sm:$0xf]  ;;  %688 = vst [vmem:[#allocation2 + $0x28] sm:$0xf] %v6665_v61 }
  0x38   : > { %v771_v9 = vshrl.u32 %v8194_v62, 16  ;;  %v774_v10 = vshll.u32 %v8194_v62, 16  ;;  %v780_v11 = vshrl.u32 %v8201_v7, 16  ;;  %7415 = vmatpush3.bf16.msra.mxu1 %v7780_v31  ;;  %v1234_v14 = vrot.slane %v1232_v2, 7  ;;  %1859 = vmatprep.mubr.bf16.mxu0 %v6147_v8  ;;  %v7779_v47 = vld [vmem:[%s10788_s3 + $0x148] sm:$0xff]  }
  0x39   : > { %v1243_v15 = vrot.slane %v1241_v4, 7  ;;  %v1410_v16 = vrot.slane %v1232_v2, 4  ;;  %v1411_v17 = vrot.slane %v1235_v3, 5  ;;  %7416 = vmatprep.subr.bf16.mxu1 %v7784_v50  ;;  %v8209_v18 = vrot.slane %v1244_v5, 5 }
  0x3a   : > { %v1416_v19 = vrot.slane %v1241_v4, 4  ;;  %v8211_v21 = vrot.slane %v771_v9, 7  ;;  %v782_v22 = vrot.slane %v780_v11, 7  ;;  %v1237_v23 = vor.u32 %v1235_v3, %v1234_v14 }
  0x3b   : > { %v1239_v24 = vrot.slane %v1234_v14, 4  ;;  %v1246_v25 = vor.u32 %v1244_v5, %v1243_v15  ;;  %v1412_v26 = vor.u32 %v1411_v17, %v1410_v16  ;;  %v783_v28 = vshll.u32 %v8201_v7, 16 }
  0x3c   : > { %v1417_v27 = vor.u32 %v1416_v19, %v8209_v18  ;;  %v944_v29 = vrot.slane %v771_v9, 4  ;;  %v945_v31 = vrot.slane %v774_v10, 5  ;;  %7417 = vmatpush3.bf16.msra.mxu1 %v7784_v50  ;;  %v1238_v33 = vsel %vm8138_vm2, %v8153_v20, %v1237_v23  ;;  %v7792_v50 = vld [vmem:[%s10788_s3 + $0xa0] sm:$0xff]  }
  0x3d   : > { %v8215_v32 = vrot.slane %v1412_v26, 4  ;;  %v1247_v36 = vsel %vm8138_vm2, %v1239_v24, %v1246_v25  ;;  %v1206_v37 = vld [vmem:[#allocation2 + $0x24] sm:$0xf]  ;;  %v950_v38 = vrot.slane %v780_v11, 4  ;;  %7418 = vmatprep.subr.bf16.mxu1 %v7788_v13  ;;  %v8230_v60 = vrot.slane %v783_v28, 5 }
  0x3e   : > { %v8222_v40 = vrot.slane %v1417_v27, 4  ;;  %v6139_v44 = vcombine.low %v1238_v33, %v1247_v36  ;;  %v1254_v45 = vshrl.u32 %v1206_v37, 16  ;;  %v1257_v46 = vshll.u32 %v1206_v37, 16  ;;  %v1207_v20 = vld [vmem:[#allocation2 + $0x28] sm:$0xf] }
  0x3f   : > { %v946_v59 = vor.u32 %v945_v31, %v944_v29  ;;  %v6116_v61 = vcombine.low %v8194_v62, %v8201_v7  ;;  %v776_v2 = vor.u32 %v774_v10, %v8211_v21  ;;  %v1263_v4 = vshrl.u32 %v1207_v20, 16  ;;  %v724_v16 = vld [vmem:[#allocation2 + $0x24] sm:$0xf]  ;;  %v7796_v62 = vld [vmem:[%s10788_s3 + $0xa8] sm:$0xff]  }
  0x40   : > { %1860 = vmatmul.mubr.bf16.vlgmr.msra.gmra.mrb[0].mxu0 %v6139_v44  ;;  %v1256_v3 = vrot.slane %v1254_v45, 7  ;;  %v1266_v5 = vshll.u32 %v1207_v20, 16  ;;  %v1424_v8 = vrot.slane %v1254_v45, 4  ;;  %7419 = vmatpush3.bf16.msra.mxu1 %v7788_v13  ;;  %v1425_v9 = vrot.slane %v1257_v46, 5  ;;  %v8252_v26 = vld [vmem:[#allocation2 + $0x28] sm:$0xf] }
  0x41   : > { %7381 = vmatpush3.bf16.msra.mxu0 %v8128_v52  ;;  %v6148_v11 = vcombine.low %v1206_v37, %v1207_v20  ;;  %v8236_v14 = vrot.slane %v946_v59, 4  ;;  %v951_v15 = vor.u32 %v950_v38, %v8230_v60  ;;  %2205 = vmatprep.mubr.bf16.mxu1 %v6116_v61  ;;  %v1265_v7 = vrot.slane %v1263_v4, 7  ;;  %v7783_v52 = vld [vmem:[%s10788_s3 + $0x150] sm:$0xff]  }
  0x42   : > { %v8242_v10 = vrot.slane %v1266_v5, 5  ;;  %v1430_v17 = vrot.slane %v1263_v4, 4  ;;  %v1259_v19 = vor.u32 %v1257_v46, %v1256_v3  ;;  %7382 = vmatprep.subr.bf16.mxu0 %v7779_v47  ;;  %7420 = vmatprep.subr.bf16.mxu1 %v7792_v50  ;;  %v1426_v13 = vor.u32 %v1425_v9, %v1424_v8  ;;  %v7804_v8 = vld [vmem:[%s10788_s3 + $0xb8] sm:$0xff]  }
  0x43   : > { %1867 = vmatprep.mubr.bf16.mxu0 %v6148_v11  ;;  %v8247_v23 = vrot.slane %v951_v15, 4  ;;  %v1261_v24 = vrot.slane %v1256_v3, 4  ;;  %v777_v25 = vsel %vm8138_vm2, %v8168_v39, %v776_v2  ;;  %v1268_v31 = vor.u32 %v1266_v5, %v1265_v7 }
  0x44   : > { %v1431_v27 = vor.u32 %v1430_v17, %v8242_v10  ;;  %v1260_v29 = vsel %vm8138_vm2, %v8159_v30, %v1259_v19  ;;  %v778_v33 = vrot.slane %v8211_v21, 4  ;;  %7421 = vmatpush3.bf16.msra.mxu1 %v7792_v50  ;;  %v8259_v36 = vrot.slane %v1426_v13, 4  ;;  %v7800_v30 = vld [vmem:[%s10788_s3 + $0xb0] sm:$0xff]   ;;  %v7791_v19 = vld [vmem:[%s10788_s3 + $0x160] sm:$0xff]  }
  0x45   : > { %v785_v37 = vor.u32 %v783_v28, %v782_v22  ;;  %7383 = vmatpush3.bf16.msra.mxu0 %v7779_v47  ;;  %v6666_v39 = vpack.c.bf16 %v417_v51, %v417_v51  ;;  %v6667_v38 = vpack.c.bf16 %v418_v54, %v418_v54  ;;  %7422 = vmatprep.subr.bf16.mxu1 %v7796_v62  ;;  %v793_v22 = vshrl.u32 %v724_v16, 16  ;;  %v8281_v47 = vld [vmem:[#allocation2 + $0x50] sm:$0x8] }
  0x46   : > { %v8270_v44 = vrot.slane %v1431_v27, 4  ;;  %v1269_v21 = vsel %vm8138_vm2, %v1261_v24, %v1268_v31  ;;  %v796_v28 = vshll.u32 %v724_v16, 16  ;;  %7384 = vmatprep.subr.bf16.mxu0 %v7783_v52  ;;  %v802_v45 = vshrl.u32 %v8252_v26, 16 }
  0x47   : > { %v6140_v51 = vcombine.low %v1260_v29, %v1269_v21  ;;  %v786_v54 = vsel %vm8138_vm2, %v778_v33, %v785_v37  ;;  %689 = vst [vmem:[#allocation2 + $0x34] sm:$0xf] %v6666_v39  ;;  %690 = vst [vmem:[#allocation2 + $0x38] sm:$0xf] %v6667_v38  ;;  %v10794_v46 = vshll.u32 %v8252_v26, 16  ;;  %v795_v20 = vrot.slane %v793_v22, 7 }
  0x48   : > { %v6108_v50 = vcombine.low %v777_v25, %v786_v54  ;;  %v8283_v59 = vrot.slane %v793_v22, 4  ;;  %v8285_v61 = vrot.slane %v796_v28, 5  ;;  %7423 = vmatpush3.bf16.msra.mxu1 %v7796_v62  ;;  %v804_v2 = vrot.slane %v802_v45, 7  ;;  %v7795_v39 = vld [vmem:[%s10788_s3 + $0x168] sm:$0xff]  }
  0x49   : > { %1868 = vmatmul.mubr.bf16.gmra.mrb[4].mxu0 %v6140_v51  ;;  %v8287_v3 = vrot.slane %v802_v45, 4  ;;  %v6117_v4 = vcombine.low %v724_v16, %v8252_v26  ;;  %v387_v5 = vadd.f32 %v8121_v35, %v8188_v55  ;;  %7424 = vmatprep.subr.bf16.mxu1 %v7800_v30  ;;  %v798_v9 = vor.u32 %v796_v28, %v795_v20  ;;  %v8344_v45 = vld [vmem:[%s10788_s3 + $0x200] sm:$0xff]  }
  0x4a   : > { %2206 = vmatmul.mubr.bf16.gmra.mrb[4].mxu1 %v6108_v50  ;;  %v800_v11 = vrot.slane %v795_v20, 4  ;;  %7385 = vmatpush3.bf16.msra.mxu0 %v7783_v52  ;;  %v388_v15 = vadd.f32 %v8121_v35, %v8197_v63  ;;  %v8299_v62 = vrot.slane %v1293_v53, 11  ;;  %v807_v55 = vor.u32 %v10794_v46, %v804_v2  ;;  %v8310_v63 = vld [vmem:[%s8104_s19 + $0x28] sm:$0xff]  }
  0x4b   : > { %2213 = vmatprep.mubr.bf16.mxu1 %v6117_v4  ;;  %v419_v16 = vmax.f32 %v387_v5, 0.0  ;;  %7386 = vmatprep.subr.bf16.mxu0 %v7787_v42  ;;  %v810_v7 = vshrl.u32 %v726_v43, 16  ;;  %v350_v17 = vmul.f32 %v6744_v0, %v8116_v34  ;;  %v799_v41 = vsel %vm8138_vm2, %v8180_v49, %v798_v9 }
  0x4c   : > { %v420_v53 = vmax.f32 %v388_v15, 0.0  ;;  %v351_v52 = vmul.f32 %v6745_v1, %v8116_v34  ;;  %v1315_v13 = vshrl.u32 %v8281_v47, 16  ;;  %7425 = vmatpush3.bf16.msra.mxu1 %v7800_v30  ;;  %v808_v0 = vsel %vm8138_vm2, %v800_v11, %v807_v55 }
  0x4d   : > { %v6668_v24 = vpack.c.bf16 %v419_v16, %v419_v16  ;;  %v8321_v25 = vrot.slane %v810_v7, 11  ;;  %v8324_v27 = vadd.f32 %v8121_v35, %v350_v17  ;;  %7426 = vmatprep.subr.bf16.mxu1 %v7804_v8  ;;  %v6109_v31 = vcombine.low %v799_v41, %v808_v0 }
  0x4e   : > { %v1209_v29 = vld [vmem:[#allocation2 + $0x34] sm:$0xf]  ;;  %v8326_v49 = vld [vmem:[#allocation2 + $0x38] sm:$0xf]  ;;  %v6669_v33 = vpack.c.bf16 %v420_v53, %v420_v53  ;;  %7387 = vmatpush3.bf16.msra.mxu0 %v7787_v42  ;;  %v8329_v1 = vadd.f32 %v8121_v35, %v351_v52  ;;  %v6748_v37 = vunpack.c.l.bf16 %v8310_v63  ;;  %vm927_vm5 = vsmask.f32 3328 }
  0x4f   : > { %v727_v57 = vld [vmem:[#allocation2 + $0x34] sm:$0xf]  ;;  %v1276_v38 = vshrl.u32 %v1209_v29, 16  ;;  %v1279_v30 = vshll.u32 %v1209_v29, 16  ;;  %v1285_v21 = vshrl.u32 %v8326_v49, 16  ;;  %v10795_v22 = vshll.u32 %v8326_v49, 16  ;;  %7388 = vmatprep.subr.bf16.mxu0 %v7791_v19 }
  0x50   : > { %691 = vst [vmem:[#allocation2 + $0x44] sm:$0xf] %v6668_v24  ;;  %v8337_v28 = vld [vmem:[#allocation2 + $0x38] sm:$0xf]  ;;  %v6149_v42 = vcombine.low %v1209_v29, %v8326_v49  ;;  %692 = vst [vmem:[#allocation2 + $0x48] sm:$0xf] %v6669_v33  ;;  %7427 = vmatpush3.bf16.msra.mxu1 %v7804_v8 }
  0x51   : > { %v815_v43 = vshrl.u32 %v727_v57, 16  ;;  %v818_v51 = vshll.u32 %v727_v57, 16  ;;  %v824_v54 = vshrl.u32 %v8337_v28, 16  ;;  %v1278_v50 = vrot.slane %v1276_v38, 7  ;;  %v7799_v8 = vld [vmem:[%s10788_s3 + $0x170] sm:$0xff]   ;;  %7444 = vmatprep.subr.bf16.mxu1 %v8344_v45 }
  0x52   : > { %v1287_v20 = vrot.slane %v1285_v21, 7  ;;  %v8346_v2 = vrot.slane %v1276_v38, 4  ;;  %v8348_v4 = vrot.slane %v1279_v30, 5  ;;  %v8350_v5 = vrot.slane %v1285_v21, 4  ;;  %1875 = vmatprep.mubr.bf16.mxu0 %v6149_v42  ;;  %2214 = vmatmul.mubr.bf16.gmra.mrb[8].mxu1 %v6109_v31 }
  0x53   : > { %v817_v9 = vrot.slane %v815_v43, 7  ;;  %v826_v11 = vrot.slane %v824_v54, 7  ;;  %v10792_v15 = vshll.u32 %v8337_v28, 16  ;;  %v1281_v55 = vor.u32 %v1279_v30, %v1278_v50  ;;  %7389 = vmatpush3.bf16.msra.mxu0 %v7791_v19 }
  0x54   : > { %v1283_v16 = vrot.slane %v1278_v50, 4  ;;  %v1290_v7 = vor.u32 %v10795_v22, %v1287_v20  ;;  %v8358_v17 = vrot.slane %v815_v43, 4  ;;  %v8361_v41 = vrot.slane %v818_v51, 5  ;;  %7390 = vmatprep.subr.bf16.mxu0 %v7795_v39 }
  0x55   : > { %v8363_v53 = vrot.slane %v824_v54, 4  ;;  %v6118_v52 = vcombine.low %v727_v57, %v8337_v28  ;;  %v820_v0 = vor.u32 %v818_v51, %v817_v9  ;;  %v1282_v24 = vsel %vm8138_vm2, %v8178_v48, %v1281_v55 }
  0x56   : > { %v1291_v29 = vsel %vm8138_vm2, %v1283_v16, %v1290_v7  ;;  %v822_v31 = vrot.slane %v817_v9, 4  ;;  %v829_v19 = vor.u32 %v10792_v15, %v826_v11  ;;  %v421_v30 = vmax.f32 %v8324_v27, 0.0  ;;  %v7803_v11 = vld [vmem:[%s10788_s3 + $0x178] sm:$0xff]  }
  0x57   : > { %v6141_v33 = vcombine.low %v1282_v24, %v1291_v29  ;;  %v1212_v38 = vld [vmem:[#allocation2 + $0x44] sm:$0xf]  ;;  %2221 = vmatprep.mubr.bf16.mxu1 %v6118_v52  ;;  %v821_v57 = vsel %vm8138_vm2, %v8321_v25, %v820_v0  ;;  %v422_v21 = vmax.f32 %v8329_v1, 0.0  ;;  %v8378_v42 = vld [vmem:[#allocation2 + $0x48] sm:$0xf]  ;;  %v6749_v50 = vunpack.c.h.bf16 %v8310_v63  ;;  %7391 = vmatpush3.bf16.msra.mxu0 %v7795_v39 }
  0x58   : > { %v1298_v48 = vshrl.u32 %v1212_v38, 16  ;;  %v1301_v43 = vshll.u32 %v1212_v38, 16  ;;  %v830_v51 = vsel %vm8138_vm2, %v822_v31, %v829_v19  ;;  %v730_v54 = vld [vmem:[#allocation2 + $0x44] sm:$0xf]  ;;  %v1307_v20 = vshrl.u32 %v8378_v42, 16  ;;  %7392 = vmatprep.subr.bf16.mxu0 %v7799_v8 }
  0x59   : > { %1876 = vmatmul.mubr.bf16.gmra.mrb[8].mxu0 %v6141_v33  ;;  %v10793_v25 = vshll.u32 %v8378_v42, 16  ;;  %v6150_v27 = vcombine.low %v1212_v38, %v8378_v42  ;;  %v6110_v9 = vcombine.low %v821_v57, %v830_v51  ;;  %v8386_v1 = vld [vmem:[#allocation2 + $0x48] sm:$0xf]  ;;  %v6670_v39 = vpack.c.bf16 %v421_v30, %v421_v30  ;;  %v729_v52 = vld [vmem:[#allocation2 + $0x40] sm:$0x8] }
  0x5a   : > { %10883 = vst [vmem:[#allocation3_spill] sm:$0xff] %v8386_v1  ;;  %v1300_v55 = vrot.slane %v1298_v48, 7  ;;  %v8391_v16 = vrot.slane %v1298_v48, 4  ;;  %v8393_v7 = vrot.slane %v1301_v43, 5  ;;  %v1309_v0 = vrot.slane %v1307_v20, 7 }
  0x5b   : > { %v8395_v24 = vrot.slane %v1307_v20, 4  ;;  %1883 = vmatprep.mubr.bf16.mxu0 %v6150_v27  ;;  %2222 = vmatmul.mubr.bf16.gmra.mrb[12].mxu1 %v6110_v9  ;;  %v6671_v29 = vpack.c.bf16 %v422_v21, %v422_v21  ;;  %v837_v31 = vshrl.u32 %v730_v54, 16  ;;  %693 = vst [vmem:[#allocation2 + $0x54] sm:$0xf] %v6670_v39  ;;  %v840_v38 = vshll.u32 %v730_v54, 16 }
  0x5c   : > { %v1303_v19 = vor.u32 %v1301_v43, %v1300_v55  ;;  %v1305_v33 = vrot.slane %v1300_v55, 4  ;;  %v846_v57 = vshrl.u32 %v8386_v1, 16  ;;  %v1217_v48 = vld [vmem:[#allocation2 + $0x60] sm:$0x8]  ;;  %7393 = vmatpush3.bf16.msra.mxu0 %v7799_v8  ;;  %v1312_v30 = vor.u32 %v10793_v25, %v1309_v0  ;;  %v8403_v21 = vld [vmem:[#allocation2 + $0x50] sm:$0x8] }
  0x5d   : > { %694 = vst [vmem:[#allocation2 + $0x58] sm:$0xf] %v6671_v29  ;;  %v839_v51 = vrot.slane %v837_v31, 7  ;;  %v10796_v20 = vshll.u32 %v8386_v1, 16  ;;  %v8401_v27 = vrot.slane %v837_v31, 4  ;;  %7394 = vmatprep.subr.bf16.mxu0 %v7803_v11  ;;  %v7805_v43 = vld [vmem:[%s10788_s3 + $0x1c0] sm:$0xff]   ;;  %v6119_v31 = vcombine.low %v730_v54, %v8386_v1 }
  0x5e   : > { %v1304_v8 = vsel %vm8138_vm2, %v8299_v62, %v1303_v19  ;;  %v848_v9 = vrot.slane %v846_v57, 7  ;;  %v8411_v55 = vrot.slane %v840_v38, 5  ;;  %v8413_v39 = vrot.slane %v846_v57, 4  ;;  %v8416_v0 = vld [vmem:[%s8104_s19 + $0x30] sm:$0xff]  }
  0x5f   : > { %10884 = vst [vmem:[#allocation4_spill] sm:$0xff] %v8401_v27  ;;  %v1313_v29 = vsel %vm8138_vm2, %v1305_v33, %v1312_v30  ;;  %v8423_v15 = vrot.slane %v1315_v13, 11  ;;  %v832_v25 = vshrl.u32 %v729_v52, 16  ;;  %v842_v22 = vor.u32 %v840_v38, %v839_v51  ;;  %2229 = vmatprep.mubr.bf16.mxu1 %v6119_v31 }
  0x60   : > { %10885 = vst [vmem:[#allocation5_spill] sm:$0xff] %v8411_v55  ;;  %10886 = vst [vmem:[#allocation6_spill] sm:$0xff] %v8413_v39  ;;  %v6142_v46 = vcombine.low %v1304_v8, %v1313_v29  ;;  %v844_v62 = vrot.slane %v839_v51, 4  ;;  %v851_v19 = vor.u32 %v10796_v20, %v848_v9  ;;  %7395 = vmatpush3.bf16.msra.mxu0 %v7803_v11  ;;  %v1337_v30 = vshrl.u32 %v1217_v48, 16 }
  0x61   : > { %v6103_v57 = vrot.slane %v832_v25, 11  ;;  %v352_v33 = vmul.f32 %v6748_v37, %v8116_v34  ;;  %v353_v54 = vmul.f32 %v6749_v50, %v8116_v34  ;;  %7060 = vmatprep.subr.bf16.mxu0 %v7805_v43  ;;  %v854_v13 = vshrl.u32 %v8403_v21, 16 }
  0x62   : > { %1884 = vmatmul.mubr.bf16.gmra.mrb[12].mxu0 %v6142_v46  ;;  %v852_v47 = vsel %vm8138_vm2, %v844_v62, %v851_v19  ;;  %v6752_v52 = vunpack.c.l.bf16 %v8416_v0  ;;  %v6753_v11 = vunpack.c.h.bf16 %v8416_v0  ;;  %v1215_v38 = vld [vmem:[#allocation2 + $0x54] sm:$0xf]  ;;  %v8440_v50 = vrot.slane %v1337_v30, 11 }
  0x63   : > { %v843_v25 = vsel %vm8138_vm2, %v6103_v57, %v842_v22  ;;  %v391_v63 = vadd.f32 %v8121_v35, %v352_v33  ;;  %v392_v37 = vadd.f32 %v8121_v35, %v353_v54  ;;  %v1320_v48 = vshrl.u32 %v1215_v38, 16  ;;  %v733_v21 = vld [vmem:[#allocation2 + $0x54] sm:$0xf] }
  0x64   : > { %v8442_v46 = vld [vmem:[#allocation2 + $0x58] sm:$0xf]  ;;  %v1323_v51 = vshll.u32 %v1215_v38, 16  ;;  %v6111_v43 = vcombine.low %v843_v25, %v852_v47  ;;  %v354_v8 = vmul.f32 %v6752_v52, %v8116_v34  ;;  %v859_v52 = vshrl.u32 %v733_v21, 16 }
  0x65   : > { %v1329_v9 = vshrl.u32 %v8442_v46, 16  ;;  %v6151_v22 = vcombine.low %v1215_v38, %v8442_v46  ;;  %v423_v29 = vmax.f32 %v391_v63, 0.0  ;;  %v1322_v31 = vrot.slane %v1320_v48, 7  ;;  %v8452_v33 = vld [vmem:[#allocation2 + $0x58] sm:$0xf] }
  0x66   : > { %v8448_v62 = vrot.slane %v1320_v48, 4  ;;  %v8450_v19 = vrot.slane %v1323_v51, 5  ;;  %2230 = vmatmul.mubr.bf16.gmra.mrb[16].mxu1 %v6111_v43  ;;  %v424_v57 = vmax.f32 %v392_v37, 0.0  ;;  %10887 = vst [vmem:[#allocation7_spill] sm:$0xff] %v8452_v33  ;;  %v862_v38 = vshll.u32 %v733_v21, 16 }
  0x67   : > { %v1331_v54 = vrot.slane %v1329_v9, 7  ;;  %v8454_v30 = vrot.slane %v1329_v9, 4  ;;  %1891 = vmatprep.mubr.bf16.mxu0 %v6151_v22  ;;  %v6672_v47 = vpack.c.bf16 %v423_v29, %v423_v29  ;;  %v1325_v25 = vor.u32 %v1323_v51, %v1322_v31  ;;  %v1220_v63 = vld [vmem:[#allocation2 + $0x70] sm:$0x8]  ;;  %v735_v48 = vld [vmem:[#allocation2 + $0x60] sm:$0x8] }
  0x68   : > { %v1327_v20 = vrot.slane %v1322_v31, 4  ;;  %v6673_v0 = vpack.c.bf16 %v424_v57, %v424_v57  ;;  %v10889_v39 = vshll.u32 %v8442_v46, 16  ;;  %v861_v37 = vrot.slane %v859_v52, 7 }
  0x69   : > { %10888 = vst [vmem:[#allocation8_spill] sm:$0xff] %v8454_v30  ;;  %695 = vst [vmem:[#allocation2 + $0x64] sm:$0xf] %v6672_v47  ;;  %v868_v43 = vshrl.u32 %v8452_v33, 16  ;;  %v1326_v22 = vsel %vm8138_vm2, %v8423_v15, %v1325_v25  ;;  %v8463_v51 = vrot.slane %v859_v52, 4  ;;  %v8465_v29 = vrot.slane %v862_v38, 5 }
  0x6a   : > { %v1334_v1 = vor.u32 %v10889_v39, %v1331_v54  ;;  %696 = vst [vmem:[#allocation2 + $0x68] sm:$0xf] %v6673_v0  ;;  %v6120_v31 = vcombine.low %v733_v21, %v8452_v33  ;;  %v6104_v47 = vrot.slane %v854_v13, 11  ;;  %v6876_v30 = vld [vmem:[%s8104_s19 + $0x38] sm:$0xff]   ;;  %v864_v55 = vor.u32 %v862_v38, %v861_v37 }
  0x6b   : > { %10890 = vst [vmem:[#allocation9_spill] sm:$0xff] %v8463_v51  ;;  %10891 = vst [vmem:[#allocation10_spill] sm:$0xff] %v8465_v29  ;;  %v870_v57 = vrot.slane %v868_v43, 7  ;;  %v8470_v54 = vrot.slane %v868_v43, 4  ;;  %v866_v27 = vrot.slane %v861_v37, 4  ;;  %v355_v15 = vmul.f32 %v6753_v11, %v8116_v34 }
  0x6c   : > { %v1335_v39 = vsel %vm8138_vm2, %v1327_v20, %v1334_v1  ;;  %2237 = vmatprep.mubr.bf16.mxu1 %v6120_v31  ;;  %v10893_v0 = vshll.u32 %v8452_v33, 16  ;;  %v393_v25 = vadd.f32 %v8121_v35, %v354_v8  ;;  %v1359_v21 = vshrl.u32 %v1220_v63, 16 }
  0x6d   : > { %10892 = vst [vmem:[#allocation11_spill] sm:$0xff] %v8470_v54  ;;  %v6143_v9 = vcombine.low %v1326_v22, %v1335_v39  ;;  %v876_v29 = vshrl.u32 %v735_v48, 16  ;;  %v865_v1 = vsel %vm8138_vm2, %v6104_v47, %v864_v55  ;;  %v394_v20 = vadd.f32 %v8121_v35, %v355_v15 }
  0x6e   : > { %v873_v52 = vor.u32 %v10893_v0, %v870_v57  ;;  %v6756_v13 = vunpack.c.l.bf16 %v6876_v30  ;;  %v6757_v43 = vunpack.c.h.bf16 %v6876_v30  ;;  %v425_v37 = vmax.f32 %v393_v25, 0.0 }
  0x6f   : > { %1892 = vmatmul.mubr.bf16.gmra.mrb[16].mxu0 %v6143_v9  ;;  %v8482_v11 = vrot.slane %v1359_v21, 11  ;;  %v8484_v22 = vrot.slane %v876_v29, 11  ;;  %v426_v63 = vmax.f32 %v394_v20, 0.0  ;;  %vm928_vm6 = vsmask.f32 7440 }
  0x70   : > { %v874_v38 = vsel %vm8138_vm2, %v866_v27, %v873_v52  ;;  %v1218_v31 = vld [vmem:[#allocation2 + $0x64] sm:$0xf]  ;;  %v356_v9 = vmul.f32 %v6756_v13, %v8116_v34  ;;  %v357_v55 = vmul.f32 %v6757_v43, %v8116_v34  ;;  %v6674_v57 = vpack.c.bf16 %v425_v37, %v425_v37  ;;  %v8504_v37 = vld [vmem:[#allocation2 + $0x80] sm:$0x8]  ;;  %v8507_v27 = vld [vmem:[#allocation2 + $0x70] sm:$0x8] }
  0x71   : > { %v6112_v8 = vcombine.low %v865_v1, %v874_v38  ;;  %v736_v48 = vld [vmem:[#allocation2 + $0x64] sm:$0xf]  ;;  %v8488_v39 = vld [vmem:[#allocation2 + $0x68] sm:$0xf]  ;;  %v1342_v35 = vshrl.u32 %v1218_v31, 16  ;;  %v1345_v30 = vshll.u32 %v1218_v31, 16  ;;  %v6675_v52 = vpack.c.bf16 %v426_v63, %v426_v63  ;;  %vm8584_vm7 = vmor %vm927_vm5, %vm928_vm6 }
  0x72   : > { %v8490_v47 = vld [vmem:[#allocation2 + $0x68] sm:$0xf]  ;;  %v1351_v29 = vshrl.u32 %v8488_v39, 16  ;;  %v10799_v15 = vshll.u32 %v8488_v39, 16  ;;  %v6152_v0 = vcombine.low %v1218_v31, %v8488_v39  ;;  %697 = vst [vmem:[#allocation2 + $0x74] sm:$0xf] %v6674_v57 }
  0x73   : > { %10894 = vst [vmem:[#allocation12_spill] sm:$0xff] %v8490_v47  ;;  %2238 = vmatmul.mubr.bf16.gmra.mrb[20].mxu1 %v6112_v8  ;;  %v1344_v25 = vrot.slane %v1342_v35, 7  ;;  %v8497_v34 = vrot.slane %v1342_v35, 4  ;;  %v8499_v21 = vrot.slane %v1345_v30, 5  ;;  %v881_v1 = vshrl.u32 %v736_v48, 16 }
  0x74   : > { %v1353_v20 = vrot.slane %v1351_v29, 7  ;;  %v8501_v13 = vrot.slane %v1351_v29, 4  ;;  %1899 = vmatprep.mubr.bf16.mxu0 %v6152_v0  ;;  %698 = vst [vmem:[#allocation2 + $0x78] sm:$0xf] %v6675_v52  ;;  %v884_v43 = vshll.u32 %v736_v48, 16  ;;  %v890_v38 = vshrl.u32 %v8490_v47, 16 }
  0x75   : > { %v1347_v31 = vor.u32 %v1345_v30, %v1344_v25  ;;  %v1349_v8 = vrot.slane %v1344_v25, 4  ;;  %v883_v63 = vrot.slane %v881_v1, 7  ;;  %v8511_v54 = vrot.slane %v881_v1, 4  ;;  %v7933_v1 = vld [vmem:[%s10787_s2] ss:$0 sm:$0xff] }
  0x76   : > { %10895 = vst [vmem:[#allocation13_spill] sm:$0xff] %v8501_v13  ;;  %v1356_v57 = vor.u32 %v10799_v15, %v1353_v20  ;;  %v892_v29 = vrot.slane %v890_v38, 7  ;;  %v8513_v0 = vrot.slane %v884_v43, 5  ;;  %v8518_v30 = vrot.slane %v890_v38, 4 }
  0x77   : > { %10896 = vst [vmem:[#allocation14_spill] sm:$0xff] %v8511_v54  ;;  %v1348_v52 = vsel %vm8138_vm2, %v8440_v50, %v1347_v31  ;;  %v6121_v25 = vcombine.low %v736_v48, %v8490_v47  ;;  %v886_v35 = vor.u32 %v884_v43, %v883_v63  ;;  %v888_v33 = vrot.slane %v883_v63, 4 }
  0x78   : > { %10897 = vst [vmem:[#allocation15_spill] sm:$0xff] %v8513_v0  ;;  %10898 = vst [vmem:[#allocation16_spill] sm:$0xff] %v8518_v30  ;;  %v1357_v13 = vsel %vm8138_vm2, %v1349_v8, %v1356_v57  ;;  %v10899_v20 = vshll.u32 %v8490_v47, 16  ;;  %v395_v0 = vadd.f32 %v7933_v1, %v356_v9  ;;  %v396_v48 = vadd.f32 %v7933_v1, %v357_v55  ;;  %v467_v30 = vld [vmem:[#allocation2 + $0xc] sm:$0x1] }
  0x79   : > { %v6144_v54 = vcombine.low %v1348_v52, %v1357_v13  ;;  %2245 = vmatprep.mubr.bf16.mxu1 %v6121_v25  ;;  %v887_v50 = vsel %vm8138_vm2, %v8484_v22, %v886_v35  ;;  %v1381_v43 = vshrl.u32 %v8504_v37, 16  ;;  %v1221_v38 = vld [vmem:[#allocation2 + $0x74] sm:$0xf]  ;;  %v898_v57 = vshrl.u32 %v8507_v27, 16 }
  0x7a   : > { %v895_v15 = vor.u32 %v10899_v20, %v892_v29  ;;  %v427_v8 = vmax.f32 %v395_v0, 0.0  ;;  %v739_v63 = vld [vmem:[#allocation2 + $0x74] sm:$0xf]  ;;  %v1364_v29 = vshrl.u32 %v1221_v38, 16  ;;  %v1367_v52 = vshll.u32 %v1221_v38, 16 }
  0x7b   : > { %1900 = vmatmul.mubr.bf16.gmra.mrb[20].mxu0 %v6144_v54  ;;  %v8537_v13 = vld [vmem:[#allocation2 + $0x78] sm:$0xf]  ;;  %v428_v55 = vmax.f32 %v396_v48, 0.0  ;;  %v906_v48 = vshll.u32 %v739_v63, 16 }
  0x7c   : > { %v896_v31 = vsel %vm8138_vm2, %v888_v33, %v895_v15  ;;  %10900 = vst [vmem:[#allocation17_spill] sm:$0xff] %v8537_v13  ;;  %v1373_v37 = vshrl.u32 %v8537_v13, 16  ;;  %v6153_v33 = vcombine.low %v1221_v38, %v8537_v13  ;;  %v6676_v15 = vpack.c.bf16 %v427_v8, %v427_v8  ;;  %v8542_v0 = vld [vmem:[#allocation2 + $0x78] sm:$0xf] }
  0x7d   : > { %v6113_v22 = vcombine.low %v887_v50, %v896_v31  ;;  %v1366_v27 = vrot.slane %v1364_v29, 7  ;;  %v8544_v25 = vrot.slane %v1364_v29, 4  ;;  %v8546_v20 = vrot.slane %v1367_v52, 5  ;;  %v473_v31 = vld [vmem:[#allocation2 + $0x1c] sm:$0x1] }
  0x7e   : > { %v6677_v54 = vpack.c.bf16 %v428_v55, %v428_v55  ;;  %v1375_v1 = vrot.slane %v1373_v37, 7  ;;  %v8548_v9 = vrot.slane %v1373_v37, 4  ;;  %1907 = vmatprep.mubr.bf16.mxu0 %v6153_v33  ;;  %699 = vst [vmem:[#allocation2 + $0x84] sm:$0xf] %v6676_v15  ;;  %v903_v50 = vshrl.u32 %v739_v63, 16 }
  0x7f   : > { %10901 = vst [vmem:[#allocation18_spill] sm:$0xff] %v8544_v25  ;;  %10902 = vst [vmem:[#allocation19_spill] sm:$0xff] %v8546_v20  ;;  %2246 = vmatmul.mubr.bf16.gmra.mrb[24].mxu1 %v6113_v22  ;;  %v1369_v35 = vor.u32 %v1367_v52, %v1366_v27  ;;  %v1371_v38 = vrot.slane %v1366_v27, 4  ;;  %v912_v8 = vshrl.u32 %v8542_v0, 16  ;;  %v10904_v47 = vshll.u32 %v8537_v13, 16 }
  0x80   : > { %10903 = vst [vmem:[#allocation20_spill] sm:$0xff] %v8548_v9  ;;  %700 = vst [vmem:[#allocation2 + $0x88] sm:$0xf] %v6677_v54  ;;  %v905_v55 = vrot.slane %v903_v50, 7  ;;  %v8554_v20 = vrot.slane %v903_v50, 4  ;;  %v8556_v37 = vrot.slane %v906_v48, 5 }
  0x81   : > { %v1378_v22 = vor.u32 %v10904_v47, %v1375_v1  ;;  %v10907_v33 = vmov 0  ;;  %v479_v52 = vld [vmem:[#allocation2 + $0x2c] sm:$0x1]  ;;  %v485_v15 = vld [vmem:[#allocation2 + $0x3c] sm:$0x1]  ;;  %v1370_v27 = vsel %vm8138_vm2, %v8482_v11, %v1369_v35  ;;  %v914_v54 = vrot.slane %v912_v8, 7 }
  0x82   : > { %10905 = vst [vmem:[#allocation21_spill] sm:$0xff] %v8554_v20  ;;  %10906 = vst [vmem:[#allocation22_spill] sm:$0xff] %v8556_v37  ;;  %v10908_v33 = vsel %vm8560_vm4, 4294967295, %v10907_v33  ;;  %v8567_v29 = vrot.slane %v912_v8, 4  ;;  %v6122_v47 = vcombine.low %v739_v63, %v8542_v0  ;;  %v8572_v50 = vrot.slane %v1381_v43, 11 }
  0x83   : > { %10909 = vst [vmem:[#allocation23_spill] sm:$0xff] %v10908_v33  ;;  %v1379_v1 = vsel %vm8138_vm2, %v1371_v38, %v1378_v22  ;;  %v6106_v37 = vrot.slane %v898_v57, 11  ;;  %v908_v20 = vor.u32 %v906_v48, %v905_v55  ;;  %v910_v13 = vrot.slane %v905_v55, 4 }
  0x84   : > { %v6145_v9 = vcombine.low %v1370_v27, %v1379_v1  ;;  %2253 = vmatprep.mubr.bf16.mxu1 %v6122_v47  ;;  %v10910_v25 = vshll.u32 %v8542_v0, 16  ;;  %v474_v11 = vsel %vm8560_vm4, 0, %v473_v31  ;;  %v468_v43 = vsel %vm8560_vm4, 0, %v467_v30 }
  0x85   : > { %v909_v35 = vsel %vm8138_vm2, %v6106_v37, %v908_v20  ;;  %475 = vst [vmem:[#allocation2 + $0x1c] sm:$0x1] %v474_v11  ;;  %v1224_v63 = vld [vmem:[#allocation2 + $0x84] sm:$0xf]  ;;  %v10911_v48 = vmov 0  ;;  %v486_v20 = vsel %vm8560_vm4, 0, %v485_v15  ;;  %v10914_v31 = vor.u32 %v8348_v4, %v8346_v2 }
  0x86   : > { %v917_v51 = vor.u32 %v10910_v25, %v914_v54  ;;  %1908 = vmatmul.mubr.bf16.gmra.mrb[24].mxu0 %v6145_v9  ;;  %v10912_v48 = vsel %vm8584_vm7, 4294967295, %v10911_v48  ;;  %469 = vst [vmem:[#allocation2 + $0xc] sm:$0x1] %v468_v43  ;;  %v480_v25 = vsel %vm8560_vm4, 0, %v479_v52  ;;  %v1386_v38 = vshrl.u32 %v1224_v63, 16 }
  0x87   : > { %10913 = vst [vmem:[#allocation24_spill] sm:$0xff] %v10912_v48  ;;  %v8595_v30 = vrot.slane %v10914_v31, 4  ;;  %v8597_v9 = vld [vmem:[#allocation2 + $0x88] sm:$0xf]  ;;  %v1415_v8 = vsel %vm8584_vm7, %v8215_v32, %v8209_v18  ;;  %481 = vst [vmem:[#allocation2 + $0x2c] sm:$0x1] %v480_v25  ;;  %v935_v4 = vsel %vm8584_vm7, %v8145_v6, %v8135_v56  ;;  %v1429_v18 = vsel %vm8584_vm7, %v8259_v36, %v8242_v10 }
  0x88   : > { %v918_v57 = vsel %vm8138_vm2, %v910_v13, %v917_v51  ;;  %v1389_v51 = vshll.u32 %v1224_v63, 16  ;;  %487 = vst [vmem:[#allocation2 + $0x3c] sm:$0x1] %v486_v20  ;;  %v1395_v22 = vshrl.u32 %v8597_v9, 16  ;;  %v1398_v55 = vshll.u32 %v8597_v9, 16 }
  0x89   : > { %v6114_v13 = vcombine.low %v909_v35, %v918_v57  ;;  %v6154_v2 = vcombine.low %v1224_v63, %v8597_v9  ;;  %v1388_v37 = vrot.slane %v1386_v38, 7  ;;  %v8610_v52 = vrot.slane %v1386_v38, 4  ;;  %v491_v32 = vld [vmem:[#allocation2 + $0x4c] sm:$0x1] }
  0x8a   : > { %v8612_v15 = vrot.slane %v1389_v51, 5  ;;  %v1397_v27 = vrot.slane %v1395_v22, 7  ;;  %v8618_v54 = vrot.slane %v1395_v22, 4  ;;  %v949_v56 = vsel %vm8584_vm7, %v8236_v14, %v8230_v60 }
  0x8b   : > { %2254 = vmatmul.mubr.bf16.gmra.mrb[28].mxu1 %v6114_v13  ;;  %1915 = vmatprep.mubr.bf16.mxu0 %v6154_v2  ;;  %v10915_v6 = vshll.u32 %v8326_v49, 16  ;;  %v1391_v1 = vor.u32 %v1389_v51, %v1388_v37  ;;  %v1393_v11 = vrot.slane %v1388_v37, 4  ;;  %v10916_v35 = vor.u32 %v8285_v61, %v8283_v59 }
  0x8c   : > { %v10917_v10 = vshll.u32 %v8252_v26, 16  ;;  %v1400_v63 = vor.u32 %v1398_v55, %v1397_v27  ;;  %v1402_v57 = vld [vmem:[#allocation2 + $0x1c] sm:$0x1]  ;;  %v492_v49 = vsel %vm8560_vm4, 0, %v491_v32 }
  0x8d   : > { %v1442_v47 = vrot.slane %v10915_v6, 5  ;;  %v961_v43 = vrot.slane %v10916_v35, 4  ;;  %v920_v25 = vld [vmem:[#allocation2 + $0x1c] sm:$0x1]  ;;  %v1392_v59 = vsel %vm8138_vm2, %v8572_v50, %v1391_v1  ;;  %v1420_v26 = vshll.u32 %v1402_v57, 16 }
  0x8e   : > { %v962_v36 = vrot.slane %v10917_v10, 5  ;;  %v919_v61 = vld [vmem:[#allocation2 + $0xc] sm:$0x1]  ;;  %v954_v20 = vshll.u32 %v920_v25, 16  ;;  %493 = vst [vmem:[#allocation2 + $0x4c] sm:$0x1] %v492_v49  ;;  %v1401_v38 = vsel %vm8138_vm2, %v1393_v11, %v1400_v63 }
  0x8f   : > { %v1443_v60 = vsel %vm8584_vm7, %v8595_v30, %v1442_v47  ;;  %v1445_v14 = vor.u32 %v8350_v5, %v1442_v47  ;;  %v940_v30 = vshll.u32 %v919_v61, 16  ;;  %v1403_v51 = vld [vmem:[#allocation2 + $0x2c] sm:$0x1]  ;;  %v1404_v5 = vld [vmem:[#allocation2 + $0x3c] sm:$0x1]  ;;  %v6146_v2 = vcombine.low %v1392_v59, %v1401_v38 }
  0x90   : > { %v963_v31 = vsel %vm8584_vm7, %v961_v43, %v962_v36  ;;  %v965_v22 = vor.u32 %v8287_v3, %v962_v36  ;;  %v1422_v37 = vrot.slane %v1420_v26, 5  ;;  %v1434_v32 = vshll.u32 %v1403_v51, 16  ;;  %v921_v27 = vld [vmem:[#allocation2 + $0x2c] sm:$0x1]  ;;  %v7807_v51 = vld [vmem:[%s10788_s3 + $0x180] sm:$0xff]  }
  0x91   : > { %v1446_v13 = vrot.slane %v1445_v14, 4  ;;  %v956_v50 = vrot.slane %v954_v20, 5  ;;  %v942_v6 = vrot.slane %v940_v30, 5  ;;  %v1448_v47 = vshll.u32 %v1404_v5, 16  ;;  %1916 = vmatmul.mubr.bf16.gmra.mrb[28].mxu0 %v6146_v2  ;;  %v497_v14 = vld [vmem:[#allocation2 + $0x5c] sm:$0x1] }
  0x92   : > { %v966_v1 = vrot.slane %v965_v22, 4  ;;  %v968_v35 = vshll.u32 %v921_v27, 16  ;;  %v1423_v11 = vsel %vm8584_vm7, %v8222_v40, %v1422_v37  ;;  %v1436_v43 = vrot.slane %v1434_v32, 5  ;;  %v7812_v32 = vld [vmem:[%s10788_s3 + $0x210] sm:$0xff]  }
  0x93   : > { %v957_v10 = vsel %vm8584_vm7, %v8247_v23, %v956_v50  ;;  %v1454_v3 = vor.u32 %v8393_v7, %v8391_v16  ;;  %v6155_v36 = vcombine.low %v1415_v8, %v1423_v11  ;;  %v943_v63 = vsel %vm8584_vm7, %v8147_v12, %v942_v6  ;;  %v7809_v16 = vld [vmem:[%s10788_s3 + $0x208] sm:$0xff]   ;;  %v10922_v11 = vld [vmem:[#allocation5_spill] sm:$0xff] }
  0x94   : > { %v6124_v57 = vcombine.low %v949_v56, %v957_v10  ;;  %v1450_v25 = vrot.slane %v1448_v47, 5  ;;  %v6123_v49 = vcombine.low %v935_v4, %v943_v63  ;;  %v1437_v40 = vsel %vm8584_vm7, %v8270_v44, %v1436_v43  ;;  %v922_v4 = vld [vmem:[#allocation2 + $0x3c] sm:$0x1]  ;;  %v10923_v10 = vld [vmem:[#allocation3_spill] sm:$0xff]  ;;  %v503_v63 = vld [vmem:[#allocation2 + $0x6c] sm:$0x1] }
  0x95   : > { %v970_v59 = vrot.slane %v968_v35, 5  ;;  %v1455_v26 = vrot.slane %v1454_v3, 4  ;;  %7396 = vmatprep.mubr.bf16.mxu0 %v6155_v36  ;;  %v6156_v23 = vcombine.low %v1429_v18, %v1437_v40  ;;  %v1405_v12 = vld [vmem:[#allocation2 + $0x4c] sm:$0x1]  ;;  %v10918_v8 = vshll.u32 %v8378_v42, 16 }
  0x96   : > { %v1451_v7 = vsel %vm8584_vm7, %v1446_v13, %v1450_v25  ;;  %v974_v61 = vor.u32 %v8361_v41, %v8358_v17  ;;  %7428 = vmatprep.mubr.bf16.mxu1 %v6123_v49  ;;  %v1462_v20 = vshll.u32 %v1405_v12, 16  ;;  %v10919_v38 = vshll.u32 %v8337_v28, 16  ;;  %v10921_v35 = vld [vmem:[#allocation4_spill] sm:$0xff] }
  0x97   : > { %v1456_v56 = vrot.slane %v10918_v8, 5  ;;  %v6157_v44 = vcombine.low %v1443_v60, %v1451_v7  ;;  %v971_v18 = vsel %vm8584_vm7, %v966_v1, %v970_v59  ;;  %7429 = vmatmul.mubr.bf16.vlgmr.msra.gmra.mrb[32].mxu1 %v6124_v57  ;;  %v7808_v60 = vld [vmem:[%s10788_s3 + $0x1c8] sm:$0xff]   ;;  %v982_v22 = vshll.u32 %v922_v4, 16  ;;  %v7811_v1 = vld [vmem:[%s10788_s3 + $0x1d0] sm:$0xff]   ;;  %v7815_v59 = vld [vmem:[%s10788_s3 + $0x218] sm:$0xff]  }
  0x98   : > { %v976_v30 = vrot.slane %v10919_v38, 5  ;;  %v6125_v42 = vcombine.low %v963_v31, %v971_v18  ;;  %v975_v41 = vrot.slane %v974_v61, 4  ;;  %7445 = vmatpush3.bf16.msra.mxu1 %v8344_v45  ;;  %v1464_v28 = vrot.slane %v1462_v20, 5  ;;  %v923_v31 = vld [vmem:[#allocation2 + $0x4c] sm:$0x1]  ;;  %v7813_v8 = vld [vmem:[%s10788_s3 + $0x190] sm:$0xff]  }
  0x99   : > { %v1457_v5 = vsel %vm8584_vm7, %v1455_v26, %v1456_v56  ;;  %v1459_v17 = vor.u32 %v8395_v24, %v1456_v56  ;;  %v498_v2 = vsel %vm8560_vm4, 0, %v497_v14  ;;  %7446 = vmatprep.subr.bf16.mxu1 %v7809_v16  ;;  %v7810_v24 = vld [vmem:[%s10788_s3 + $0x188] sm:$0xff]   ;;  %v10920_v50 = vshll.u32 %v8442_v46, 16  ;;  %7397 = vmatmul.mubr.bf16.vlgmr.msra.gmra.mrb[32].mxu0 %v6156_v23  ;;  %v509_v14 = vld [vmem:[#allocation2 + $0x7c] sm:$0x1] }
  0x9a   : > { %v979_v13 = vor.u32 %v8363_v53, %v976_v30  ;;  %7432 = vmatprep.mubr.bf16.mxu1 %v6125_v42  ;;  %v977_v45 = vsel %vm8584_vm7, %v975_v41, %v976_v30  ;;  %499 = vst [vmem:[#allocation2 + $0x5c] sm:$0x1] %v498_v2  ;;  %v1468_v53 = vor.u32 %v8450_v19, %v8448_v62  ;;  %v984_v47 = vrot.slane %v982_v22, 5  ;;  %v10925_v19 = vld [vmem:[#allocation8_spill] sm:$0xff]  ;;  %v10926_v23 = vld [vmem:[#allocation6_spill] sm:$0xff]  ;;  %v10928_v42 = vld [vmem:[#allocation9_spill] sm:$0xff] }
  0x9b   : > { %v1460_v37 = vrot.slane %v1459_v17, 4  ;;  %v8699_v27 = vrot.slane %v10920_v50, 5  ;;  %v988_v43 = vor.u32 %v10922_v11, %v10921_v35  ;;  %v10924_v3 = vshll.u32 %v10923_v10, 16  ;;  %7061 = vmatpush3.bf16.msra.mxu0 %v7807_v51  ;;  %7400 = vmatprep.mubr.bf16.mxu0 %v6157_v44  ;;  %v7814_v38 = vld [vmem:[%s10788_s3 + $0x1d8] sm:$0xff]   ;;  %v10930_v41 = vld [vmem:[#allocation7_spill] sm:$0xff] }
  0x9c   : > { %v980_v6 = vrot.slane %v979_v13, 4  ;;  %v8710_v62 = vrot.slane %v1468_v53, 4  ;;  %v996_v25 = vshll.u32 %v923_v31, 16  ;;  %7062 = vmatprep.subr.bf16.mxu0 %v7808_v60  ;;  %7447 = vmatpush3.bf16.msra.mxu1 %v7809_v16  ;;  %v504_v18 = vsel %vm8560_vm4, 0, %v503_v63  ;;  %v10932_v2 = vld [vmem:[#allocation18_spill] sm:$0xff]  ;;  %v10933_v31 = vld [vmem:[#allocation19_spill] sm:$0xff] }
  0x9d   : > { %v990_v36 = vrot.slane %v10924_v3, 5  ;;  %v1465_v46 = vsel %vm8584_vm7, %v1460_v37, %v1464_v28  ;;  %v1473_v57 = vor.u32 %v10925_v19, %v8699_v27  ;;  %v989_v26 = vrot.slane %v988_v43, 4  ;;  %7448 = vmatprep.subr.bf16.mxu1 %v7812_v32  ;;  %505 = vst [vmem:[#allocation2 + $0x6c] sm:$0x1] %v504_v18  ;;  %v10934_v37 = vld [vmem:[#allocation17_spill] sm:$0xff]  ;;  %v10937_v11 = vld [vmem:[#allocation11_spill] sm:$0xff] }
  0x9e   : > { %v6158_v49 = vcombine.low %v1457_v5, %v1465_v46  ;;  %v985_v40 = vsel %vm8584_vm7, %v980_v6, %v984_v47  ;;  %v1471_v16 = vsel %vm8584_vm7, %v8710_v62, %v8699_v27  ;;  %v998_v4 = vrot.slane %v996_v25, 5  ;;  %v10929_v5 = vld [vmem:[#allocation10_spill] sm:$0xff]  ;;  %v10938_v25 = vld [vmem:[#allocation20_spill] sm:$0xff] }
  0x9f   : > { %v993_v7 = vor.u32 %v10926_v23, %v990_v36  ;;  %v6126_v12 = vcombine.low %v977_v45, %v985_v40  ;;  %v1474_v56 = vrot.slane %v1473_v57, 4  ;;  %v991_v61 = vsel %vm8584_vm7, %v989_v26, %v990_v36  ;;  %7063 = vmatpush3.bf16.msra.mxu0 %v7810_v24  ;;  %v515_v36 = vld [vmem:[#allocation2 + $0x8c] sm:$0x1]  ;;  %v7816_v63 = vld [vmem:[%s10788_s3 + $0x198] sm:$0xff]   ;;  %v7817_v57 = vld [vmem:[%s10788_s3 + $0x1e0] sm:$0xff]  }
  0xa0   : > { %v1482_v20 = vor.u32 %v8499_v21, %v8497_v34  ;;  %v10927_v30 = vshll.u32 %v8488_v39, 16  ;;  %v1002_v17 = vor.u32 %v10929_v5, %v10928_v42  ;;  %v10931_v60 = vshll.u32 %v10930_v41, 16  ;;  %7064 = vmatprep.subr.bf16.mxu0 %v7811_v1  ;;  %7449 = vmatpush3.bf16.msra.mxu1 %v7812_v32  ;;  %v10936_v32 = vld [vmem:[#allocation13_spill] sm:$0xff]  ;;  %v7818_v1 = vld [vmem:[%s10788_s3 + $0x220] sm:$0xff]   ;;  %v10939_v23 = vld [vmem:[#allocation14_spill] sm:$0xff] }
  0xa1   : > { %v994_v44 = vrot.slane %v993_v7, 4  ;;  %7433 = vmatmul.mubr.bf16.gmra.mrb[36].mxu1 %v6126_v12  ;;  %v510_v34 = vsel %vm8560_vm4, 0, %v509_v14  ;;  %v1406_v21 = vld [vmem:[#allocation2 + $0x5c] sm:$0x1]  ;;  %v1496_v24 = vor.u32 %v10933_v31, %v10932_v2  ;;  %v10935_v45 = vshll.u32 %v10934_v37, 16  ;;  %7450 = vmatprep.subr.bf16.mxu1 %v7815_v59  ;;  %v10940_v7 = vld [vmem:[#allocation15_spill] sm:$0xff] }
  0xa2   : > { %v8738_v51 = vrot.slane %v10927_v30, 5  ;;  %v1004_v28 = vrot.slane %v10931_v60, 5  ;;  %v8748_v22 = vrot.slane %v1482_v20, 4  ;;  %v924_v39 = vld [vmem:[#allocation2 + $0x5c] sm:$0x1]  ;;  %v1476_v50 = vshll.u32 %v1406_v21, 16  ;;  %7401 = vmatmul.mubr.bf16.gmra.mrb[36].mxu0 %v6158_v49 }
  0xa3   : > { %v999_v13 = vsel %vm8584_vm7, %v994_v44, %v998_v4  ;;  %511 = vst [vmem:[#allocation2 + $0x7c] sm:$0x1] %v510_v34  ;;  %v8754_v53 = vrot.slane %v10935_v45, 5  ;;  %v1003_v47 = vrot.slane %v1002_v17, 4  ;;  %v1010_v10 = vshll.u32 %v924_v39, 16  ;;  %7065 = vmatpush3.bf16.msra.mxu0 %v7813_v8  ;;  %v7819_v60 = vld [vmem:[%s10788_s3 + $0x1a0] sm:$0xff]  }
  0xa4   : > { %v6127_v27 = vcombine.low %v991_v61, %v999_v13  ;;  %v1487_v6 = vor.u32 %v10936_v32, %v8738_v51  ;;  %v1485_v35 = vsel %vm8584_vm7, %v8748_v22, %v8738_v51  ;;  %v1007_v43 = vor.u32 %v10937_v11, %v1004_v28  ;;  %7066 = vmatprep.subr.bf16.mxu0 %v7814_v38  ;;  %v10941_v61 = vld [vmem:[#allocation12_spill] sm:$0xff]  ;;  %v10945_v32 = vld [vmem:[#allocation22_spill] sm:$0xff]  ;;  %v7824_v22 = vld [vmem:[%s10788_s3 + $0x230] sm:$0xff]  }
  0xa5   : > { %v8766_v3 = vrot.slane %v1496_v24, 4  ;;  %v1478_v46 = vrot.slane %v1476_v50, 5  ;;  %v1005_v19 = vsel %vm8584_vm7, %v1003_v47, %v1004_v28  ;;  %v1501_v14 = vor.u32 %v10938_v25, %v8754_v53  ;;  %7451 = vmatpush3.bf16.msra.mxu1 %v7815_v59  ;;  %v1407_v38 = vld [vmem:[#allocation2 + $0x6c] sm:$0x1]  ;;  %v8817_v47 = vld [vmem:[#allocation2 + $0x24] sm:$0xf] }
  0xa6   : > { %7436 = vmatprep.mubr.bf16.mxu1 %v6127_v27  ;;  %v1488_v62 = vrot.slane %v1487_v6, 4  ;;  %v1008_v49 = vrot.slane %v1007_v43, 4  ;;  %v1012_v40 = vrot.slane %v1010_v10, 5  ;;  %v1016_v12 = vor.u32 %v10940_v7, %v10939_v23  ;;  %7452 = vmatprep.subr.bf16.mxu1 %v7818_v1  ;;  %v925_v42 = vld [vmem:[#allocation2 + $0x6c] sm:$0x1]  ;;  %v10944_v27 = vld [vmem:[#allocation21_spill] sm:$0xff] }
  0xa7   : > { %v1499_v26 = vsel %vm8584_vm7, %v8766_v3, %v8754_v53  ;;  %v1479_v8 = vsel %vm8584_vm7, %v1474_v56, %v1478_v46  ;;  %v1502_v4 = vrot.slane %v1501_v14, 4  ;;  %v10942_v44 = vshll.u32 %v10941_v61, 16  ;;  %7067 = vmatpush3.bf16.msra.mxu0 %v7816_v63  ;;  %v10943_v34 = vld [vmem:[#allocation16_spill] sm:$0xff]  ;;  %v7827_v61 = vld [vmem:[%s10788_s3 + $0x238] sm:$0xff]  }
  0xa8   : > { %v516_v59 = vsel %vm8560_vm4, 0, %v515_v36  ;;  %v6159_v20 = vcombine.low %v1471_v16, %v1479_v8  ;;  %v1013_v30 = vsel %vm8584_vm7, %v1008_v49, %v1012_v40  ;;  %v1017_v5 = vrot.slane %v1016_v12, 4  ;;  %v7821_v16 = vld [vmem:[%s10788_s3 + $0x228] sm:$0xff]   ;;  %7068 = vmatprep.subr.bf16.mxu0 %v7817_v57 }
  0xa9   : > { %v1018_v18 = vrot.slane %v10942_v44, 5  ;;  %517 = vst [vmem:[#allocation2 + $0x8c] sm:$0x1] %v516_v59  ;;  %v1510_v17 = vor.u32 %v8612_v15, %v8610_v52  ;;  %v1490_v56 = vshll.u32 %v1407_v38, 16  ;;  %v6128_v41 = vcombine.low %v1005_v19, %v1013_v30  ;;  %v7820_v52 = vld [vmem:[%s10788_s3 + $0x1e8] sm:$0xff]   ;;  %7453 = vmatpush3.bf16.msra.mxu1 %v7818_v1 }
  0xaa   : > { %v1408_v28 = vld [vmem:[#allocation2 + $0x7c] sm:$0x1]  ;;  %v1024_v13 = vshll.u32 %v925_v42, 16  ;;  %7404 = vmatprep.mubr.bf16.mxu0 %v6159_v20  ;;  %v8810_v31 = vrot.slane %v1398_v55, 5  ;;  %v7822_v45 = vld [vmem:[%s10788_s3 + $0x1a8] sm:$0xff]   ;;  %v1030_v6 = vor.u32 %v10945_v32, %v10944_v27  ;;  %v10946_v10 = vshll.u32 %v8542_v0, 16  ;;  %7454 = vmatprep.subr.bf16.mxu1 %v7821_v16 }
  0xab   : > { %v1021_v21 = vor.u32 %v10943_v34, %v1018_v18  ;;  %v1504_v15 = vshll.u32 %v1408_v28, 16  ;;  %v1019_v39 = vsel %vm8584_vm7, %v1017_v5, %v1018_v18  ;;  %v8806_v2 = vrot.slane %v1510_v17, 4  ;;  %v926_v24 = vld [vmem:[#allocation2 + $0x7c] sm:$0x1]  ;;  %7437 = vmatmul.mubr.bf16.gmra.mrb[40].mxu1 %v6128_v41  ;;  %v8819_v11 = vld [vmem:[#allocation2 + $0x28] sm:$0xf]  ;;  %7069 = vmatpush3.bf16.msra.mxu0 %v7819_v60 }
  0xac   : > { %v1492_v37 = vrot.slane %v1490_v56, 5  ;;  %v1026_v50 = vrot.slane %v1024_v13, 5  ;;  %v1515_v43 = vor.u32 %v8618_v54, %v8810_v31  ;;  %v1032_v3 = vrot.slane %v10946_v10, 5  ;;  %7070 = vmatprep.subr.bf16.mxu0 %v7820_v52  ;;  %v2560_v25 = vld [vmem:[#allocation2 + $0x2c] sm:$0x1]  ;;  %v7828_v13 = vld [vmem:[%s10788_s3 + $0x1b8] sm:$0xff]  }
  0xad   : > { %v1022_v53 = vrot.slane %v1021_v21, 4  ;;  %v1506_v9 = vrot.slane %v1504_v15, 5  ;;  %v1513_v55 = vsel %vm8584_vm7, %v8806_v2, %v8810_v31  ;;  %v1031_v63 = vrot.slane %v1030_v6, 4  ;;  %7455 = vmatpush3.bf16.msra.mxu1 %v7821_v16  ;;  %v2360_v20 = vld [vmem:[#allocation2 + $0x20] sm:$0x8] }
  0xae   : > { %v1493_v36 = vsel %vm8584_vm7, %v1488_v62, %v1492_v37  ;;  %v1038_v46 = vshll.u32 %v926_v24, 16  ;;  %v1516_v57 = vrot.slane %v1515_v43, 4  ;;  %v7823_v62 = vld [vmem:[%s10788_s3 + $0x1f0] sm:$0xff]   ;;  %v1035_v23 = vor.u32 %v8567_v29, %v1032_v3  ;;  %v8866_v56 = vld [vmem:[#allocation2 + $0x38] sm:$0xf]  ;;  %7456 = vmatprep.subr.bf16.mxu1 %v7824_v22  ;;  %v7830_v37 = vld [vmem:[%s10788_s3 + $0x100] sm:$0xff]  }
  0xaf   : > { %v1027_v1 = vsel %vm8584_vm7, %v1022_v53, %v1026_v50  ;;  %v6160_v19 = vcombine.low %v1485_v35, %v1493_v36  ;;  %v1507_v0 = vsel %vm8584_vm7, %v1502_v4, %v1506_v9  ;;  %v1033_v40 = vsel %vm8584_vm7, %v1031_v63, %v1032_v3  ;;  %v7825_v35 = vld [vmem:[%s10788_s3 + $0x1b0] sm:$0xff]   ;;  %7071 = vmatpush3.bf16.msra.mxu0 %v7822_v45  ;;  %v8878_v45 = vld [vmem:[#allocation2 + $0x44] sm:$0xf]  ;;  %v2561_v6 = vld [vmem:[#allocation2 + $0x3c] sm:$0x1] }
  0xb0   : > { %v6129_v54 = vcombine.low %v1019_v39, %v1027_v1  ;;  %v6161_v14 = vcombine.low %v1499_v26, %v1507_v0  ;;  %v1409_v49 = vld [vmem:[#allocation2 + $0x8c] sm:$0x1]  ;;  %v1040_v51 = vrot.slane %v1038_v46, 5  ;;  %v7826_v26 = vld [vmem:[%s10788_s3 + $0x1f8] sm:$0xff]   ;;  %v2390_v12 = vshrl.u32 %v8817_v47, 16  ;;  %7072 = vmatprep.subr.bf16.mxu0 %v7823_v62 }
  0xb1   : > { %7405 = vmatmul.mubr.bf16.gmra.mrb[40].mxu0 %v6160_v19  ;;  %v1518_v7 = vshll.u32 %v1409_v49, 16  ;;  %v2393_v29 = vshll.u32 %v8817_v47, 16  ;;  %v2399_v8 = vshrl.u32 %v8819_v11, 16  ;;  %v1036_v4 = vrot.slane %v1035_v23, 4  ;;  %v8864_v38 = vld [vmem:[#allocation2 + $0x34] sm:$0xf]  ;;  %7457 = vmatpush3.bf16.msra.mxu1 %v7824_v22 }
  0xb2   : > { %7408 = vmatprep.mubr.bf16.mxu0 %v6161_v14  ;;  %v2402_v44 = vshll.u32 %v8819_v11, 16  ;;  %v6275_v18 = vcombine.low %v8817_v47, %v8819_v11  ;;  %v2578_v59 = vshll.u32 %v2560_v25, 16  ;;  %7440 = vmatprep.mubr.bf16.mxu1 %v6129_v54  ;;  %v2392_v42 = vrot.slane %v2390_v12, 7  ;;  %v8885_v47 = vld [vmem:[%s10788_s3 + $0x140] sm:$0xff]   ;;  %v8891_v10 = vld [vmem:[#allocation2 + $0x48] sm:$0xf] }
  0xb3   : > { %v1520_v30 = vrot.slane %v1518_v7, 5  ;;  %v2401_v5 = vrot.slane %v2399_v8, 7  ;;  %v2568_v17 = vrot.slane %v2390_v12, 4  ;;  %v1041_v41 = vsel %vm8584_vm7, %v1036_v4, %v1040_v51  ;;  %7073 = vmatpush3.bf16.msra.mxu0 %v7825_v35  ;;  %7458 = vmatprep.subr.bf16.mxu1 %v7827_v61  ;;  %v8912_v4 = vld [vmem:[#allocation2 + $0x54] sm:$0xf] }
  0xb4   : > { %v2569_v60 = vrot.slane %v2393_v29, 5  ;;  %v2574_v16 = vrot.slane %v2399_v8, 4  ;;  %v2572_v28 = vrot.slane %v2402_v44, 5  ;;  %v6130_v21 = vcombine.low %v1033_v40, %v1041_v41  ;;  %7074 = vmatprep.subr.bf16.mxu0 %v7826_v26  ;;  %v2562_v40 = vld [vmem:[#allocation2 + $0x4c] sm:$0x1]  ;;  %v7832_v26 = vld [vmem:[%s10788_s3 + $0xc0] sm:$0xff]  }
  0xb5   : > { %v1521_v34 = vsel %vm8584_vm7, %v1516_v57, %v1520_v30  ;;  %v2395_v52 = vor.u32 %v2393_v29, %v2392_v42  ;;  %v2397_v15 = vrot.slane %v2392_v42, 4  ;;  %v2404_v2 = vor.u32 %v2402_v44, %v2401_v5  ;;  %7459 = vmatpush3.bf16.msra.mxu1 %v7827_v61  ;;  %v2363_v57 = vld [vmem:[#allocation2 + $0x30] sm:$0x8] }
  0xb6   : > { %v6162_v39 = vcombine.low %v1513_v55, %v1521_v34  ;;  %v2570_v31 = vor.u32 %v2569_v60, %v2568_v17  ;;  %v2580_v24 = vrot.slane %v2578_v59, 5  ;;  %7441 = vmatmul.mubr.bf16.gmra.mrb[44].mxu1 %v6130_v21  ;;  %v2575_v53 = vor.u32 %v2574_v16, %v2572_v28  ;;  %7476 = vmatprep.subr.bf16.mxu1 %v8885_v47  ;;  %v7835_v17 = vld [vmem:[%s10788_s3 + $0x108] sm:$0xff]   ;;  %v8930_v34 = vld [vmem:[#allocation2 + $0x58] sm:$0xf] }
  0xb7   : > { %v2385_v50 = vshrl.u32 %v2360_v20, 16  ;;  %v2412_v27 = vshrl.u32 %v8864_v38, 16  ;;  %v2415_v32 = vshll.u32 %v8864_v38, 16  ;;  %v2405_v9 = vsel %vm8138_vm2, %v2397_v15, %v2404_v2  ;;  %7075 = vmatpush3.bf16.msra.mxu0 %v7828_v13  ;;  %v7833_v13 = vld [vmem:[%s10788_s3 + $0x148] sm:$0xff]  }
  0xb8   : > { %v2571_v11 = vrot.slane %v2570_v31, 4  ;;  %v2421_v55 = vshrl.u32 %v8866_v56, 16  ;;  %v2424_v43 = vshll.u32 %v8866_v56, 16  ;;  %v2576_v3 = vrot.slane %v2575_v53, 4  ;;  %7140 = vmatprep.subr.bf16.mxu0 %v7830_v37  ;;  %v7837_v2 = vld [vmem:[%s10788_s3 + $0xc8] sm:$0xff]  }
  0xb9   : > { %7409 = vmatmul.mubr.bf16.gmra.mrb[44].mxu0 %v6162_v39  ;;  %v6259_v36 = vrot.slane %v2385_v50, 11  ;;  %v2582_v1 = vrot.slane %v2412_v27, 4  ;;  %v2583_v63 = vrot.slane %v2415_v32, 5  ;;  %v2592_v54 = vshll.u32 %v2561_v6, 16  ;;  %v2563_v50 = vld [vmem:[#allocation2 + $0x5c] sm:$0x1] }
  0xba   : > { %3017 = vmatprep.mubr.bf16.mxu0 %v6275_v18  ;;  %v2573_v46 = vsel %vm8584_vm7, %v2571_v11, %v2572_v28  ;;  %v2586_v19 = vrot.slane %v2424_v43, 5  ;;  %v2588_v0 = vrot.slane %v2421_v55, 4  ;;  %v2581_v62 = vsel %vm8584_vm7, %v2576_v3, %v2580_v24  ;;  %v8947_v3 = vld [vmem:[#allocation2 + $0x68] sm:$0xf] }
  0xbb   : > { %v2396_v25 = vsel %vm8138_vm2, %v6259_v36, %v2395_v52  ;;  %v2584_v14 = vor.u32 %v2583_v63, %v2582_v1  ;;  %v2434_v49 = vshrl.u32 %v8878_v45, 16  ;;  %v6283_v23 = vcombine.low %v2573_v46, %v2581_v62  ;;  %v7836_v1 = vld [vmem:[%s10788_s3 + $0x150] sm:$0xff]   ;;  %v2564_v63 = vld [vmem:[#allocation2 + $0x6c] sm:$0x1] }
  0xbc   : > { %v6267_v51 = vcombine.low %v2396_v25, %v2405_v9  ;;  %v2589_v22 = vor.u32 %v2588_v0, %v2586_v19  ;;  %v2594_v35 = vrot.slane %v2592_v54, 5  ;;  %v6276_v12 = vcombine.low %v8864_v38, %v8866_v56  ;;  %v7840_v38 = vld [vmem:[%s10788_s3 + $0x110] sm:$0xff]  }
  0xbd   : > { %v2585_v7 = vrot.slane %v2584_v14, 4  ;;  %v2437_v29 = vshll.u32 %v8878_v45, 16  ;;  %v2443_v8 = vshrl.u32 %v8891_v10, 16  ;;  %7460 = vmatprep.mubr.bf16.mxu1 %v6283_v23  ;;  %v2446_v44 = vshll.u32 %v8891_v10, 16  ;;  %v7838_v23 = vld [vmem:[%s10788_s3 + $0x158] sm:$0xff]  }
  0xbe   : > { %v2590_v61 = vrot.slane %v2589_v22, 4  ;;  %v2596_v18 = vrot.slane %v2434_v49, 4  ;;  %v2606_v59 = vshll.u32 %v2562_v40, 16  ;;  %v2407_v5 = vshrl.u32 %v2363_v57, 16 }
  0xbf   : > { %v2587_v20 = vsel %vm8584_vm7, %v2585_v7, %v2586_v19  ;;  %v2597_v30 = vrot.slane %v2437_v29, 5  ;;  %v2602_v42 = vrot.slane %v2443_v8, 4  ;;  %v2600_v60 = vrot.slane %v2446_v44, 5  ;;  %v7842_v7 = vld [vmem:[%s10788_s3 + $0xd0] sm:$0xff]  }
  0xc0   : > { %v2595_v41 = vsel %vm8584_vm7, %v2590_v61, %v2594_v35  ;;  %v2608_v16 = vrot.slane %v2606_v59, 5  ;;  %v2414_v28 = vrot.slane %v2412_v27, 7  ;;  %v6260_v15 = vrot.slane %v2407_v5, 11  ;;  %v8941_v27 = vld [vmem:[#allocation2 + $0x64] sm:$0xf]  ;;  %v7845_v59 = vld [vmem:[%s10788_s3 + $0x118] sm:$0xff]  }
  0xc1   : > { %3018 = vmatmul.mubr.bf16.vlgmr.msra.gmra.mrb[48].mxu0 %v6267_v51  ;;  %v6284_v21 = vcombine.low %v2587_v20, %v2595_v41  ;;  %v2598_v52 = vor.u32 %v2597_v30, %v2596_v18  ;;  %v2423_v39 = vrot.slane %v2421_v55, 7  ;;  %v2603_v31 = vor.u32 %v2602_v42, %v2600_v60  ;;  %v2366_v35 = vld [vmem:[#allocation2 + $0x40] sm:$0x8]  ;;  %v7847_v41 = vld [vmem:[%s10788_s3 + $0xd8] sm:$0xff]  }
  0xc2   : > { %7141 = vmatpush3.bf16.msra.mxu0 %v7832_v26  ;;  %3025 = vmatprep.mubr.bf16.mxu0 %v6276_v12  ;;  %v2417_v24 = vor.u32 %v2415_v32, %v2414_v28  ;;  %v2419_v37 = vrot.slane %v2414_v28, 4  ;;  %v2456_v53 = vshrl.u32 %v8912_v4, 16  ;;  %v2459_v9 = vshll.u32 %v8912_v4, 16 }
  0xc3   : > { %7461 = vmatmul.mubr.bf16.vlgmr.msra.gmra.mrb[32].mxu1 %v6284_v21  ;;  %v2599_v6 = vrot.slane %v2598_v52, 4  ;;  %v2426_v11 = vor.u32 %v2424_v43, %v2423_v39  ;;  %v2465_v55 = vshrl.u32 %v8930_v34, 16  ;;  %7142 = vmatprep.subr.bf16.mxu0 %v7835_v17  ;;  %v2604_v32 = vrot.slane %v2603_v31, 4  ;;  %v8990_v17 = vld [vmem:[#allocation2 + $0x74] sm:$0xf]  ;;  %v7850_v31 = vld [vmem:[%s10788_s3 + $0x120] sm:$0xff]  }
  0xc4   : > { %7477 = vmatpush3.bf16.msra.mxu1 %v8885_v47  ;;  %v2418_v36 = vsel %vm8138_vm2, %v6260_v15, %v2417_v24  ;;  %v2468_v56 = vshll.u32 %v8930_v34, 16  ;;  %v2610_v43 = vrot.slane %v2456_v53, 4  ;;  %v2611_v19 = vrot.slane %v2459_v9, 5 }
  0xc5   : > { %7478 = vmatprep.subr.bf16.mxu1 %v7833_v13  ;;  %v2601_v46 = vsel %vm8584_vm7, %v2599_v6, %v2600_v60  ;;  %v2427_v47 = vsel %vm8138_vm2, %v2419_v37, %v2426_v11  ;;  %v2616_v0 = vrot.slane %v2465_v55, 4  ;;  %v2609_v54 = vsel %vm8584_vm7, %v2604_v32, %v2608_v16 }
  0xc6   : > { %v6268_v57 = vcombine.low %v2418_v36, %v2427_v47  ;;  %v2614_v62 = vrot.slane %v2468_v56, 5  ;;  %v2620_v25 = vshll.u32 %v2563_v50, 16  ;;  %7143 = vmatpush3.bf16.msra.mxu0 %v7837_v2  ;;  %v6285_v14 = vcombine.low %v2601_v46, %v2609_v54  ;;  %v7841_v36 = vld [vmem:[%s10788_s3 + $0x160] sm:$0xff]  }
  0xc7   : > { %v2612_v40 = vor.u32 %v2611_v19, %v2610_v43  ;;  %v6277_v51 = vcombine.low %v8878_v45, %v8891_v10  ;;  %v2478_v22 = vshrl.u32 %v8941_v27, 16  ;;  %7144 = vmatprep.subr.bf16.mxu0 %v7840_v38  ;;  %v2481_v61 = vshll.u32 %v8941_v27, 16  ;;  %v2565_v19 = vld [vmem:[#allocation2 + $0x7c] sm:$0x1] }
  0xc8   : > { %7479 = vmatpush3.bf16.msra.mxu1 %v7833_v13  ;;  %v2617_v26 = vor.u32 %v2616_v0, %v2614_v62  ;;  %v2622_v12 = vrot.slane %v2620_v25, 5  ;;  %v2487_v18 = vshrl.u32 %v8947_v3, 16  ;;  %7464 = vmatprep.mubr.bf16.mxu1 %v6285_v14  ;;  %v2490_v30 = vshll.u32 %v8947_v3, 16  ;;  %v8999_v13 = vld [vmem:[#allocation2 + $0x78] sm:$0xf]  ;;  %v7843_v0 = vld [vmem:[%s10788_s3 + $0x168] sm:$0xff]  }
  0xc9   : > { %3026 = vmatmul.mubr.bf16.gmra.mrb[52].mxu0 %v6268_v57  ;;  %v2613_v20 = vrot.slane %v2612_v40, 4  ;;  %v2624_v42 = vrot.slane %v2478_v22, 4  ;;  %v2634_v5 = vshll.u32 %v2564_v63, 16  ;;  %7480 = vmatprep.subr.bf16.mxu1 %v7836_v1  ;;  %v2625_v16 = vrot.slane %v2481_v61, 5  ;;  %v9040_v25 = vld [vmem:[#allocation2 + $0x88] sm:$0xf] }
  0xca   : > { %v2618_v60 = vrot.slane %v2617_v26, 4  ;;  %3033 = vmatprep.mubr.bf16.mxu0 %v6277_v51  ;;  %v2630_v28 = vrot.slane %v2487_v18, 4  ;;  %v2429_v21 = vshrl.u32 %v2366_v35, 16  ;;  %v2628_v15 = vrot.slane %v2490_v30, 5  ;;  %7145 = vmatpush3.bf16.msra.mxu0 %v7842_v7  ;;  %v2566_v35 = vld [vmem:[#allocation2 + $0x8c] sm:$0x1] }
  0xcb   : > { %v2615_v52 = vsel %vm8584_vm7, %v2613_v20, %v2614_v62  ;;  %v2636_v39 = vrot.slane %v2634_v5, 5  ;;  %v2436_v2 = vrot.slane %v2434_v49, 7  ;;  %v2626_v37 = vor.u32 %v2625_v16, %v2624_v42  ;;  %7146 = vmatprep.subr.bf16.mxu0 %v7845_v59  ;;  %v9038_v62 = vld [vmem:[#allocation2 + $0x84] sm:$0xf]  ;;  %v2369_v7 = vld [vmem:[#allocation2 + $0x50] sm:$0x8] }
  0xcc   : > { %v2623_v24 = vsel %vm8584_vm7, %v2618_v60, %v2622_v12  ;;  %7481 = vmatpush3.bf16.msra.mxu1 %v7836_v1  ;;  %v6261_v50 = vrot.slane %v2429_v21, 11  ;;  %v2445_v6 = vrot.slane %v2443_v8, 7  ;;  %v2631_v38 = vor.u32 %v2630_v28, %v2628_v15  ;;  %v7852_v42 = vld [vmem:[%s10788_s3 + $0xe0] sm:$0xff]   ;;  %v7846_v21 = vld [vmem:[%s10788_s3 + $0x170] sm:$0xff]  }
  0xcd   : > { %v6286_v11 = vcombine.low %v2615_v52, %v2623_v24  ;;  %7482 = vmatprep.subr.bf16.mxu1 %v7838_v23  ;;  %v2439_v49 = vor.u32 %v2437_v29, %v2436_v2  ;;  %v2441_v32 = vrot.slane %v2436_v2, 4  ;;  %v2627_v43 = vrot.slane %v2626_v37, 4  ;;  %v6877_v28 = vld [vmem:[%s8104_s19 + $0x40] sm:$0xff]   ;;  %v7855_v52 = vld [vmem:[%s10788_s3 + $0x128] sm:$0xff]  }
  0xce   : > { %v2448_v1 = vor.u32 %v2446_v44, %v2445_v6  ;;  %v2500_v63 = vshrl.u32 %v8990_v17, 16  ;;  %v2503_v8 = vshll.u32 %v8990_v17, 16  ;;  %v2632_v46 = vrot.slane %v2631_v38, 4  ;;  %7147 = vmatpush3.bf16.msra.mxu0 %v7847_v41  ;;  %v7857_v24 = vld [vmem:[%s10788_s3 + $0xe8] sm:$0xff]   ;;  %v521_v38 = vld [vmem:[#allocation2 + $0x9c] sm:$0x1] }
  0xcf   : > { %7465 = vmatmul.mubr.bf16.gmra.mrb[36].mxu1 %v6286_v11  ;;  %v2440_v47 = vsel %vm8138_vm2, %v6261_v50, %v2439_v49  ;;  %v2509_v45 = vshrl.u32 %v8999_v13, 16  ;;  %v2512_v29 = vshll.u32 %v8999_v13, 16  ;;  %v2629_v10 = vsel %vm8584_vm7, %v2627_v43, %v2628_v15  ;;  %7148 = vmatprep.subr.bf16.mxu0 %v7850_v31 }
  0xd0   : > { %7483 = vmatpush3.bf16.msra.mxu1 %v7838_v23  ;;  %v2449_v44 = vsel %vm8138_vm2, %v2441_v32, %v2448_v1  ;;  %v2638_v54 = vrot.slane %v2500_v63, 4  ;;  %v2639_v57 = vrot.slane %v2503_v8, 5  ;;  %v2637_v14 = vsel %vm8584_vm7, %v2632_v46, %v2636_v39  ;;  %v7860_v1 = vld [vmem:[%s10788_s3 + $0x130] sm:$0xff]  }
  0xd1   : > { %v6269_v40 = vcombine.low %v2440_v47, %v2449_v44  ;;  %v2642_v23 = vrot.slane %v2512_v29, 5  ;;  %v2644_v51 = vrot.slane %v2509_v45, 4  ;;  %7484 = vmatprep.subr.bf16.mxu1 %v7841_v36  ;;  %v6287_v26 = vcombine.low %v2629_v10, %v2637_v14 }
  0xd2   : > { %v2640_v12 = vor.u32 %v2639_v57, %v2638_v54  ;;  %v2648_v59 = vshll.u32 %v2565_v19, 16  ;;  %v6278_v20 = vcombine.low %v8912_v4, %v8930_v34  ;;  %v2522_v41 = vshrl.u32 %v9038_v62, 16  ;;  %7149 = vmatpush3.bf16.msra.mxu0 %v7852_v42  ;;  %v7862_v34 = vld [vmem:[%s10788_s3 + $0xf0] sm:$0xff]  }
  0xd3   : > { %3034 = vmatmul.mubr.bf16.gmra.mrb[56].mxu0 %v6269_v40  ;;  %v2645_v5 = vor.u32 %v2644_v51, %v2642_v23  ;;  %v2525_v60 = vshll.u32 %v9038_v62, 16  ;;  %v2531_v16 = vshrl.u32 %v9040_v25, 16  ;;  %7468 = vmatprep.mubr.bf16.mxu1 %v6287_v26  ;;  %v2534_v2 = vshll.u32 %v9040_v25, 16  ;;  %v7848_v40 = vld [vmem:[%s10788_s3 + $0x178] sm:$0xff]  }
  0xd4   : > { %v2641_v15 = vrot.slane %v2640_v12, 4  ;;  %v2650_v39 = vrot.slane %v2648_v59, 5  ;;  %7485 = vmatpush3.bf16.msra.mxu1 %v7841_v36  ;;  %v2662_v31 = vshll.u32 %v2566_v35, 16  ;;  %3041 = vmatprep.mubr.bf16.mxu0 %v6278_v20  ;;  %v2652_v50 = vrot.slane %v2522_v41, 4  ;;  %v9097_v12 = vld [vmem:[%s10786_s1] ss:$0 sm:$0xff] }
  0xd5   : > { %v2646_v37 = vrot.slane %v2645_v5, 4  ;;  %7486 = vmatprep.subr.bf16.mxu1 %v7843_v0  ;;  %v2653_v6 = vrot.slane %v2525_v60, 5  ;;  %v2658_v11 = vrot.slane %v2531_v16, 4  ;;  %v2656_v32 = vrot.slane %v2534_v2, 5  ;;  %7150 = vmatprep.subr.bf16.mxu0 %v7855_v52  ;;  %v9116_v5 = vld [vmem:[%s10788_s3 + $0x80] sm:$0xff]  }
  0xd6   : > { %v2643_v49 = vsel %vm8584_vm7, %v2641_v15, %v2642_v23  ;;  %v2664_v36 = vrot.slane %v2662_v31, 5  ;;  %v2451_v43 = vshrl.u32 %v2369_v7, 16  ;;  %v2458_v19 = vrot.slane %v2456_v53, 7  ;;  %v6878_v7 = vld [vmem:[%s8104_s19 + $0x48] sm:$0xff]   ;;  %7151 = vmatpush3.bf16.msra.mxu0 %v7857_v24 }
  0xd7   : > { %v2651_v46 = vsel %vm8584_vm7, %v2646_v37, %v2650_v39  ;;  %v2654_v47 = vor.u32 %v2653_v6, %v2652_v50  ;;  %v2467_v10 = vrot.slane %v2465_v55, 7  ;;  %v2659_v54 = vor.u32 %v2658_v11, %v2656_v32  ;;  %v2372_v55 = vld [vmem:[#allocation2 + $0x60] sm:$0x8]  ;;  %7152 = vmatprep.subr.bf16.mxu0 %v7860_v1  ;;  %v9124_v39 = vld [vmem:[%s10787_s2] ss:$0 sm:$0xff] }
  0xd8   : > { %v6288_v44 = vcombine.low %v2643_v49, %v2651_v46  ;;  %7487 = vmatpush3.bf16.msra.mxu1 %v7843_v0  ;;  %v6262_v57 = vrot.slane %v2451_v43, 11  ;;  %v6760_v14 = vunpack.c.l.bf16 %v6877_v28  ;;  %v2461_v51 = vor.u32 %v2459_v9, %v2458_v19  ;;  %v527_v24 = vld [vmem:[#allocation2 + $0xac] sm:$0x1]  ;;  %v6879_v43 = vld [vmem:[%s8104_s19 + $0x50] sm:$0xff]  }
  0xd9   : > { %v2655_v23 = vrot.slane %v2654_v47, 4  ;;  %v2463_v35 = vrot.slane %v2458_v19, 4  ;;  %v2470_v53 = vor.u32 %v2468_v56, %v2467_v10  ;;  %7488 = vmatprep.subr.bf16.mxu1 %v7846_v21  ;;  %v2660_v0 = vrot.slane %v2659_v54, 4  ;;  %v533_v47 = vld [vmem:[#allocation2 + $0xbc] sm:$0x1] }
  0xda   : > { %7469 = vmatmul.mubr.bf16.gmra.mrb[40].mxu1 %v6288_v44  ;;  %v6761_v26 = vunpack.c.h.bf16 %v6877_v28  ;;  %v358_v59 = vmul.f32 %v9097_v12, %v6760_v14  ;;  %v522_v4 = vsel %vm8560_vm4, 0, %v521_v38  ;;  %v2462_v56 = vsel %vm8138_vm2, %v6262_v57, %v2461_v51  ;;  %v7865_v38 = vld [vmem:[%s10788_s3 + $0x138] sm:$0xff]   ;;  %v2375_v19 = vld [vmem:[#allocation2 + $0x70] sm:$0x8]  ;;  %7153 = vmatpush3.bf16.msra.mxu0 %v7862_v34 }
  0xdb   : > { %v2657_v9 = vsel %vm8584_vm7, %v2655_v23, %v2656_v32  ;;  %v2471_v20 = vsel %vm8138_vm2, %v2463_v35, %v2470_v53  ;;  %523 = vst [vmem:[#allocation2 + $0x9c] sm:$0x1] %v522_v4  ;;  %v6279_v42 = vcombine.low %v8941_v27, %v8947_v3  ;;  %v2665_v28 = vsel %vm8584_vm7, %v2660_v0, %v2664_v36  ;;  %v7867_v14 = vld [vmem:[%s10788_s3 + $0xf8] sm:$0xff]  }
  0xdc   : > { %v6270_v52 = vcombine.low %v2462_v56, %v2471_v20  ;;  %v359_v15 = vmul.f32 %v9097_v12, %v6761_v26  ;;  %v397_v31 = vadd.f32 %v9124_v39, %v358_v59  ;;  %7489 = vmatpush3.bf16.msra.mxu1 %v7846_v21  ;;  %v6289_v37 = vcombine.low %v2657_v9, %v2665_v28  ;;  %v9160_v0 = vld [vmem:[%s8104_s19 + $0x58] sm:$0xff]   ;;  %v539_v9 = vld [vmem:[#allocation2 + $0xcc] sm:$0x1] }
  0xdd   : > { %7490 = vmatprep.subr.bf16.mxu1 %v7848_v40  ;;  %v2473_v50 = vshrl.u32 %v2372_v55, 16  ;;  %v2480_v6 = vrot.slane %v2478_v22, 7  ;;  %v2489_v11 = vrot.slane %v2487_v18, 7  ;;  %v6764_v36 = vunpack.c.l.bf16 %v6878_v7  ;;  %7154 = vmatprep.subr.bf16.mxu0 %v7865_v38  ;;  %v9175_v38 = vld [vmem:[%s8104_s19 + $0x60] sm:$0xff]  }
  0xde   : > { %3042 = vmatmul.mubr.bf16.gmra.mrb[60].mxu0 %v6270_v52  ;;  %v398_v49 = vadd.f32 %v9124_v39, %v359_v15  ;;  %v429_v32 = vmax.f32 %v397_v31, 0.0  ;;  %v6765_v21 = vunpack.c.h.bf16 %v6878_v7  ;;  %7472 = vmatprep.mubr.bf16.mxu1 %v6289_v37  ;;  %v6768_v4 = vunpack.c.l.bf16 %v6879_v43 }
  0xdf   : > { %3049 = vmatprep.mubr.bf16.mxu0 %v6279_v42  ;;  %v6263_v1 = vrot.slane %v2473_v50, 11  ;;  %v2483_v22 = vor.u32 %v2481_v61, %v2480_v6  ;;  %v2485_v46 = vrot.slane %v2480_v6, 4  ;;  %v2492_v18 = vor.u32 %v2490_v30, %v2489_v11  ;;  %7155 = vmatpush3.bf16.msra.mxu0 %v7867_v14 }
  0xe0   : > { %v430_v10 = vmax.f32 %v398_v49, 0.0  ;;  %v6678_v44 = vpack.c.bf16 %v429_v32, %v429_v32  ;;  %7491 = vmatpush3.bf16.msra.mxu1 %v7848_v40  ;;  %v360_v54 = vmul.f32 %v9097_v12, %v6764_v36  ;;  %v361_v57 = vmul.f32 %v9097_v12, %v6765_v21  ;;  %v7870_v40 = vld [vmem:[%s10788_s3 + $0x40] sm:$0xff]  }
  0xe1   : > { %v2484_v27 = vsel %vm8138_vm2, %v6263_v1, %v2483_v22  ;;  %v2493_v3 = vsel %vm8138_vm2, %v2485_v46, %v2492_v18  ;;  %v528_v61 = vsel %vm8560_vm4, 0, %v527_v24  ;;  %7508 = vmatprep.subr.bf16.mxu1 %v9116_v5  ;;  %v6280_v30 = vcombine.low %v8990_v17, %v8999_v13  ;;  %7220 = vmatprep.subr.bf16.mxu0 %v7870_v40 }
  0xe2   : > { %v6679_v23 = vpack.c.bf16 %v430_v10, %v430_v10  ;;  %701 = vst [vmem:[#allocation2 + $0x94] sm:$0xf] %v6678_v44  ;;  %v2567_v51 = vld [vmem:[#allocation2 + $0x9c] sm:$0x1]  ;;  %v6271_v53 = vcombine.low %v2484_v27, %v2493_v3  ;;  %v399_v55 = vadd.f32 %v9124_v39, %v360_v54  ;;  %v400_v7 = vadd.f32 %v9124_v39, %v361_v57 }
  0xe3   : > { %v4017_v35 = vld [vmem:[#allocation2 + $0x9c] sm:$0x1]  ;;  %529 = vst [vmem:[#allocation2 + $0xac] sm:$0x1] %v528_v61  ;;  %v2676_v26 = vshll.u32 %v2567_v51, 16  ;;  %v6769_v34 = vunpack.c.h.bf16 %v6879_v43  ;;  %v534_v42 = vsel %vm8560_vm4, 0, %v533_v47  ;;  %v362_v31 = vmul.f32 %v9097_v12, %v6768_v4 }
  0xe4   : > { %v4035_v59 = vshll.u32 %v4017_v35, 16  ;;  %702 = vst [vmem:[#allocation2 + $0x98] sm:$0xf] %v6679_v23  ;;  %v431_v56 = vmax.f32 %v399_v55, 0.0  ;;  %v432_v20 = vmax.f32 %v400_v7, 0.0  ;;  %v2495_v28 = vshrl.u32 %v2375_v19, 16 }
  0xe5   : > { %v9164_v52 = vrot.slane %v2676_v26, 5  ;;  %v363_v24 = vmul.f32 %v9097_v12, %v6769_v34  ;;  %535 = vst [vmem:[#allocation2 + $0xbc] sm:$0x1] %v534_v42  ;;  %v2502_v11 = vrot.slane %v2500_v63, 7  ;;  %v9178_v49 = vadd.f32 %v9124_v39, %v362_v31 }
  0xe6   : > { %v9166_v15 = vrot.slane %v4035_v59, 5  ;;  %3050 = vmatmul.mubr.bf16.gmra.mrb[64].mxu0 %v6271_v53  ;;  %v6680_v37 = vpack.c.bf16 %v431_v56, %v431_v56  ;;  %v6681_v50 = vpack.c.bf16 %v432_v20, %v432_v20  ;;  %v9170_v6 = vrot.slane %v2495_v28, 11 }
  0xe7   : > { %3057 = vmatprep.mubr.bf16.mxu0 %v6280_v30  ;;  %v9181_v32 = vadd.f32 %v9124_v39, %v363_v24  ;;  %v2511_v36 = vrot.slane %v2509_v45, 7  ;;  %v6772_v21 = vunpack.c.l.bf16 %v9160_v0  ;;  %v9188_v43 = vor.u32 %v2503_v8, %v2502_v11 }
  0xe8   : > { %703 = vst [vmem:[#allocation2 + $0xa4] sm:$0xf] %v6680_v37  ;;  %704 = vst [vmem:[#allocation2 + $0xa8] sm:$0xf] %v6681_v50  ;;  %v2507_v63 = vrot.slane %v2502_v11, 4  ;;  %v6773_v1 = vunpack.c.h.bf16 %v9160_v0  ;;  %v540_v22 = vsel %vm8560_vm4, 0, %v539_v9  ;;  %v6281_v17 = vcombine.low %v9038_v62, %v9040_v25 }
  0xe9   : > { %v9193_v46 = vld [vmem:[#allocation2 + $0x94] sm:$0xf]  ;;  %v2514_v45 = vor.u32 %v2512_v29, %v2511_v36  ;;  %v9200_v19 = vmul.f32 %v9097_v12, %v6772_v21  ;;  %541 = vst [vmem:[#allocation2 + $0xcc] sm:$0x1] %v540_v22  ;;  %v6776_v8 = vunpack.c.l.bf16 %v9175_v38  ;;  %v433_v27 = vmax.f32 %v9178_v49, 0.0 }
  0xea   : > { %v9195_v18 = vld [vmem:[#allocation2 + $0x94] sm:$0xf]  ;;  %v4018_v47 = vld [vmem:[#allocation2 + $0xac] sm:$0x1]  ;;  %v2544_v10 = vshrl.u32 %v9193_v46, 16  ;;  %v2547_v44 = vshll.u32 %v9193_v46, 16  ;;  %v2506_v3 = vsel %vm8138_vm2, %v9170_v6, %v9188_v43  ;;  %v6777_v0 = vunpack.c.h.bf16 %v9175_v38 }
  0xeb   : > { %v3847_v54 = vshrl.u32 %v9195_v18, 16  ;;  %v3850_v57 = vshll.u32 %v9195_v18, 16  ;;  %v9209_v14 = vld [vmem:[#allocation2 + $0x98] sm:$0xf]  ;;  %v4049_v29 = vshll.u32 %v4018_v47, 16  ;;  %v2515_v61 = vsel %vm8138_vm2, %v2507_v63, %v2514_v45 }
  0xec   : > { %v9211_v13 = vld [vmem:[#allocation2 + $0x98] sm:$0xf]  ;;  %v2553_v30 = vshrl.u32 %v9209_v14, 16  ;;  %v2556_v40 = vshll.u32 %v9209_v14, 16  ;;  %v2666_v23 = vrot.slane %v2544_v10, 4  ;;  %v2667_v51 = vrot.slane %v2547_v44, 5 }
  0xed   : > { %v9226_v35 = vrot.slane %v3847_v54, 7  ;;  %v3856_v53 = vshrl.u32 %v9211_v13, 16  ;;  %v3859_v55 = vshll.u32 %v9211_v13, 16  ;;  %v4025_v7 = vrot.slane %v3847_v54, 4  ;;  %v4019_v45 = vld [vmem:[#allocation2 + $0xbc] sm:$0x1] }
  0xee   : > { %v2668_v26 = vor.u32 %v2667_v51, %v2666_v23  ;;  %v2670_v59 = vrot.slane %v2556_v40, 5  ;;  %v2672_v4 = vrot.slane %v2553_v30, 4  ;;  %v4026_v34 = vrot.slane %v3850_v57, 5  ;;  %v3538_v33 = vld [vmem:[#allocation2 + $0xac] sm:$0x1] }
  0xef   : > { %v9235_v9 = vor.u32 %v3850_v57, %v9226_v35  ;;  %v3858_v56 = vrot.slane %v3856_v53, 7  ;;  %v4029_v20 = vrot.slane %v3859_v55, 5  ;;  %v4031_v42 = vrot.slane %v3856_v53, 4  ;;  %v9237_v28 = vld [vmem:[#allocation2 + $0xa4] sm:$0xf] }
  0xf0   : > { %v2669_v31 = vrot.slane %v2668_v26, 4  ;;  %v2673_v24 = vor.u32 %v2672_v4, %v2670_v59  ;;  %v4027_v37 = vor.u32 %v4026_v34, %v4025_v7  ;;  %v9239_v50 = vld [vmem:[#allocation2 + $0xa8] sm:$0xf]  ;;  %v10830_v6 = vshrl.u32 %v9237_v28, 16  ;;  %v4020_v53 = vld [vmem:[#allocation2 + $0xcc] sm:$0x1] }
  0xf1   : > { %v9242_v11 = vor.u32 %v3859_v55, %v3858_v56  ;;  %v4032_v49 = vor.u32 %v4031_v42, %v4029_v20  ;;  %v10827_v36 = vshll.u32 %v9237_v28, 16  ;;  %v10828_v21 = vshrl.u32 %v9239_v50, 16 }
  0xf2   : > { %v2671_v43 = vsel %vm8584_vm7, %v2669_v31, %v2670_v59  ;;  %v2674_v63 = vrot.slane %v2673_v24, 4  ;;  %v4028_v22 = vrot.slane %v4027_v37, 4  ;;  %v10826_v47 = vshll.u32 %v9239_v50, 16  ;;  %v545_v31 = vld [vmem:[#allocation2 + $0xdc] sm:$0x1] }
  0xf3   : > { %v4033_v54 = vrot.slane %v4032_v49, 4  ;;  %v4039_v57 = vrot.slane %v10830_v6, 4  ;;  %v4040_v23 = vrot.slane %v10827_v36, 5  ;;  %v4045_v51 = vrot.slane %v10828_v21, 4 }
  0xf4   : > { %v2679_v55 = vsel %vm8584_vm7, %v2674_v63, %v9164_v52  ;;  %v4030_v7 = vsel %vm8584_vm7, %v4028_v22, %v4029_v20  ;;  %v4043_v26 = vrot.slane %v10826_v47, 5  ;;  %v4051_v59 = vrot.slane %v4049_v29, 5 }
  0xf5   : > { %v6290_v4 = vcombine.low %v2671_v43, %v2679_v55  ;;  %v4038_v34 = vsel %vm8584_vm7, %v4033_v54, %v9166_v15  ;;  %v4041_v56 = vor.u32 %v4040_v23, %v4039_v57  ;;  %v434_v42 = vmax.f32 %v9181_v32, 0.0 }
  0xf6   : > { %v6435_v24 = vcombine.low %v4030_v7, %v4038_v34  ;;  %v4046_v37 = vor.u32 %v4045_v51, %v4043_v26  ;;  %v6682_v49 = vpack.c.bf16 %v433_v27, %v433_v27  ;;  %v4063_v52 = vshll.u32 %v4019_v45, 16  ;;  %v6882_v51 = vld [vmem:[%s8104_s19 + $0x68] sm:$0xff]  }
  0xf7   : > { %7473 = vmatmul.mubr.bf16.gmra.mrb[44].mxu1 %v6290_v4  ;;  %v4042_v63 = vrot.slane %v4041_v56, 4  ;;  %v6683_v20 = vpack.c.bf16 %v434_v42, %v434_v42  ;;  %v6272_v22 = vcombine.low %v2506_v3, %v2515_v61  ;;  %v365_v29 = vmul.f32 %v9097_v12, %v6773_v1  ;;  %v2378_v61 = vld [vmem:[#allocation2 + $0x80] sm:$0x8] }
  0xf8   : > { %7492 = vmatprep.mubr.bf16.mxu1 %v6435_v24  ;;  %v4047_v43 = vrot.slane %v4046_v37, 4  ;;  %705 = vst [vmem:[#allocation2 + $0xb4] sm:$0xf] %v6682_v49  ;;  %v9269_v15 = vrot.slane %v4063_v52, 5  ;;  %v403_v32 = vadd.f32 %v9124_v39, %v9200_v19  ;;  %v4077_v54 = vshll.u32 %v4020_v53, 16 }
  0xf9   : > { %v4044_v27 = vsel %vm8584_vm7, %v4042_v63, %v4043_v26  ;;  %706 = vst [vmem:[#allocation2 + $0xb8] sm:$0xf] %v6683_v20  ;;  %3058 = vmatmul.mubr.bf16.gmra.mrb[68].mxu0 %v6272_v22  ;;  %v404_v3 = vadd.f32 %v9124_v39, %v365_v29  ;;  %v366_v1 = vmul.f32 %v9097_v12, %v6776_v8  ;;  %v546_v23 = vsel %vm8560_vm4, 0, %v545_v31 }
  0xfa   : > { %v4052_v45 = vsel %vm8584_vm7, %v4047_v43, %v4051_v59  ;;  %v435_v57 = vmax.f32 %v403_v32, 0.0  ;;  %v9282_v19 = vrot.slane %v4077_v54, 5  ;;  %3065 = vmatprep.mubr.bf16.mxu0 %v6281_v17  ;;  %v367_v38 = vmul.f32 %v9097_v12, %v6777_v0  ;;  %547 = vst [vmem:[#allocation2 + $0xdc] sm:$0x1] %v546_v23  ;;  %v7853_v17 = vld [vmem:[%s10788_s3 + $0x88] sm:$0xff]   ;;  %v6883_v23 = vld [vmem:[%s8104_s19 + $0x70] sm:$0xff]  }
  0xfb   : > { %v6436_v53 = vcombine.low %v4044_v27, %v4052_v45  ;;  %v436_v55 = vmax.f32 %v404_v3, 0.0  ;;  %v405_v8 = vadd.f32 %v9124_v39, %v366_v1  ;;  %v2517_v26 = vshrl.u32 %v2378_v61, 16  ;;  %v551_v43 = vld [vmem:[#allocation2 + $0xec] sm:$0x1] }
  0xfc   : > { %v6684_v7 = vpack.c.bf16 %v435_v57, %v435_v57  ;;  %v2524_v59 = vrot.slane %v2522_v41, 7  ;;  %v2533_v4 = vrot.slane %v2531_v16, 7  ;;  %v406_v56 = vadd.f32 %v9124_v39, %v367_v38 }
  0xfd   : > { %v6685_v34 = vpack.c.bf16 %v436_v55, %v436_v55  ;;  %v437_v42 = vmax.f32 %v405_v8, 0.0  ;;  %v6780_v31 = vunpack.c.l.bf16 %v6882_v51  ;;  %v6265_v24 = vrot.slane %v2517_v26, 11 }
  0xfe   : > { %707 = vst [vmem:[#allocation2 + $0xc4] sm:$0xf] %v6684_v7  ;;  %v2527_v37 = vor.u32 %v2525_v60, %v2524_v59  ;;  %v2529_v49 = vrot.slane %v2524_v59, 4  ;;  %v2536_v41 = vor.u32 %v2534_v2, %v2533_v4  ;;  %v438_v52 = vmax.f32 %v406_v56, 0.0  ;;  %v7858_v56 = vld [vmem:[%s10788_s3 + $0x98] sm:$0xff]  }
  0xff   : > { %7493 = vmatmul.mubr.bf16.vlgmr.msra.gmra.mrb[48].mxu1 %v6436_v53  ;;  %v9304_v16 = vld [vmem:[#allocation2 + $0xb4] sm:$0xf]  ;;  %708 = vst [vmem:[#allocation2 + $0xc8] sm:$0xf] %v6685_v34  ;;  %v6686_v63 = vpack.c.bf16 %v437_v42, %v437_v42  ;;  %v6781_v20 = vunpack.c.h.bf16 %v6882_v51  ;;  %v368_v22 = vmul.f32 %v9097_v12, %v6780_v31  ;;  %v552_v38 = vsel %vm8560_vm4, 0, %v551_v43 }
 0x100   : > { %7509 = vmatpush3.bf16.msra.mxu1 %v9116_v5  ;;  %v9308_v29 = vld [vmem:[#allocation2 + $0xb8] sm:$0xf]  ;;  %v10821_v62 = vshrl.u32 %v9304_v16, 16  ;;  %v10819_v60 = vshll.u32 %v9304_v16, 16  ;;  %v2528_v25 = vsel %vm8138_vm2, %v6265_v24, %v2527_v37  ;;  %v2537_v2 = vsel %vm8138_vm2, %v2529_v49, %v2536_v41  ;;  %v7856_v5 = vld [vmem:[%s10788_s3 + $0x90] sm:$0xff]  }
 0x101   : > { %7510 = vmatprep.subr.bf16.mxu1 %v7853_v17  ;;  %v10820_v32 = vshrl.u32 %v9308_v29, 16  ;;  %v10818_v54 = vshll.u32 %v9308_v29, 16  ;;  %v6687_v27 = vpack.c.bf16 %v438_v52, %v438_v52  ;;  %709 = vst [vmem:[#allocation2 + $0xd4] sm:$0xf] %v6686_v63  ;;  %v6273_v3 = vcombine.low %v2528_v25, %v2537_v2  ;;  %v4021_v61 = vld [vmem:[#allocation2 + $0xdc] sm:$0x1] }
 0x102   : > { %v4053_v0 = vrot.slane %v10821_v62, 4  ;;  %v4054_v1 = vrot.slane %v10819_v60, 5  ;;  %v369_v45 = vmul.f32 %v9097_v12, %v6781_v20  ;;  %v407_v57 = vadd.f32 %v9124_v39, %v368_v22  ;;  %553 = vst [vmem:[#allocation2 + $0xec] sm:$0x1] %v552_v38  ;;  %v3537_v60 = vld [vmem:[#allocation2 + $0x9c] sm:$0x1] }
 0x103   : > { %v4057_v51 = vrot.slane %v10818_v54, 5  ;;  %v4059_v53 = vrot.slane %v10820_v32, 4  ;;  %710 = vst [vmem:[#allocation2 + $0xd8] sm:$0xf] %v6687_v27  ;;  %v4091_v55 = vshll.u32 %v4021_v61, 16  ;;  %3066 = vmatmul.mubr.bf16.gmra.mrb[72].mxu0 %v6273_v3  ;;  %v6282_v59 = vcombine.low %v9193_v46, %v9209_v14 }
 0x104   : > { %7511 = vmatpush3.bf16.msra.mxu1 %v7853_v17  ;;  %v4055_v8 = vor.u32 %v4054_v1, %v4053_v0  ;;  %v408_v7 = vadd.f32 %v9124_v39, %v369_v45  ;;  %v439_v26 = vmax.f32 %v407_v57, 0.0  ;;  %v6784_v31 = vunpack.c.l.bf16 %v6883_v23 }
 0x105   : > { %v4060_v4 = vor.u32 %v4059_v53, %v4057_v51  ;;  %v9337_v34 = vld [vmem:[#allocation2 + $0xc4] sm:$0xf]  ;;  %7512 = vmatprep.subr.bf16.mxu1 %v7856_v5  ;;  %v9342_v42 = vrot.slane %v4091_v55, 5  ;;  %v6785_v17 = vunpack.c.h.bf16 %v6883_v23  ;;  %3073 = vmatprep.mubr.bf16.mxu0 %v6282_v59  ;;  %v3568_v36 = vshll.u32 %v3537_v60, 16 }
 0x106   : > { %v4056_v24 = vrot.slane %v4055_v8, 4  ;;  %v9344_v37 = vld [vmem:[#allocation2 + $0xc8] sm:$0xf]  ;;  %v10817_v49 = vshrl.u32 %v9337_v34, 16  ;;  %v10807_v41 = vshll.u32 %v9337_v34, 16  ;;  %v440_v52 = vmax.f32 %v408_v7, 0.0 }
 0x107   : > { %v4061_v63 = vrot.slane %v4060_v4, 4  ;;  %v10816_v20 = vshrl.u32 %v9344_v37, 16  ;;  %v10806_v22 = vshll.u32 %v9344_v37, 16  ;;  %v6688_v25 = vpack.c.bf16 %v439_v26, %v439_v26  ;;  %v7863_v4 = vld [vmem:[%s10788_s3 + $0xa8] sm:$0xff]  }
 0x108   : > { %v4058_v2 = vsel %vm8584_vm7, %v4056_v24, %v4057_v51  ;;  %v4067_v43 = vrot.slane %v10817_v49, 4  ;;  %v4068_v27 = vrot.slane %v10807_v41, 5  ;;  %7513 = vmatpush3.bf16.msra.mxu1 %v7856_v5  ;;  %v9356_v3 = vld [vmem:[#allocation2 + $0xd4] sm:$0xf]  ;;  %v6689_v0 = vpack.c.bf16 %v440_v52, %v440_v52  ;;  %v7861_v5 = vld [vmem:[%s10788_s3 + $0xa0] sm:$0xff]  }
 0x109   : > { %v4066_v1 = vsel %vm8584_vm7, %v4061_v63, %v9269_v15  ;;  %v4071_v61 = vrot.slane %v10806_v22, 5  ;;  %v4073_v45 = vrot.slane %v10816_v20, 4  ;;  %7514 = vmatprep.subr.bf16.mxu1 %v7858_v56  ;;  %v10805_v57 = vshrl.u32 %v9356_v3, 16  ;;  %711 = vst [vmem:[#allocation2 + $0xe4] sm:$0xf] %v6688_v25 }
 0x10a   : > { %v6437_v23 = vcombine.low %v4058_v2, %v4066_v1  ;;  %v4069_v51 = vor.u32 %v4068_v27, %v4067_v43  ;;  %v9369_v53 = vld [vmem:[#allocation2 + $0xd8] sm:$0xf]  ;;  %v10803_v15 = vshll.u32 %v9356_v3, 16  ;;  %712 = vst [vmem:[#allocation2 + $0xe8] sm:$0xf] %v6689_v0  ;;  %v370_v55 = vmul.f32 %v9097_v12, %v6784_v31  ;;  %v9383_v2 = vpop.f32.mrb[0].mxu1 }
 0x10b   : > { %v4074_v38 = vor.u32 %v4073_v45, %v4071_v61  ;;  %v10804_v8 = vshrl.u32 %v9369_v53, 16  ;;  %v10802_v7 = vshll.u32 %v9369_v53, 16  ;;  %v4081_v26 = vrot.slane %v10805_v57, 4  ;;  %v4022_v59 = vld [vmem:[#allocation2 + $0xec] sm:$0x1]  ;;  %v9390_v45 = vpop.f32.mrb[1].mxu1 }
 0x10c   : > { %7496 = vmatprep.mubr.bf16.mxu1 %v6437_v23  ;;  %v4070_v24 = vrot.slane %v4069_v51, 4  ;;  %7515 = vmatpush3.bf16.msra.mxu1 %v7858_v56  ;;  %v4082_v52 = vrot.slane %v10803_v15, 5  ;;  %v4105_v31 = vshll.u32 %v4022_v59, 16  ;;  %v371_v63 = vmul.f32 %v9097_v12, %v6785_v17  ;;  %v557_v25 = vld [vmem:[#allocation2 + $0xfc] sm:$0x1]  ;;  %v9397_v59 = vpop.f32.mrb[2].mxu1 }
 0x10d   : > { %v4075_v43 = vrot.slane %v4074_v38, 4  ;;  %v4085_v27 = vrot.slane %v10802_v7, 5  ;;  %v4087_v0 = vrot.slane %v10804_v8, 4  ;;  %7516 = vmatprep.subr.bf16.mxu1 %v7861_v5  ;;  %v409_v1 = vadd.f32 %v9124_v39, %v370_v55  ;;  %v2381_v56 = vld [vmem:[#allocation2 + $0x90] sm:$0x8] }
 0x10e   : > { %v4072_v23 = vsel %vm8584_vm7, %v4070_v24, %v4071_v61  ;;  %v4083_v17 = vor.u32 %v4082_v52, %v4081_v26  ;;  %v9394_v51 = vrot.slane %v4105_v31, 5  ;;  %v410_v38 = vadd.f32 %v9124_v39, %v371_v63  ;;  %v9406_v24 = vpop.f32.mrb[3].mxu1  ;;  %v9497_v20 = vld [vmem:[#allocation2 + $0x98] sm:$0xf] }
 0x10f   : > { %v4080_v7 = vsel %vm8584_vm7, %v4075_v43, %v9282_v19  ;;  %v4088_v15 = vor.u32 %v4087_v0, %v4085_v27  ;;  %v441_v8 = vmax.f32 %v409_v1, 0.0  ;;  %v558_v55 = vsel %vm8560_vm4, 0, %v557_v25  ;;  %v6884_v1 = vld [vmem:[%s8104_s19 + $0x78] sm:$0xff]   ;;  %10950 = vst [vmem:[#allocation8_spill] sm:$0xff] %v9497_v20  ;;  %s10645_s19 = scalar_lea.vmem %s10789_s4, %s6064_s22 }
 0x110   : > { %v6438_v57 = vcombine.low %v4072_v23, %v4080_v7  ;;  %v4084_v22 = vrot.slane %v4083_v17, 4  ;;  %v9404_v41 = vld [vmem:[#allocation2 + $0xe4] sm:$0xf]  ;;  %7517 = vmatpush3.bf16.msra.mxu1 %v7861_v5  ;;  %v442_v61 = vmax.f32 %v410_v38, 0.0  ;;  %559 = vst [vmem:[#allocation2 + $0xfc] sm:$0x1] %v558_v55  ;;  %v6428_v21 = vcombine.low %v9237_v28, %v9239_v50 }
 0x111   : > { %v2539_v26 = vshrl.u32 %v2381_v56, 16  ;;  %v4089_v52 = vrot.slane %v4088_v15, 4  ;;  %v9408_v31 = vld [vmem:[#allocation2 + $0xe8] sm:$0xf]  ;;  %v10815_v19 = vshrl.u32 %v9404_v41, 16  ;;  %v10813_v63 = vshll.u32 %v9404_v41, 16  ;;  %7518 = vmatprep.subr.bf16.mxu1 %v7863_v4 }
 0x112   : > { %v6690_v25 = vpack.c.bf16 %v441_v8, %v441_v8  ;;  %v7866_v7 = vld [vmem:[%s10788_s3 + $0xb0] sm:$0xff]   ;;  %7497 = vmatmul.mubr.bf16.gmra.mrb[52].mxu1 %v6438_v57  ;;  %v4086_v5 = vsel %vm8584_vm7, %v4084_v22, %v4085_v27  ;;  %v10814_v43 = vshrl.u32 %v9408_v31, 16  ;;  %v10808_v15 = vshll.u32 %v9408_v31, 16  ;;  %v563_v17 = vld [vmem:[#allocation2 + $0x10c] sm:$0x1] }
 0x113   : > { %v6691_v0 = vpack.c.bf16 %v442_v61, %v442_v61  ;;  %v4094_v56 = vsel %vm8584_vm7, %v4089_v52, %v9342_v42  ;;  %v4095_v8 = vrot.slane %v10815_v19, 4  ;;  %v4096_v23 = vrot.slane %v10813_v63, 5 }
 0x114   : > { %713 = vst [vmem:[#allocation2 + $0xf4] sm:$0xf] %v6690_v25  ;;  %v6266_v57 = vrot.slane %v2539_v26, 11  ;;  %v6439_v22 = vcombine.low %v4086_v5, %v4094_v56  ;;  %v4099_v27 = vrot.slane %v10808_v15, 5  ;;  %v4101_v38 = vrot.slane %v10814_v43, 4  ;;  %7519 = vmatpush3.bf16.msra.mxu1 %v7863_v4  ;;  %v7868_v26 = vld [vmem:[%s10788_s3 + $0xb8] sm:$0xff]  }
 0x115   : > { %714 = vst [vmem:[#allocation2 + $0xf8] sm:$0xf] %v6691_v0  ;;  %v2546_v42 = vrot.slane %v2544_v10, 7  ;;  %v4097_v55 = vor.u32 %v4096_v23, %v4095_v8  ;;  %v2555_v61 = vrot.slane %v2553_v30, 7  ;;  %v6788_v52 = vunpack.c.l.bf16 %v6884_v1  ;;  %7520 = vmatprep.subr.bf16.mxu1 %v7866_v7  ;;  %v3337_v15 = vld [vmem:[#allocation2 + $0x84] sm:$0xf] }
 0x116   : > { %v6789_v25 = vunpack.c.h.bf16 %v6884_v1  ;;  %7500 = vmatprep.mubr.bf16.mxu1 %v6439_v22  ;;  %v4102_v5 = vor.u32 %v4101_v38, %v4099_v27  ;;  %v564_v10 = vsel %vm8560_vm4, 0, %v563_v17 }
 0x117   : > { %v2549_v4 = vor.u32 %v2547_v44, %v2546_v42  ;;  %v2551_v0 = vrot.slane %v2546_v42, 4  ;;  %v4098_v56 = vrot.slane %v4097_v55, 4  ;;  %v4023_v8 = vld [vmem:[#allocation2 + $0xfc] sm:$0x1]  ;;  %v2558_v30 = vor.u32 %v2556_v40, %v2555_v61  ;;  %565 = vst [vmem:[#allocation2 + $0x10c] sm:$0x1] %v564_v10 }
 0x118   : > { %v372_v1 = vmul.f32 %v9097_v12, %v6788_v52  ;;  %v373_v23 = vmul.f32 %v9097_v12, %v6789_v25  ;;  %v4103_v22 = vrot.slane %v4102_v5, 4  ;;  %v4119_v38 = vshll.u32 %v4023_v8, 16  ;;  %7521 = vmatpush3.bf16.msra.mxu1 %v7866_v7  ;;  %v7871_v42 = vld [vmem:[%s10788_s3 + $0x1c0] sm:$0xff]   ;;  %v3338_v55 = vld [vmem:[#allocation2 + $0x88] sm:$0xf] }
 0x119   : > { %v2550_v46 = vsel %vm8138_vm2, %v6266_v57, %v2549_v4  ;;  %v6427_v44 = vcombine.low %v9195_v18, %v9211_v13  ;;  %v4100_v17 = vsel %vm8584_vm7, %v4098_v56, %v4099_v27  ;;  %v2559_v14 = vsel %vm8138_vm2, %v2551_v0, %v2558_v30  ;;  %7522 = vmatprep.subr.bf16.mxu1 %v7868_v26  ;;  %v9459_v57 = vpop.f32.mrb[0].mxu0 }
 0x11a   : > { %v411_v40 = vadd.f32 %v9124_v39, %v372_v1  ;;  %v412_v12 = vadd.f32 %v9124_v39, %v373_v23  ;;  %v4108_v18 = vsel %vm8584_vm7, %v4103_v22, %v9394_v51  ;;  %v4121_v7 = vrot.slane %v4119_v38, 5  ;;  %v9470_v0 = vpop.f32.mrb[1].mxu0  ;;  %v3536_v38 = vld [vmem:[#allocation2 + $0x8c] sm:$0x1] }
 0x11b   : > { %v9464_v13 = vld [vmem:[#allocation2 + $0xf4] sm:$0xf]  ;;  %v6274_v27 = vcombine.low %v2550_v46, %v2559_v14  ;;  %v3366_v61 = vshrl.u32 %v3337_v15, 16  ;;  %v6440_v52 = vcombine.low %v4100_v17, %v4108_v18  ;;  %v3369_v22 = vshll.u32 %v3337_v15, 16  ;;  %v9480_v46 = vpop.f32.mrb[2].mxu0 }
 0x11c   : > { %v9466_v25 = vld [vmem:[#allocation2 + $0xf8] sm:$0xf]  ;;  %v10811_v39 = vshrl.u32 %v9464_v13, 16  ;;  %v10809_v5 = vshll.u32 %v9464_v13, 16  ;;  %v443_v4 = vmax.f32 %v411_v40, 0.0  ;;  %v444_v56 = vmax.f32 %v412_v12, 0.0  ;;  %7523 = vmatpush3.bf16.msra.mxu1 %v7868_v26 }
 0x11d   : > { %v10812_v10 = vshrl.u32 %v9466_v25, 16  ;;  %v10810_v51 = vshll.u32 %v9466_v25, 16  ;;  %3074 = vmatmul.mubr.bf16.gmra.mrb[76].mxu0 %v6274_v27  ;;  %v9474_v8 = vrot.slane %v3366_v61, 7  ;;  %7501 = vmatmul.mubr.bf16.gmra.mrb[56].mxu1 %v6440_v52  ;;  %v3375_v12 = vshrl.u32 %v3338_v55, 16  ;;  %v9486_v18 = vpop.f32.mrb[3].mxu0 }
 0x11e   : > { %v4109_v30 = vrot.slane %v10811_v39, 4  ;;  %v4110_v1 = vrot.slane %v10809_v5, 5  ;;  %v6692_v23 = vpack.c.bf16 %v443_v4, %v443_v4  ;;  %4473 = vmatprep.mubr.bf16.mxu0 %v6427_v44  ;;  %v6693_v14 = vpack.c.bf16 %v444_v56, %v444_v56  ;;  %v4024_v40 = vld [vmem:[#allocation2 + $0x10c] sm:$0x1]  ;;  %7300 = vmatprep.subr.bf16.mxu1 %v7871_v42  ;;  %v3817_v4 = vld [vmem:[#allocation2 + $0x90] sm:$0x8] }
 0x11f   : > { %v4113_v17 = vrot.slane %v10810_v51, 5  ;;  %v4115_v26 = vrot.slane %v10812_v10, 4  ;;  %v4133_v52 = vshll.u32 %v4024_v40, 16  ;;  %v9489_v15 = vor.u32 %v3369_v22, %v9474_v8  ;;  %v9491_v5 = vld [vmem:[#allocation2 + $0x94] sm:$0xf] }
 0x120   : > { %v4111_v27 = vor.u32 %v4110_v1, %v4109_v30  ;;  %715 = vst [vmem:[#allocation2 + $0x104] sm:$0xf] %v6692_v23  ;;  %v3378_v44 = vshll.u32 %v3338_v55, 16  ;;  %10948 = vst [vmem:[#allocation5_spill] sm:$0xff] %v9491_v5  ;;  %v3377_v39 = vrot.slane %v3375_v12, 7  ;;  %v3544_v10 = vrot.slane %v3366_v61, 4 }
 0x121   : > { %10947 = vst [vmem:[#allocation4_spill] sm:$0xff] %v9489_v15  ;;  %v4116_v51 = vor.u32 %v4115_v26, %v4113_v17  ;;  %716 = vst [vmem:[#allocation2 + $0x108] sm:$0xf] %v6693_v14  ;;  %v3545_v56 = vrot.slane %v3369_v22, 5  ;;  %v9493_v43 = vrot.slane %v4133_v52, 5  ;;  %v3550_v19 = vrot.slane %v3375_v12, 4 }
 0x122   : > { %v4112_v63 = vrot.slane %v4111_v27, 4  ;;  %v3548_v42 = vrot.slane %v3378_v44, 5  ;;  %v9495_v1 = vor.u32 %v3378_v44, %v3377_v39  ;;  %v3554_v40 = vshll.u32 %v3536_v38, 16  ;;  %v9505_v39 = vpop.f32.mrb[4].mxu0 }
 0x123   : > { %v4117_v30 = vrot.slane %v4116_v51, 4  ;;  %v3546_v23 = vor.u32 %v3545_v56, %v3544_v10  ;;  %v3842_v14 = vshrl.u32 %v3817_v4, 16  ;;  %v3854_v61 = vrot.slane %v9226_v35, 4  ;;  %v7872_v35 = vld [vmem:[%s10788_s3] sm:$0xff]  }
 0x124   : > { %10949 = vst [vmem:[#allocation3_spill] sm:$0xff] %v9495_v1  ;;  %v4114_v55 = vsel %vm8584_vm7, %v4112_v63, %v4113_v17  ;;  %v3551_v26 = vor.u32 %v3550_v19, %v3548_v42  ;;  %v3556_v52 = vrot.slane %v3554_v40, 5  ;;  %v10823_v51 = vshrl.u32 %v9491_v5, 16  ;;  %v9513_v19 = vpop.f32.mrb[4].mxu1 }
 0x125   : > { %v4122_v22 = vsel %vm8584_vm7, %v4117_v30, %v4121_v7  ;;  %v3547_v27 = vrot.slane %v3546_v23, 4  ;;  %v6411_v12 = vrot.slane %v3842_v14, 11  ;;  %v3862_v63 = vsel %vm8138_vm2, %v3854_v61, %v9242_v11  ;;  %v9515_v7 = vpop.f32.mrb[5].mxu0  ;;  %v7877_v11 = vld [vmem:[%s10788_s3 + $0x48] sm:$0xff]   ;;  %v9527_v23 = vpop.f32.mrb[5].mxu1 }
 0x126   : > { %v6441_v10 = vcombine.low %v4114_v55, %v4122_v22  ;;  %v3552_v38 = vrot.slane %v3551_v26, 4  ;;  %v10824_v4 = vshll.u32 %v9491_v5, 16  ;;  %v10836_v56 = vshrl.u32 %v9497_v20, 16  ;;  %v9538_v61 = vpop.f32.mrb[6].mxu0  ;;  %v9540_v22 = vpop.f32.mrb[6].mxu1 }
 0x127   : > { %v9517_v17 = vld [vmem:[#allocation2 + $0x104] sm:$0xf]  ;;  %v3549_v44 = vsel %vm8584_vm7, %v3547_v27, %v3548_v42  ;;  %v10832_v30 = vshll.u32 %v9497_v20, 16  ;;  %v3853_v14 = vsel %vm8138_vm2, %v6411_v12, %v9235_v9  ;;  %v9546_v32 = vpop.f32.mrb[7].mxu0  ;;  %v9548_v62 = vpop.f32.mrb[7].mxu1 }
 0x128   : > { %7504 = vmatprep.mubr.bf16.mxu1 %v6441_v10  ;;  %v9529_v40 = vld [vmem:[#allocation2 + $0x108] sm:$0xf]  ;;  %v10825_v55 = vshrl.u32 %v9517_v17, 16  ;;  %v10822_v26 = vshll.u32 %v9517_v17, 16  ;;  %v3557_v42 = vsel %vm8584_vm7, %v3552_v38, %v3556_v52  ;;  %v6419_v54 = vcombine.low %v3853_v14, %v3862_v63  ;;  %v3820_v20 = vld [vmem:[#allocation2 + $0xa0] sm:$0x8] }
 0x129   : > { %v10831_v27 = vshrl.u32 %v9529_v40, 16  ;;  %v10829_v10 = vshll.u32 %v9529_v40, 16  ;;  %v9544_v49 = vcombine.low %v3549_v44, %v3557_v42  ;;  %v3558_v38 = vrot.slane %v10823_v51, 4  ;;  %v9558_v44 = vld [vmem:[#allocation2 + $0xa4] sm:$0xf]  ;;  %v7879_v63 = vld [vmem:[%s10788_s3 + $0x8] sm:$0xff]  }
 0x12a   : > { %v4123_v52 = vrot.slane %v10825_v55, 4  ;;  %v4124_v9 = vrot.slane %v10822_v26, 5  ;;  %v3559_v12 = vrot.slane %v10824_v4, 5  ;;  %10951 = vst [vmem:[#allocation6_spill] sm:$0xff] %v9558_v44  ;;  %4474 = vmatmul.mubr.bf16.vlgmr.msra.gmra.mrb[80].mxu0 %v6419_v54  ;;  %v3562_v26 = vrot.slane %v10832_v30, 5 }
 0x12b   : > { %v4127_v42 = vrot.slane %v10829_v10, 5  ;;  %v4129_v14 = vrot.slane %v10831_v27, 4  ;;  %v3564_v51 = vrot.slane %v10836_v56, 4  ;;  %v9571_v4 = vld [vmem:[#allocation2 + $0xa8] sm:$0xf]  ;;  %7221 = vmatpush3.bf16.msra.mxu0 %v7872_v35  ;;  %v9575_v10 = vpop.f32.mrb[8].mxu1  ;;  %4481 = vmatprep.mubr.bf16.mxu0 %v6428_v21 }
 0x12c   : > { %10952 = vst [vmem:[#allocation9_spill] sm:$0xff] %v9571_v4  ;;  %v4125_v55 = vor.u32 %v4124_v9, %v4123_v52  ;;  %v3560_v47 = vor.u32 %v3559_v12, %v3558_v38  ;;  %v10840_v54 = vshrl.u32 %v9558_v44, 16  ;;  %7222 = vmatprep.subr.bf16.mxu0 %v7877_v11  ;;  %v7884_v52 = vld [vmem:[%s10788_s3 + $0x50] sm:$0xff]   ;;  %v9582_v60 = vpop.f32.mrb[9].mxu1  ;;  %v3570_v38 = vrot.slane %v3568_v36, 5 }
 0x12d   : > { %v4130_v6 = vor.u32 %v4129_v14, %v4127_v42  ;;  %v3565_v27 = vor.u32 %v3564_v51, %v3562_v26  ;;  %v10839_v12 = vshrl.u32 %v9571_v4, 16  ;;  %v9585_v51 = vpop.f32.mrb[10].mxu1  ;;  %v10843_v30 = vshll.u32 %v9571_v4, 16 }
 0x12e   : > { %v4126_v35 = vrot.slane %v4125_v55, 4  ;;  %v3561_v9 = vrot.slane %v3560_v47, 4  ;;  %10953 = vst [vmem:[#allocation10_spill] sm:$0xff] %v9585_v51  ;;  %v3572_v11 = vrot.slane %v10840_v54, 4  ;;  %v9590_v5 = vpop.f32.mrb[11].mxu1  ;;  %v10955_v21 = vshll.u32 %v9558_v44, 16 }
 0x12f   : > { %v4131_v14 = vrot.slane %v4130_v6, 4  ;;  %v3566_v56 = vrot.slane %v3565_v27, 4  ;;  %10954 = vst [vmem:[#allocation7_spill] sm:$0xff] %v9590_v5  ;;  %v3578_v6 = vrot.slane %v10839_v12, 4  ;;  %7223 = vmatpush3.bf16.msra.mxu0 %v7879_v63  ;;  %v7886_v55 = vld [vmem:[%s10788_s3 + $0x10] sm:$0xff]   ;;  %v7891_v27 = vld [vmem:[%s10788_s3 + $0x58] sm:$0xff]  }
 0x130   : > { %v4128_v15 = vsel %vm8584_vm7, %v4126_v35, %v4127_v42  ;;  %v3563_v36 = vsel %vm8584_vm7, %v3561_v9, %v3562_v26  ;;  %v3573_v47 = vrot.slane %v10955_v21, 5  ;;  %v3576_v35 = vrot.slane %v10843_v30, 5  ;;  %v9613_v63 = vld [vmem:[#allocation2 + $0xb4] sm:$0xf]  ;;  %7224 = vmatprep.subr.bf16.mxu0 %v7884_v52  ;;  %v7893_v5 = vld [vmem:[%s10788_s3 + $0x18] sm:$0xff]  }
 0x131   : > { %v4136_v42 = vsel %vm8584_vm7, %v4131_v14, %v9493_v43  ;;  %v3571_v26 = vsel %vm8584_vm7, %v3566_v56, %v3570_v38  ;;  %v3582_v9 = vshll.u32 %v3538_v33, 16  ;;  %10956 = vst [vmem:[#allocation18_spill] sm:$0xff] %v9613_v63  ;;  %v3864_v44 = vshrl.u32 %v3820_v20, 16  ;;  %v9620_v43 = vpop.f32.mrb[8].mxu0  ;;  %v9626_v52 = vld [vmem:[#allocation2 + $0xb8] sm:$0xf] }
 0x132   : > { %v6442_v21 = vcombine.low %v4128_v15, %v4136_v42  ;;  %v9615_v12 = vcombine.low %v3563_v36, %v3571_v26  ;;  %v3574_v54 = vor.u32 %v3573_v47, %v3572_v11  ;;  %v3579_v14 = vor.u32 %v3578_v6, %v3576_v35  ;;  %10959 = vst [vmem:[#allocation19_spill] sm:$0xff] %v9626_v52  ;;  %v7899_v20 = vld [vmem:[%s10788_s3 + $0x60] sm:$0xff]   ;;  %v9631_v15 = vpop.f32.mrb[9].mxu0  ;;  %v3539_v42 = vld [vmem:[#allocation2 + $0xbc] sm:$0x1] }
 0x133   : > { %v3584_v56 = vrot.slane %v3582_v9, 5  ;;  %v10957_v38 = vshrl.u32 %v9237_v28, 16  ;;  %v10958_v33 = vshrl.u32 %v9239_v50, 16  ;;  %v6412_v36 = vrot.slane %v3864_v44, 11  ;;  %7225 = vmatpush3.bf16.msra.mxu0 %v7886_v55  ;;  %v9635_v26 = vpop.f32.mrb[10].mxu0  ;;  %v9637_v9 = vpop.f32.mrb[12].mxu1 }
 0x134   : > { %7505 = vmatmul.mubr.bf16.gmra.mrb[60].mxu1 %v6442_v21  ;;  %v3575_v11 = vrot.slane %v3574_v54, 4  ;;  %10960 = vst [vmem:[#allocation17_spill] sm:$0xff] %v9637_v9  ;;  %v10962_v54 = vshll.u32 %v9239_v50, 16  ;;  %v9644_v21 = vld [vmem:[#allocation2 + $0xc4] sm:$0xf]  ;;  %7226 = vmatprep.subr.bf16.mxu0 %v7891_v27  ;;  %v9646_v6 = vpop.f32.mrb[11].mxu0 }
 0x135   : > { %v3871_v30 = vrot.slane %v10957_v38, 7  ;;  %v3880_v4 = vrot.slane %v10958_v33, 7  ;;  %7524 = vmatprep.mubr.bf16.mxu1 %v9544_v49  ;;  %v3580_v38 = vrot.slane %v3579_v14, 4  ;;  %v10961_v33 = vshll.u32 %v9237_v28, 16  ;;  %10963 = vst [vmem:[#allocation13_spill] sm:$0xff] %v9644_v21  ;;  %10964 = vst [vmem:[#allocation11_spill] sm:$0xff] %v9646_v6 }
 0x136   : > { %v9648_v55 = vpop.f32.mrb[13].mxu1  ;;  %v3577_v47 = vsel %vm8584_vm7, %v3575_v11, %v3576_v35  ;;  %v10966_v28 = vshrl.u32 %v9613_v63, 16  ;;  %v10969_v11 = vshll.u32 %v9613_v63, 16  ;;  %v7909_v63 = vld [vmem:[%s10788_s3 + $0x70] sm:$0xff]  }
 0x137   : > { %v3874_v51 = vor.u32 %v10961_v33, %v3871_v30  ;;  %v3876_v1 = vrot.slane %v3871_v30, 4  ;;  %v3883_v44 = vor.u32 %v10962_v54, %v3880_v4  ;;  %10965 = vst [vmem:[#allocation20_spill] sm:$0xff] %v9648_v55  ;;  %v9656_v33 = vld [vmem:[#allocation2 + $0xc8] sm:$0xf]  ;;  %v9658_v50 = vpop.f32.mrb[14].mxu1  ;;  %v3585_v4 = vsel %vm8584_vm7, %v3580_v38, %v3584_v56  ;;  %7227 = vmatpush3.bf16.msra.mxu0 %v7893_v5 }
 0x138   : > { %v3586_v30 = vrot.slane %v10966_v28, 4  ;;  %10967 = vst [vmem:[#allocation14_spill] sm:$0xff] %v9656_v33  ;;  %10968 = vst [vmem:[#allocation15_spill] sm:$0xff] %v9658_v50  ;;  %v3587_v54 = vrot.slane %v10969_v11, 5  ;;  %v9668_v49 = vpop.f32.mrb[15].mxu1  ;;  %v6405_v14 = vcombine.low %v3577_v47, %v3585_v4  ;;  %v10971_v55 = vshll.u32 %v9626_v52, 16  ;;  %7228 = vmatprep.subr.bf16.mxu0 %v7899_v20 }
 0x139   : > { %v3875_v27 = vsel %vm8138_vm2, %v6412_v36, %v3874_v51  ;;  %v3884_v35 = vsel %vm8138_vm2, %v3876_v1, %v3883_v44  ;;  %10970 = vst [vmem:[#allocation12_spill] sm:$0xff] %v9668_v49  ;;  %v10972_v50 = vshrl.u32 %v9626_v52, 16  ;;  %v3540_v56 = vld [vmem:[#allocation2 + $0xcc] sm:$0x1]  ;;  %v7900_v51 = vld [vmem:[%s10788_s3 + $0x20] sm:$0xff]   ;;  %v3596_v38 = vshll.u32 %v3539_v42, 16 }
 0x13a   : > { %v6420_v28 = vcombine.low %v3875_v27, %v3884_v35  ;;  %v3590_v9 = vrot.slane %v10971_v55, 5  ;;  %v7873_v1 = vld [vmem:[%s10788_s3 + $0x180] sm:$0xff]   ;;  %v7874_v36 = vld [vmem:[%s10788_s3 + $0x1c8] sm:$0xff]   ;;  %v3588_v47 = vor.u32 %v3587_v54, %v3586_v30  ;;  %v6429_v44 = vcombine.low %v9304_v16, %v9308_v29  ;;  %v3823_v5 = vld [vmem:[#allocation2 + $0xb0] sm:$0x8]  ;;  %v9702_v35 = vpop.f32.mrb[12].mxu0 }
 0x13b   : > { %v3592_v6 = vrot.slane %v10972_v50, 4  ;;  %v10848_v55 = vshrl.u32 %v9644_v21, 16  ;;  %v7904_v30 = vld [vmem:[%s10788_s3 + $0x68] sm:$0xff]   ;;  %v3598_v54 = vrot.slane %v3596_v38, 5  ;;  %10974 = vst [vmem:[#allocation21_spill] sm:$0xff] %v9702_v35  ;;  %v10975_v52 = vshll.u32 %v9644_v21, 16  ;;  %7229 = vmatpush3.bf16.msra.mxu0 %v7900_v51 }
 0x13c   : > { %4482 = vmatmul.mubr.bf16.gmra.mrb[84].mxu0 %v6420_v28  ;;  %v7875_v42 = vld [vmem:[%s10788_s3 + $0x188] sm:$0xff]   ;;  %v3589_v11 = vrot.slane %v3588_v47, 4  ;;  %v9697_v28 = vld [vmem:[#allocation2 + $0xd4] sm:$0xf]  ;;  %7525 = vmatmul.mubr.bf16.vlgmr.msra.gmra.mrb[48].mxu1 %v9615_v12  ;;  %v10976_v38 = vshll.u32 %v9656_v33, 16  ;;  %v9714_v49 = vpop.f32.mrb[13].mxu0 }
 0x13d   : > { %v3593_v50 = vor.u32 %v3592_v6, %v3590_v9  ;;  %4489 = vmatprep.mubr.bf16.mxu0 %v6429_v44  ;;  %v3600_v20 = vrot.slane %v10848_v55, 4  ;;  %v3610_v6 = vshll.u32 %v3540_v56, 16  ;;  %10973 = vst [vmem:[#allocation16_spill] sm:$0xff] %v9697_v28  ;;  %v7905_v27 = vld [vmem:[%s10788_s3 + $0x28] sm:$0xff]   ;;  %v3601_v47 = vrot.slane %v10975_v52, 5  ;;  %10978 = vst [vmem:[#allocation22_spill] sm:$0xff] %v9714_v49  ;;  %7301 = vmatpush3.bf16.msra.mxu1 %v7873_v1 }
 0x13e   : > { %v3604_v44 = vrot.slane %v10976_v38, 5  ;;  %v10977_v55 = vshrl.u32 %v9656_v33, 16  ;;  %7528 = vmatprep.mubr.bf16.mxu1 %v6405_v14  ;;  %v3591_v12 = vsel %vm8584_vm7, %v3589_v11, %v3590_v9  ;;  %v3886_v52 = vshrl.u32 %v3823_v5, 16  ;;  %v9720_v35 = vpop.f32.mrb[14].mxu0  ;;  %7302 = vmatprep.subr.bf16.mxu1 %v7874_v36  ;;  %v9729_v11 = vld [vmem:[#allocation2 + $0xd8] sm:$0xf] }
 0x13f   : > { %v3594_v4 = vrot.slane %v3593_v50, 4  ;;  %v3612_v50 = vrot.slane %v3610_v6, 5  ;;  %v10979_v21 = vshrl.u32 %v9304_v16, 16  ;;  %10980 = vst [vmem:[#allocation25_spill] sm:$0xff] %v9720_v35  ;;  %v3602_v1 = vor.u32 %v3601_v47, %v3600_v20  ;;  %10982 = vst [vmem:[#allocation26_spill] sm:$0xff] %v9729_v11  ;;  %7230 = vmatprep.subr.bf16.mxu0 %v7904_v30  ;;  %v9731_v5 = vpop.f32.mrb[15].mxu0 }
 0x140   : > { %v3606_v56 = vrot.slane %v10977_v55, 4  ;;  %v7878_v55 = vld [vmem:[%s10788_s3 + $0x1d0] sm:$0xff]   ;;  %v10981_v33 = vshrl.u32 %v9308_v29, 16  ;;  %10983 = vst [vmem:[#allocation27_spill] sm:$0xff] %v9731_v5  ;;  %v6413_v6 = vrot.slane %v3886_v52, 11  ;;  %v10984_v36 = vshll.u32 %v9304_v16, 16  ;;  %7231 = vmatpush3.bf16.msra.mxu0 %v7905_v27 }
 0x141   : > { %v3893_v38 = vrot.slane %v10979_v21, 7  ;;  %v3599_v51 = vsel %vm8584_vm7, %v3594_v4, %v3598_v54  ;;  %v3541_v54 = vld [vmem:[#allocation2 + $0xdc] sm:$0x1]  ;;  %v9735_v49 = vpop.f32.mrb[16].mxu1  ;;  %v7880_v20 = vld [vmem:[%s10788_s3 + $0x190] sm:$0xff]   ;;  %v3603_v47 = vrot.slane %v3602_v1, 4  ;;  %7303 = vmatpush3.bf16.msra.mxu1 %v7875_v42  ;;  %7232 = vmatprep.subr.bf16.mxu0 %v7909_v63 }
 0x142   : > { %v3607_v14 = vor.u32 %v3606_v56, %v3604_v44  ;;  %v3902_v9 = vrot.slane %v10981_v33, 7  ;;  %v6406_v21 = vcombine.low %v3591_v12, %v3599_v51  ;;  %v10985_v56 = vshll.u32 %v9308_v29, 16  ;;  %v7910_v16 = vld [vmem:[%s10788_s3 + $0x30] sm:$0xff]   ;;  %v9746_v12 = vpop.f32.mrb[17].mxu1  ;;  %v9753_v1 = vld [vmem:[#allocation2 + $0xe4] sm:$0xf]  ;;  %7304 = vmatprep.subr.bf16.mxu1 %v7878_v55 }
 0x143   : > { %v3896_v35 = vor.u32 %v10984_v36, %v3893_v38  ;;  %v3898_v4 = vrot.slane %v3893_v38, 4  ;;  %v10857_v5 = vshrl.u32 %v9697_v28, 16  ;;  %v10856_v38 = vshll.u32 %v9697_v28, 16  ;;  %10986 = vst [vmem:[#allocation28_spill] sm:$0xff] %v9753_v1  ;;  %v9755_v27 = vpop.f32.mrb[18].mxu1 }
 0x144   : > { %v3608_v33 = vrot.slane %v3607_v14, 4  ;;  %v3905_v30 = vor.u32 %v10985_v56, %v3902_v9  ;;  %v10855_v29 = vshll.u32 %v9729_v11, 16  ;;  %10987 = vst [vmem:[#allocation29_spill] sm:$0xff] %v9755_v27  ;;  %v7881_v14 = vld [vmem:[%s10788_s3 + $0x1d8] sm:$0xff]   ;;  %v3605_v42 = vsel %vm8584_vm7, %v3603_v47, %v3604_v44  ;;  %v9768_v63 = vld [vmem:[#allocation2 + $0xe8] sm:$0xf]  ;;  %7529 = vmatmul.mubr.bf16.gmra.mrb[52].mxu1 %v6406_v21  ;;  %7233 = vmatpush3.bf16.msra.mxu0 %v7910_v16 }
 0x145   : > { %v3897_v52 = vsel %vm8138_vm2, %v6413_v6, %v3896_v35  ;;  %v3614_v6 = vrot.slane %v10857_v5, 4  ;;  %10988 = vst [vmem:[#allocation30_spill] sm:$0xff] %v9768_v63  ;;  %v9770_v36 = vpop.f32.mrb[19].mxu1  ;;  %v3615_v51 = vrot.slane %v10856_v38, 5  ;;  %v3542_v47 = vld [vmem:[#allocation2 + $0xec] sm:$0x1]  ;;  %7305 = vmatpush3.bf16.msra.mxu1 %v7880_v20 }
 0x146   : > { %v3613_v35 = vsel %vm8584_vm7, %v3608_v33, %v3612_v50  ;;  %v3906_v9 = vsel %vm8138_vm2, %v3898_v4, %v3905_v30  ;;  %10989 = vst [vmem:[#allocation31_spill] sm:$0xff] %v9770_v36  ;;  %v3618_v44 = vrot.slane %v10855_v29, 5  ;;  %v7914_v50 = vld [vmem:[%s10788_s3 + $0x78] sm:$0xff]   ;;  %v10990_v4 = vshrl.u32 %v9729_v11, 16  ;;  %v3826_v38 = vld [vmem:[#allocation2 + $0xc0] sm:$0x8]  ;;  %7306 = vmatprep.subr.bf16.mxu1 %v7881_v14 }
 0x147   : > { %v6407_v55 = vcombine.low %v3605_v42, %v3613_v35  ;;  %v6421_v56 = vcombine.low %v3897_v52, %v3906_v9  ;;  %v3624_v30 = vshll.u32 %v3541_v54, 16  ;;  %v6430_v42 = vcombine.low %v9337_v34, %v9344_v37  ;;  %v7915_v35 = vld [vmem:[%s10788_s3 + $0x38] sm:$0xff]   ;;  %v7885_v20 = vld [vmem:[%s10788_s3 + $0x1e0] sm:$0xff]   ;;  %7234 = vmatprep.subr.bf16.mxu0 %v7914_v50 }
 0x148   : > { %v3620_v33 = vrot.slane %v10990_v4, 4  ;;  %v10862_v52 = vshrl.u32 %v9753_v1, 16  ;;  %v7882_v9 = vld [vmem:[%s10788_s3 + $0x198] sm:$0xff]   ;;  %v3616_v21 = vor.u32 %v3615_v51, %v3614_v6  ;;  %v10864_v4 = vshll.u32 %v9753_v1, 16  ;;  %7235 = vmatpush3.bf16.msra.mxu0 %v7915_v35  ;;  %v7887_v35 = vld [vmem:[%s10788_s3 + $0x1a0] sm:$0xff]  }
 0x149   : > { %7532 = vmatprep.mubr.bf16.mxu1 %v6407_v55  ;;  %v10863_v29 = vshll.u32 %v9768_v63, 16  ;;  %4490 = vmatmul.mubr.bf16.gmra.mrb[88].mxu0 %v6421_v56  ;;  %v3626_v5 = vrot.slane %v3624_v30, 5  ;;  %v3638_v55 = vshll.u32 %v3542_v47, 16  ;;  %v10991_v14 = vshrl.u32 %v9768_v63, 16  ;;  %v9814_v63 = vld [vmem:[#allocation2 + $0xf4] sm:$0xf] }
 0x14a   : > { %v3621_v16 = vor.u32 %v3620_v33, %v3618_v44  ;;  %v3628_v11 = vrot.slane %v10862_v52, 4  ;;  %v3617_v51 = vrot.slane %v3616_v21, 4  ;;  %4497 = vmatprep.mubr.bf16.mxu0 %v6430_v42  ;;  %v3629_v6 = vrot.slane %v10864_v4, 5  ;;  %v9804_v33 = vpop.f32.mrb[16].mxu0  ;;  %7307 = vmatpush3.bf16.msra.mxu1 %v7882_v9  ;;  %10994 = vst [vmem:[#allocation32_spill] sm:$0xff] %v9814_v63 }
 0x14b   : > { %v3632_v54 = vrot.slane %v10863_v29, 5  ;;  %v3634_v56 = vrot.slane %v10991_v14, 4  ;;  %v3640_v28 = vrot.slane %v3638_v55, 5  ;;  %v3908_v36 = vshrl.u32 %v3826_v38, 16  ;;  %v9808_v42 = vpop.f32.mrb[17].mxu0  ;;  %7308 = vmatprep.subr.bf16.mxu1 %v7885_v20 }
 0x14c   : > { %v3622_v30 = vrot.slane %v3621_v16, 4  ;;  %v10992_v52 = vshrl.u32 %v9337_v34, 16  ;;  %v3619_v21 = vsel %vm8584_vm7, %v3617_v51, %v3618_v44  ;;  %v3630_v29 = vor.u32 %v3629_v6, %v3628_v11  ;;  %v9816_v16 = vld [vmem:[#allocation2 + $0xf8] sm:$0xf]  ;;  %v9818_v38 = vpop.f32.mrb[18].mxu0 }
 0x14d   : > { %v3635_v4 = vor.u32 %v3634_v56, %v3632_v54  ;;  %v10993_v14 = vshrl.u32 %v9344_v37, 16  ;;  %10995 = vst [vmem:[#allocation33_spill] sm:$0xff] %v9816_v16  ;;  %v6414_v44 = vrot.slane %v3908_v36, 11  ;;  %v10996_v11 = vshll.u32 %v9337_v34, 16  ;;  %v9827_v51 = vpop.f32.mrb[19].mxu0  ;;  %v7888_v56 = vld [vmem:[%s10788_s3 + $0x1e8] sm:$0xff]  }
 0x14e   : > { %v3915_v47 = vrot.slane %v10992_v52, 7  ;;  %v3627_v52 = vsel %vm8584_vm7, %v3622_v30, %v3626_v5  ;;  %10997 = vst [vmem:[#allocation34_spill] sm:$0xff] %v9827_v51  ;;  %v10998_v5 = vshll.u32 %v9344_v37, 16  ;;  %v9834_v30 = vpop.f32.mrb[20].mxu1  ;;  %v10871_v34 = vshrl.u32 %v9814_v63, 16  ;;  %7309 = vmatpush3.bf16.msra.mxu1 %v7887_v35 }
 0x14f   : > { %v3924_v50 = vrot.slane %v10993_v14, 7  ;;  %v6408_v6 = vcombine.low %v3619_v21, %v3627_v52  ;;  %v3631_v14 = vrot.slane %v3630_v29, 4  ;;  %v3636_v1 = vrot.slane %v3635_v4, 4  ;;  %10999 = vst [vmem:[#allocation35_spill] sm:$0xff] %v9834_v30  ;;  %v3543_v52 = vld [vmem:[#allocation2 + $0xfc] sm:$0x1]  ;;  %7310 = vmatprep.subr.bf16.mxu1 %v7888_v56 }
 0x150   : > { %v3918_v9 = vor.u32 %v10996_v11, %v3915_v47  ;;  %v3920_v55 = vrot.slane %v3915_v47, 4  ;;  %v10870_v47 = vshll.u32 %v9814_v63, 16  ;;  %v10872_v21 = vshrl.u32 %v9816_v16, 16  ;;  %v9841_v11 = vpop.f32.mrb[21].mxu1  ;;  %v9896_v51 = vld [vmem:[#allocation2 + $0xb4] sm:$0xf] }
 0x151   : > { %v3927_v20 = vor.u32 %v10998_v5, %v3924_v50  ;;  %11000 = vst [vmem:[#allocation36_spill] sm:$0xff] %v9841_v11  ;;  %7533 = vmatmul.mubr.bf16.gmra.mrb[56].mxu1 %v6408_v6  ;;  %v3633_v29 = vsel %vm8584_vm7, %v3631_v14, %v3632_v54  ;;  %v3641_v37 = vsel %vm8584_vm7, %v3636_v1, %v3640_v28  ;;  %v10869_v50 = vshll.u32 %v9816_v16, 16  ;;  %v9854_v5 = vpop.f32.mrb[22].mxu1  ;;  %v7889_v6 = vld [vmem:[%s10788_s3 + $0x1a8] sm:$0xff]  }
 0x152   : > { %v3919_v36 = vsel %vm8138_vm2, %v6414_v44, %v3918_v9  ;;  %v9850_v44 = vld [vmem:[#allocation2 + $0xa4] sm:$0xf]  ;;  %v9852_v9 = vld [vmem:[#allocation2 + $0xa8] sm:$0xf]  ;;  %11002 = vst [vmem:[#allocation38_spill] sm:$0xff] %v9854_v5  ;;  %v6409_v54 = vcombine.low %v3633_v29, %v3641_v37  ;;  %v3642_v28 = vrot.slane %v10871_v34, 4  ;;  %v6431_v29 = vcombine.low %v9356_v3, %v9369_v53  ;;  %7311 = vmatpush3.bf16.msra.mxu1 %v7889_v6 }
 0x153   : > { %v3928_v4 = vsel %vm8138_vm2, %v3920_v55, %v3927_v20  ;;  %11001 = vst [vmem:[#allocation37_spill] sm:$0xff] %v9852_v9  ;;  %v3643_v1 = vrot.slane %v10870_v47, 5  ;;  %v9863_v55 = vpop.f32.mrb[23].mxu1  ;;  %v3646_v20 = vrot.slane %v10869_v50, 5  ;;  %v3648_v35 = vrot.slane %v10872_v21, 4 }
 0x154   : > { %v6422_v14 = vcombine.low %v3919_v36, %v3928_v4  ;;  %11003 = vst [vmem:[#allocation39_spill] sm:$0xff] %v9863_v55  ;;  %v3652_v5 = vshll.u32 %v3543_v52, 16  ;;  %v7892_v36 = vld [vmem:[%s10788_s3 + $0x1f0] sm:$0xff]   ;;  %7536 = vmatprep.mubr.bf16.mxu1 %v6409_v54  ;;  %v5004_v4 = vshrl.u32 %v9850_v44, 16  ;;  %v5007_v56 = vshll.u32 %v9850_v44, 16 }
 0x155   : > { %v3644_v37 = vor.u32 %v3643_v1, %v3642_v28  ;;  %v5013_v50 = vshrl.u32 %v9852_v9, 16  ;;  %v3829_v47 = vld [vmem:[#allocation2 + $0xd0] sm:$0x8]  ;;  %v3649_v34 = vor.u32 %v3648_v35, %v3646_v20  ;;  %v6555_v16 = vcombine.low %v9850_v44, %v9852_v9  ;;  %7312 = vmatprep.subr.bf16.mxu1 %v7892_v36  ;;  %v4974_v6 = vld [vmem:[#allocation2 + $0xa0] sm:$0x8] }
 0x156   : > { %4498 = vmatmul.mubr.bf16.gmra.mrb[92].mxu0 %v6422_v14  ;;  %v3654_v21 = vrot.slane %v3652_v5, 5  ;;  %v7894_v54 = vld [vmem:[%s10788_s3 + $0x1b0] sm:$0xff]   ;;  %v7895_v14 = vld [vmem:[%s10788_s3 + $0x1f8] sm:$0xff]   ;;  %v5006_v28 = vrot.slane %v5004_v4, 7  ;;  %v9886_v35 = vrot.slane %v5004_v4, 4  ;;  %v3930_v44 = vshrl.u32 %v3829_v47, 16 }
 0x157   : > { %4505 = vmatprep.mubr.bf16.mxu0 %v6431_v29  ;;  %v3645_v63 = vrot.slane %v3644_v37, 4  ;;  %v5015_v1 = vrot.slane %v5013_v50, 7  ;;  %v3650_v5 = vrot.slane %v3649_v34, 4  ;;  %v9888_v29 = vrot.slane %v5007_v56, 5  ;;  %v9898_v4 = vpop.f32.mrb[20].mxu0  ;;  %7313 = vmatpush3.bf16.msra.mxu1 %v7894_v54 }
 0x158   : > { %11004 = vst [vmem:[#allocation40_spill] sm:$0xff] %v9886_v35  ;;  %v9890_v52 = vrot.slane %v5013_v50, 4  ;;  %v5009_v55 = vor.u32 %v5007_v56, %v5006_v28  ;;  %v5011_v11 = vrot.slane %v5006_v28, 4  ;;  %v11007_v30 = vshll.u32 %v9852_v9, 16  ;;  %7314 = vmatprep.subr.bf16.mxu1 %v7895_v14 }
 0x159   : > { %11005 = vst [vmem:[#allocation41_spill] sm:$0xff] %v9888_v29  ;;  %v3647_v37 = vsel %vm8584_vm7, %v3645_v63, %v3646_v20  ;;  %v3655_v34 = vsel %vm8584_vm7, %v3650_v5, %v3654_v21  ;;  %v6415_v36 = vrot.slane %v3930_v44, 11  ;;  %v11008_v50 = vshrl.u32 %v9356_v3, 16  ;;  %v9906_v63 = vld [vmem:[#allocation2 + $0xb8] sm:$0xf]  ;;  %v9908_v20 = vpop.f32.mrb[21].mxu0 }
 0x15a   : > { %11006 = vst [vmem:[#allocation42_spill] sm:$0xff] %v9890_v52  ;;  %v5018_v27 = vor.u32 %v11007_v30, %v5015_v1  ;;  %v11009_v52 = vshrl.u32 %v9369_v53, 16  ;;  %11010 = vst [vmem:[#allocation43_spill] sm:$0xff] %v9908_v20  ;;  %v6410_v56 = vcombine.low %v3647_v37, %v3655_v34  ;;  %v7896_v30 = vld [vmem:[%s10788_s3 + $0x1b8] sm:$0xff]   ;;  %v4999_v28 = vshrl.u32 %v4974_v6, 16  ;;  %v9917_v5 = vpop.f32.mrb[22].mxu0 }
 0x15b   : > { %v3937_v47 = vrot.slane %v11008_v50, 7  ;;  %v6432_v1 = vcombine.low %v9404_v41, %v9408_v31  ;;  %11011 = vst [vmem:[#allocation44_spill] sm:$0xff] %v9917_v5  ;;  %v11013_v44 = vshll.u32 %v9356_v3, 16  ;;  %v11014_v34 = vshll.u32 %v9369_v53, 16  ;;  %v7901_v6 = vld [vmem:[%s10788_s3 + $0x200] sm:$0xff]   ;;  %7315 = vmatpush3.bf16.msra.mxu1 %v7896_v30 }
 0x15c   : > { %v3946_v29 = vrot.slane %v11009_v52, 7  ;;  %v5019_v21 = vsel %vm8138_vm2, %v5011_v11, %v5018_v27  ;;  %v9919_v52 = vpop.f32.mrb[24].mxu1  ;;  %v5026_v27 = vshrl.u32 %v9896_v51, 16  ;;  %v9929_v11 = vpop.f32.mrb[23].mxu0  ;;  %7537 = vmatmul.mubr.bf16.gmra.mrb[60].mxu1 %v6410_v56  ;;  %v5029_v14 = vshll.u32 %v9896_v51, 16  ;;  %7540 = vmatprep.subr.bf16.mxu1 %v7901_v6 }
 0x15d   : > { %11012 = vst [vmem:[#allocation45_spill] sm:$0xff] %v9919_v52  ;;  %v3940_v37 = vor.u32 %v11013_v44, %v3937_v47  ;;  %v3942_v54 = vrot.slane %v3937_v47, 4  ;;  %11015 = vst [vmem:[#allocation46_spill] sm:$0xff] %v9929_v11  ;;  %v9931_v48 = vpop.f32.mrb[25].mxu1  ;;  %v6539_v52 = vrot.slane %v4999_v28, 11  ;;  %v5035_v3 = vshrl.u32 %v9906_v63, 16  ;;  %5630 = vmatprep.mubr.bf16.mxu1 %v6555_v16 }
 0x15e   : > { %v3949_v50 = vor.u32 %v11014_v34, %v3946_v29  ;;  %11016 = vst [vmem:[#allocation47_spill] sm:$0xff] %v9931_v48  ;;  %v5038_v47 = vshll.u32 %v9906_v63, 16  ;;  %v9936_v53 = vpop.f32.mrb[26].mxu1  ;;  %v5028_v34 = vrot.slane %v5026_v27, 7  ;;  %v5196_v9 = vrot.slane %v5026_v27, 4 }
 0x15f   : > { %11017 = vst [vmem:[#allocation48_spill] sm:$0xff] %v9936_v53  ;;  %v3941_v29 = vsel %vm8138_vm2, %v6415_v36, %v3940_v37  ;;  %v3832_v48 = vld [vmem:[#allocation2 + $0xe0] sm:$0x8]  ;;  %v9942_v56 = vpop.f32.mrb[27].mxu1  ;;  %v5010_v35 = vsel %vm8138_vm2, %v6539_v52, %v5009_v55  ;;  %v5037_v11 = vrot.slane %v5035_v3, 7  ;;  %v5197_v5 = vrot.slane %v5029_v14, 5 }
 0x160   : > { %v3950_v44 = vsel %vm8138_vm2, %v3942_v54, %v3949_v50  ;;  %11018 = vst [vmem:[#allocation49_spill] sm:$0xff] %v9942_v56  ;;  %v4977_v53 = vld [vmem:[#allocation2 + $0xb0] sm:$0x8]  ;;  %v6547_v16 = vcombine.low %v5010_v35, %v5019_v21  ;;  %v9946_v20 = vrot.slane %v5038_v47, 5  ;;  %v5202_v36 = vrot.slane %v5035_v3, 4  ;;  %v7906_v3 = vld [vmem:[%s10788_s3 + $0x208] sm:$0xff]  }
 0x161   : > { %v6423_v28 = vcombine.low %v3941_v29, %v3950_v44  ;;  %v6556_v37 = vcombine.low %v9896_v51, %v9906_v63  ;;  %v5198_v54 = vor.u32 %v5197_v5, %v5196_v9  ;;  %v3952_v50 = vshrl.u32 %v3832_v48, 16  ;;  %v9958_v51 = vld [vmem:[#allocation2 + $0xc4] sm:$0xf] }
 0x162   : > { %v11019_v30 = vshrl.u32 %v9404_v41, 16  ;;  %v11020_v29 = vshrl.u32 %v9408_v31, 16  ;;  %v5203_v52 = vor.u32 %v5202_v36, %v9946_v20  ;;  %v5021_v35 = vshrl.u32 %v4977_v53, 16 }
 0x163   : > { %4506 = vmatmul.mubr.bf16.gmra.mrb[96].mxu0 %v6423_v28  ;;  %v5031_v21 = vor.u32 %v5029_v14, %v5028_v34  ;;  %v5033_v44 = vrot.slane %v5028_v34, 4  ;;  %v9960_v9 = vrot.slane %v5198_v54, 4  ;;  %v6416_v48 = vrot.slane %v3952_v50, 11 }
 0x164   : > { %v3959_v27 = vrot.slane %v11019_v30, 7  ;;  %v3968_v55 = vrot.slane %v11020_v29, 7  ;;  %4513 = vmatprep.mubr.bf16.mxu0 %v6432_v1  ;;  %v11021_v63 = vshll.u32 %v9404_v41, 16  ;;  %v9964_v30 = vld [vmem:[#allocation2 + $0xc8] sm:$0xf]  ;;  %v9966_v1 = vpop.f32.mrb[24].mxu0  ;;  %v5040_v29 = vor.u32 %v5038_v47, %v5037_v11  ;;  %5631 = vmatmul.mubr.bf16.vlgmr.msra.gmra.mrb[64].mxu1 %v6547_v16 }
 0x165   : > { %v9968_v53 = vrot.slane %v5203_v52, 4  ;;  %v11023_v14 = vshll.u32 %v9408_v31, 16  ;;  %v6540_v36 = vrot.slane %v5021_v35, 11  ;;  %v9972_v56 = vpop.f32.mrb[25].mxu0  ;;  %v6433_v41 = vcombine.low %v9464_v13, %v9466_v25  ;;  %7541 = vmatpush3.bf16.msra.mxu1 %v7901_v6  ;;  %5638 = vmatprep.mubr.bf16.mxu1 %v6556_v37 }
 0x166   : > { %v3962_v5 = vor.u32 %v11021_v63, %v3959_v27  ;;  %v3964_v28 = vrot.slane %v3959_v27, 4  ;;  %v5048_v50 = vshrl.u32 %v9958_v51, 16  ;;  %v5051_v27 = vshll.u32 %v9958_v51, 16  ;;  %v9980_v52 = vpop.f32.mrb[26].mxu0  ;;  %7542 = vmatprep.subr.bf16.mxu1 %v7906_v3 }
 0x167   : > { %11022 = vst [vmem:[#allocation50_spill] sm:$0xff] %v9968_v53  ;;  %v3971_v34 = vor.u32 %v11023_v14, %v3968_v55  ;;  %v5032_v11 = vsel %vm8138_vm2, %v6540_v36, %v5031_v21  ;;  %v5041_v47 = vsel %vm8138_vm2, %v5033_v44, %v5040_v29  ;;  %v5057_v16 = vshrl.u32 %v9964_v30, 16  ;;  %v3835_v55 = vld [vmem:[#allocation2 + $0xf0] sm:$0x8]  ;;  %v9989_v35 = vpop.f32.mrb[27].mxu0 }
 0x168   : > { %v3963_v54 = vsel %vm8138_vm2, %v6416_v48, %v3962_v5  ;;  %11024 = vst [vmem:[#allocation51_spill] sm:$0xff] %v9989_v35  ;;  %v9991_v48 = vpop.f32.mrb[28].mxu1  ;;  %v6548_v5 = vcombine.low %v5032_v11, %v5041_v47  ;;  %v5050_v6 = vrot.slane %v5048_v50, 7  ;;  %v7911_v21 = vld [vmem:[%s10788_s3 + $0x210] sm:$0xff]   ;;  %v10001_v36 = vrot.slane %v5051_v27, 5 }
 0x169   : > { %v3972_v31 = vsel %vm8138_vm2, %v3964_v28, %v3971_v34  ;;  %11025 = vst [vmem:[#allocation52_spill] sm:$0xff] %v9991_v48  ;;  %v4980_v28 = vld [vmem:[#allocation2 + $0xc0] sm:$0x8]  ;;  %v9997_v14 = vpop.f32.mrb[29].mxu1  ;;  %v5059_v44 = vrot.slane %v5057_v16, 7  ;;  %v9999_v34 = vrot.slane %v5048_v50, 4  ;;  %7543 = vmatpush3.bf16.msra.mxu1 %v7906_v3 }
 0x16a   : > { %v6424_v63 = vcombine.low %v3963_v54, %v3972_v31  ;;  %11026 = vst [vmem:[#allocation53_spill] sm:$0xff] %v9997_v14  ;;  %11028 = vst [vmem:[#allocation55_spill] sm:$0xff] %v10001_v36  ;;  %v10003_v29 = vrot.slane %v5057_v16, 4  ;;  %v10005_v54 = vpop.f32.mrb[30].mxu1  ;;  %v6557_v31 = vcombine.low %v9958_v51, %v9964_v30  ;;  %v3974_v11 = vshrl.u32 %v3835_v55, 16  ;;  %7544 = vmatprep.subr.bf16.mxu1 %v7911_v21  ;;  %v7916_v3 = vld [vmem:[%s10788_s3 + $0x218] sm:$0xff]  }
 0x16b   : > { %11027 = vst [vmem:[#allocation54_spill] sm:$0xff] %v9999_v34  ;;  %11030 = vst [vmem:[#allocation57_spill] sm:$0xff] %v10005_v54  ;;  %v11031_v47 = vshrl.u32 %v9464_v13, 16  ;;  %v11032_v48 = vshrl.u32 %v9466_v25, 16  ;;  %v10013_v53 = vpop.f32.mrb[31].mxu1  ;;  %v5043_v50 = vshrl.u32 %v4980_v28, 16  ;;  %v5053_v16 = vor.u32 %v5051_v27, %v5050_v6 }
 0x16c   : > { %11029 = vst [vmem:[#allocation56_spill] sm:$0xff] %v10003_v29  ;;  %4514 = vmatmul.mubr.bf16.gmra.mrb[100].mxu0 %v6424_v63  ;;  %v5055_v29 = vrot.slane %v5050_v6, 4  ;;  %v11033_v54 = vshll.u32 %v9964_v30, 16  ;;  %v6417_v36 = vrot.slane %v3974_v11, 11  ;;  %v11034_v51 = vshll.u32 %v9464_v13, 16  ;;  %5639 = vmatmul.mubr.bf16.gmra.mrb[68].mxu1 %v6548_v5 }
 0x16d   : > { %v3981_v37 = vrot.slane %v11031_v47, 7  ;;  %v3990_v14 = vrot.slane %v11032_v48, 7  ;;  %4521 = vmatprep.mubr.bf16.mxu0 %v6433_v41  ;;  %v11035_v47 = vshll.u32 %v9466_v25, 16  ;;  %v4984_v48 = vld [vmem:[#allocation2 + $0xd4] sm:$0xf]  ;;  %v6541_v41 = vrot.slane %v5043_v50, 11  ;;  %5646 = vmatprep.mubr.bf16.mxu1 %v6557_v31 }
 0x16e   : > { %v5062_v63 = vor.u32 %v11033_v54, %v5059_v44  ;;  %v10028_v6 = vadd.f32 %v9470_v0, %v9459_v57  ;;  %v10032_v13 = vadd.f32 %v9390_v45, %v9383_v2  ;;  %v10034_v25 = vld [vmem:[#allocation2 + $0xd8] sm:$0xf]  ;;  %v10046_v57 = vadd.f32 %v9406_v24, %v9397_v59  ;;  %v3838_v0 = vld [vmem:[#allocation2 + $0x100] sm:$0x8]  ;;  %7545 = vmatpush3.bf16.msra.mxu1 %v7911_v21 }
 0x16f   : > { %v3984_v55 = vor.u32 %v11034_v51, %v3981_v37  ;;  %v3986_v34 = vrot.slane %v3981_v37, 4  ;;  %v3993_v35 = vor.u32 %v11035_v47, %v3990_v14  ;;  %v10042_v14 = vadd.f32 %v9486_v18, %v9480_v46  ;;  %v7919_v46 = vld [vmem:[%s10788_s3 + $0x220] sm:$0xff]   ;;  %v10055_v18 = vpop.f32.mrb[28].mxu0  ;;  %7546 = vmatprep.subr.bf16.mxu1 %v7916_v3 }
 0x170   : > { %v5063_v27 = vsel %vm8138_vm2, %v5055_v29, %v5062_v63  ;;  %11036 = vst [vmem:[#allocation58_spill] sm:$0xff] %v10032_v13  ;;  %11038 = vst [vmem:[#allocation60_spill] sm:$0xff] %v10046_v57  ;;  %v5054_v45 = vsel %vm8138_vm2, %v6541_v41, %v5053_v16  ;;  %v6434_v5 = vcombine.low %v9517_v17, %v9529_v40  ;;  %v5070_v44 = vshrl.u32 %v4984_v48, 16  ;;  %v10059_v29 = vpop.f32.mrb[29].mxu0  ;;  %v10080_v13 = vld [vmem:[#allocation2 + $0xe4] sm:$0xf] }
 0x171   : > { %v3985_v37 = vsel %vm8138_vm2, %v6417_v36, %v3984_v55  ;;  %v3994_v28 = vsel %vm8138_vm2, %v3986_v34, %v3993_v35  ;;  %11037 = vst [vmem:[#allocation59_spill] sm:$0xff] %v10042_v14  ;;  %v6549_v35 = vcombine.low %v5054_v45, %v5063_v27  ;;  %v5073_v59 = vshll.u32 %v4984_v48, 16  ;;  %v4983_v36 = vld [vmem:[#allocation2 + $0xd0] sm:$0x8]  ;;  %v10064_v50 = vpop.f32.mrb[30].mxu0  ;;  %v11066_v14 = vld [vmem:[#allocation22_spill] sm:$0xff] }
 0x172   : > { %v6425_v2 = vcombine.low %v3985_v37, %v3994_v28  ;;  %v5079_v24 = vshrl.u32 %v10034_v25, 16  ;;  %v5072_v21 = vrot.slane %v5070_v44, 7  ;;  %v10061_v54 = vrot.slane %v5070_v44, 4  ;;  %v10072_v41 = vpop.f32.mrb[31].mxu0  ;;  %7547 = vmatpush3.bf16.msra.mxu1 %v7916_v3 }
 0x173   : > { %v6558_v31 = vcombine.low %v4984_v48, %v10034_v25  ;;  %v3996_v11 = vshrl.u32 %v3838_v0, 16  ;;  %v10066_v63 = vrot.slane %v5073_v59, 5  ;;  %v11039_v55 = vshrl.u32 %v9517_v17, 16  ;;  %7548 = vmatprep.subr.bf16.mxu1 %v7919_v46 }
 0x174   : > { %4522 = vmatmul.mubr.bf16.gmra.mrb[104].mxu0 %v6425_v2  ;;  %v5081_v16 = vrot.slane %v5079_v24, 7  ;;  %v10068_v51 = vrot.slane %v5079_v24, 4  ;;  %v11040_v37 = vshrl.u32 %v9529_v40, 16  ;;  %v5065_v48 = vshrl.u32 %v4983_v36, 16  ;;  %5647 = vmatmul.mubr.bf16.gmra.mrb[72].mxu1 %v6549_v35  ;;  %v7937_v35 = vld [vmem:[#allocation2 + $0x88] sm:$0xf] }
 0x175   : > { %v4003_v47 = vrot.slane %v11039_v55, 7  ;;  %4529 = vmatprep.mubr.bf16.mxu0 %v6434_v5  ;;  %v6418_v27 = vrot.slane %v3996_v11, 11  ;;  %v5075_v0 = vor.u32 %v5073_v59, %v5072_v21  ;;  %v11041_v2 = vshll.u32 %v9517_v17, 16  ;;  %v7922_v5 = vld [vmem:[%s10788_s3 + $0x228] sm:$0xff]   ;;  %5654 = vmatprep.mubr.bf16.mxu1 %v6558_v31  ;;  %v4986_v31 = vld [vmem:[#allocation2 + $0xe0] sm:$0x8] }
 0x176   : > { %v4012_v28 = vrot.slane %v11040_v37, 7  ;;  %v5077_v34 = vrot.slane %v5072_v21, 4  ;;  %v11042_v24 = vshll.u32 %v10034_v25, 16  ;;  %v11043_v11 = vshll.u32 %v9529_v40, 16  ;;  %v10095_v21 = vld [vmem:[#allocation2 + $0xe8] sm:$0xf]  ;;  %7549 = vmatpush3.bf16.msra.mxu1 %v7919_v46 }
 0x177   : > { %v4006_v45 = vor.u32 %v11041_v2, %v4003_v47  ;;  %v4008_v44 = vrot.slane %v4003_v47, 4  ;;  %v6542_v59 = vrot.slane %v5065_v48, 11  ;;  %v10089_v17 = vadd.f32 %v9515_v7, %v9505_v39  ;;  %7550 = vmatprep.subr.bf16.mxu1 %v7922_v5  ;;  %v7925_v37 = vld [vmem:[%s10788_s3 + $0x230] sm:$0xff]  }
 0x178   : > { %v5084_v57 = vor.u32 %v11042_v24, %v5081_v16  ;;  %v4015_v36 = vor.u32 %v11043_v11, %v4012_v28  ;;  %v10093_v3 = vadd.f32 %v9527_v23, %v9513_v19  ;;  %v10103_v40 = vadd.f32 %v9546_v32, %v9538_v61  ;;  %v7936_v23 = vld [vmem:[#allocation2 + $0x84] sm:$0xf]  ;;  %v10114_v32 = vpop.f32.mrb[32].mxu0 }
 0x179   : > { %v4007_v16 = vsel %vm8138_vm2, %v6418_v27, %v4006_v45  ;;  %v10107_v39 = vadd.f32 %v9548_v62, %v9540_v22  ;;  %v5076_v7 = vsel %vm8138_vm2, %v6542_v59, %v5075_v0  ;;  %v6395_v47 = vcombine.low %v7936_v23, %v7937_v35  ;;  %v10121_v28 = vpop.f32.mrb[33].mxu0  ;;  %v10137_v23 = vld [vmem:[#allocation2 + $0xf4] sm:$0xf] }
 0x17a   : > { %v5085_v55 = vsel %vm8138_vm2, %v5077_v34, %v5084_v57  ;;  %v4016_v19 = vsel %vm8138_vm2, %v4008_v44, %v4015_v36  ;;  %v5092_v57 = vshrl.u32 %v10080_v13, 16  ;;  %v3336_v34 = vld [vmem:[#allocation2 + $0x80] sm:$0x8]  ;;  %v5095_v62 = vshll.u32 %v10080_v13, 16  ;;  %v10128_v45 = vpop.f32.mrb[34].mxu0  ;;  %7551 = vmatpush3.bf16.msra.mxu1 %v7922_v5 }
 0x17b   : > { %11044 = vst [vmem:[#allocation61_spill] sm:$0xff] %v10107_v39  ;;  %v6426_v61 = vcombine.low %v4007_v16, %v4016_v19  ;;  %v6550_v27 = vcombine.low %v5076_v7, %v5085_v55  ;;  %v5101_v22 = vshrl.u32 %v10095_v21, 16  ;;  %v10880_v0 = vshll.u32 %v10095_v21, 16  ;;  %11045 = vst [vmem:[#allocation62_spill] sm:$0xff] %v10128_v45  ;;  %v10134_v59 = vpop.f32.mrb[35].mxu0  ;;  %7552 = vmatprep.subr.bf16.mxu1 %v7925_v37  ;;  %v11049_v5 = vld [vmem:[#allocation3_spill] sm:$0xff] }
 0x17c   : > { %v5094_v48 = vrot.slane %v5092_v57, 7  ;;  %v10124_v46 = vrot.slane %v5092_v57, 4  ;;  %v6559_v2 = vcombine.low %v10080_v13, %v10095_v21  ;;  %v10130_v24 = vrot.slane %v5095_v62, 5  ;;  %11046 = vst [vmem:[#allocation63_spill] sm:$0xff] %v10134_v59 }
 0x17d   : > { %4530 = vmatmul.mubr.bf16.gmra.mrb[108].mxu0 %v6426_v61  ;;  %v5103_v44 = vrot.slane %v5101_v22, 7  ;;  %v10132_v11 = vrot.slane %v5101_v22, 4  ;;  %v3361_v36 = vshrl.u32 %v3336_v34, 16  ;;  %v3373_v16 = vrot.slane %v9474_v8, 4  ;;  %v7928_v8 = vld [vmem:[%s10788_s3 + $0x238] sm:$0xff]   ;;  %v11050_v22 = vld [vmem:[#allocation11_spill] sm:$0xff]  ;;  %5655 = vmatmul.mubr.bf16.gmra.mrb[76].mxu1 %v6550_v27 }
 0x17e   : > { %4811 = vmatprep.mubr.bf16.mxu0 %v6395_v47  ;;  %v5087_v55 = vshrl.u32 %v4986_v31, 16  ;;  %v5097_v19 = vor.u32 %v5095_v62, %v5094_v48  ;;  %v5099_v7 = vrot.slane %v5094_v48, 4  ;;  %v10143_v57 = vadd.f32 %v9631_v15, %v9620_v43  ;;  %v10149_v47 = vld [vmem:[#allocation2 + $0xf8] sm:$0xf]  ;;  %v11053_v31 = vld [vmem:[#allocation7_spill] sm:$0xff]  ;;  %5662 = vmatprep.mubr.bf16.mxu1 %v6559_v2 }
 0x17f   : > { %v6379_v13 = vrot.slane %v3361_v36, 11  ;;  %v5106_v35 = vor.u32 %v10880_v0, %v5103_v44  ;;  %v10147_v34 = vadd.f32 %v9582_v60, %v9575_v10  ;;  %v3381_v61 = vsel %vm8138_vm2, %v3373_v16, %v11049_v5  ;;  %v11052_v15 = vld [vmem:[#allocation10_spill] sm:$0xff]  ;;  %v11055_v60 = vld [vmem:[#allocation4_spill] sm:$0xff]  ;;  %v7938_v36 = vld [vmem:[#allocation2 + $0x94] sm:$0xf]  ;;  %7553 = vmatpush3.bf16.msra.mxu1 %v7925_v37 }
 0x180   : > { %11047 = vst [vmem:[#allocation64_spill] sm:$0xff] %v10143_v57  ;;  %v6543_v62 = vrot.slane %v5087_v55, 11  ;;  %v10159_v43 = vadd.f32 %v11050_v22, %v9635_v26  ;;  %v10163_v10 = vadd.f32 %v11053_v31, %v11052_v15  ;;  %v7939_v0 = vld [vmem:[#allocation2 + $0x98] sm:$0xf]  ;;  %v5114_v55 = vshrl.u32 %v10137_v23, 16  ;;  %7554 = vmatprep.subr.bf16.mxu1 %v7928_v8 }
 0x181   : > { %11048 = vst [vmem:[#allocation65_spill] sm:$0xff] %v10147_v34  ;;  %v3372_v48 = vsel %vm8138_vm2, %v6379_v13, %v11055_v60  ;;  %v5107_v44 = vsel %vm8138_vm2, %v5099_v7, %v5106_v35  ;;  %v6396_v16 = vcombine.low %v7938_v36, %v7939_v0  ;;  %v3339_v5 = vld [vmem:[#allocation2 + $0x90] sm:$0x8]  ;;  %v5117_v27 = vshll.u32 %v10137_v23, 16  ;;  %v10175_v13 = vpop.f32.mrb[36].mxu0 }
 0x182   : > { %11051 = vst [vmem:[#allocation3_spill] sm:$0xff] %v10159_v43  ;;  %11054 = vst [vmem:[#allocation11_spill] sm:$0xff] %v10163_v10  ;;  %v6387_v26 = vcombine.low %v3372_v48, %v3381_v61  ;;  %v5098_v22 = vsel %vm8138_vm2, %v6543_v62, %v5097_v19  ;;  %v5123_v15 = vshrl.u32 %v10149_v47, 16  ;;  %v4989_v31 = vld [vmem:[#allocation2 + $0xf0] sm:$0x8]  ;;  %v5116_v35 = vrot.slane %v5114_v55, 7 }
 0x183   : > { %11056 = vst [vmem:[#allocation10_spill] sm:$0xff] %v10175_v13  ;;  %v6551_v7 = vcombine.low %v5098_v22, %v5107_v44  ;;  %v10178_v60 = vrot.slane %v5114_v55, 4  ;;  %v10180_v2 = vpop.f32.mrb[37].mxu0  ;;  %v10182_v48 = vrot.slane %v5117_v27, 5  ;;  %v6560_v62 = vcombine.low %v10137_v23, %v10149_v47  ;;  %v11059_v36 = vld [vmem:[#allocation5_spill] sm:$0xff]  ;;  %v11061_v55 = vld [vmem:[#allocation8_spill] sm:$0xff]  ;;  %7555 = vmatpush3.bf16.msra.mxu1 %v7928_v8 }
 0x184   : > { %11057 = vst [vmem:[#allocation7_spill] sm:$0xff] %v10180_v2  ;;  %v5125_v61 = vrot.slane %v5123_v15, 7  ;;  %v10184_v19 = vrot.slane %v5123_v15, 4  ;;  %v10188_v37 = vpop.f32.mrb[38].mxu0  ;;  %v3383_v44 = vshrl.u32 %v3339_v5, 16  ;;  %v11060_v22 = vshrl.u32 %v11059_v36, 16 }
 0x185   : > { %11058 = vst [vmem:[#allocation4_spill] sm:$0xff] %v10188_v37  ;;  %4812 = vmatmul.mubr.bf16.vlgmr.msra.gmra.mrb[112].mxu0 %v6387_v26  ;;  %v11062_v10 = vshrl.u32 %v11061_v55, 16  ;;  %v5109_v34 = vshrl.u32 %v4989_v31, 16  ;;  %v10194_v57 = vpop.f32.mrb[39].mxu0  ;;  %v5119_v2 = vor.u32 %v5117_v27, %v5116_v35  ;;  %v5121_v15 = vrot.slane %v5116_v35, 4  ;;  %v11065_v23 = vld [vmem:[#allocation21_spill] sm:$0xff]  ;;  %5663 = vmatmul.mubr.bf16.gmra.mrb[80].mxu1 %v6551_v7 }
 0x186   : > { %v3390_v0 = vrot.slane %v11060_v22, 7  ;;  %11063 = vst [vmem:[#allocation5_spill] sm:$0xff] %v10194_v57  ;;  %4819 = vmatprep.mubr.bf16.mxu0 %v6396_v16  ;;  %v11064_v13 = vshll.u32 %v10149_v47, 16  ;;  %v10200_v37 = vadd.f32 %v11066_v14, %v11065_v23  ;;  %v6380_v5 = vrot.slane %v3383_v44, 11  ;;  %v4993_v57 = vld [vmem:[#allocation2 + $0x104] sm:$0xf]  ;;  %5670 = vmatprep.mubr.bf16.mxu1 %v6560_v62 }
 0x187   : > { %v3399_v43 = vrot.slane %v11062_v10, 7  ;;  %v11068_v26 = vshll.u32 %v11059_v36, 16  ;;  %v11069_v10 = vshll.u32 %v11061_v55, 16  ;;  %v6544_v16 = vrot.slane %v5109_v34, 11  ;;  %v11070_v35 = vld [vmem:[#allocation17_spill] sm:$0xff]  ;;  %v11074_v23 = vld [vmem:[#allocation27_spill] sm:$0xff] }
 0x188   : > { %v5128_v39 = vor.u32 %v11064_v13, %v5125_v61  ;;  %11067 = vst [vmem:[#allocation8_spill] sm:$0xff] %v10200_v37  ;;  %v3395_v59 = vrot.slane %v3390_v0, 4  ;;  %v11071_v13 = vld [vmem:[#allocation20_spill] sm:$0xff]  ;;  %v11073_v14 = vld [vmem:[#allocation25_spill] sm:$0xff]  ;;  %v7940_v55 = vld [vmem:[#allocation2 + $0xa4] sm:$0xf] }
 0x189   : > { %v3393_v22 = vor.u32 %v11068_v26, %v3390_v0  ;;  %v3402_v31 = vor.u32 %v11069_v10, %v3399_v43  ;;  %v10210_v61 = vadd.f32 %v11071_v13, %v11070_v35  ;;  %v10214_v8 = vadd.f32 %v11074_v23, %v11073_v14  ;;  %v10216_v44 = vld [vmem:[#allocation2 + $0x108] sm:$0xf]  ;;  %v11076_v43 = vld [vmem:[#allocation15_spill] sm:$0xff] }
 0x18a   : > { %v5129_v27 = vsel %vm8138_vm2, %v5121_v15, %v5128_v39  ;;  %v11077_v36 = vld [vmem:[#allocation12_spill] sm:$0xff]  ;;  %v3342_v10 = vld [vmem:[#allocation2 + $0xa0] sm:$0x8]  ;;  %v5120_v13 = vsel %vm8138_vm2, %v6544_v16, %v5119_v2  ;;  %v5136_v7 = vshrl.u32 %v4993_v57, 16  ;;  %v5139_v14 = vshll.u32 %v4993_v57, 16  ;;  %v11082_v2 = vld [vmem:[#allocation6_spill] sm:$0xff] }
 0x18b   : > { %11072 = vst [vmem:[#allocation21_spill] sm:$0xff] %v10210_v61  ;;  %11075 = vst [vmem:[#allocation22_spill] sm:$0xff] %v10214_v8  ;;  %v3394_v0 = vsel %vm8138_vm2, %v6380_v5, %v3393_v22  ;;  %v3403_v34 = vsel %vm8138_vm2, %v3395_v59, %v3402_v31  ;;  %v10224_v39 = vadd.f32 %v11077_v36, %v11076_v43  ;;  %v7941_v15 = vld [vmem:[#allocation2 + $0xa8] sm:$0xf]  ;;  %v5145_v5 = vshrl.u32 %v10216_v44, 16 }
 0x18c   : > { %v6397_v26 = vcombine.low %v7940_v55, %v7941_v15  ;;  %v6388_v35 = vcombine.low %v3394_v0, %v3403_v34  ;;  %v6552_v23 = vcombine.low %v5120_v13, %v5129_v27  ;;  %v6561_v22 = vcombine.low %v4993_v57, %v10216_v44  ;;  %v4992_v31 = vld [vmem:[#allocation2 + $0x100] sm:$0x8]  ;;  %v11084_v15 = vld [vmem:[#allocation9_spill] sm:$0xff] }
 0x18d   : > { %11078 = vst [vmem:[#allocation17_spill] sm:$0xff] %v10224_v39  ;;  %v5138_v43 = vrot.slane %v5136_v7, 7  ;;  %v10231_v36 = vrot.slane %v5136_v7, 4  ;;  %v10233_v55 = vrot.slane %v5139_v14, 5  ;;  %v3405_v62 = vshrl.u32 %v3342_v10, 16  ;;  %v10241_v7 = vpop.f32.mrb[40].mxu0 }
 0x18e   : > { %4820 = vmatmul.mubr.bf16.gmra.mrb[116].mxu0 %v6388_v35  ;;  %v5147_v0 = vrot.slane %v5145_v5, 7  ;;  %v10235_v34 = vrot.slane %v5145_v5, 4  ;;  %v11083_v16 = vshrl.u32 %v11082_v2, 16  ;;  %v11085_v13 = vshrl.u32 %v11084_v15, 16  ;;  %11086 = vst [vmem:[#allocation15_spill] sm:$0xff] %v10241_v7  ;;  %v10249_v45 = vpop.f32.mrb[41].mxu0  ;;  %5671 = vmatmul.mubr.bf16.gmra.mrb[84].mxu1 %v6552_v23 }
 0x18f   : > { %11079 = vst [vmem:[#allocation20_spill] sm:$0xff] %v10231_v36  ;;  %11080 = vst [vmem:[#allocation25_spill] sm:$0xff] %v10233_v55  ;;  %4827 = vmatprep.mubr.bf16.mxu0 %v6397_v26  ;;  %v6381_v59 = vrot.slane %v3405_v62, 11  ;;  %v5131_v57 = vshrl.u32 %v4992_v31, 16  ;;  %v5141_v8 = vor.u32 %v5139_v14, %v5138_v43  ;;  %v5143_v61 = vrot.slane %v5138_v43, 4  ;;  %v10265_v62 = vpop.f32.mrb[42].mxu0  ;;  %5678 = vmatprep.mubr.bf16.mxu1 %v6561_v22 }
 0x190   : > { %11081 = vst [vmem:[#allocation27_spill] sm:$0xff] %v10235_v34  ;;  %v3412_v27 = vrot.slane %v11083_v16, 7  ;;  %v3421_v39 = vrot.slane %v11085_v13, 7  ;;  %v11087_v37 = vshll.u32 %v11082_v2, 16  ;;  %v11088_v5 = vshll.u32 %v11084_v15, 16  ;;  %11090 = vst [vmem:[#allocation12_spill] sm:$0xff] %v10249_v45 }
 0x191   : > { %v11089_v55 = vshll.u32 %v10216_v44, 16  ;;  %v4996_v36 = vld [vmem:[#allocation2 + $0x114] sm:$0xf]  ;;  %v6545_v26 = vrot.slane %v5131_v57, 11  ;;  %v10253_v14 = vadd.f32 %v9808_v42, %v9804_v33  ;;  %v10257_v31 = vadd.f32 %v9746_v12, %v9735_v49  ;;  %11095 = vst [vmem:[#allocation66_spill] sm:$0xff] %v10265_v62  ;;  %v11097_v12 = vld [vmem:[#allocation31_spill] sm:$0xff] }
 0x192   : > { %v3415_v10 = vor.u32 %v11087_v37, %v3412_v27  ;;  %v3417_v35 = vrot.slane %v3412_v27, 4  ;;  %v3424_v34 = vor.u32 %v11088_v5, %v3421_v39  ;;  %v11093_v37 = vld [vmem:[#allocation34_spill] sm:$0xff]  ;;  %v11096_v49 = vld [vmem:[#allocation29_spill] sm:$0xff]  ;;  %v10277_v2 = vpop.f32.mrb[43].mxu0  ;;  %v5158_v57 = vshrl.u32 %v4996_v36, 16 }
 0x193   : > { %v5150_v16 = vor.u32 %v11089_v55, %v5147_v0  ;;  %11091 = vst [vmem:[#allocation6_spill] sm:$0xff] %v10253_v14  ;;  %11092 = vst [vmem:[#allocation9_spill] sm:$0xff] %v10257_v31  ;;  %v10261_v43 = vadd.f32 %v11093_v37, %v9818_v38  ;;  %v10263_v39 = vld [vmem:[#allocation2 + $0x118] sm:$0xf]  ;;  %v10275_v0 = vadd.f32 %v11097_v12, %v11096_v49  ;;  %v3345_v38 = vld [vmem:[#allocation2 + $0xb0] sm:$0x8] }
 0x194   : > { %v3416_v55 = vsel %vm8138_vm2, %v6381_v59, %v3415_v10  ;;  %v3425_v33 = vsel %vm8138_vm2, %v3417_v35, %v3424_v34  ;;  %11099 = vst [vmem:[#allocation31_spill] sm:$0xff] %v10277_v2  ;;  %v5142_v23 = vsel %vm8138_vm2, %v6545_v26, %v5141_v8  ;;  %v7942_v15 = vld [vmem:[#allocation2 + $0xb4] sm:$0xf]  ;;  %v7943_v59 = vld [vmem:[#allocation2 + $0xb8] sm:$0xf]  ;;  %v5161_v10 = vshll.u32 %v4996_v36, 16 }
 0x195   : > { %11094 = vst [vmem:[#allocation34_spill] sm:$0xff] %v10261_v43  ;;  %v5151_v42 = vsel %vm8138_vm2, %v5143_v61, %v5150_v16  ;;  %11098 = vst [vmem:[#allocation29_spill] sm:$0xff] %v10275_v0  ;;  %v6389_v27 = vcombine.low %v3416_v55, %v3425_v33  ;;  %v6398_v13 = vcombine.low %v7942_v15, %v7943_v59  ;;  %v5167_v61 = vshrl.u32 %v10263_v39, 16  ;;  %v4995_v5 = vld [vmem:[#allocation2 + $0x110] sm:$0x8]  ;;  %v11100_v49 = vld [vmem:[#allocation18_spill] sm:$0xff] }
 0x196   : > { %v6553_v34 = vcombine.low %v5142_v23, %v5151_v42  ;;  %v5160_v16 = vrot.slane %v5158_v57, 7  ;;  %v10283_v37 = vrot.slane %v5158_v57, 4  ;;  %v6562_v22 = vcombine.low %v4996_v36, %v10263_v39  ;;  %v11102_v15 = vld [vmem:[#allocation19_spill] sm:$0xff]  ;;  %v10294_v31 = vpop.f32.mrb[44].mxu0  ;;  %v11127_v45 = vld [vmem:[#allocation14_spill] sm:$0xff] }
 0x197   : > { %v3427_v55 = vshrl.u32 %v3345_v38, 16  ;;  %4828 = vmatmul.mubr.bf16.gmra.mrb[120].mxu0 %v6389_v27  ;;  %v5169_v33 = vrot.slane %v5167_v61, 7  ;;  %v10286_v8 = vrot.slane %v5161_v10, 5  ;;  %v10288_v26 = vrot.slane %v5167_v61, 4  ;;  %11104 = vst [vmem:[#allocation18_spill] sm:$0xff] %v10294_v31  ;;  %v10300_v62 = vpop.f32.mrb[45].mxu0 }
 0x198   : > { %v11101_v42 = vshrl.u32 %v11100_v49, 16  ;;  %4835 = vmatprep.mubr.bf16.mxu0 %v6398_v13  ;;  %v11103_v59 = vshrl.u32 %v11102_v15, 16  ;;  %v5153_v0 = vshrl.u32 %v4995_v5, 16  ;;  %v5163_v57 = vor.u32 %v5161_v10, %v5160_v16  ;;  %11107 = vst [vmem:[#allocation19_spill] sm:$0xff] %v10300_v62  ;;  %v11110_v10 = vld [vmem:[#allocation35_spill] sm:$0xff]  ;;  %v11111_v31 = vld [vmem:[#allocation36_spill] sm:$0xff]  ;;  %5679 = vmatmul.mubr.bf16.gmra.mrb[88].mxu1 %v6553_v34 }
 0x199   : > { %v6382_v23 = vrot.slane %v3427_v55, 11  ;;  %v11105_v36 = vshll.u32 %v11100_v49, 16  ;;  %v5165_v43 = vrot.slane %v5160_v16, 4  ;;  %v11106_v61 = vshll.u32 %v10263_v39, 16  ;;  %v5174_v49 = vld [vmem:[#allocation2 + $0xac] sm:$0x1]  ;;  %5686 = vmatprep.mubr.bf16.mxu1 %v6562_v22 }
 0x19a   : > { %v3434_v12 = vrot.slane %v11101_v42, 7  ;;  %v3443_v35 = vrot.slane %v11103_v59, 7  ;;  %v11108_v13 = vshll.u32 %v11102_v15, 16  ;;  %v6546_v42 = vrot.slane %v5153_v0, 11  ;;  %v11109_v59 = vld [vmem:[#allocation43_spill] sm:$0xff]  ;;  %v11115_v0 = vld [vmem:[#allocation46_spill] sm:$0xff] }
 0x19b   : > { %v5172_v2 = vor.u32 %v11106_v61, %v5169_v33  ;;  %v10306_v5 = vadd.f32 %v11109_v59, %v9898_v4  ;;  %v10310_v14 = vadd.f32 %v11111_v31, %v11110_v10  ;;  %v11117_v4 = vld [vmem:[#allocation38_spill] sm:$0xff]  ;;  %v3348_v31 = vld [vmem:[#allocation2 + $0xc0] sm:$0x8]  ;;  %v11121_v59 = vld [vmem:[#allocation40_spill] sm:$0xff] }
 0x19c   : > { %v3437_v38 = vor.u32 %v11105_v36, %v3434_v12  ;;  %v3439_v27 = vrot.slane %v3434_v12, 4  ;;  %v3446_v55 = vor.u32 %v11108_v13, %v3443_v35  ;;  %v10312_v12 = vpop.f32.mrb[46].mxu0  ;;  %v11114_v35 = vld [vmem:[#allocation44_spill] sm:$0xff]  ;;  %v11118_v36 = vld [vmem:[#allocation39_spill] sm:$0xff]  ;;  %v11122_v10 = vld [vmem:[#allocation41_spill] sm:$0xff]  ;;  %v3449_v62 = vshrl.u32 %v3348_v31, 16 }
 0x19d   : > { %11112 = vst [vmem:[#allocation43_spill] sm:$0xff] %v10310_v14  ;;  %11113 = vst [vmem:[#allocation35_spill] sm:$0xff] %v10312_v12  ;;  %v5173_v33 = vsel %vm8138_vm2, %v5165_v43, %v5172_v2  ;;  %v10320_v15 = vadd.f32 %v11115_v0, %v11114_v35  ;;  %v10324_v61 = vadd.f32 %v11118_v36, %v11117_v4  ;;  %v10326_v13 = vpop.f32.mrb[47].mxu0  ;;  %v7945_v43 = vld [vmem:[#allocation2 + $0xc8] sm:$0xf]  ;;  %v11123_v36 = vld [vmem:[#allocation37_spill] sm:$0xff] }
 0x19e   : > { %v3438_v16 = vsel %vm8138_vm2, %v6382_v23, %v3437_v38  ;;  %11120 = vst [vmem:[#allocation46_spill] sm:$0xff] %v10326_v13  ;;  %v3447_v34 = vsel %vm8138_vm2, %v3439_v27, %v3446_v55  ;;  %v5164_v23 = vsel %vm8138_vm2, %v6546_v42, %v5163_v57  ;;  %v7944_v38 = vld [vmem:[#allocation2 + $0xc4] sm:$0xf]  ;;  %v5184_v35 = vor.u32 %v11122_v10, %v11121_v59  ;;  %v5175_v0 = vld [vmem:[#allocation2 + $0xbc] sm:$0x1]  ;;  %v10349_v10 = vpop.f32.mrb[48].mxu0 }
 0x19f   : > { %11116 = vst [vmem:[#allocation36_spill] sm:$0xff] %v10320_v15  ;;  %11119 = vst [vmem:[#allocation44_spill] sm:$0xff] %v10324_v61  ;;  %v6399_v2 = vcombine.low %v7944_v38, %v7945_v43  ;;  %v6390_v12 = vcombine.low %v3438_v16, %v3447_v34  ;;  %v6554_v4 = vcombine.low %v5164_v23, %v5173_v33  ;;  %v11124_v61 = vshll.u32 %v11123_v36, 16  ;;  %v11125_v15 = vld [vmem:[#allocation13_spill] sm:$0xff]  ;;  %v11129_v38 = vld [vmem:[#allocation42_spill] sm:$0xff] }
 0x1a0   : > { %v5192_v13 = vshll.u32 %v5174_v49, 16  ;;  %v5185_v22 = vrot.slane %v5184_v35, 4  ;;  %v11126_v27 = vshrl.u32 %v11125_v15, 16  ;;  %v11128_v57 = vshrl.u32 %v11127_v45, 16  ;;  %v11190_v58 = vld [vmem:[#allocation22_spill] sm:$0xff] }
 0x1a1   : > { %v5186_v14 = vrot.slane %v11124_v61, 5  ;;  %4836 = vmatmul.mubr.bf16.gmra.mrb[124].mxu0 %v6390_v12  ;;  %v5201_v33 = vsel %vm8584_vm7, %v9960_v9, %v9946_v20  ;;  %v5206_v34 = vshll.u32 %v5175_v0, 16  ;;  %v6383_v61 = vrot.slane %v3449_v62, 11  ;;  %v10357_v9 = vpop.f32.mrb[49].mxu0  ;;  %v11133_v62 = vld [vmem:[#allocation45_spill] sm:$0xff]  ;;  %v11135_v0 = vld [vmem:[#allocation51_spill] sm:$0xff]  ;;  %5687 = vmatmul.mubr.bf16.gmra.mrb[92].mxu1 %v6554_v4 }
 0x1a2   : > { %v3456_v55 = vrot.slane %v11126_v27, 7  ;;  %v3465_v42 = vrot.slane %v11128_v57, 7  ;;  %v5194_v7 = vrot.slane %v5192_v13, 5  ;;  %4843 = vmatprep.mubr.bf16.mxu0 %v6399_v2  ;;  %v11131_v31 = vshll.u32 %v11125_v15, 16  ;;  %v11134_v15 = vld [vmem:[#allocation47_spill] sm:$0xff]  ;;  %v11137_v27 = vld [vmem:[#allocation49_spill] sm:$0xff] }
 0x1a3   : > { %v5189_v43 = vor.u32 %v11129_v38, %v5186_v14  ;;  %v5187_v49 = vsel %vm8584_vm7, %v5185_v22, %v5186_v14  ;;  %v11132_v13 = vshll.u32 %v11127_v45, 16  ;;  %v5208_v36 = vrot.slane %v5206_v34, 5  ;;  %v11136_v45 = vld [vmem:[#allocation48_spill] sm:$0xff]  ;;  %v11140_v34 = vld [vmem:[#allocation50_spill] sm:$0xff] }
 0x1a4   : > { %v3459_v23 = vor.u32 %v11131_v31, %v3456_v55  ;;  %v3461_v59 = vrot.slane %v3456_v55, 4  ;;  %v10355_v20 = vadd.f32 %v9972_v56, %v9966_v1  ;;  %v10363_v2 = vadd.f32 %v11134_v15, %v11133_v62  ;;  %v5176_v57 = vld [vmem:[#allocation2 + $0xcc] sm:$0x1]  ;;  %v3351_v56 = vld [vmem:[#allocation2 + $0xd0] sm:$0x8]  ;;  %v10373_v1 = vpop.f32.mrb[32].mxu1 }
 0x1a5   : > { %v5190_v12 = vrot.slane %v5189_v43, 4  ;;  %v3468_v35 = vor.u32 %v11132_v13, %v3465_v42  ;;  %v10367_v22 = vadd.f32 %v11135_v0, %v9980_v52  ;;  %v10371_v55 = vadd.f32 %v11137_v27, %v11136_v45  ;;  %11139 = vst [vmem:[#allocation39_spill] sm:$0xff] %v10373_v1  ;;  %v10375_v42 = vpop.f32.mrb[50].mxu0  ;;  %v7947_v31 = vld [vmem:[#allocation2 + $0xd8] sm:$0xf]  ;;  %v10384_v13 = vpop.f32.mrb[33].mxu1 }
 0x1a6   : > { %v3460_v14 = vsel %vm8138_vm2, %v6383_v61, %v3459_v23  ;;  %v5209_v52 = vsel %vm8584_vm7, %v11140_v34, %v5208_v36  ;;  %v7946_v61 = vld [vmem:[#allocation2 + $0xd4] sm:$0xf]  ;;  %11141 = vst [vmem:[#allocation40_spill] sm:$0xff] %v10384_v13  ;;  %v10386_v62 = vpop.f32.mrb[51].mxu0  ;;  %v11142_v45 = vld [vmem:[#allocation54_spill] sm:$0xff]  ;;  %v11143_v27 = vld [vmem:[#allocation55_spill] sm:$0xff] }
 0x1a7   : > { %11138 = vst [vmem:[#allocation38_spill] sm:$0xff] %v10371_v55  ;;  %v5195_v38 = vsel %vm8584_vm7, %v5190_v12, %v5194_v7  ;;  %v3469_v43 = vsel %vm8138_vm2, %v3461_v59, %v3468_v35  ;;  %v6400_v23 = vcombine.low %v7946_v61, %v7947_v31  ;;  %v6564_v4 = vcombine.low %v5201_v33, %v5209_v52  ;;  %v10390_v12 = vpop.f32.mrb[34].mxu1  ;;  %v11146_v34 = vld [vmem:[#allocation16_spill] sm:$0xff] }
 0x1a8   : > { %v6563_v15 = vcombine.low %v5187_v49, %v5195_v38  ;;  %v6391_v0 = vcombine.low %v3460_v14, %v3469_v43  ;;  %v5212_v7 = vor.u32 %v11143_v27, %v11142_v45  ;;  %11144 = vst [vmem:[#allocation41_spill] sm:$0xff] %v10390_v12  ;;  %v11145_v59 = vshll.u32 %v9964_v30, 16  ;;  %v10396_v31 = vpop.f32.mrb[35].mxu1  ;;  %v11148_v49 = vld [vmem:[#allocation26_spill] sm:$0xff] }
 0x1a9   : > { %v5220_v1 = vshll.u32 %v5176_v57, 16  ;;  %v3471_v36 = vshrl.u32 %v3351_v56, 16  ;;  %v11147_v55 = vshrl.u32 %v11146_v34, 16  ;;  %v11149_v14 = vshrl.u32 %v11148_v49, 16  ;;  %v5177_v38 = vld [vmem:[#allocation2 + $0xdc] sm:$0x1] }
 0x1aa   : > { %v5214_v35 = vrot.slane %v11145_v59, 5  ;;  %7556 = vmatprep.mubr.bf16.mxu1 %v6563_v15  ;;  %v5213_v13 = vrot.slane %v5212_v7, 4  ;;  %v5226_v43 = vor.u32 %v10066_v63, %v10061_v54  ;;  %v11150_v52 = vshll.u32 %v10034_v25, 16  ;;  %4844 = vmatmul.mubr.bf16.gmra.mrb[128].mxu0 %v6391_v0  ;;  %v11151_v57 = vld [vmem:[#allocation56_spill] sm:$0xff]  ;;  %v10411_v63 = vpop.f32.mrb[52].mxu0 }
 0x1ab   : > { %v3478_v61 = vrot.slane %v11147_v55, 7  ;;  %v3487_v33 = vrot.slane %v11149_v14, 7  ;;  %v5222_v45 = vrot.slane %v5220_v1, 5  ;;  %v6384_v27 = vrot.slane %v3471_v36, 11  ;;  %4851 = vmatprep.mubr.bf16.mxu0 %v6400_v23  ;;  %7557 = vmatmul.mubr.bf16.vlgmr.msra.gmra.mrb[48].mxu1 %v6564_v4  ;;  %v7949_v4 = vld [vmem:[#allocation2 + $0xe8] sm:$0xf] }
 0x1ac   : > { %v5228_v30 = vrot.slane %v11150_v52, 5  ;;  %v5217_v56 = vor.u32 %v11151_v57, %v5214_v35  ;;  %v11152_v55 = vshll.u32 %v11146_v34, 16  ;;  %v5215_v15 = vsel %vm8584_vm7, %v5213_v13, %v5214_v35  ;;  %v10416_v34 = vpop.f32.mrb[53].mxu0  ;;  %v11213_v16 = vld [vmem:[#allocation39_spill] sm:$0xff] }
 0x1ad   : > { %v3483_v7 = vrot.slane %v3478_v61, 4  ;;  %v11153_v14 = vshll.u32 %v11148_v49, 16  ;;  %v5227_v54 = vrot.slane %v5226_v43, 4  ;;  %v5234_v36 = vshll.u32 %v5177_v38, 16  ;;  %v11155_v49 = vld [vmem:[#allocation53_spill] sm:$0xff]  ;;  %v10430_v52 = vpop.f32.mrb[54].mxu0 }
 0x1ae   : > { %v3481_v59 = vor.u32 %v11152_v55, %v3478_v61  ;;  %v5218_v25 = vrot.slane %v5217_v56, 4  ;;  %v5231_v1 = vor.u32 %v10068_v51, %v5228_v30  ;;  %v10424_v35 = vadd.f32 %v10059_v29, %v10055_v18  ;;  %v11154_v61 = vld [vmem:[#allocation52_spill] sm:$0xff]  ;;  %v3354_v56 = vld [vmem:[#allocation2 + $0xe0] sm:$0x8]  ;;  %v11156_v29 = vld [vmem:[#allocation57_spill] sm:$0xff] }
 0x1af   : > { %v3490_v12 = vor.u32 %v11153_v14, %v3487_v33  ;;  %v5229_v13 = vsel %vm8584_vm7, %v5227_v54, %v5228_v30  ;;  %v10428_v33 = vadd.f32 %v11155_v49, %v11154_v61  ;;  %v5178_v43 = vld [vmem:[#allocation2 + $0xec] sm:$0x1]  ;;  %v5236_v57 = vrot.slane %v5234_v36, 5  ;;  %v10434_v30 = vpop.f32.mrb[55].mxu0  ;;  %v11160_v36 = vld [vmem:[#allocation30_spill] sm:$0xff]  ;;  %v10454_v49 = vpop.f32.mrb[36].mxu1 }
 0x1b0   : > { %v3482_v0 = vsel %vm8138_vm2, %v6384_v27, %v3481_v59  ;;  %v5223_v51 = vsel %vm8584_vm7, %v5218_v25, %v5222_v45  ;;  %v10438_v18 = vadd.f32 %v10072_v41, %v10064_v50  ;;  %v10442_v55 = vadd.f32 %v10013_v53, %v11156_v29  ;;  %v7948_v59 = vld [vmem:[#allocation2 + $0xe4] sm:$0xf] }
 0x1b1   : > { %v3491_v23 = vsel %vm8138_vm2, %v3483_v7, %v3490_v12  ;;  %v5232_v12 = vrot.slane %v5231_v1, 4  ;;  %v6565_v27 = vcombine.low %v5215_v15, %v5223_v51  ;;  %v6401_v7 = vcombine.low %v7948_v59, %v7949_v4 }
 0x1b2   : > { %v6392_v38 = vcombine.low %v3482_v0, %v3491_v23  ;;  %v5240_v14 = vor.u32 %v10130_v24, %v10124_v46  ;;  %v11157_v54 = vshll.u32 %v10095_v21, 16  ;;  %v5248_v25 = vshll.u32 %v5178_v43, 16  ;;  %v11158_v0 = vld [vmem:[#allocation28_spill] sm:$0xff]  ;;  %v5179_v24 = vld [vmem:[#allocation2 + $0xfc] sm:$0x1]  ;;  %v10459_v43 = vpop.f32.mrb[37].mxu1 }
 0x1b3   : > { %v5237_v45 = vsel %vm8584_vm7, %v5232_v12, %v5236_v57  ;;  %7560 = vmatprep.mubr.bf16.mxu1 %v6565_v27  ;;  %v3493_v41 = vshrl.u32 %v3354_v56, 16  ;;  %v11159_v1 = vshrl.u32 %v11158_v0, 16  ;;  %v11161_v23 = vshrl.u32 %v11160_v36, 16 }
 0x1b4   : > { %v5242_v15 = vrot.slane %v11157_v54, 5  ;;  %v6566_v50 = vcombine.low %v5229_v13, %v5237_v45  ;;  %4852 = vmatmul.mubr.bf16.gmra.mrb[132].mxu0 %v6392_v38  ;;  %v5241_v51 = vrot.slane %v5240_v14, 4  ;;  %v5250_v46 = vrot.slane %v5248_v25, 5  ;;  %v10465_v38 = vpop.f32.mrb[38].mxu1 }
 0x1b5   : > { %v3500_v53 = vrot.slane %v11159_v1, 7  ;;  %v3509_v61 = vrot.slane %v11161_v23, 7  ;;  %v5254_v21 = vor.u32 %v10182_v48, %v10178_v60  ;;  %4859 = vmatprep.mubr.bf16.mxu0 %v6401_v7  ;;  %v6385_v13 = vrot.slane %v3493_v41, 11  ;;  %v10471_v14 = vpop.f32.mrb[39].mxu1 }
 0x1b6   : > { %v5245_v12 = vor.u32 %v10132_v11, %v5242_v15  ;;  %v11162_v57 = vshll.u32 %v11158_v0, 16  ;;  %v11163_v29 = vshll.u32 %v11160_v36, 16  ;;  %v5243_v11 = vsel %vm8584_vm7, %v5241_v51, %v5242_v15  ;;  %v10479_v0 = vpop.f32.mrb[56].mxu0  ;;  %7561 = vmatmul.mubr.bf16.gmra.mrb[52].mxu1 %v6566_v50  ;;  %v5180_v36 = vld [vmem:[#allocation2 + $0x10c] sm:$0x1] }
 0x1b7   : > { %v3505_v27 = vrot.slane %v3500_v53, 4  ;;  %v5255_v45 = vrot.slane %v5254_v21, 4  ;;  %v11164_v60 = vshll.u32 %v10149_v47, 16  ;;  %v5262_v25 = vshll.u32 %v5179_v24, 16  ;;  %v10486_v23 = vpop.f32.mrb[57].mxu0  ;;  %v11165_v24 = vld [vmem:[#allocation62_spill] sm:$0xff] }
 0x1b8   : > { %v3503_v56 = vor.u32 %v11162_v57, %v3500_v53  ;;  %v3512_v59 = vor.u32 %v11163_v29, %v3509_v61  ;;  %v5246_v4 = vrot.slane %v5245_v12, 4  ;;  %v1967_v41 = vadd.f32 %v10114_v32, %v10089_v17  ;;  %v3357_v32 = vld [vmem:[#allocation2 + $0xf0] sm:$0x8]  ;;  %v10493_v50 = vpop.f32.mrb[58].mxu0 }
 0x1b9   : > { %v5256_v48 = vrot.slane %v11164_v60, 5  ;;  %v5264_v51 = vrot.slane %v5262_v25, 5  ;;  %v1959_v17 = vadd.f32 %v10028_v6, %v10121_v28  ;;  %v1970_v21 = vadd.f32 %v11165_v24, %v10103_v40  ;;  %v11169_v6 = vld [vmem:[#allocation20_spill] sm:$0xff]  ;;  %v11170_v28 = vld [vmem:[#allocation25_spill] sm:$0xff]  ;;  %v569_v40 = vld [vmem:[#allocation2 + $0x11c] sm:$0x1] }
 0x1ba   : > { %v3504_v7 = vsel %vm8138_vm2, %v6385_v13, %v3503_v56  ;;  %v3513_v54 = vsel %vm8138_vm2, %v3505_v27, %v3512_v59  ;;  %v5251_v15 = vsel %vm8584_vm7, %v5246_v4, %v5250_v46  ;;  %v10489_v12 = vadd.f32 %v10093_v3, %v1967_v41  ;;  %v11166_v13 = vld [vmem:[#allocation63_spill] sm:$0xff]  ;;  %v7950_v56 = vld [vmem:[#allocation2 + $0xf4] sm:$0xf]  ;;  %v7951_v27 = vld [vmem:[#allocation2 + $0xf8] sm:$0xf]  ;;  %v10499_v59 = vpop.f32.mrb[59].mxu0 }
 0x1bb   : > { %v6393_v47 = vcombine.low %v3504_v7, %v3513_v54  ;;  %v5257_v1 = vsel %vm8584_vm7, %v5255_v45, %v5256_v48  ;;  %v5259_v53 = vor.u32 %v10184_v19, %v5256_v48  ;;  %v6567_v61 = vcombine.low %v5243_v11, %v5251_v15  ;;  %v11167_v19 = vld [vmem:[#allocation59_spill] sm:$0xff]  ;;  %v11168_v3 = vld [vmem:[#allocation58_spill] sm:$0xff]  ;;  %v11172_v54 = vld [vmem:[#allocation61_spill] sm:$0xff] }
 0x1bc   : > { %v1962_v57 = vadd.f32 %v11167_v19, %v11166_v13  ;;  %v6402_v29 = vcombine.low %v7950_v56, %v7951_v27  ;;  %v10502_v11 = vadd.f32 %v11168_v3, %v1959_v17  ;;  %v5268_v4 = vor.u32 %v11170_v28, %v11169_v6  ;;  %v11173_v41 = vld [vmem:[#allocation60_spill] sm:$0xff]  ;;  %v11174_v24 = vld [vmem:[#allocation27_spill] sm:$0xff]  ;;  %v11177_v27 = vld [vmem:[#allocation33_spill] sm:$0xff] }
 0x1bd   : > { %v5260_v46 = vrot.slane %v5259_v53, 4  ;;  %7564 = vmatprep.mubr.bf16.mxu1 %v6567_v61  ;;  %v11171_v45 = vshll.u32 %v10216_v44, 16  ;;  %v5276_v48 = vshll.u32 %v5180_v36, 16  ;;  %4860 = vmatmul.mubr.bf16.gmra.mrb[136].mxu0 %v6393_v47  ;;  %v10511_v25 = vadd.f32 %v11172_v54, %v1970_v21  ;;  %v11175_v36 = vld [vmem:[#allocation32_spill] sm:$0xff] }
 0x1be   : > { %v10514_v15 = vadd.f32 %v11173_v41, %v1962_v57  ;;  %v3515_v53 = vshrl.u32 %v3357_v32, 16  ;;  %4867 = vmatprep.mubr.bf16.mxu0 %v6402_v29  ;;  %v5269_v17 = vrot.slane %v5268_v4, 4  ;;  %v11176_v56 = vshrl.u32 %v11175_v36, 16  ;;  %v10523_v57 = vpop.f32.mrb[40].mxu1  ;;  %v11184_v41 = vld [vmem:[#allocation10_spill] sm:$0xff] }
 0x1bf   : > { %v5270_v60 = vrot.slane %v11171_v45, 5  ;;  %v5265_v7 = vsel %vm8584_vm7, %v5260_v46, %v5264_v51  ;;  %v5278_v44 = vrot.slane %v5276_v48, 5  ;;  %v11178_v51 = vshrl.u32 %v11177_v27, 16  ;;  %v10533_v4 = vpop.f32.mrb[41].mxu1 }
 0x1c0   : > { %v6568_v61 = vcombine.low %v5257_v1, %v5265_v7  ;;  %v6386_v19 = vrot.slane %v3515_v53, 11  ;;  %v3522_v47 = vrot.slane %v11176_v56, 7  ;;  %v570_v3 = vsel %vm8560_vm4, 0, %v569_v40 }
 0x1c1   : > { %v5273_v13 = vor.u32 %v11174_v24, %v5270_v60  ;;  %v3531_v46 = vrot.slane %v11178_v51, 7  ;;  %v5271_v1 = vsel %vm8584_vm7, %v5269_v17, %v5270_v60  ;;  %571 = vst [vmem:[#allocation2 + $0x11c] sm:$0x1] %v570_v3  ;;  %v5282_v29 = vor.u32 %v10286_v8, %v10283_v37  ;;  %v11183_v60 = vld [vmem:[#allocation8_spill] sm:$0xff]  ;;  %v10542_v37 = vpop.f32.mrb[42].mxu1  ;;  %v11185_v17 = vld [vmem:[#allocation7_spill] sm:$0xff] }
 0x1c2   : > { %v11180_v6 = vshll.u32 %v10263_v39, 16  ;;  %7565 = vmatmul.mubr.bf16.gmra.mrb[56].mxu1 %v6568_v61  ;;  %v11181_v45 = vshll.u32 %v11175_v36, 16  ;;  %v3527_v40 = vrot.slane %v3522_v47, 4  ;;  %v11182_v7 = vshll.u32 %v11177_v27, 16  ;;  %v11186_v24 = vld [vmem:[#allocation64_spill] sm:$0xff]  ;;  %v10550_v36 = vpop.f32.mrb[43].mxu1 }
 0x1c3   : > { %v5274_v32 = vrot.slane %v5273_v13, 4  ;;  %v1983_v53 = vadd.f32 %v11184_v41, %v11183_v60  ;;  %v5283_v8 = vrot.slane %v5282_v29, 4  ;;  %v1975_v13 = vadd.f32 %v11186_v24, %v11185_v17  ;;  %v11187_v51 = vld [vmem:[#allocation21_spill] sm:$0xff]  ;;  %v11196_v60 = vld [vmem:[#allocation6_spill] sm:$0xff]  ;;  %v11199_v17 = vld [vmem:[#allocation31_spill] sm:$0xff] }
 0x1c4   : > { %v10531_v28 = vrot.slane %v11180_v6, 5  ;;  %v3525_v48 = vor.u32 %v11181_v45, %v3522_v47  ;;  %v3534_v54 = vor.u32 %v11182_v7, %v3531_v46  ;;  %v11192_v45 = vld [vmem:[#allocation5_spill] sm:$0xff]  ;;  %v11194_v7 = vld [vmem:[#allocation15_spill] sm:$0xff]  ;;  %v11200_v24 = vld [vmem:[#allocation34_spill] sm:$0xff] }
 0x1c5   : > { %v5279_v39 = vsel %vm8584_vm7, %v5274_v32, %v5278_v44  ;;  %v10557_v46 = vadd.f32 %v11187_v51, %v1983_v53  ;;  %v7094_v44 = vpop.f32.mrb[60].mxu0  ;;  %v11188_v32 = vld [vmem:[#allocation65_spill] sm:$0xff] }
 0x1c6   : > { %v5287_v61 = vor.u32 %v10288_v26, %v10531_v28  ;;  %v6569_v56 = vcombine.low %v5271_v1, %v5279_v39  ;;  %v3526_v47 = vsel %vm8138_vm2, %v6386_v19, %v3525_v48  ;;  %v3535_v27 = vsel %vm8138_vm2, %v3527_v40, %v3534_v54  ;;  %v7095_v19 = vpop.f32.mrb[61].mxu0  ;;  %v11191_v1 = vld [vmem:[#allocation4_spill] sm:$0xff]  ;;  %v11193_v48 = vld [vmem:[#allocation3_spill] sm:$0xff] }
 0x1c7   : > { %v6394_v21 = vcombine.low %v3526_v47, %v3535_v27  ;;  %v5285_v26 = vsel %vm8584_vm7, %v5283_v8, %v10531_v28  ;;  %v2216_v29 = vadd.f32 %v11188_v32, %v1975_v13  ;;  %v1986_v6 = vadd.f32 %v11191_v1, %v11190_v58  ;;  %v11195_v28 = vld [vmem:[#allocation12_spill] sm:$0xff]  ;;  %v7097_v53 = vpop.f32.mrb[62].mxu0  ;;  %v11198_v8 = vld [vmem:[#allocation66_spill] sm:$0xff]  ;;  %v11202_v27 = vld [vmem:[#allocation19_spill] sm:$0xff] }
 0x1c8   : > { %v5288_v3 = vrot.slane %v5287_v61, 4  ;;  %7568 = vmatprep.mubr.bf16.mxu1 %v6569_v56  ;;  %v1978_v40 = vadd.f32 %v11193_v48, %v11192_v45  ;;  %v1999_v54 = vadd.f32 %v11194_v7, %v10306_v5  ;;  %v1991_v41 = vadd.f32 %v11196_v60, %v11195_v28  ;;  %v11197_v39 = vld [vmem:[#allocation36_spill] sm:$0xff]  ;;  %v11201_v56 = vld [vmem:[#allocation18_spill] sm:$0xff]  ;;  %v7098_v5 = vpop.f32.mrb[63].mxu0  ;;  %v11203_v58 = vld [vmem:[#allocation17_spill] sm:$0xff] }
 0x1c9   : > { %4868 = vmatmul.mubr.bf16.gmra.mrb[140].mxu0 %v6394_v21  ;;  %v2002_v61 = vadd.f32 %v11198_v8, %v11197_v39  ;;  %v1994_v13 = vadd.f32 %v11200_v24, %v11199_v17  ;;  %v2015_v47 = vadd.f32 %v11201_v56, %v10424_v35  ;;  %v2007_v51 = vadd.f32 %v10355_v20, %v11202_v27  ;;  %v5181_v32 = vld [vmem:[#allocation2 + $0x11c] sm:$0x1]  ;;  %v11204_v45 = vld [vmem:[#allocation11_spill] sm:$0xff]  ;;  %v11206_v28 = vld [vmem:[#allocation9_spill] sm:$0xff] }
 0x1ca   : > { %v2227_v1 = vadd.f32 %v11203_v58, %v1986_v6  ;;  %v2219_v48 = vadd.f32 %v11204_v45, %v1978_v40  ;;  %v11205_v7 = vld [vmem:[#allocation43_spill] sm:$0xff]  ;;  %v10591_v60 = vadd.f32 %v11206_v28, %v1991_v41  ;;  %v5290_v39 = vshll.u32 %v5181_v32, 16  ;;  %v11207_v8 = vld [vmem:[#allocation44_spill] sm:$0xff]  ;;  %v11208_v35 = vld [vmem:[#allocation29_spill] sm:$0xff] }
 0x1cb   : > { %v10588_v21 = vadd.f32 %v11205_v7, %v1999_v54  ;;  %v10594_v17 = vadd.f32 %v11207_v8, %v2002_v61  ;;  %v2235_v24 = vadd.f32 %v11208_v35, %v1994_v13  ;;  %v10598_v20 = vadd.f32 %v10428_v33, %v2015_v47  ;;  %v11209_v40 = vld [vmem:[#allocation35_spill] sm:$0xff]  ;;  %v11210_v41 = vld [vmem:[#allocation46_spill] sm:$0xff]  ;;  %v11214_v45 = vld [vmem:[#allocation41_spill] sm:$0xff] }
 0x1cc   : > { %v10607_v6 = vadd.f32 %v10363_v2, %v2007_v51  ;;  %v2018_v54 = vadd.f32 %v11209_v40, %v10438_v18  ;;  %v2010_v61 = vadd.f32 %v10367_v22, %v11210_v41  ;;  %v7078_v13 = vadd.f32 %v10357_v9, %v10349_v10  ;;  %v11211_v18 = vld [vmem:[#allocation38_spill] sm:$0xff]  ;;  %v7100_v9 = vpop.f32.mrb[64].mxu0 }
 0x1cd   : > { %v5292_v56 = vrot.slane %v5290_v39, 5  ;;  %v7081_v33 = vadd.f32 %v10386_v62, %v10375_v42  ;;  %v7084_v47 = vadd.f32 %v10416_v34, %v10411_v63  ;;  %v7087_v2 = vadd.f32 %v10434_v30, %v10430_v52  ;;  %v7101_v52 = vpop.f32.mrb[65].mxu0 }
 0x1ce   : > { %v10622_v27 = vadd.f32 %v10442_v55, %v2018_v54  ;;  %v10625_v51 = vadd.f32 %v11211_v18, %v2010_v61  ;;  %v7578_v22 = vadd.f32 %v7078_v13, %v10502_v11  ;;  %v7090_v10 = vadd.f32 %v10486_v23, %v10479_v0  ;;  %v11212_v55 = vld [vmem:[#allocation40_spill] sm:$0xff]  ;;  %v7103_v0 = vpop.f32.mrb[66].mxu0 }
 0x1cf   : > { %v5293_v42 = vsel %vm8584_vm7, %v5288_v3, %v5292_v56  ;;  %v7586_v62 = vadd.f32 %v7081_v33, %v10514_v15  ;;  %v7574_v63 = vadd.f32 %v7084_v47, %v10489_v12  ;;  %v7582_v34 = vadd.f32 %v7087_v2, %v10511_v25  ;;  %v7104_v28 = vpop.f32.mrb[67].mxu0 }
 0x1d0   : > { %v6570_v30 = vcombine.low %v5285_v26, %v5293_v42  ;;  %v7579_v32 = vadd.f32 %v7578_v22, %v11212_v55  ;;  %v7594_v58 = vadd.f32 %v7090_v10, %v2216_v29  ;;  %v7093_v11 = vadd.f32 %v10499_v59, %v10493_v50 }
 0x1d1   : > { %v7587_v23 = vadd.f32 %v7586_v62, %v10396_v31  ;;  %v7575_v3 = vadd.f32 %v7574_v63, %v11213_v16  ;;  %v7583_v7 = vadd.f32 %v7582_v34, %v11214_v45  ;;  %v7096_v15 = vadd.f32 %v7095_v19, %v7094_v44 }
 0x1d2   : > { %7569 = vmatmul.mubr.bf16.gmra.mrb[60].mxu1 %v6570_v30  ;;  %v3297_v12 = vmul.f32 %v7579_v32, %v7579_v32  ;;  %v7595_v50 = vadd.f32 %v7594_v58, %v10459_v43  ;;  %v7602_v59 = vadd.f32 %v7093_v11, %v2219_v48  ;;  %v7099_v25 = vadd.f32 %v7098_v5, %v7097_v53 }
 0x1d3   : > { %v6793_v31 = vpack.c.bf16 %v7587_v23, %v7579_v32  ;;  %v3275_v26 = vadd.f32 %v7587_v23, %v7579_v32  ;;  %v3298_v29 = vmul.f32 %v7587_v23, %v7587_v23  ;;  %v3299_v39 = vmul.f32 %v7575_v3, %v7575_v3 }
 0x1d4   : > { %v6798_v8 = vpack.c.bf16 %v7583_v7, %v7575_v3  ;;  %v3300_v44 = vmul.f32 %v7583_v7, %v7583_v7  ;;  %v7603_v19 = vadd.f32 %v7602_v59, %v10471_v14  ;;  %v7590_v54 = vadd.f32 %v7096_v15, %v10557_v46 }
 0x1d5   : > { %6794 = vst [vmem:[%s10645_s19] sm:$0xff] %v6793_v31   ;;  %v3313_v35 = vadd.f32 %v3298_v29, %v3297_v12  ;;  %v3276_v40 = vadd.f32 %v7575_v3, %v3275_v26  ;;  %v7598_v41 = vadd.f32 %v7099_v25, %v2227_v1  ;;  %v3301_v61 = vmul.f32 %v7595_v50, %v7595_v50 }
 0x1d6   : > { %6885 = vst [vmem:[%s10645_s19 + $0x8] sm:$0xff] %v6798_v8   ;;  %v6803_v43 = vpack.c.bf16 %v7603_v19, %v7595_v50  ;;  %v7102_v48 = vadd.f32 %v7101_v52, %v7100_v9  ;;  %v7105_v53 = vadd.f32 %v7104_v28, %v7103_v0  ;;  %v7591_v56 = vadd.f32 %v7590_v54, %v10454_v49  ;;  %v7106_v0 = vpop.f32.mrb[68].mxu0 }
 0x1d7   : > { %v3314_v5 = vadd.f32 %v3313_v35, %v3299_v39  ;;  %v3277_v13 = vadd.f32 %v7583_v7, %v3276_v40  ;;  %v7599_v33 = vadd.f32 %v7598_v41, %v10465_v38  ;;  %v3302_v1 = vmul.f32 %v7603_v19, %v7603_v19  ;;  %v7107_v23 = vpop.f32.mrb[69].mxu0 }
 0x1d8   : > { %6886 = vst [vmem:[%s10645_s19 + $0x10] sm:$0xff] %v6803_v43   ;;  %v7610_v14 = vadd.f32 %v7102_v48, %v10591_v60  ;;  %v7618_v47 = vadd.f32 %v7105_v53, %v2235_v24  ;;  %v3303_v62 = vmul.f32 %v7591_v56, %v7591_v56  ;;  %v7474_v60 = vpop.f32.mrb[44].mxu1  ;;  %v7108_v45 = vadd.f32 %v7107_v23, %v7106_v0  ;;  %v7109_v7 = vpop.f32.mrb[70].mxu0 }
 0x1d9   : > { %v3315_v2 = vadd.f32 %v3314_v5, %v3300_v44  ;;  %v3278_v46 = vadd.f32 %v7595_v50, %v3277_v13  ;;  %v6808_v18 = vpack.c.bf16 %v7599_v33, %v7591_v56  ;;  %v3304_v34 = vmul.f32 %v7599_v33, %v7599_v33  ;;  %v3164_v55 = vpop.f32.mrb[45].mxu1  ;;  %v7110_v15 = vpop.f32.mrb[71].mxu0 }
 0x1da   : > { %v7611_v22 = vadd.f32 %v7610_v14, %v10533_v4  ;;  %v7619_v10 = vadd.f32 %v7618_v47, %v10550_v36  ;;  %v7475_v32 = vpop.f32.mrb[46].mxu1  ;;  %v7606_v12 = vadd.f32 %v7108_v45, %v10588_v21  ;;  %v7111_v50 = vadd.f32 %v7110_v15, %v7109_v7  ;;  %v7112_v35 = vpop.f32.mrb[72].mxu0 }
 0x1db   : > { %v3316_v9 = vadd.f32 %v3315_v2, %v3301_v61  ;;  %v3279_v42 = vadd.f32 %v7603_v19, %v3278_v46  ;;  %6887 = vst [vmem:[%s10645_s19 + $0x18] sm:$0xff] %v6808_v18   ;;  %v3167_v36 = vpop.f32.mrb[47].mxu1  ;;  %v7113_v40 = vpop.f32.mrb[73].mxu0 }
 0x1dc   : > { %v6813_v49 = vpack.c.bf16 %v7619_v10, %v7611_v22  ;;  %v3305_v30 = vmul.f32 %v7611_v22, %v7611_v22  ;;  %v3306_v4 = vmul.f32 %v7619_v10, %v7619_v10  ;;  %v7607_v59 = vadd.f32 %v7606_v12, %v10523_v57  ;;  %v7115_v21 = vpop.f32.mrb[74].mxu0 }
 0x1dd   : > { %v3317_v63 = vadd.f32 %v3316_v9, %v3302_v1  ;;  %v3280_v38 = vadd.f32 %v7591_v56, %v3279_v42  ;;  %v7614_v25 = vadd.f32 %v7111_v50, %v10594_v17  ;;  %v7114_v41 = vadd.f32 %v7113_v40, %v7112_v35  ;;  %v7116_v61 = vpop.f32.mrb[75].mxu0 }
 0x1de   : > { %6888 = vst [vmem:[%s10645_s19 + $0x20] sm:$0xff] %v6813_v49   ;;  %v3307_v26 = vmul.f32 %v7607_v59, %v7607_v59  ;;  %v7117_v43 = vadd.f32 %v7116_v61, %v7115_v21 }
 0x1df   : > { %v3318_v52 = vadd.f32 %v3317_v63, %v3303_v62  ;;  %v3281_v24 = vadd.f32 %v7599_v33, %v3280_v38  ;;  %v7615_v29 = vadd.f32 %v7614_v25, %v10542_v37  ;;  %v7626_v57 = vadd.f32 %v7114_v41, %v10607_v6 }
 0x1e0   : > { %v7634_v48 = vadd.f32 %v7117_v43, %v10625_v51 }
 0x1e1   : > { %v3319_v58 = vadd.f32 %v3318_v52, %v3304_v34  ;;  %v3282_v11 = vadd.f32 %v7611_v22, %v3281_v24  ;;  %v6818_v8 = vpack.c.bf16 %v7615_v29, %v7607_v59  ;;  %v3308_v19 = vmul.f32 %v7615_v29, %v7615_v29 }
 0x1e2   : > { %v7627_v17 = vadd.f32 %v7626_v57, %v3164_v55  ;;  %v7635_v5 = vadd.f32 %v7634_v48, %v3167_v36 }
 0x1e3   : > { %v3320_v16 = vadd.f32 %v3319_v58, %v3305_v30  ;;  %v3283_v3 = vadd.f32 %v7619_v10, %v3282_v11  ;;  %6889 = vst [vmem:[%s10645_s19 + $0x28] sm:$0xff] %v6818_v8  }
 0x1e4   : > { %v3309_v37 = vmul.f32 %v7627_v17, %v7627_v17  ;;  %v6823_v56 = vpack.c.bf16 %v7635_v5, %v7627_v17  ;;  %v3310_v14 = vmul.f32 %v7635_v5, %v7635_v5 }
 0x1e5   : > { %v3321_v28 = vadd.f32 %v3320_v16, %v3306_v4  ;;  %v3284_v31 = vadd.f32 %v7607_v59, %v3283_v3 }
 0x1e6   : > { %6890 = vst [vmem:[%s10645_s19 + $0x30] sm:$0xff] %v6823_v56  }
 0x1e7   : > { %v3322_v39 = vadd.f32 %v3321_v28, %v3307_v26  ;;  %v3285_v44 = vadd.f32 %v7615_v29, %v3284_v31 }
 0x1e9   : > { %v3323_v54 = vadd.f32 %v3322_v39, %v3308_v19  ;;  %v3286_v53 = vadd.f32 %v7627_v17, %v3285_v44 }
 0x1eb   : > { %v3324_v13 = vadd.f32 %v3323_v54, %v3309_v37  ;;  %v3287_v33 = vadd.f32 %v7635_v5, %v3286_v53 }
 0x1ed   : > { %v3325_v47 = vadd.f32 %v3324_v13, %v3310_v14 }
 0x1f0   : > { %v7118_v2 = vpop.f32.mrb[76].mxu0 }
 0x1f1   : > { %v7119_v46 = vpop.f32.mrb[77].mxu0 }
 0x1f2   : > { %v7120_v1 = vadd.f32 %v7119_v46, %v7118_v2  ;;  %v7121_v18 = vpop.f32.mrb[78].mxu0 }
 0x1f3   : > { %v7122_v22 = vpop.f32.mrb[79].mxu0 }
 0x1f4   : > { %v7622_v6 = vadd.f32 %v7120_v1, %v10598_v20  ;;  %v7123_v10 = vadd.f32 %v7122_v22, %v7121_v18 }
 0x1f6   : > { %v7623_v9 = vadd.f32 %v7622_v6, %v7474_v60  ;;  %v7630_v51 = vadd.f32 %v7123_v10, %v10622_v27 }
 0x1f8   : > { %v3288_v42 = vadd.f32 %v7623_v9, %v3287_v33  ;;  %v3311_v62 = vmul.f32 %v7623_v9, %v7623_v9  ;;  %v7631_v49 = vadd.f32 %v7630_v51, %v7475_v32 }
 0x1fa   : > { %v3326_v63 = vadd.f32 %v3325_v47, %v3311_v62  ;;  %v6828_v38 = vpack.c.bf16 %v7631_v49, %v7623_v9  ;;  %v10670_v34 = vadd.f32 %v7631_v49, %v3288_v42  ;;  %v3312_v52 = vmul.f32 %v7631_v49, %v7631_v49 }
 0x1fc   : > { %6891 = vst [vmem:[%s10645_s19 + $0x38] sm:$0xff] %v6828_v38   ;;  %v10673_v24 = vadd.f32 %v3326_v63, %v3312_v52 }
 0x1fd   : > { %v7156_v30 = vpop.f32.mrb[80].mxu0 }
 0x1fe   : > { %v7157_v55 = vpop.f32.mrb[81].mxu0 }
 0x1ff   : > { %v10675_v58 = vadd.f32 %v7157_v55, %v7156_v30  ;;  %v7159_v20 = vpop.f32.mrb[82].mxu0 }
 0x200   : > { %v7160_v11 = vpop.f32.mrb[83].mxu0 }
 0x201   : > { %v10677_v60 = vadd.f32 %v7160_v11, %v7159_v20 }
 0x20f   : > { %v7162_v27 = vpop.f32.mrb[84].mxu0 }
 0x210   : > { %v7163_v4 = vpop.f32.mrb[85].mxu0 }
 0x211   : > { %v10679_v0 = vadd.f32 %v7163_v4, %v7162_v27  ;;  %v7165_v32 = vpop.f32.mrb[86].mxu0 }
 0x212   : > { %v7166_v36 = vpop.f32.mrb[87].mxu0 }
 0x213   : > { %v10681_v23 = vadd.f32 %v7166_v36, %v7165_v32 }
 0x21c   : > { %v7168_v16 = vpop.f32.mrb[88].mxu0 }
 0x21d   : > { %v7169_v3 = vpop.f32.mrb[89].mxu0 }
 0x21e   : > { %v10683_v45 = vadd.f32 %v7169_v3, %v7168_v16  ;;  %v7171_v7 = vpop.f32.mrb[90].mxu0 }
 0x21f   : > { %v7172_v15 = vpop.f32.mrb[91].mxu0 }
 0x220   : > { %v10685_v28 = vadd.f32 %v7172_v15, %v7171_v7 }
 0x229   : > { %v7174_v12 = vpop.f32.mrb[92].mxu0 }
 0x22a   : > { %v7175_v50 = vpop.f32.mrb[93].mxu0 }
 0x22b   : > { %v10687_v59 = vadd.f32 %v7175_v50, %v7174_v12  ;;  %v7177_v25 = vpop.f32.mrb[94].mxu0 }
 0x22c   : > { %v7178_v31 = vpop.f32.mrb[95].mxu0 }
 0x22d   : > { %v10689_v26 = vadd.f32 %v7178_v31, %v7177_v25 }
 0x236   : > { %v7180_v29 = vpop.f32.mrb[96].mxu0 }
 0x237   : > { %v7181_v39 = vpop.f32.mrb[97].mxu0  ;;  %v7316_v35 = vpop.f32.mrb[64].mxu1 }
 0x238   : > { %v10691_v8 = vadd.f32 %v7181_v39, %v7180_v29  ;;  %v7183_v44 = vpop.f32.mrb[98].mxu0  ;;  %v7317_v54 = vpop.f32.mrb[65].mxu1 }
 0x239   : > { %v7184_v19 = vpop.f32.mrb[99].mxu0  ;;  %v7318_v41 = vadd.f32 %v7317_v54, %v7316_v35  ;;  %v7319_v21 = vpop.f32.mrb[66].mxu1 }
 0x23a   : > { %v10693_v40 = vadd.f32 %v7184_v19, %v7183_v44  ;;  %v7320_v61 = vpop.f32.mrb[67].mxu1 }
 0x23b   : > { %v7321_v57 = vadd.f32 %v7320_v61, %v7319_v21 }
 0x23f   : > { %v7186_v43 = vpop.f32.mrb[100].mxu0  ;;  %v7322_v5 = vpop.f32.mrb[68].mxu1 }
 0x240   : > { %v7187_v17 = vpop.f32.mrb[101].mxu0  ;;  %v7323_v56 = vpop.f32.mrb[69].mxu1 }
 0x241   : > { %v10695_v48 = vadd.f32 %v7187_v17, %v7186_v43  ;;  %v7189_v53 = vpop.f32.mrb[102].mxu0  ;;  %v7324_v33 = vadd.f32 %v7323_v56, %v7322_v5  ;;  %v7325_v14 = vpop.f32.mrb[70].mxu1 }
 0x242   : > { %v7190_v37 = vpop.f32.mrb[103].mxu0  ;;  %v7326_v47 = vpop.f32.mrb[71].mxu1 }
 0x243   : > { %v10697_v13 = vadd.f32 %v7190_v37, %v7189_v53  ;;  %v7327_v2 = vadd.f32 %v7326_v47, %v7325_v14 }
 0x247   : > { %v7192_v46 = vpop.f32.mrb[104].mxu0  ;;  %v7328_v10 = vpop.f32.mrb[72].mxu1 }
 0x248   : > { %v7193_v1 = vpop.f32.mrb[105].mxu0  ;;  %v7329_v51 = vpop.f32.mrb[73].mxu1 }
 0x249   : > { %v10699_v18 = vadd.f32 %v7193_v1, %v7192_v46  ;;  %v7195_v22 = vpop.f32.mrb[106].mxu0  ;;  %v7330_v42 = vadd.f32 %v7329_v51, %v7328_v10  ;;  %v7331_v62 = vpop.f32.mrb[74].mxu1 }
 0x24a   : > { %v7196_v6 = vpop.f32.mrb[107].mxu0  ;;  %v7332_v49 = vpop.f32.mrb[75].mxu1 }
 0x24b   : > { %v10701_v9 = vadd.f32 %v7196_v6, %v7195_v22  ;;  %v7333_v63 = vadd.f32 %v7332_v49, %v7331_v62 }
 0x250   : > { %v7198_v38 = vpop.f32.mrb[108].mxu0  ;;  %v7334_v11 = vpop.f32.mrb[76].mxu1 }
 0x251   : > { %v7199_v52 = vpop.f32.mrb[109].mxu0  ;;  %v7335_v4 = vpop.f32.mrb[77].mxu1 }
 0x252   : > { %v10703_v30 = vadd.f32 %v7199_v52, %v7198_v38  ;;  %v7201_v55 = vpop.f32.mrb[110].mxu0  ;;  %v10707_v32 = vadd.f32 %v7335_v4, %v7334_v11  ;;  %v7337_v36 = vpop.f32.mrb[78].mxu1 }
 0x253   : > { %v7202_v20 = vpop.f32.mrb[111].mxu0  ;;  %v7338_v16 = vpop.f32.mrb[79].mxu1 }
 0x254   : > { %v10705_v27 = vadd.f32 %v7202_v20, %v7201_v55  ;;  %v10709_v3 = vadd.f32 %v7338_v16, %v7337_v36 }
 0x258   : > { %v7236_v7 = vpop.f32.mrb[112].mxu0  ;;  %v7340_v31 = vpop.f32.mrb[80].mxu1 }
 0x259   : > { %v7237_v15 = vpop.f32.mrb[113].mxu0  ;;  %v7341_v44 = vpop.f32.mrb[81].mxu1 }
 0x25a   : > { %v7238_v12 = vadd.f32 %v7237_v15, %v7236_v7  ;;  %v7239_v50 = vpop.f32.mrb[114].mxu0  ;;  %v10712_v19 = vadd.f32 %v7341_v44, %v7340_v31  ;;  %v7343_v35 = vpop.f32.mrb[82].mxu1 }
 0x25b   : > { %v7240_v25 = vpop.f32.mrb[115].mxu0  ;;  %v7344_v61 = vpop.f32.mrb[83].mxu1 }
 0x25c   : > { %v7639_v29 = vadd.f32 %v7238_v12, %v10675_v58  ;;  %v7241_v39 = vadd.f32 %v7240_v25, %v7239_v50  ;;  %v10715_v43 = vadd.f32 %v7344_v61, %v7343_v35 }
 0x25e   : > { %v7645_v54 = vadd.f32 %v7241_v39, %v10677_v60  ;;  %v7640_v21 = vadd.f32 %v7639_v29, %v7318_v41 }
 0x260   : > { %v10717_v53 = vadd.f32 %v7645_v54, %v7321_v57 }
 0x261   : > { %v7242_v17 = vpop.f32.mrb[116].mxu0  ;;  %v7346_v47 = vpop.f32.mrb[84].mxu1 }
 0x262   : > { %v7243_v37 = vpop.f32.mrb[117].mxu0  ;;  %v7347_v1 = vpop.f32.mrb[85].mxu1 }
 0x263   : > { %v7244_v5 = vadd.f32 %v7243_v37, %v7242_v17  ;;  %v7245_v56 = vpop.f32.mrb[118].mxu0  ;;  %v10720_v22 = vadd.f32 %v7347_v1, %v7346_v47  ;;  %v7349_v6 = vpop.f32.mrb[86].mxu1 }
 0x264   : > { %v7246_v14 = vpop.f32.mrb[119].mxu0  ;;  %v7350_v10 = vpop.f32.mrb[87].mxu1 }
 0x265   : > { %v7636_v58 = vadd.f32 %v7244_v5, %v10679_v0  ;;  %v7247_v46 = vadd.f32 %v7246_v14, %v7245_v56  ;;  %v10723_v51 = vadd.f32 %v7350_v10, %v7349_v6 }
 0x267   : > { %v7642_v60 = vadd.f32 %v7247_v46, %v10681_v23  ;;  %v7637_v41 = vadd.f32 %v7636_v58, %v7324_v33 }
 0x269   : > { %v7643_v62 = vadd.f32 %v7642_v60, %v7327_v2 }
 0x26a   : > { %v7248_v57 = vpop.f32.mrb[120].mxu0 }
 0x26b   : > { %v7249_v49 = vpop.f32.mrb[121].mxu0  ;;  %v7352_v20 = vpop.f32.mrb[88].mxu1 }
 0x26c   : > { %v7250_v38 = vadd.f32 %v7249_v49, %v7248_v57  ;;  %v7251_v52 = vpop.f32.mrb[122].mxu0  ;;  %v7353_v4 = vpop.f32.mrb[89].mxu1 }
 0x26d   : > { %v7252_v55 = vpop.f32.mrb[123].mxu0  ;;  %v10726_v36 = vadd.f32 %v7353_v4, %v7352_v20  ;;  %v7355_v16 = vpop.f32.mrb[90].mxu1 }
 0x26e   : > { %v7651_v0 = vadd.f32 %v7250_v38, %v10683_v45  ;;  %v7253_v11 = vadd.f32 %v7252_v55, %v7251_v52  ;;  %v7356_v7 = vpop.f32.mrb[91].mxu1 }
 0x26f   : > { %v10729_v15 = vadd.f32 %v7356_v7, %v7355_v16 }
 0x270   : > { %v7657_v23 = vadd.f32 %v7253_v11, %v10685_v28  ;;  %v7652_v33 = vadd.f32 %v7651_v0, %v7330_v42 }
 0x272   : > { %v10731_v2 = vadd.f32 %v7657_v23, %v7333_v63 }
 0x274   : > { %v7254_v12 = vpop.f32.mrb[124].mxu0  ;;  %v7358_v39 = vpop.f32.mrb[92].mxu1 }
 0x275   : > { %v7255_v50 = vpop.f32.mrb[125].mxu0  ;;  %v7359_v35 = vpop.f32.mrb[93].mxu1 }
 0x276   : > { %v7256_v25 = vadd.f32 %v7255_v50, %v7254_v12  ;;  %v7257_v31 = vpop.f32.mrb[126].mxu0  ;;  %v10734_v54 = vadd.f32 %v7359_v35, %v7358_v39  ;;  %v7361_v61 = vpop.f32.mrb[94].mxu1 }
 0x277   : > { %v7258_v29 = vpop.f32.mrb[127].mxu0  ;;  %v7362_v17 = vpop.f32.mrb[95].mxu1 }
 0x278   : > { %v7648_v45 = vadd.f32 %v7256_v25, %v10687_v59  ;;  %v7259_v44 = vadd.f32 %v7258_v29, %v7257_v31  ;;  %v10738_v37 = vadd.f32 %v7362_v17, %v7361_v61 }
 0x27a   : > { %v7654_v28 = vadd.f32 %v7259_v44, %v10689_v26  ;;  %v7649_v42 = vadd.f32 %v7648_v45, %v10707_v32 }
 0x27c   : > { %v7655_v5 = vadd.f32 %v7654_v28, %v10709_v3 }
 0x27d   : > { %v7260_v63 = vpop.f32.mrb[128].mxu0 }
 0x27e   : > { %v7261_v56 = vpop.f32.mrb[129].mxu0  ;;  %v7558_v59 = vpop.f32.mrb[48].mxu1 }
 0x27f   : > { %v7262_v14 = vadd.f32 %v7261_v56, %v7260_v63  ;;  %v7263_v47 = vpop.f32.mrb[130].mxu0  ;;  %v7638_v6 = vadd.f32 %v7637_v41, %v7558_v59  ;;  %v5729_v60 = vpop.f32.mrb[49].mxu1 }
 0x280   : > { %v7264_v58 = vpop.f32.mrb[131].mxu0  ;;  %v7641_v10 = vadd.f32 %v7640_v21, %v5729_v60  ;;  %v7559_v26 = vpop.f32.mrb[50].mxu1 }
 0x281   : > { %v7663_v46 = vadd.f32 %v7262_v14, %v10691_v8  ;;  %v7265_v1 = vadd.f32 %v7264_v58, %v7263_v47  ;;  %v7644_v49 = vadd.f32 %v7643_v62, %v7559_v26  ;;  %v5732_v3 = vpop.f32.mrb[51].mxu1  ;;  %v5912_v16 = vmul.f32 %v7638_v6, %v7638_v6 }
 0x282   : > { %v7647_v38 = vadd.f32 %v10717_v53, %v5732_v3  ;;  %v5910_v8 = vmul.f32 %v7641_v10, %v7641_v10 }
 0x283   : > { %v7669_v32 = vadd.f32 %v7265_v1, %v10693_v40  ;;  %v7664_v57 = vadd.f32 %v7663_v46, %v10712_v19  ;;  %v6838_v20 = vpack.c.bf16 %v7644_v49, %v7638_v6 }
 0x284   : > { %v6833_v0 = vpack.c.bf16 %v7647_v38, %v7641_v10  ;;  %v5888_v21 = vadd.f32 %v7647_v38, %v7641_v10  ;;  %v5911_v11 = vmul.f32 %v7647_v38, %v7647_v38 }
 0x285   : > { %v10746_v55 = vadd.f32 %v7669_v32, %v10715_v43  ;;  %6893 = vst [vmem:[%s10645_s19 + $0x48] sm:$0xff] %v6838_v20   ;;  %v5913_v43 = vmul.f32 %v7644_v49, %v7644_v49 }
 0x286   : > { %6892 = vst [vmem:[%s10645_s19 + $0x40] sm:$0xff] %v6833_v0   ;;  %v5889_v62 = vadd.f32 %v7638_v6, %v5888_v21  ;;  %v5926_v23 = vadd.f32 %v5911_v11, %v5910_v8 }
 0x287   : > { %v7266_v52 = vpop.f32.mrb[132].mxu0 }
 0x288   : > { %v7267_v41 = vpop.f32.mrb[133].mxu0  ;;  %v5927_v31 = vadd.f32 %v5926_v23, %v5912_v16  ;;  %v5890_v39 = vadd.f32 %v7644_v49, %v5889_v62 }
 0x289   : > { %v7268_v4 = vadd.f32 %v7267_v41, %v7266_v52  ;;  %v7269_v40 = vpop.f32.mrb[134].mxu0  ;;  %v7562_v7 = vpop.f32.mrb[52].mxu1 }
 0x28a   : > { %v7270_v19 = vpop.f32.mrb[135].mxu0  ;;  %v7650_v50 = vadd.f32 %v7649_v42, %v7562_v7  ;;  %v5745_v25 = vpop.f32.mrb[53].mxu1  ;;  %v5928_v56 = vadd.f32 %v5927_v31, %v5913_v43 }
 0x28b   : > { %v7660_v53 = vadd.f32 %v7268_v4, %v10695_v48  ;;  %v7271_v12 = vadd.f32 %v7270_v19, %v7269_v40  ;;  %v7653_v29 = vadd.f32 %v7652_v33, %v5745_v25  ;;  %v7563_v45 = vpop.f32.mrb[54].mxu1 }
 0x28c   : > { %v7656_v35 = vadd.f32 %v7655_v5, %v7563_v45  ;;  %v5748_v61 = vpop.f32.mrb[55].mxu1 }
 0x28d   : > { %v7666_v44 = vadd.f32 %v7271_v12, %v10697_v13  ;;  %v7661_v28 = vadd.f32 %v7660_v53, %v10720_v22  ;;  %v5891_v17 = vadd.f32 %v7653_v29, %v5890_v39  ;;  %v5914_v63 = vmul.f32 %v7653_v29, %v7653_v29 }
 0x28e   : > { %v7659_v48 = vadd.f32 %v10731_v2, %v5748_v61  ;;  %v6848_v42 = vpack.c.bf16 %v7656_v35, %v7650_v50  ;;  %v5916_v22 = vmul.f32 %v7650_v50, %v7650_v50  ;;  %v5917_v2 = vmul.f32 %v7656_v35, %v7656_v35 }
 0x28f   : > { %v7667_v33 = vadd.f32 %v7666_v44, %v10723_v51  ;;  %v5929_v58 = vadd.f32 %v5928_v56, %v5914_v63  ;;  %v3290_v56 = vrot.slane %v10670_v34, 4 }
 0x290   : > { %v7272_v14 = vpop.f32.mrb[136].mxu0  ;;  %v6843_v59 = vpack.c.bf16 %v7659_v48, %v7653_v29  ;;  %v5892_v46 = vadd.f32 %v7659_v48, %v5891_v17  ;;  %v5915_v13 = vmul.f32 %v7659_v48, %v7659_v48  ;;  %6895 = vst [vmem:[%s10645_s19 + $0x58] sm:$0xff] %v6848_v42  }
 0x291   : > { %v7273_v47 = vpop.f32.mrb[137].mxu0 }
 0x292   : > { %v7275_v5 = vpop.f32.mrb[138].mxu0  ;;  %v7274_v1 = vadd.f32 %v7273_v47, %v7272_v14  ;;  %6894 = vst [vmem:[%s10645_s19 + $0x50] sm:$0xff] %v6843_v59   ;;  %v5893_v60 = vadd.f32 %v7650_v50, %v5892_v46  ;;  %v5930_v10 = vadd.f32 %v5929_v58, %v5915_v13  ;;  %v3328_v58 = vrot.slane %v10673_v24, 4 }
 0x293   : > { %v7276_v6 = vpop.f32.mrb[139].mxu0 }
 0x294   : > { %v7277_v32 = vadd.f32 %v7276_v6, %v7275_v5  ;;  %v7675_v3 = vadd.f32 %v7274_v1, %v10699_v18  ;;  %v5931_v51 = vadd.f32 %v5930_v10, %v5916_v22  ;;  %v5894_v8 = vadd.f32 %v7656_v35, %v5893_v60 }
 0x295   : > { %v7566_v26 = vpop.f32.mrb[56].mxu1  ;;  %v3329_v60 = vadd.f32 %v3328_v58, %v10673_v24 }
 0x296   : > { %v7662_v49 = vadd.f32 %v7661_v28, %v7566_v26  ;;  %v5761_v38 = vpop.f32.mrb[57].mxu1  ;;  %v7681_v41 = vadd.f32 %v7277_v32, %v10701_v9  ;;  %v7676_v11 = vadd.f32 %v7675_v3, %v10726_v36  ;;  %v5932_v16 = vadd.f32 %v5931_v51, %v5917_v2 }
 0x297   : > { %v7665_v52 = vadd.f32 %v7664_v57, %v5761_v38  ;;  %v7567_v20 = vpop.f32.mrb[58].mxu1  ;;  %v3330_v38 = vrot.slane %v3329_v60, 2 }
 0x298   : > { %v7668_v0 = vadd.f32 %v7667_v33, %v7567_v20  ;;  %v5764_v21 = vpop.f32.mrb[59].mxu1  ;;  %v7682_v23 = vadd.f32 %v7681_v41, %v10729_v15  ;;  %v5920_v25 = vmul.f32 %v7662_v49, %v7662_v49 }
 0x299   : > { %v5895_v4 = vadd.f32 %v7665_v52, %v5894_v8  ;;  %v5918_v40 = vmul.f32 %v7665_v52, %v7665_v52  ;;  %v7671_v19 = vadd.f32 %v10746_v55, %v5764_v21  ;;  %v3331_v41 = vadd.f32 %v3330_v38, %v3329_v60 }
 0x29a   : > { %v6858_v62 = vpack.c.bf16 %v7668_v0, %v7662_v49  ;;  %v5921_v45 = vmul.f32 %v7668_v0, %v7668_v0 }
 0x29b   : > { %v5933_v57 = vadd.f32 %v5932_v16, %v5918_v40  ;;  %v6853_v7 = vpack.c.bf16 %v7671_v19, %v7665_v52  ;;  %v5896_v53 = vadd.f32 %v7671_v19, %v5895_v4  ;;  %v5919_v12 = vmul.f32 %v7671_v19, %v7671_v19 }
 0x29c   : > { %v7278_v18 = vpop.f32.mrb[140].mxu0  ;;  %6897 = vst [vmem:[%s10645_s19 + $0x68] sm:$0xff] %v6858_v62   ;;  %v3332_v40 = vrot.slane %v3331_v41, 1 }
 0x29d   : > { %v7279_v9 = vpop.f32.mrb[141].mxu0  ;;  %6896 = vst [vmem:[%s10645_s19 + $0x60] sm:$0xff] %v6853_v7   ;;  %v5897_v36 = vadd.f32 %v7662_v49, %v5896_v53  ;;  %v5934_v31 = vadd.f32 %v5933_v57, %v5919_v12 }
 0x29e   : > { %v7280_v43 = vadd.f32 %v7279_v9, %v7278_v18  ;;  %v7281_v50 = vpop.f32.mrb[142].mxu0  ;;  %v3333_v57 = vadd.f32 %v3332_v40, %v3331_v41 }
 0x29f   : > { %v7282_v29 = vpop.f32.mrb[143].mxu0  ;;  %v5935_v44 = vadd.f32 %v5934_v31, %v5920_v25  ;;  %v5898_v35 = vadd.f32 %v7668_v0, %v5897_v36 }
 0x2a0   : > { %v7672_v39 = vadd.f32 %v7280_v43, %v10703_v30  ;;  %v7283_v55 = vadd.f32 %v7282_v29, %v7281_v50 }
 0x2a1   : > { %v5936_v28 = vadd.f32 %v5935_v44, %v5921_v45 }
 0x2a2   : > { %v7673_v15 = vadd.f32 %v7672_v39, %v10734_v54  ;;  %v7678_v61 = vadd.f32 %v7283_v55, %v10705_v27  ;;  %v3291_v27 = vadd.f32 %v3290_v56, %v10670_v34 }
 0x2a4   : > { %v7679_v17 = vadd.f32 %v7678_v61, %v10738_v37  ;;  %v3292_v2 = vrot.slane %v3291_v27, 2 }
 0x2a5   : > { %v7570_v63 = vpop.f32.mrb[60].mxu1 }
 0x2a6   : > { %v7674_v48 = vadd.f32 %v7673_v15, %v7570_v63  ;;  %v5777_v14 = vpop.f32.mrb[61].mxu1  ;;  %v3293_v34 = vadd.f32 %v3292_v2, %v3291_v27 }
 0x2a7   : > { %v7677_v42 = vadd.f32 %v7676_v11, %v5777_v14  ;;  %v7571_v47 = vpop.f32.mrb[62].mxu1 }
 0x2a8   : > { %v7680_v30 = vadd.f32 %v7679_v17, %v7571_v47  ;;  %v5780_v33 = vpop.f32.mrb[63].mxu1  ;;  %v5924_v37 = vmul.f32 %v7674_v48, %v7674_v48  ;;  %v3294_v11 = vrot.slane %v3293_v34, 1 }
 0x2a9   : > { %v5899_v59 = vadd.f32 %v7677_v42, %v5898_v35  ;;  %v5922_v54 = vmul.f32 %v7677_v42, %v7677_v42  ;;  %v7683_v46 = vadd.f32 %v7682_v23, %v5780_v33 }
 0x2aa   : > { %v6868_v13 = vpack.c.bf16 %v7680_v30, %v7674_v48  ;;  %v5925_v10 = vmul.f32 %v7680_v30, %v7680_v30  ;;  %v3295_v62 = vadd.f32 %v3294_v11, %v3293_v34 }
 0x2ab   : > { %v5937_v5 = vadd.f32 %v5936_v28, %v5922_v54  ;;  %v6863_v1 = vpack.c.bf16 %v7683_v46, %v7677_v42  ;;  %v5900_v6 = vadd.f32 %v7683_v46, %v5899_v59  ;;  %v5923_v22 = vmul.f32 %v7683_v46, %v7683_v46 }
 0x2ac   : > { %6899 = vst [vmem:[%s10645_s19 + $0x78] sm:$0xff] %v6868_v13  }
 0x2ad   : > { %6898 = vst [vmem:[%s10645_s19 + $0x70] sm:$0xff] %v6863_v1   ;;  %v5901_v26 = vadd.f32 %v7674_v48, %v5900_v6  ;;  %v5938_v32 = vadd.f32 %v5937_v5, %v5923_v22 }
 0x2af   : > { %v5902_v49 = vadd.f32 %v7680_v30, %v5901_v26  ;;  %v5939_v3 = vadd.f32 %v5938_v32, %v5924_v37 }
 0x2b1   : > { %v5903_v51 = vrot.slane %v5902_v49, 4  ;;  %v5940_v52 = vadd.f32 %v5939_v3, %v5925_v10 }
 0x2b3   : > { %v5904_v8 = vadd.f32 %v5903_v51, %v5902_v49  ;;  %v5941_v20 = vrot.slane %v5940_v52, 4 }
 0x2b5   : > { %v5905_v0 = vrot.slane %v5904_v8, 2  ;;  %v5942_v21 = vadd.f32 %v5941_v20, %v5940_v52 }
 0x2b7   : > { %v5906_v24 = vadd.f32 %v5905_v0, %v5904_v8  ;;  %v5943_v4 = vrot.slane %v5942_v21, 2 }
 0x2b9   : > { %v5907_v16 = vrot.slane %v5906_v24, 1  ;;  %v5944_v19 = vadd.f32 %v5943_v4, %v5942_v21 }
 0x2bb   : > { %v5908_v18 = vadd.f32 %v5907_v16, %v5906_v24  ;;  %v5945_v23 = vrot.slane %v5944_v19, 1 }
 0x2bd   : > { %v5909_v7 = vadd.f32 %v5908_v18, %v3295_v62  ;;  %v5946_v53 = vadd.f32 %v5945_v23, %v5944_v19 }
 0x2bf   : > { %v5947_v12 = vadd.f32 %v5946_v53, %v3333_v57  ;;  %5948 = vst [vmem:[%s266_s20] sm:$0x1] %v5909_v7 }
 0x2c1   : > { %5949 = vst [vmem:[%s269_s26] sm:$0x1] %v5947_v12 }
 0x2c2 PF: > { %s17_s21 = sadd.s32 1, %s7958_s21  }
 0x2c3   : > { %p14_p5 = scmp.ge.s32.totalorder %s17_s21, 4  }
 0x2c5   :  { %16 = sbr.rel (!%p14_p5) target bundleno = 1 (0x1), region = 97 }

</bundles_post_ra>
